<compile_context>
chip_gen: v5e
topology: v5e:2x2
jax: 0.10.0
libtpu: 0.0.40
codegen_flags: <defaults>
</compile_context>

<pallas_src>
import math

import jax
import jax.numpy as jnp
from jax.experimental import pallas as pl
from jax.experimental.pallas import tpu as pltpu


# ---------------------------------------------------------------------------
# Weight preprocessing: fold nearest-2x into the 3x3 conv and merge shared taps.
# For output row 2i+a, the padded-input row offsets of the 3 conv taps are
#   a=0 -> (0, 1, 1)   and   a=1 -> (1, 1, 2)
# i.e. only 2 distinct offsets per parity; taps sharing an offset are summed.
# Same for columns.  Result: w_eff[a, b, dr, dc] with
#   out[2i+a, 2j+b] = sum_{dr,dc in {0,1}} xp[i+a+dr, j+b+dc] @ w_eff[a,b,dr,dc] + bias
# ---------------------------------------------------------------------------
def _merge_taps(w_hwio):
    w = w_hwio                                    # (3, 3, Cin, Cout), indexed [kh, kw]
    row = [jnp.stack([w[0], w[1] + w[2]]),        # a=0: offsets (0,1) <- kh {0}, {1,2}
           jnp.stack([w[0] + w[1], w[2]])]        # a=1: offsets (1,2) <- kh {0,1}, {2}
    per_a = []
    for a in range(2):
        r = row[a]                                # (2, 3, Cin, Cout), indexed [dr, kw]
        col0 = jnp.stack([r[:, 0], r[:, 1] + r[:, 2]], axis=1)   # b=0: (2, 2, Cin, Cout)
        col1 = jnp.stack([r[:, 0] + r[:, 1], r[:, 2]], axis=1)   # b=1
        per_a.append(jnp.stack([col0, col1]))     # (2, 2, 2, Cin, Cout) [b, dr, dc]
    return jnp.stack(per_a)                       # (2, 2, 2, 2, Cin, Cout) [a, b, dr, dc]


def _round_up(v, m):
    return -(-v // m) * m


# ---------------------------------------------------------------------------
# Tiling policy: honest, generation-aware VMEM budget.
# ---------------------------------------------------------------------------
def _per_step_vmem_bytes(nN, H, W, C, itemsize):
    """Per-grid-step VMEM estimate with layout padding: double-buffered pipeline blocks,
    padded scratch, K-concatenated MXU operands, and the f32 accumulator."""
    lane_c = _round_up(C, 128)
    w_sub = _round_up(W, 8)
    in_blk = nN * H * w_sub * lane_c * itemsize
    out_blk = 4 * nN * H * w_sub * lane_c * itemsize
    w_blk = 4 * _round_up(4 * C, 8) * lane_c * itemsize       # (2,2,4C,C) merged weights
    b_blk = 8 * lane_c * 4
    scratch = nN * (H + 2) * _round_up(W + 2, 8) * lane_c * itemsize
    m_sub = _round_up(nN * H * W, 8)
    xcat = m_sub * _round_up(4 * C, 128) * itemsize           # (M, 4*Cin) MXU operand
    acc = m_sub * lane_c * 4                                  # f32 accumulator
    win = m_sub * lane_c * itemsize                           # one shifted-window copy
    temps = 2 * xcat + acc + 3 * win                          # scheduling / spill slack
    return 2 * (in_blk + out_blk + w_blk + b_blk) + scratch + temps + (2 << 20)


def _vmem_budget():
    """Physical VMEM per TensorCore, block budget with headroom, and a 2-TC heuristic."""
    phys = 64 << 20                                           # conservative fallback
    try:
        info = pltpu.get_tpu_info()
        phys = int(getattr(info, "vmem_capacity_bytes", phys))
    except Exception:
        pass
    two_tc = phys <= (64 << 20)        # v7x: 64 MiB/TC and 2 TensorCores per chip
    cap = int(phys * 0.70)             # block budget; leaves headroom under the hard limit
    return phys, cap, two_tc


def _choose_images_per_step(N, fits, two_tc):
    """Largest per-step image count that fits the budget; prefers an even grid extent on
    2-TensorCore chips and penalizes per-step overhead / padded-tail waste."""
    n_max = 1
    for n in range(1, N + 1):          # fits() is monotone in n
        if fits(n):
            n_max = n
        else:
            break
    best_n, best_key = 1, None
    for n in range(1, n_max + 1):
        g = -(-N // n)                                  # grid steps (cdiv)
        cost = g * (1.0 + n)                            # step overhead ~ 1 image equiv.
        even_ok = (not two_tc) or (g % 2 == 0) or (N == 1)
        key = (1 if even_ok else 0, -cost, n)
        if best_key is None or key > best_key:
            best_key, best_n = key, n
    return best_n


# ---------------------------------------------------------------------------
# Kernel: per grid step, conv+upsample nN whole images (batched along the matmul M
# dimension).  One K-concatenated MXU dot per output parity.
# ---------------------------------------------------------------------------
def _upsample_conv_kernel(x_ref, w_ref, b_ref, o_ref, xp_ref):
    # x_ref : (nN, H, W, Cin)        un-padded images (NHWC)
    # w_ref : (2, 2, 4*Cin, Cout)    merged per-parity conv taps, K-concatenated
    # b_ref : (1, Cout)              bias (f32)
    # o_ref : (nN, 2, 2, H, W, Cout) parity-split output
    # xp_ref: (nN, H+2, W+2, Cin)    VMEM scratch (zero-padded images)
    nN, H, W, Cin = x_ref.shape
    Cout = o_ref.shape[-1]
    M = nN * H * W
    dt = xp_ref.dtype

    # Zero ONLY the 1-pixel border of the padded scratch (interior is overwritten below).
    # Re-done every step: under 'parallel' sharding not every core runs program_id 0, so a
    # zero-once trick would leave per-core scratch borders uninitialized.
    xp_ref[:, 0:1, :, :] = jnp.zeros((nN, 1, W + 2, Cin), dt)
    xp_ref[:, H + 1:H + 2, :, :] = jnp.zeros((nN, 1, W + 2, Cin), dt)
    xp_ref[:, 1:H + 1, 0:1, :] = jnp.zeros((nN, H, 1, Cin), dt)
    xp_ref[:, 1:H + 1, W + 1:W + 2, :] = jnp.zeros((nN, H, 1, Cin), dt)

    # Copy the input block into the scratch interior.
    # TODO(synk): replace with a manual HBM->scratch-interior DMA (memory_space=pl.ANY +
    # make_async_copy, double-buffered) to drop this VMEM->VMEM pass per the review.
    xp_ref[:, 1:H + 1, 1:W + 1, :] = x_ref[...]
    xp = xp_ref[...]                                           # (nN, H+2, W+2, Cin)

    bias = b_ref[0].astype(jnp.float32)                        # (Cout,)

    def win(r, c):
        # TODO(synk): build the +/-1 column shifts with pltpu.roll + boundary mask to
        # avoid sublane-misaligned copies (mainly a v5e win).
        return xp[:, r:r + H, c:c + W, :].reshape(M, Cin)

    for pa in range(2):
        for pb in range(2):
            # K-concatenate the 4 merged taps of this parity: one dot with K=4*Cin.
            # Order (dr-major, dc, Cin) matches the (2,2,Cin)->4*Cin reshape of w_eff.
            xcat = jnp.concatenate(
                [win(pa + dr, pb + dc) for dr in range(2) for dc in range(2)], axis=-1)
            acc = jnp.dot(xcat, w_ref[pa, pb],
                          preferred_element_type=jnp.float32) + bias
            # TODO(synk): for C < 128 the minor dim makes this a masked store; fold W*C
            # (lane-dense re-blocking) if small-C use becomes common.
            o_ref[:, pa, pb] = acc.reshape(nN, H, W, Cout).astype(o_ref.dtype)


# ---------------------------------------------------------------------------
# Module wrapper (forward semantics of the PyTorch Upsample2D).
# ---------------------------------------------------------------------------
class Upsample2D:
    def __init__(self, in_channels, with_conv, key=None):
        self.in_channels = in_channels
        self.with_conv = with_conv
        if with_conv:
            assert key is not None
            fan_in = in_channels * 3 * 3
            bound = 1.0 / math.sqrt(fan_in)
            kw_key, kb_key = jax.random.split(key)
            # Deterministic synthetic init (same shapes as torch.nn.Conv2d(C, C, 3, 1, 1)).
            w_oihw = jax.random.uniform(kw_key, (in_channels, in_channels, 3, 3),
                                        jnp.float32, -bound, bound)
            self.w_hwio = jnp.transpose(w_oihw, (2, 3, 1, 0))    # (3, 3, Cin, Cout)
            self.bias = jax.random.uniform(kb_key, (in_channels,),
                                           jnp.float32, -bound, bound)
            # Merged taps, K-concatenated per parity: (2, 2, 4*Cin, Cout).
            self.w_cat = _merge_taps(self.w_hwio).reshape(
                2, 2, 4 * in_channels, in_channels)

    def __call__(self, x, is_init_image=True, is_split=False):
        B, C, T, H, W = x.shape

        if not self.with_conv:
            # Nearest 2x upsample is pure data movement: one broadcast+reshape in the
            # native NCHW layout (1 read + 4x write at HBM roofline; no kernel launch).
            up = jnp.broadcast_to(x[:, :, :, :, None, :, None], (B, C, T, H, 2, W, 2))
            return up.reshape(B, C, T, 2 * H, 2 * W)

        N = B * T
        # 'b c t h w -> (b t) h w c': channels-last so Cin is the matmul contraction dim.
        # TODO(synk): this transpose and the fused one after the kernel are the remaining
        # full-HBM layout passes; for the MXU-bound C>=256 regime the review suggests an
        # in-kernel channel-major output store to make the post-pass lighter.
        x_n = jnp.transpose(x, (0, 2, 3, 4, 1)).reshape(N, H, W, C)

        itemsize = x.dtype.itemsize
        phys, cap, two_tc = _vmem_budget()
        fits = lambda n: _per_step_vmem_bytes(n, H, W, C, itemsize) <= cap
        nN = _choose_images_per_step(N, fits, two_tc)
        grid_steps = pl.cdiv(N, nN)                  # non-divisor nN: tail block clipped
        need = _per_step_vmem_bytes(nN, H, W, C, itemsize)
        vmem_limit = int(min(phys - (6 << 20), max(32 << 20, int(need * 1.25))))

        w_cat = self.w_cat.astype(x.dtype)           # native-dtype MXU feed
        bias = self.bias.astype(jnp.float32).reshape(1, C)

        # TODO(synk): for very large H*W*C that exceed the per-step VMEM budget even at
        # nN=1, add H-row tiling with a 2-row halo instead of whole-image blocks.
        # TODO(synk): weights/bias have a grid-constant block index; single-buffer them
        # (pipeline_mode=pl.Buffered(1)) once that path is validated on all generations.
        y = pl.pallas_call(
            _upsample_conv_kernel,
            out_shape=jax.ShapeDtypeStruct((N, 2, 2, H, W, C), x.dtype),
            grid_spec=pltpu.PrefetchScalarGridSpec(
                num_scalar_prefetch=0,
                grid=(grid_steps,),
                in_specs=[
                    pl.BlockSpec((nN, H, W, C), lambda n: (n, 0, 0, 0)),
                    pl.BlockSpec((2, 2, 4 * C, C), lambda n: (0, 0, 0, 0)),
                    pl.BlockSpec((1, C), lambda n: (0, 0)),
                ],
                out_specs=pl.BlockSpec((nN, 2, 2, H, W, C),
                                       lambda n: (n, 0, 0, 0, 0, 0)),
                scratch_shapes=[pltpu.VMEM((nN, H + 2, W + 2, C), x.dtype)],
            ),
            compiler_params=pltpu.CompilerParams(
                dimension_semantics=("parallel",),
                vmem_limit_bytes=vmem_limit),
        )(x_n, w_cat, bias)

        # Parity de-interleave + NHWC->NCHW fused into ONE transpose (one HBM pass):
        # out[b, c, t, 2i+a, 2j+bb] = y[(b t), a, bb, i, j, c]
        y7 = y.reshape(B, T, 2, 2, H, W, C)
        out = jnp.transpose(y7, (0, 6, 1, 4, 2, 5, 3))      # (B, C, T, H, 2, W, 2)
        return out.reshape(B, C, T, 2 * H, 2 * W)


# ---------------------------------------------------------------------------
# Pure-JAX reference and self-test.
# ---------------------------------------------------------------------------
def _reference(x, with_conv, w_hwio=None, bias=None):
    B, C, T, H, W = x.shape
    xn = jnp.transpose(x, (0, 2, 3, 4, 1)).reshape(B * T, H, W, C)
    up = jnp.repeat(jnp.repeat(xn, 2, axis=1), 2, axis=2)
    if with_conv:
        up = jax.lax.conv_general_dilated(
            up, w_hwio, window_strides=(1, 1), padding="SAME",
            dimension_numbers=("NHWC", "HWIO", "NHWC")) + bias
    return jnp.transpose(up.reshape(B, T, 2 * H, 2 * W, C), (0, 4, 1, 2, 3))


if __name__ == "__main__":
    key = jax.random.PRNGKey(0)
    k_x, k_params = jax.random.split(key)

    B, C, T, H, W = 2, 8, 3, 16, 16
    x = jax.random.normal(k_x, (B, C, T, H, W), jnp.float32)

    # with_conv = True path (Pallas kernel)
    mod = Upsample2D(C, with_conv=True, key=k_params)
    out = jax.block_until_ready(mod(x))
    ref = _reference(x, True, mod.w_hwio, mod.bias)
    assert out.shape == (B, C, T, 2 * H, 2 * W)
    assert jnp.allclose(out, ref, atol=1e-4, rtol=1e-4), "conv path mismatch"

    # with_conv = False path (pure data movement, XLA broadcast per perf review)
    mod_nc = Upsample2D(C, with_conv=False)
    out_nc = jax.block_until_ready(mod_nc(x))
    ref_nc = _reference(x, False)
    assert out_nc.shape == (B, C, T, 2 * H, 2 * W)
    assert jnp.allclose(out_nc, ref_nc, atol=1e-6), "upsample-only path mismatch"

    print("KERNEL_OK")
</pallas_src>

<mosaic_0001>
module attributes {stable_mosaic.version = 11 : i64} {
  func.func @_upsample_conv_kernel(%arg0: i32, %arg1: memref<3x16x16x8xf32, #tpu.memory_space<vmem>>, %arg2: memref<2x2x32x8xf32, #tpu.memory_space<vmem>>, %arg3: memref<1x8xf32, #tpu.memory_space<vmem>>, %arg4: memref<3x2x2x16x16x8xf32, #tpu.memory_space<vmem>>, %arg5: memref<3x18x18x8xf32, #tpu.memory_space<vmem>>) attributes {dimension_semantics = [#tpu.dimension_semantics<parallel>], iteration_bounds = array<i64: 2>, scalar_prefetch = 0 : i64, scratch_operands = 1 : i64, tpu.core_type = #tpu.core_type<tc>, window_params = [{transform_indices = @transform_0, window_bounds = array<i64: 3, 16, 16, 8>}, {pipeline_mode = #tpu.pipeline_mode<synchronous>, transform_indices = @transform_1, window_bounds = array<i64: 2, 2, 32, 8>}, {pipeline_mode = #tpu.pipeline_mode<synchronous>, transform_indices = @transform_2, window_bounds = array<i64: 1, 8>}, {transform_indices = @transform_3, window_bounds = array<i64: 3, 2, 2, 16, 16, 8>}]} {
    %cst = arith.constant 0.000000e+00 : f32
    %0 = vector.broadcast %cst : f32 to vector<3x1x18x8xf32>
    %c0 = arith.constant 0 : index
    %c0_0 = arith.constant 0 : index
    %c0_1 = arith.constant 0 : index
    %c0_2 = arith.constant 0 : index
    %1 = vector.load %arg5[%c0, %c0_0, %c0_1, %c0_2] : memref<3x18x18x8xf32, #tpu.memory_space<vmem>>, vector<3x1x18x8xf32>
    tpu.vector_store %arg5[%c0, %c0_0, %c0_1, %c0_2], %0 {strides = array<i32>} : memref<3x18x18x8xf32, #tpu.memory_space<vmem>>, vector<3x1x18x8xf32>,
    %cst_3 = arith.constant 0.000000e+00 : f32
    %2 = vector.broadcast %cst_3 : f32 to vector<3x1x18x8xf32>
    %c0_4 = arith.constant 0 : index
    %c17 = arith.constant 17 : index
    %c0_5 = arith.constant 0 : index
    %c0_6 = arith.constant 0 : index
    %3 = vector.load %arg5[%c0_4, %c17, %c0_5, %c0_6] : memref<3x18x18x8xf32, #tpu.memory_space<vmem>>, vector<3x1x18x8xf32>
    tpu.vector_store %arg5[%c0_4, %c17, %c0_5, %c0_6], %2 {strides = array<i32>} : memref<3x18x18x8xf32, #tpu.memory_space<vmem>>, vector<3x1x18x8xf32>,
    %cst_7 = arith.constant 0.000000e+00 : f32
    %4 = vector.broadcast %cst_7 : f32 to vector<3x16x1x8xf32>
    %c0_8 = arith.constant 0 : index
    %c1 = arith.constant 1 : index
    %c0_9 = arith.constant 0 : index
    %c0_10 = arith.constant 0 : index
    %5 = vector.load %arg5[%c0_8, %c1, %c0_9, %c0_10] : memref<3x18x18x8xf32, #tpu.memory_space<vmem>>, vector<3x16x1x8xf32>
    tpu.vector_store %arg5[%c0_8, %c1, %c0_9, %c0_10], %4 {strides = array<i32>} : memref<3x18x18x8xf32, #tpu.memory_space<vmem>>, vector<3x16x1x8xf32>,
    %cst_11 = arith.constant 0.000000e+00 : f32
    %6 = vector.broadcast %cst_11 : f32 to vector<3x16x1x8xf32>
    %c0_12 = arith.constant 0 : index
    %c1_13 = arith.constant 1 : index
    %c17_14 = arith.constant 17 : index
    %c0_15 = arith.constant 0 : index
    %7 = vector.load %arg5[%c0_12, %c1_13, %c17_14, %c0_15] : memref<3x18x18x8xf32, #tpu.memory_space<vmem>>, vector<3x16x1x8xf32>
    tpu.vector_store %arg5[%c0_12, %c1_13, %c17_14, %c0_15], %6 {strides = array<i32>} : memref<3x18x18x8xf32, #tpu.memory_space<vmem>>, vector<3x16x1x8xf32>,
    %c0_16 = arith.constant 0 : index
    %c0_17 = arith.constant 0 : index
    %c0_18 = arith.constant 0 : index
    %c0_19 = arith.constant 0 : index
    %8 = vector.load %arg1[%c0_16, %c0_17, %c0_18, %c0_19] : memref<3x16x16x8xf32, #tpu.memory_space<vmem>>, vector<3x16x16x8xf32>
    %c0_20 = arith.constant 0 : index
    %c1_21 = arith.constant 1 : index
    %c1_22 = arith.constant 1 : index
    %c0_23 = arith.constant 0 : index
    %9 = vector.load %arg5[%c0_20, %c1_21, %c1_22, %c0_23] : memref<3x18x18x8xf32, #tpu.memory_space<vmem>>, vector<3x16x16x8xf32>
    tpu.vector_store %arg5[%c0_20, %c1_21, %c1_22, %c0_23], %8 {strides = array<i32>} : memref<3x18x18x8xf32, #tpu.memory_space<vmem>>, vector<3x16x16x8xf32>,
    %c0_24 = arith.constant 0 : index
    %c0_25 = arith.constant 0 : index
    %c0_26 = arith.constant 0 : index
    %c0_27 = arith.constant 0 : index
    %10 = vector.load %arg5[%c0_24, %c0_25, %c0_26, %c0_27] : memref<3x18x18x8xf32, #tpu.memory_space<vmem>>, vector<3x18x18x8xf32>
    %c0_28 = arith.constant 0 : index
    %c0_29 = arith.constant 0 : index
    %11 = vector.load %arg3[%c0_28, %c0_29] : memref<1x8xf32, #tpu.memory_space<vmem>>, vector<1x8xf32>
    %12 = vector.shape_cast %11 : vector<1x8xf32> to vector<8xf32>
    %13 = vector.extract_strided_slice %10 {offsets = [0, 0, 0, 0], sizes = [3, 16, 16, 8], strides = [1, 1, 1, 1]} : vector<3x18x18x8xf32> to vector<3x16x16x8xf32>
    %14 = vector.shape_cast %13 : vector<3x16x16x8xf32> to vector<768x8xf32>
    %15 = vector.extract_strided_slice %10 {offsets = [0, 0, 1, 0], sizes = [3, 16, 16, 8], strides = [1, 1, 1, 1]} : vector<3x18x18x8xf32> to vector<3x16x16x8xf32>
    %16 = vector.shape_cast %15 : vector<3x16x16x8xf32> to vector<768x8xf32>
    %17 = vector.extract_strided_slice %10 {offsets = [0, 1, 0, 0], sizes = [3, 16, 16, 8], strides = [1, 1, 1, 1]} : vector<3x18x18x8xf32> to vector<3x16x16x8xf32>
    %18 = vector.shape_cast %17 : vector<3x16x16x8xf32> to vector<768x8xf32>
    %19 = vector.extract_strided_slice %10 {offsets = [0, 1, 1, 0], sizes = [3, 16, 16, 8], strides = [1, 1, 1, 1]} : vector<3x18x18x8xf32> to vector<3x16x16x8xf32>
    %20 = vector.shape_cast %19 : vector<3x16x16x8xf32> to vector<768x8xf32>
    %21 = tpu.concatenate %14, %16, %18, %20 in 1 : vector<768x8xf32>, vector<768x8xf32>, vector<768x8xf32>, vector<768x8xf32> -> vector<768x32xf32>
    %c0_30 = arith.constant 0 : index
    %c0_31 = arith.constant 0 : index
    %c0_32 = arith.constant 0 : index
    %c0_33 = arith.constant 0 : index
    %22 = vector.load %arg2[%c0_30, %c0_31, %c0_32, %c0_33] : memref<2x2x32x8xf32, #tpu.memory_space<vmem>>, vector<1x1x32x8xf32>
    %23 = vector.shape_cast %22 : vector<1x1x32x8xf32> to vector<32x8xf32>
    %cst_34 = arith.constant dense<0.000000e+00> : vector<768x8xf32>
    %24 = tpu.matmul %21, %23, %cst_34 {dimension_numbers = #tpu.dot_dimension_numbers<[1], [0], [0], [1], [0, 0, 1, 1], [], []>} : vector<768x32xf32>, vector<32x8xf32>, vector<768x8xf32> -> vector<768x8xf32>
    %25 = vector.shape_cast %12 : vector<8xf32> to vector<1x8xf32>
    %26 = vector.broadcast %25 : vector<1x8xf32> to vector<768x8xf32>
    %27 = arith.addf %24, %26 : vector<768x8xf32>
    %28 = vector.shape_cast %27 : vector<768x8xf32> to vector<3x16x16x8xf32>
    %c0_35 = arith.constant 0 : index
    %c0_36 = arith.constant 0 : index
    %c0_37 = arith.constant 0 : index
    %c0_38 = arith.constant 0 : index
    %c0_39 = arith.constant 0 : index
    %c0_40 = arith.constant 0 : index
    %29 = vector.load %arg4[%c0_35, %c0_36, %c0_37, %c0_38, %c0_39, %c0_40] : memref<3x2x2x16x16x8xf32, #tpu.memory_space<vmem>>, vector<3x1x1x16x16x8xf32>
    %30 = vector.shape_cast %29 : vector<3x1x1x16x16x8xf32> to vector<3x16x16x8xf32>
    %31 = vector.shape_cast %28 : vector<3x16x16x8xf32> to vector<3x1x1x16x16x8xf32>
    tpu.vector_store %arg4[%c0_35, %c0_36, %c0_37, %c0_38, %c0_39, %c0_40], %31 {strides = array<i32>} : memref<3x2x2x16x16x8xf32, #tpu.memory_space<vmem>>, vector<3x1x1x16x16x8xf32>,
    %32 = vector.extract_strided_slice %10 {offsets = [0, 0, 1, 0], sizes = [3, 16, 16, 8], strides = [1, 1, 1, 1]} : vector<3x18x18x8xf32> to vector<3x16x16x8xf32>
    %33 = vector.shape_cast %32 : vector<3x16x16x8xf32> to vector<768x8xf32>
    %34 = vector.extract_strided_slice %10 {offsets = [0, 0, 2, 0], sizes = [3, 16, 16, 8], strides = [1, 1, 1, 1]} : vector<3x18x18x8xf32> to vector<3x16x16x8xf32>
    %35 = vector.shape_cast %34 : vector<3x16x16x8xf32> to vector<768x8xf32>
    %36 = vector.extract_strided_slice %10 {offsets = [0, 1, 1, 0], sizes = [3, 16, 16, 8], strides = [1, 1, 1, 1]} : vector<3x18x18x8xf32> to vector<3x16x16x8xf32>
    %37 = vector.shape_cast %36 : vector<3x16x16x8xf32> to vector<768x8xf32>
    %38 = vector.extract_strided_slice %10 {offsets = [0, 1, 2, 0], sizes = [3, 16, 16, 8], strides = [1, 1, 1, 1]} : vector<3x18x18x8xf32> to vector<3x16x16x8xf32>
    %39 = vector.shape_cast %38 : vector<3x16x16x8xf32> to vector<768x8xf32>
    %40 = tpu.concatenate %33, %35, %37, %39 in 1 : vector<768x8xf32>, vector<768x8xf32>, vector<768x8xf32>, vector<768x8xf32> -> vector<768x32xf32>
    %c0_41 = arith.constant 0 : index
    %c1_42 = arith.constant 1 : index
    %c0_43 = arith.constant 0 : index
    %c0_44 = arith.constant 0 : index
    %41 = vector.load %arg2[%c0_41, %c1_42, %c0_43, %c0_44] : memref<2x2x32x8xf32, #tpu.memory_space<vmem>>, vector<1x1x32x8xf32>
    %42 = vector.shape_cast %41 : vector<1x1x32x8xf32> to vector<32x8xf32>
    %cst_45 = arith.constant dense<0.000000e+00> : vector<768x8xf32>
    %43 = tpu.matmul %40, %42, %cst_45 {dimension_numbers = #tpu.dot_dimension_numbers<[1], [0], [0], [1], [0, 0, 1, 1], [], []>} : vector<768x32xf32>, vector<32x8xf32>, vector<768x8xf32> -> vector<768x8xf32>
    %44 = vector.shape_cast %12 : vector<8xf32> to vector<1x8xf32>
    %45 = vector.broadcast %44 : vector<1x8xf32> to vector<768x8xf32>
    %46 = arith.addf %43, %45 : vector<768x8xf32>
    %47 = vector.shape_cast %46 : vector<768x8xf32> to vector<3x16x16x8xf32>
    %c0_46 = arith.constant 0 : index
    %c0_47 = arith.constant 0 : index
    %c1_48 = arith.constant 1 : index
    %c0_49 = arith.constant 0 : index
    %c0_50 = arith.constant 0 : index
    %c0_51 = arith.constant 0 : index
    %48 = vector.load %arg4[%c0_46, %c0_47, %c1_48, %c0_49, %c0_50, %c0_51] : memref<3x2x2x16x16x8xf32, #tpu.memory_space<vmem>>, vector<3x1x1x16x16x8xf32>
    %49 = vector.shape_cast %48 : vector<3x1x1x16x16x8xf32> to vector<3x16x16x8xf32>
    %50 = vector.shape_cast %47 : vector<3x16x16x8xf32> to vector<3x1x1x16x16x8xf32>
    tpu.vector_store %arg4[%c0_46, %c0_47, %c1_48, %c0_49, %c0_50, %c0_51], %50 {strides = array<i32>} : memref<3x2x2x16x16x8xf32, #tpu.memory_space<vmem>>, vector<3x1x1x16x16x8xf32>,
    %51 = vector.extract_strided_slice %10 {offsets = [0, 1, 0, 0], sizes = [3, 16, 16, 8], strides = [1, 1, 1, 1]} : vector<3x18x18x8xf32> to vector<3x16x16x8xf32>
    %52 = vector.shape_cast %51 : vector<3x16x16x8xf32> to vector<768x8xf32>
    %53 = vector.extract_strided_slice %10 {offsets = [0, 1, 1, 0], sizes = [3, 16, 16, 8], strides = [1, 1, 1, 1]} : vector<3x18x18x8xf32> to vector<3x16x16x8xf32>
    %54 = vector.shape_cast %53 : vector<3x16x16x8xf32> to vector<768x8xf32>
    %55 = vector.extract_strided_slice %10 {offsets = [0, 2, 0, 0], sizes = [3, 16, 16, 8], strides = [1, 1, 1, 1]} : vector<3x18x18x8xf32> to vector<3x16x16x8xf32>
    %56 = vector.shape_cast %55 : vector<3x16x16x8xf32> to vector<768x8xf32>
    %57 = vector.extract_strided_slice %10 {offsets = [0, 2, 1, 0], sizes = [3, 16, 16, 8], strides = [1, 1, 1, 1]} : vector<3x18x18x8xf32> to vector<3x16x16x8xf32>
    %58 = vector.shape_cast %57 : vector<3x16x16x8xf32> to vector<768x8xf32>
    %59 = tpu.concatenate %52, %54, %56, %58 in 1 : vector<768x8xf32>, vector<768x8xf32>, vector<768x8xf32>, vector<768x8xf32> -> vector<768x32xf32>
    %c1_52 = arith.constant 1 : index
    %c0_53 = arith.constant 0 : index
    %c0_54 = arith.constant 0 : index
    %c0_55 = arith.constant 0 : index
    %60 = vector.load %arg2[%c1_52, %c0_53, %c0_54, %c0_55] : memref<2x2x32x8xf32, #tpu.memory_space<vmem>>, vector<1x1x32x8xf32>
    %61 = vector.shape_cast %60 : vector<1x1x32x8xf32> to vector<32x8xf32>
    %cst_56 = arith.constant dense<0.000000e+00> : vector<768x8xf32>
    %62 = tpu.matmul %59, %61, %cst_56 {dimension_numbers = #tpu.dot_dimension_numbers<[1], [0], [0], [1], [0, 0, 1, 1], [], []>} : vector<768x32xf32>, vector<32x8xf32>, vector<768x8xf32> -> vector<768x8xf32>
    %63 = vector.shape_cast %12 : vector<8xf32> to vector<1x8xf32>
    %64 = vector.broadcast %63 : vector<1x8xf32> to vector<768x8xf32>
    %65 = arith.addf %62, %64 : vector<768x8xf32>
    %66 = vector.shape_cast %65 : vector<768x8xf32> to vector<3x16x16x8xf32>
    %c0_57 = arith.constant 0 : index
    %c1_58 = arith.constant 1 : index
    %c0_59 = arith.constant 0 : index
    %c0_60 = arith.constant 0 : index
    %c0_61 = arith.constant 0 : index
    %c0_62 = arith.constant 0 : index
    %67 = vector.load %arg4[%c0_57, %c1_58, %c0_59, %c0_60, %c0_61, %c0_62] : memref<3x2x2x16x16x8xf32, #tpu.memory_space<vmem>>, vector<3x1x1x16x16x8xf32>
    %68 = vector.shape_cast %67 : vector<3x1x1x16x16x8xf32> to vector<3x16x16x8xf32>
    %69 = vector.shape_cast %66 : vector<3x16x16x8xf32> to vector<3x1x1x16x16x8xf32>
    tpu.vector_store %arg4[%c0_57, %c1_58, %c0_59, %c0_60, %c0_61, %c0_62], %69 {strides = array<i32>} : memref<3x2x2x16x16x8xf32, #tpu.memory_space<vmem>>, vector<3x1x1x16x16x8xf32>,
    %70 = vector.extract_strided_slice %10 {offsets = [0, 1, 1, 0], sizes = [3, 16, 16, 8], strides = [1, 1, 1, 1]} : vector<3x18x18x8xf32> to vector<3x16x16x8xf32>
    %71 = vector.shape_cast %70 : vector<3x16x16x8xf32> to vector<768x8xf32>
    %72 = vector.extract_strided_slice %10 {offsets = [0, 1, 2, 0], sizes = [3, 16, 16, 8], strides = [1, 1, 1, 1]} : vector<3x18x18x8xf32> to vector<3x16x16x8xf32>
    %73 = vector.shape_cast %72 : vector<3x16x16x8xf32> to vector<768x8xf32>
    %74 = vector.extract_strided_slice %10 {offsets = [0, 2, 1, 0], sizes = [3, 16, 16, 8], strides = [1, 1, 1, 1]} : vector<3x18x18x8xf32> to vector<3x16x16x8xf32>
    %75 = vector.shape_cast %74 : vector<3x16x16x8xf32> to vector<768x8xf32>
    %76 = vector.extract_strided_slice %10 {offsets = [0, 2, 2, 0], sizes = [3, 16, 16, 8], strides = [1, 1, 1, 1]} : vector<3x18x18x8xf32> to vector<3x16x16x8xf32>
    %77 = vector.shape_cast %76 : vector<3x16x16x8xf32> to vector<768x8xf32>
    %78 = tpu.concatenate %71, %73, %75, %77 in 1 : vector<768x8xf32>, vector<768x8xf32>, vector<768x8xf32>, vector<768x8xf32> -> vector<768x32xf32>
    %c1_63 = arith.constant 1 : index
    %c1_64 = arith.constant 1 : index
    %c0_65 = arith.constant 0 : index
    %c0_66 = arith.constant 0 : index
    %79 = vector.load %arg2[%c1_63, %c1_64, %c0_65, %c0_66] : memref<2x2x32x8xf32, #tpu.memory_space<vmem>>, vector<1x1x32x8xf32>
    %80 = vector.shape_cast %79 : vector<1x1x32x8xf32> to vector<32x8xf32>
    %cst_67 = arith.constant dense<0.000000e+00> : vector<768x8xf32>
    %81 = tpu.matmul %78, %80, %cst_67 {dimension_numbers = #tpu.dot_dimension_numbers<[1], [0], [0], [1], [0, 0, 1, 1], [], []>} : vector<768x32xf32>, vector<32x8xf32>, vector<768x8xf32> -> vector<768x8xf32>
    %82 = vector.shape_cast %12 : vector<8xf32> to vector<1x8xf32>
    %83 = vector.broadcast %82 : vector<1x8xf32> to vector<768x8xf32>
    %84 = arith.addf %81, %83 : vector<768x8xf32>
    %85 = vector.shape_cast %84 : vector<768x8xf32> to vector<3x16x16x8xf32>
    %c0_68 = arith.constant 0 : index
    %c1_69 = arith.constant 1 : index
    %c1_70 = arith.constant 1 : index
    %c0_71 = arith.constant 0 : index
    %c0_72 = arith.constant 0 : index
    %c0_73 = arith.constant 0 : index
    %86 = vector.load %arg4[%c0_68, %c1_69, %c1_70, %c0_71, %c0_72, %c0_73] : memref<3x2x2x16x16x8xf32, #tpu.memory_space<vmem>>, vector<3x1x1x16x16x8xf32>
    %87 = vector.shape_cast %86 : vector<3x1x1x16x16x8xf32> to vector<3x16x16x8xf32>
    %88 = vector.shape_cast %85 : vector<3x16x16x8xf32> to vector<3x1x1x16x16x8xf32>
    tpu.vector_store %arg4[%c0_68, %c1_69, %c1_70, %c0_71, %c0_72, %c0_73], %88 {strides = array<i32>} : memref<3x2x2x16x16x8xf32, #tpu.memory_space<vmem>>, vector<3x1x1x16x16x8xf32>,
    return
  }
  func.func @transform_0(%arg0: i32) -> (i32, i32, i32, i32) {
    %c0_i32 = arith.constant 0 : i32
    %c0_i32_0 = arith.constant 0 : i32
    %c0_i32_1 = arith.constant 0 : i32
    %c0_i32_2 = arith.constant 0 : i32
    return %arg0, %c0_i32, %c0_i32_0, %c0_i32_1 : i32, i32, i32, i32
  }
  func.func @transform_1(%arg0: i32) -> (i32, i32, i32, i32) {
    %c0_i32 = arith.constant 0 : i32
    %c0_i32_0 = arith.constant 0 : i32
    %c0_i32_1 = arith.constant 0 : i32
    %c0_i32_2 = arith.constant 0 : i32
    %c0_i32_3 = arith.constant 0 : i32
    return %c0_i32, %c0_i32_0, %c0_i32_1, %c0_i32_2 : i32, i32, i32, i32
  }
  func.func @transform_2(%arg0: i32) -> (i32, i32) {
    %c0_i32 = arith.constant 0 : i32
    %c0_i32_0 = arith.constant 0 : i32
    %c0_i32_1 = arith.constant 0 : i32
    return %c0_i32, %c0_i32_0 : i32, i32
  }
  func.func @transform_3(%arg0: i32) -> (i32, i32, i32, i32, i32, i32) {
    %c0_i32 = arith.constant 0 : i32
    %c0_i32_0 = arith.constant 0 : i32
    %c0_i32_1 = arith.constant 0 : i32
    %c0_i32_2 = arith.constant 0 : i32
    %c0_i32_3 = arith.constant 0 : i32
    %c0_i32_4 = arith.constant 0 : i32
    return %arg0, %c0_i32, %c0_i32_0, %c0_i32_1, %c0_i32_2, %c0_i32_3 : i32, i32, i32, i32, i32, i32
  }
}

</mosaic_0001>

<bundles_post_ra>
// kernel: tpu_custom_call.1
= control target key start
LH: loop header
LB: loop body
LE: loop exit
PB: predicated region body
PF: predicated region fallthrough
CT: control target
= control target key end

     0   :  { %8 = vsyncpa [#allocation4], 0  ;;  %s7266_s12 = smov 0   ;;  %s13669_s0 = inlined_call_operand.vmem [shape: f32[6,16,16,8], index: 0, kind: input, shape index: {}]   ;;  %s13670_s1 = inlined_call_operand.vmem [shape: f32[2,2,32,8], index: 1, kind: input, shape index: {}]   ;;  %s13671_s2 = inlined_call_operand.hbm [shape: f32[1,8], index: 2, kind: input, shape index: {}]   ;;  %s13672_s3 = inlined_call_operand.vmem [shape: f32[6,2,2,16,16,8], index: 3, kind: output, shape index: {}]  }
   0x1 LB: > { %s6236_s13 = sadd.s32 4294967295, %s7239_s12   ;;  %p6238_p0 = scmp.ge.s32.totalorder %s7239_s12, 1  ;;  %s7239_s12 = sphi %s7266_s12, %s14_s12  }
   0x2   : > { %p113_p1 = scmp.lt.s32.totalorder %s7239_s12, 3  ;;  %s128_s16 = sshll.u32 %s13671_s2, 4  ;;  %s129_s16 = int_to_ptr.hbm [resolvable:$true] %s128_s16 }
   0x3   : > { %p6943_p3 = scmp.eq.s32.totalorder %s6236_s13, 0  ;;  %s7241_s17 = smov [#allocation3]  }
   0x4   : > { %p114_p2 = pnand %p6238_p0, %p113_p1  ;;  %s130_s18 = sshll.u32 %s7241_s17, 4  ;;  %s131_s18 = int_to_ptr.vmem [resolvable:$true] %s130_s18 }
   0x6   : > { %p6939_p4 = pneg %p114_p2  ;;  %153 = sbr.rel (%p114_p2) target bundleno = 2013 (0x7dd), region = 32 }
   0x8   : > { %p6940_p5 = pnand %p6943_p3, %p6939_p4 }
   0xa   : > { %6942 = dma.hbm_to_vmem [thread:$0]  (!%p6940_p5), %s129_s16, 16, %s131_s18, [#allocation4]  }
   0xb   : > { %7234 = dma.done.wait (%p6943_p3), [#allocation4], 16  }
   0xc   : > { %7236 = vsyncadd (%p6943_p3), [#allocation4], 4294967280  ;;  %vm194_vm0 = vcmask 64512   ;;  %v7242_v0 = vmov 0.0   ;;  %s180_s19 = smul.u32 3, %s6236_s13  ;;  %vm812_vm1 = vcmask 1046528  }
   0xd   : > { %195 = vst.msk [vmem:[#allocation2] sm:$0xff] %vm194_vm0, %v7242_v0  ;;  %vm216_vm2 = vcmask 57344   ;;  %s7243_s24 = smov 8   ;;  %vm197_vm3 = vcmask 58368   ;;  %s7244_s25 = smov 16   ;;  %vm2139_vm4 = vcmask 130048  }
   0xe   : > { %196 = vst.msk [vmem:[#allocation2 + $0x8] sm:$0xff] %vm194_vm0, %v7242_v0  ;;  %p181_p6 = scmp.lt.s32.totalorder %s180_s19, 5  ;;  %s7245_s26 = smov 24   ;;  %vm2236_vm5 = vcmask 195584   ;;  %vm2340_vm6 = vcmask 261120   ;;  %vm3030_vm7 = vcmask 1045504  }
   0xf   : > { %199 = vst.msk [vmem:[#allocation2 + $0x1b0] sm:$0xff] %vm194_vm0, %v7242_v0 }
  0x10   : > { %200 = vst.msk [vmem:[#allocation2 + $0x1b8] sm:$0xff] %vm194_vm0, %v7242_v0  ;;  %s14770_s19 = smov (!%p181_p6, %s180_s19), 5 }
  0x11   : > { %202 = vst.msk [vmem:[#allocation2 + $0x360] sm:$0xff] %vm194_vm0, %v7242_v0  ;;  %s6933_s20 = sshll.u32 %s14770_s19, 8  ;;  %s6934_s17 = sshll.u32 %s14770_s19, 10 }
  0x12   : > { %203 = vst.msk [vmem:[#allocation2 + $0x368] sm:$0xff] %vm194_vm0, %v7242_v0  ;;  %s7299_s23 = scalar_lea.vmem %s13669_s0, %s6933_s20  ;;  %s9373_s21 = scalar_lea.vmem %s13672_s3, %s6934_s17 }
  0x13   : > { %206 = vst.msk [vmem:[#allocation2 + $0x198] sm:$0xff] %vm194_vm0, %v7242_v0  ;;  %v315_v5 = vld [vmem:[%s7299_s23 + $0x10] sm:$0xff]  ;;  %v316_v7 = vld [vmem:[%s7299_s23 + $0x18] sm:$0xff]  ;;  %v313_v16 = vld [vmem:[%s7299_s23] sm:$0xff] }
  0x14   : > { %v505_v1 = vld [vmem:[#allocation2] sm:$0xff]  ;;  %207 = vst.msk [vmem:[#allocation2 + $0x1a0] sm:$0xff] %vm194_vm0, %v7242_v0  ;;  %v314_v17 = vld [vmem:[%s7299_s23 + $0x8] sm:$0xff]  ;;  %v319_v21 = vld [vmem:[%s7299_s23 + $0x30] sm:$0xff] }
  0x15   : > { %v7301_v2 = vld [vmem:[#allocation2 + $0x8] sm:$0xff]  ;;  %v813_v3 = vrot.slane %v505_v1, 1  ;;  %209 = vst.msk [vmem:[#allocation2 + $0x348] sm:$0xff] %vm194_vm0, %v7242_v0  ;;  %v317_v18 = vld [vmem:[%s7299_s23 + $0x20] sm:$0xff]  ;;  %v320_v24 = vld [vmem:[%s7299_s23 + $0x38] sm:$0xff] }
  0x16   : > { %v814_v4 = vrot.slane %v7301_v2, 1  ;;  %210 = vst.msk [vmem:[#allocation2 + $0x350] sm:$0xff] %vm194_vm0, %v7242_v0  ;;  %v318_v19 = vld [vmem:[%s7299_s23 + $0x28] sm:$0xff]  ;;  %v321_v27 = vld [vmem:[%s7299_s23 + $0x40] sm:$0xff]  ;;  %v323_v32 = vld [vmem:[%s7299_s23 + $0x50] sm:$0xff] }
  0x17   : > { %212 = vst.msk [vmem:[#allocation2 + $0x4f8] sm:$0xff] %vm194_vm0, %v7242_v0  ;;  %v322_v30 = vld [vmem:[%s7299_s23 + $0x48] sm:$0xff]  ;;  %v324_v34 = vld [vmem:[%s7299_s23 + $0x58] sm:$0xff]  ;;  %v325_v36 = vld [vmem:[%s7299_s23 + $0x60] sm:$0xff] }
  0x18   : > { %v7314_v6 = vsel %vm812_vm1, %v813_v3, %v814_v4  ;;  %213 = vst.msk [vmem:[#allocation2 + $0x500] sm:$0xff] %vm194_vm0, %v7242_v0  ;;  %v326_v37 = vld [vmem:[%s7299_s23 + $0x68] sm:$0xff]  ;;  %v327_v39 = vld [vmem:[%s7299_s23 + $0x70] sm:$0xff]  ;;  %v328_v42 = vld [vmem:[%s7299_s23 + $0x78] sm:$0xff] }
  0x19   : > { %13930 = vst [vmem:[#allocation6_spill] sm:$0xff] %v7314_v6  ;;  %1179 = vrot.lane.b32.xlu0 %v7314_v6, %s7243_s24  ;;  %v329_v46 = vld [vmem:[%s7299_s23 + $0x80] sm:$0xff]  ;;  %v330_v50 = vld [vmem:[%s7299_s23 + $0x88] sm:$0xff]  ;;  %v331_v54 = vld [vmem:[%s7299_s23 + $0x90] sm:$0xff] }
  0x1a   : > { %218 = vst.msk [vmem:[#allocation2 + $0x30] sm:$0x1] %vm216_vm2, %v7242_v0  ;;  %v332_v57 = vld [vmem:[%s7299_s23 + $0x98] sm:$0xff]  ;;  %v334_v1 = vld [vmem:[%s7299_s23 + $0xa8] sm:$0xff] }
  0x1b   : > { %411 = vst.msk [vmem:[#allocation2 + $0x31] sm:$0xff] %vm194_vm0, %v315_v5 }
  0x1c   : > { %412 = vst.msk [vmem:[#allocation2 + $0x39] sm:$0xff] %vm194_vm0, %v316_v7 }
  0x1d   : > { %217 = vst.msk [vmem:[#allocation2 + $0x18] sm:$0x1] %vm216_vm2, %v7242_v0 }
  0x1e   : > { %219 = vst.msk [vmem:[#allocation2 + $0x48] sm:$0x1] %vm216_vm2, %v7242_v0 }
  0x1f   : > { %220 = vst.msk [vmem:[#allocation2 + $0x60] sm:$0x1] %vm216_vm2, %v7242_v0 }
  0x20   : > { %221 = vst.msk [vmem:[#allocation2 + $0x78] sm:$0x1] %vm216_vm2, %v7242_v0 }
  0x21   : > { %222 = vst.msk [vmem:[#allocation2 + $0x90] sm:$0x1] %vm216_vm2, %v7242_v0 }
  0x22   : > { %v511_v8 = vld [vmem:[#allocation2 + $0x30] sm:$0xff]  ;;  %223 = vst.msk [vmem:[#allocation2 + $0xa8] sm:$0x1] %vm216_vm2, %v7242_v0 }
  0x23   : > { %v7337_v9 = vld [vmem:[#allocation2 + $0x38] sm:$0xff]  ;;  %v823_v10 = vrot.slane %v511_v8, 1  ;;  %224 = vst.msk [vmem:[#allocation2 + $0xc0] sm:$0x1] %vm216_vm2, %v7242_v0 }
  0x24   : > { %v824_v11 = vrot.slane %v7337_v9, 1  ;;  %225 = vst.msk [vmem:[#allocation2 + $0xd8] sm:$0x1] %vm216_vm2, %v7242_v0  ;;  %v336_v9 = vld [vmem:[%s7299_s23 + $0xb8] sm:$0xff] }
  0x25   : > { %226 = vst.msk [vmem:[#allocation2 + $0xf0] sm:$0x1] %vm216_vm2, %v7242_v0 }
  0x26   : > { %v7349_v12 = vsel %vm812_vm1, %v823_v10, %v824_v11  ;;  %227 = vst.msk [vmem:[#allocation2 + $0x108] sm:$0x1] %vm216_vm2, %v7242_v0 }
  0x27   : > { %13931 = vst [vmem:[#allocation7_spill] sm:$0xff] %v7349_v12  ;;  %1187 = vrot.lane.b32.xlu2 %v7349_v12, %s7243_s24 }
  0x28   : > { %228 = vst.msk [vmem:[#allocation2 + $0x120] sm:$0x1] %vm216_vm2, %v7242_v0 }
  0x29   : > { %229 = vst.msk [vmem:[#allocation2 + $0x138] sm:$0x1] %vm216_vm2, %v7242_v0 }
  0x2a   : > { %230 = vst.msk [vmem:[#allocation2 + $0x150] sm:$0x1] %vm216_vm2, %v7242_v0 }
  0x2b   : > { %231 = vst.msk [vmem:[#allocation2 + $0x168] sm:$0x1] %vm216_vm2, %v7242_v0 }
  0x2c   : > { %232 = vst.msk [vmem:[#allocation2 + $0x180] sm:$0x1] %vm216_vm2, %v7242_v0 }
  0x2d   : > { %233 = vst.msk [vmem:[#allocation2 + $0x1c8] sm:$0x1] %vm216_vm2, %v7242_v0 }
  0x2e   : > { %234 = vst.msk [vmem:[#allocation2 + $0x1e0] sm:$0x1] %vm216_vm2, %v7242_v0 }
  0x2f   : > { %235 = vst.msk [vmem:[#allocation2 + $0x1f8] sm:$0x1] %vm216_vm2, %v7242_v0 }
  0x30   : > { %236 = vst.msk [vmem:[#allocation2 + $0x210] sm:$0x1] %vm216_vm2, %v7242_v0 }
  0x31   : > { %237 = vst.msk [vmem:[#allocation2 + $0x228] sm:$0x1] %vm216_vm2, %v7242_v0 }
  0x32   : > { %238 = vst.msk [vmem:[#allocation2 + $0x240] sm:$0x1] %vm216_vm2, %v7242_v0 }
  0x33   : > { %239 = vst.msk [vmem:[#allocation2 + $0x258] sm:$0x1] %vm216_vm2, %v7242_v0 }
  0x34   : > { %240 = vst.msk [vmem:[#allocation2 + $0x270] sm:$0x1] %vm216_vm2, %v7242_v0 }
  0x35   : > { %241 = vst.msk [vmem:[#allocation2 + $0x288] sm:$0x1] %vm216_vm2, %v7242_v0 }
  0x36   : > { %242 = vst.msk [vmem:[#allocation2 + $0x2a0] sm:$0x1] %vm216_vm2, %v7242_v0 }
  0x37   : > { %243 = vst.msk [vmem:[#allocation2 + $0x2b8] sm:$0x1] %vm216_vm2, %v7242_v0 }
  0x38   : > { %244 = vst.msk [vmem:[#allocation2 + $0x2d0] sm:$0x1] %vm216_vm2, %v7242_v0 }
  0x39   : > { %245 = vst.msk [vmem:[#allocation2 + $0x2e8] sm:$0x1] %vm216_vm2, %v7242_v0 }
  0x3a   : > { %246 = vst.msk [vmem:[#allocation2 + $0x300] sm:$0x1] %vm216_vm2, %v7242_v0 }
  0x3b   : > { %247 = vst.msk [vmem:[#allocation2 + $0x318] sm:$0x1] %vm216_vm2, %v7242_v0 }
  0x3c   : > { %248 = vst.msk [vmem:[#allocation2 + $0x330] sm:$0x1] %vm216_vm2, %v7242_v0 }
  0x3d   : > { %249 = vst.msk [vmem:[#allocation2 + $0x378] sm:$0x1] %vm216_vm2, %v7242_v0 }
  0x3e   : > { %250 = vst.msk [vmem:[#allocation2 + $0x390] sm:$0x1] %vm216_vm2, %v7242_v0 }
  0x3f   : > { %251 = vst.msk [vmem:[#allocation2 + $0x3a8] sm:$0x1] %vm216_vm2, %v7242_v0 }
  0x40   : > { %252 = vst.msk [vmem:[#allocation2 + $0x3c0] sm:$0x1] %vm216_vm2, %v7242_v0 }
  0x41   : > { %253 = vst.msk [vmem:[#allocation2 + $0x3d8] sm:$0x1] %vm216_vm2, %v7242_v0 }
  0x42   : > { %254 = vst.msk [vmem:[#allocation2 + $0x3f0] sm:$0x1] %vm216_vm2, %v7242_v0 }
  0x43   : > { %255 = vst.msk [vmem:[#allocation2 + $0x408] sm:$0x1] %vm216_vm2, %v7242_v0 }
  0x44   : > { %256 = vst.msk [vmem:[#allocation2 + $0x420] sm:$0x1] %vm216_vm2, %v7242_v0 }
  0x45   : > { %257 = vst.msk [vmem:[#allocation2 + $0x438] sm:$0x1] %vm216_vm2, %v7242_v0 }
  0x46   : > { %258 = vst.msk [vmem:[#allocation2 + $0x450] sm:$0x1] %vm216_vm2, %v7242_v0 }
  0x47   : > { %259 = vst.msk [vmem:[#allocation2 + $0x468] sm:$0x1] %vm216_vm2, %v7242_v0 }
  0x48   : > { %260 = vst.msk [vmem:[#allocation2 + $0x480] sm:$0x1] %vm216_vm2, %v7242_v0 }
  0x49   : > { %261 = vst.msk [vmem:[#allocation2 + $0x498] sm:$0x1] %vm216_vm2, %v7242_v0 }
  0x4a   : > { %262 = vst.msk [vmem:[#allocation2 + $0x4b0] sm:$0x1] %vm216_vm2, %v7242_v0 }
  0x4b   : > { %263 = vst.msk [vmem:[#allocation2 + $0x4c8] sm:$0x1] %vm216_vm2, %v7242_v0 }
  0x4c   : > { %264 = vst.msk [vmem:[#allocation2 + $0x4e0] sm:$0x1] %vm216_vm2, %v7242_v0 }
  0x4d   : > { %265 = vst.msk [vmem:[#allocation2 + $0x29] sm:$0x1] %vm216_vm2, %v7242_v0 }
  0x4e   : > { %266 = vst.msk [vmem:[#allocation2 + $0x41] sm:$0x1] %vm216_vm2, %v7242_v0 }
  0x4f   : > { %267 = vst.msk [vmem:[#allocation2 + $0x59] sm:$0x1] %vm216_vm2, %v7242_v0 }
  0x50   : > { %268 = vst.msk [vmem:[#allocation2 + $0x71] sm:$0x1] %vm216_vm2, %v7242_v0 }
  0x51   : > { %269 = vst.msk [vmem:[#allocation2 + $0x89] sm:$0x1] %vm216_vm2, %v7242_v0 }
  0x52   : > { %270 = vst.msk [vmem:[#allocation2 + $0xa1] sm:$0x1] %vm216_vm2, %v7242_v0 }
  0x53   : > { %271 = vst.msk [vmem:[#allocation2 + $0xb9] sm:$0x1] %vm216_vm2, %v7242_v0 }
  0x54   : > { %272 = vst.msk [vmem:[#allocation2 + $0xd1] sm:$0x1] %vm216_vm2, %v7242_v0 }
  0x55   : > { %273 = vst.msk [vmem:[#allocation2 + $0xe9] sm:$0x1] %vm216_vm2, %v7242_v0  ;;  %v513_v13 = vld [vmem:[#allocation2 + $0x40] sm:$0x3] }
  0x56   : > { %274 = vst.msk [vmem:[#allocation2 + $0x101] sm:$0x1] %vm216_vm2, %v7242_v0  ;;  %v826_v14 = vrot.slane %v513_v13, 1 }
  0x57   : > { %275 = vst.msk [vmem:[#allocation2 + $0x119] sm:$0x1] %vm216_vm2, %v7242_v0 }
  0x58   : > { %276 = vst.msk [vmem:[#allocation2 + $0x131] sm:$0x1] %vm216_vm2, %v7242_v0  ;;  %v7498_v15 = vsel %vm812_vm1, %v824_v11, %v826_v14 }
  0x59   : > { %277 = vst.msk [vmem:[#allocation2 + $0x149] sm:$0x1] %vm216_vm2, %v7242_v0  ;;  %1189 = vrot.lane.b32.xlu2 %v7498_v15, %s7243_s24 }
  0x5a   : > { %278 = vst.msk [vmem:[#allocation2 + $0x161] sm:$0x1] %vm216_vm2, %v7242_v0 }
  0x5b   : > { %279 = vst.msk [vmem:[#allocation2 + $0x179] sm:$0x1] %vm216_vm2, %v7242_v0 }
  0x5c   : > { %280 = vst.msk [vmem:[#allocation2 + $0x191] sm:$0x1] %vm216_vm2, %v7242_v0 }
  0x5d   : > { %281 = vst.msk [vmem:[#allocation2 + $0x1d9] sm:$0x1] %vm216_vm2, %v7242_v0 }
  0x5e   : > { %282 = vst.msk [vmem:[#allocation2 + $0x1f1] sm:$0x1] %vm216_vm2, %v7242_v0 }
  0x5f   : > { %283 = vst.msk [vmem:[#allocation2 + $0x209] sm:$0x1] %vm216_vm2, %v7242_v0 }
  0x60   : > { %284 = vst.msk [vmem:[#allocation2 + $0x221] sm:$0x1] %vm216_vm2, %v7242_v0 }
  0x61   : > { %285 = vst.msk [vmem:[#allocation2 + $0x239] sm:$0x1] %vm216_vm2, %v7242_v0 }
  0x62   : > { %286 = vst.msk [vmem:[#allocation2 + $0x251] sm:$0x1] %vm216_vm2, %v7242_v0 }
  0x63   : > { %287 = vst.msk [vmem:[#allocation2 + $0x269] sm:$0x1] %vm216_vm2, %v7242_v0 }
  0x64   : > { %288 = vst.msk [vmem:[#allocation2 + $0x281] sm:$0x1] %vm216_vm2, %v7242_v0 }
  0x65   : > { %289 = vst.msk [vmem:[#allocation2 + $0x299] sm:$0x1] %vm216_vm2, %v7242_v0 }
  0x66   : > { %290 = vst.msk [vmem:[#allocation2 + $0x2b1] sm:$0x1] %vm216_vm2, %v7242_v0 }
  0x67   : > { %291 = vst.msk [vmem:[#allocation2 + $0x2c9] sm:$0x1] %vm216_vm2, %v7242_v0 }
  0x68   : > { %292 = vst.msk [vmem:[#allocation2 + $0x2e1] sm:$0x1] %vm216_vm2, %v7242_v0 }
  0x69   : > { %293 = vst.msk [vmem:[#allocation2 + $0x2f9] sm:$0x1] %vm216_vm2, %v7242_v0 }
  0x6a   : > { %294 = vst.msk [vmem:[#allocation2 + $0x311] sm:$0x1] %vm216_vm2, %v7242_v0 }
  0x6b   : > { %295 = vst.msk [vmem:[#allocation2 + $0x329] sm:$0x1] %vm216_vm2, %v7242_v0 }
  0x6c   : > { %296 = vst.msk [vmem:[#allocation2 + $0x341] sm:$0x1] %vm216_vm2, %v7242_v0 }
  0x6d   : > { %297 = vst.msk [vmem:[#allocation2 + $0x389] sm:$0x1] %vm216_vm2, %v7242_v0 }
  0x6e   : > { %13932 = vst [vmem:[#allocation8_spill] sm:$0xff] %v7498_v15 }
  0x6f   : > { %298 = vst.msk [vmem:[#allocation2 + $0x3a1] sm:$0x1] %vm216_vm2, %v7242_v0 }
  0x70   : > { %299 = vst.msk [vmem:[#allocation2 + $0x3b9] sm:$0x1] %vm216_vm2, %v7242_v0 }
  0x71   : > { %300 = vst.msk [vmem:[#allocation2 + $0x3d1] sm:$0x1] %vm216_vm2, %v7242_v0 }
  0x72   : > { %301 = vst.msk [vmem:[#allocation2 + $0x3e9] sm:$0x1] %vm216_vm2, %v7242_v0 }
  0x73   : > { %302 = vst.msk [vmem:[#allocation2 + $0x401] sm:$0x1] %vm216_vm2, %v7242_v0 }
  0x74   : > { %303 = vst.msk [vmem:[#allocation2 + $0x419] sm:$0x1] %vm216_vm2, %v7242_v0 }
  0x75   : > { %304 = vst.msk [vmem:[#allocation2 + $0x431] sm:$0x1] %vm216_vm2, %v7242_v0 }
  0x76   : > { %305 = vst.msk [vmem:[#allocation2 + $0x449] sm:$0x1] %vm216_vm2, %v7242_v0 }
  0x77   : > { %306 = vst.msk [vmem:[#allocation2 + $0x461] sm:$0x1] %vm216_vm2, %v7242_v0 }
  0x78   : > { %307 = vst.msk [vmem:[#allocation2 + $0x479] sm:$0x1] %vm216_vm2, %v7242_v0 }
  0x79   : > { %308 = vst.msk [vmem:[#allocation2 + $0x491] sm:$0x1] %vm216_vm2, %v7242_v0 }
  0x7a   : > { %309 = vst.msk [vmem:[#allocation2 + $0x4a9] sm:$0x1] %vm216_vm2, %v7242_v0 }
  0x7b   : > { %310 = vst.msk [vmem:[#allocation2 + $0x4c1] sm:$0x1] %vm216_vm2, %v7242_v0 }
  0x7c   : > { %311 = vst.msk [vmem:[#allocation2 + $0x4d9] sm:$0x1] %vm216_vm2, %v7242_v0 }
  0x7d   : > { %312 = vst.msk [vmem:[#allocation2 + $0x4f1] sm:$0x1] %vm216_vm2, %v7242_v0 }
  0x7e   : > { %409 = vst.msk [vmem:[#allocation2 + $0x19] sm:$0xff] %vm194_vm0, %v313_v16 }
  0x7f   : > { %410 = vst.msk [vmem:[#allocation2 + $0x21] sm:$0xff] %vm194_vm0, %v314_v17 }
  0x80   : > { %198 = vst.msk [vmem:[#allocation2 + $0x10] sm:$0x3] %vm197_vm3, %v7242_v0 }
  0x81   : > { %201 = vst.msk [vmem:[#allocation2 + $0x1c0] sm:$0x3] %vm197_vm3, %v7242_v0 }
  0x82   : > { %204 = vst.msk [vmem:[#allocation2 + $0x370] sm:$0x3] %vm197_vm3, %v7242_v0 }
  0x83   : > { %208 = vst.msk [vmem:[#allocation2 + $0x1a8] sm:$0x3] %vm197_vm3, %v7242_v0 }
  0x84   : > { %211 = vst.msk [vmem:[#allocation2 + $0x358] sm:$0x3] %vm197_vm3, %v7242_v0 }
  0x85   : > { %v508_v20 = vld [vmem:[#allocation2 + $0x18] sm:$0xff]  ;;  %214 = vst.msk [vmem:[#allocation2 + $0x508] sm:$0x3] %vm197_vm3, %v7242_v0  ;;  %v333_v0 = vld [vmem:[%s7299_s23 + $0xa0] sm:$0xff] }
  0x86   : > { %v509_v22 = vld [vmem:[#allocation2 + $0x20] sm:$0xff]  ;;  %v818_v23 = vrot.slane %v508_v20, 1  ;;  %413 = vst.msk [vmem:[#allocation2 + $0x49] sm:$0xff] %vm194_vm0, %v317_v18  ;;  %v510_v29 = vld [vmem:[#allocation2 + $0x28] sm:$0x3] }
  0x87   : > { %v819_v25 = vrot.slane %v509_v22, 1  ;;  %v507_v26 = vld [vmem:[#allocation2 + $0x10] sm:$0x3]  ;;  %414 = vst.msk [vmem:[#allocation2 + $0x51] sm:$0xff] %vm194_vm0, %v318_v19  ;;  %v821_v35 = vrot.slane %v510_v29, 1  ;;  %v337_v20 = vld [vmem:[%s7299_s23 + $0xc0] sm:$0xff] }
  0x88   : > { %v816_v28 = vrot.slane %v507_v26, 1  ;;  %415 = vst.msk [vmem:[#allocation2 + $0x61] sm:$0xff] %vm194_vm0, %v319_v21  ;;  %v338_v21 = vld [vmem:[%s7299_s23 + $0xc8] sm:$0xff] }
  0x89   : > { %v7552_v31 = vsel %vm812_vm1, %v818_v23, %v819_v25  ;;  %416 = vst.msk [vmem:[#allocation2 + $0x69] sm:$0xff] %vm194_vm0, %v320_v24  ;;  %v7576_v43 = vsel %vm812_vm1, %v819_v25, %v821_v35  ;;  %v339_v35 = vld [vmem:[%s7299_s23 + $0xd0] sm:$0xff] }
  0x8a   : > { %13933 = vst [vmem:[#allocation9_spill] sm:$0xff] %v7552_v31  ;;  %1183 = vrot.lane.b32.xlu1 %v7552_v31, %s7243_s24  ;;  %v7561_v33 = vsel %vm812_vm1, %v814_v4, %v816_v28  ;;  %v335_v4 = vld [vmem:[%s7299_s23 + $0xb0] sm:$0xff] }
  0x8b   : > { %13934 = vst [vmem:[#allocation10_spill] sm:$0xff] %v7561_v33  ;;  %1181 = vrot.lane.b32.xlu0 %v7561_v33, %s7243_s24  ;;  %v370_v33 = vld [vmem:[%s7299_s23 + $0x1c8] sm:$0xff] }
  0x8c   : > { %417 = vst.msk [vmem:[#allocation2 + $0x79] sm:$0xff] %vm194_vm0, %v321_v27 }
  0x8d   : > { %418 = vst.msk [vmem:[#allocation2 + $0x81] sm:$0xff] %vm194_vm0, %v322_v30  ;;  %v514_v38 = vld [vmem:[#allocation2 + $0x48] sm:$0xff] }
  0x8e   : > { %419 = vst.msk [vmem:[#allocation2 + $0x91] sm:$0xff] %vm194_vm0, %v323_v32  ;;  %v515_v40 = vld [vmem:[#allocation2 + $0x50] sm:$0xff]  ;;  %v828_v41 = vrot.slane %v514_v38, 1  ;;  %v516_v49 = vld [vmem:[#allocation2 + $0x58] sm:$0x3] }
  0x8f   : > { %420 = vst.msk [vmem:[#allocation2 + $0x99] sm:$0xff] %vm194_vm0, %v324_v34  ;;  %v829_v44 = vrot.slane %v515_v40, 1  ;;  %v517_v45 = vld [vmem:[#allocation2 + $0x60] sm:$0xff]  ;;  %v831_v59 = vrot.slane %v516_v49, 1 }
  0x90   : > { %421 = vst.msk [vmem:[#allocation2 + $0xa9] sm:$0xff] %vm194_vm0, %v325_v36  ;;  %v518_v47 = vld [vmem:[#allocation2 + $0x68] sm:$0xff]  ;;  %v833_v48 = vrot.slane %v517_v45, 1  ;;  %v519_v53 = vld [vmem:[#allocation2 + $0x70] sm:$0x3]  ;;  %v340_v36 = vld [vmem:[%s7299_s23 + $0xd8] sm:$0xff] }
  0x91   : > { %13935 = vst [vmem:[#allocation11_spill] sm:$0xff] %v7576_v43  ;;  %v7583_v51 = vsel %vm812_vm1, %v828_v41, %v829_v44  ;;  %v834_v52 = vrot.slane %v518_v47, 1  ;;  %v836_v60 = vrot.slane %v519_v53, 1  ;;  %v7602_v63 = vsel %vm812_vm1, %v829_v44, %v831_v59  ;;  %v342_v44 = vld [vmem:[%s7299_s23 + $0xe8] sm:$0xff] }
  0x92   : > { %422 = vst.msk [vmem:[#allocation2 + $0xb1] sm:$0xff] %vm194_vm0, %v326_v37  ;;  %1185 = vrot.lane.b32.xlu1 %v7576_v43, %s7243_s24 }
  0x93   : > { %423 = vst.msk [vmem:[#allocation2 + $0xc1] sm:$0xff] %vm194_vm0, %v327_v39  ;;  %1191 = vrot.lane.b32.xlu0 %v7583_v51, %s7243_s24  ;;  %v7594_v58 = vsel %vm812_vm1, %v833_v48, %v834_v52  ;;  %v7607_v2 = vsel %vm812_vm1, %v834_v52, %v836_v60  ;;  %v520_v3 = vld [vmem:[#allocation2 + $0x78] sm:$0xff]  ;;  %v341_v39 = vld [vmem:[%s7299_s23 + $0xe0] sm:$0xff] }
  0x94   : > { %13936 = vst [vmem:[#allocation12_spill] sm:$0xff] %v7583_v51  ;;  %v521_v55 = vld [vmem:[#allocation2 + $0x80] sm:$0xff]  ;;  %v522_v56 = vld [vmem:[#allocation2 + $0x88] sm:$0x3]  ;;  %1195 = vrot.lane.b32.xlu2 %v7594_v58, %s7243_s24  ;;  %v838_v13 = vrot.slane %v520_v3, 1 }
  0x95   : > { %424 = vst.msk [vmem:[#allocation2 + $0xc9] sm:$0xff] %vm194_vm0, %v328_v42  ;;  %v839_v61 = vrot.slane %v521_v55, 1  ;;  %v841_v62 = vrot.slane %v522_v56, 1  ;;  %v523_v7 = vld [vmem:[#allocation2 + $0x90] sm:$0xff] }
  0x96   : > { %425 = vst.msk [vmem:[#allocation2 + $0xd9] sm:$0xff] %vm194_vm0, %v329_v46  ;;  %v524_v8 = vld [vmem:[#allocation2 + $0x98] sm:$0xff]  ;;  %v843_v14 = vrot.slane %v523_v7, 1  ;;  %v525_v23 = vld [vmem:[#allocation2 + $0xa0] sm:$0x3] }
  0x97   : > { %13937 = vst [vmem:[#allocation13_spill] sm:$0xff] %v7594_v58  ;;  %v7612_v5 = vsel %vm812_vm1, %v839_v61, %v841_v62  ;;  %v526_v10 = vld [vmem:[#allocation2 + $0xa8] sm:$0xff]  ;;  %v844_v16 = vrot.slane %v524_v8, 1  ;;  %v7625_v19 = vsel %vm812_vm1, %v838_v13, %v839_v61  ;;  %v846_v28 = vrot.slane %v525_v23, 1  ;;  %v345_v8 = vld [vmem:[%s7299_s23 + $0x100] sm:$0xff] }
  0x98   : > { %426 = vst.msk [vmem:[#allocation2 + $0xe1] sm:$0xff] %vm194_vm0, %v330_v50  ;;  %v848_v17 = vrot.slane %v526_v10, 1  ;;  %v347_v10 = vld [vmem:[%s7299_s23 + $0x110] sm:$0xff] }
  0x99   : > { %427 = vst.msk [vmem:[#allocation2 + $0xf1] sm:$0xff] %vm194_vm0, %v331_v54  ;;  %v527_v11 = vld [vmem:[#allocation2 + $0xb0] sm:$0xff]  ;;  %v7630_v22 = vsel %vm812_vm1, %v843_v14, %v844_v16  ;;  %v528_v25 = vld [vmem:[#allocation2 + $0xb8] sm:$0x3]  ;;  %v7644_v34 = vsel %vm812_vm1, %v844_v16, %v846_v28  ;;  %v349_v28 = vld [vmem:[%s7299_s23 + $0x120] sm:$0xff] }
  0x9a   : > { %428 = vst.msk [vmem:[#allocation2 + $0xf9] sm:$0xff] %vm194_vm0, %v332_v57  ;;  %1193 = vrot.lane.b32.xlu1 %v7602_v63, %s7243_s24  ;;  %v849_v18 = vrot.slane %v527_v11, 1  ;;  %v851_v29 = vrot.slane %v528_v25, 1  ;;  %v529_v38 = vld [vmem:[#allocation2 + $0xc0] sm:$0xff]  ;;  %v348_v16 = vld [vmem:[%s7299_s23 + $0x118] sm:$0xff] }
  0x9b   : > { %13938 = vst [vmem:[#allocation14_spill] sm:$0xff] %v7602_v63  ;;  %1197 = vrot.lane.b32.xlu0 %v7607_v2, %s7243_s24  ;;  %v853_v47 = vrot.slane %v529_v38, 1 }
  0x9c   : > { %13939 = vst [vmem:[#allocation15_spill] sm:$0xff] %v7607_v2  ;;  %1201 = vrot.lane.b32.xlu2 %v7612_v5, %s7243_s24  ;;  %v7634_v24 = vsel %vm812_vm1, %v848_v17, %v849_v18  ;;  %v530_v26 = vld [vmem:[#allocation2 + $0xc8] sm:$0xff]  ;;  %v531_v27 = vld [vmem:[#allocation2 + $0xd0] sm:$0x3]  ;;  %v7649_v37 = vsel %vm812_vm1, %v849_v18, %v851_v29  ;;  %v405_v2 = vld [vmem:[%s7299_s23 + $0x2e0] sm:$0xff] }
  0x9d   : > { %429 = vst.msk [vmem:[#allocation2 + $0x109] sm:$0xff] %vm194_vm0, %v333_v0  ;;  %v854_v30 = vrot.slane %v530_v26, 1  ;;  %v856_v32 = vrot.slane %v531_v27, 1  ;;  %v532_v41 = vld [vmem:[#allocation2 + $0xd8] sm:$0xff]  ;;  %v350_v29 = vld [vmem:[%s7299_s23 + $0x128] sm:$0xff] }
  0x9e   : > { %13940 = vst [vmem:[#allocation16_spill] sm:$0xff] %v7612_v5  ;;  %v858_v48 = vrot.slane %v532_v41, 1 }
  0x9f   : > { %430 = vst.msk [vmem:[#allocation2 + $0x111] sm:$0xff] %vm194_vm0, %v334_v1  ;;  %v7654_v40 = vsel %vm812_vm1, %v854_v30, %v856_v32  ;;  %v533_v42 = vld [vmem:[#allocation2 + $0xe0] sm:$0xff]  ;;  %v7667_v53 = vsel %vm812_vm1, %v853_v47, %v854_v30  ;;  %v534_v55 = vld [vmem:[#allocation2 + $0xe8] sm:$0x3]  ;;  %v351_v47 = vld [vmem:[%s7299_s23 + $0x130] sm:$0xff] }
  0xa0   : > { %431 = vst.msk [vmem:[#allocation2 + $0x121] sm:$0xff] %vm194_vm0, %v335_v4  ;;  %v535_v45 = vld [vmem:[#allocation2 + $0xf0] sm:$0xff]  ;;  %v859_v49 = vrot.slane %v533_v42, 1  ;;  %v861_v61 = vrot.slane %v534_v55, 1 }
  0xa1   : > { %432 = vst.msk [vmem:[#allocation2 + $0x129] sm:$0xff] %vm194_vm0, %v336_v9  ;;  %v536_v46 = vld [vmem:[#allocation2 + $0xf8] sm:$0xff]  ;;  %v863_v50 = vrot.slane %v535_v45, 1  ;;  %v537_v57 = vld [vmem:[#allocation2 + $0x100] sm:$0x3]  ;;  %v346_v9 = vld [vmem:[%s7299_s23 + $0x108] sm:$0xff] }
  0xa2   : > { %13941 = vst [vmem:[#allocation17_spill] sm:$0xff] %v7625_v19  ;;  %1199 = vrot.lane.b32.xlu1 %v7625_v19, %s7243_s24  ;;  %v864_v52 = vrot.slane %v536_v46, 1  ;;  %v7670_v54 = vsel %vm812_vm1, %v858_v48, %v859_v49  ;;  %v866_v62 = vrot.slane %v537_v57, 1  ;;  %v7682_v3 = vsel %vm812_vm1, %v859_v49, %v861_v61  ;;  %v352_v48 = vld [vmem:[%s7299_s23 + $0x138] sm:$0xff]  ;;  %v559_v61 = vld [vmem:[#allocation2 + $0x1b0] sm:$0xff]  ;;  %v406_v19 = vld [vmem:[%s7299_s23 + $0x2e8] sm:$0xff] }
  0xa3   : > { %13942 = vst [vmem:[#allocation18_spill] sm:$0xff] %v7630_v22  ;;  %1203 = vrot.lane.b32.xlu0 %v7630_v22, %s7243_s24 }
  0xa4   : > { %433 = vst.msk [vmem:[#allocation2 + $0x139] sm:$0xff] %vm194_vm0, %v337_v20  ;;  %1207 = vrot.lane.b32.xlu2 %v7634_v24, %s7243_s24  ;;  %v7673_v56 = vsel %vm812_vm1, %v863_v50, %v864_v52  ;;  %v538_v4 = vld [vmem:[#allocation2 + $0x108] sm:$0xff]  ;;  %v7685_v7 = vsel %vm812_vm1, %v864_v52, %v866_v62  ;;  %v353_v52 = vld [vmem:[%s7299_s23 + $0x140] sm:$0xff]  ;;  %v560_v62 = vld [vmem:[#allocation2 + $0x1b8] sm:$0xff] }
  0xa5   : > { %13943 = vst [vmem:[#allocation19_spill] sm:$0xff] %v7634_v24  ;;  %v868_v20 = vrot.slane %v538_v4, 1 }
  0xa6   : > { %434 = vst.msk [vmem:[#allocation2 + $0x141] sm:$0xff] %vm194_vm0, %v338_v21  ;;  %v539_v59 = vld [vmem:[#allocation2 + $0x110] sm:$0xff]  ;;  %v540_v60 = vld [vmem:[#allocation2 + $0x118] sm:$0x3] }
  0xa7   : > { %13944 = vst [vmem:[#allocation20_spill] sm:$0xff] %v7644_v34  ;;  %v869_v0 = vrot.slane %v539_v59, 1  ;;  %v871_v1 = vrot.slane %v540_v60, 1  ;;  %v541_v13 = vld [vmem:[#allocation2 + $0x120] sm:$0xff]  ;;  %v354_v60 = vld [vmem:[%s7299_s23 + $0x148] sm:$0xff] }
  0xa8   : > { %13945 = vst [vmem:[#allocation21_spill] sm:$0xff] %v7649_v37  ;;  %v542_v14 = vld [vmem:[#allocation2 + $0x128] sm:$0xff]  ;;  %v873_v21 = vrot.slane %v541_v13, 1  ;;  %v543_v32 = vld [vmem:[#allocation2 + $0x130] sm:$0x3] }
  0xa9   : > { %435 = vst.msk [vmem:[#allocation2 + $0x151] sm:$0xff] %vm194_vm0, %v339_v35  ;;  %v7691_v11 = vsel %vm812_vm1, %v869_v0, %v871_v1  ;;  %v874_v23 = vrot.slane %v542_v14, 1  ;;  %v7705_v27 = vsel %vm812_vm1, %v868_v20, %v869_v0  ;;  %v876_v41 = vrot.slane %v543_v32, 1  ;;  %v355_v13 = vld [vmem:[%s7299_s23 + $0x150] sm:$0xff]  ;;  %v356_v14 = vld [vmem:[%s7299_s23 + $0x158] sm:$0xff] }
  0xaa   : > { %13946 = vst [vmem:[#allocation22_spill] sm:$0xff] %v7654_v40  ;;  %1205 = vrot.lane.b32.xlu1 %v7644_v34, %s7243_s24  ;;  %v561_v20 = vld [vmem:[#allocation2 + $0x1c0] sm:$0x3] }
  0xab   : > { %436 = vst.msk [vmem:[#allocation2 + $0x159] sm:$0xff] %vm194_vm0, %v340_v36  ;;  %1209 = vrot.lane.b32.xlu0 %v7649_v37, %s7243_s24  ;;  %v544_v17 = vld [vmem:[#allocation2 + $0x138] sm:$0xff]  ;;  %v7710_v30 = vsel %vm812_vm1, %v873_v21, %v874_v23  ;;  %v7724_v46 = vsel %vm812_vm1, %v874_v23, %v876_v41  ;;  %v399_v37 = vld [vmem:[%s7299_s23 + $0x2b0] sm:$0xff] }
  0xac   : > { %437 = vst.msk [vmem:[#allocation2 + $0x169] sm:$0xff] %vm194_vm0, %v341_v39  ;;  %1213 = vrot.lane.b32.xlu2 %v7654_v40, %s7243_s24  ;;  %v878_v25 = vrot.slane %v544_v17, 1 }
  0xad   : > { %438 = vst.msk [vmem:[#allocation2 + $0x171] sm:$0xff] %vm194_vm0, %v342_v44  ;;  %v545_v18 = vld [vmem:[#allocation2 + $0x140] sm:$0xff]  ;;  %v546_v36 = vld [vmem:[#allocation2 + $0x148] sm:$0x3] }
  0xae   : > { %13947 = vst [vmem:[#allocation23_spill] sm:$0xff] %v7667_v53  ;;  %v879_v26 = vrot.slane %v545_v18, 1  ;;  %v881_v42 = vrot.slane %v546_v36, 1  ;;  %v357_v36 = vld [vmem:[%s7299_s23 + $0x160] sm:$0xff] }
  0xaf   : > { %13948 = vst [vmem:[#allocation24_spill] sm:$0xff] %v7670_v54 }
  0xb0   : > { %13949 = vst [vmem:[#allocation25_spill] sm:$0xff] %v7673_v56  ;;  %v7714_v35 = vsel %vm812_vm1, %v878_v25, %v879_v26  ;;  %v7729_v49 = vsel %vm812_vm1, %v879_v26, %v881_v42  ;;  %v547_v50 = vld [vmem:[#allocation2 + $0x150] sm:$0xff]  ;;  %v896_v26 = vrot.slane %v561_v20, 1 }
  0xb1   : > { %13950 = vst [vmem:[#allocation26_spill] sm:$0xff] %v7682_v3  ;;  %v883_v0 = vrot.slane %v547_v50, 1  ;;  %v359_v42 = vld [vmem:[%s7299_s23 + $0x170] sm:$0xff]  ;;  %v7782_v50 = vpop.permute.xlu2 %1187 }
  0xb2   : > { %1211 = vrot.lane.b32.xlu1 %v7667_v53, %s7243_s24  ;;  %13951 = vst [vmem:[#allocation27_spill] sm:$0xff] %v7685_v7  ;;  %v548_v38 = vld [vmem:[#allocation2 + $0x158] sm:$0xff]  ;;  %v549_v39 = vld [vmem:[#allocation2 + $0x160] sm:$0x3] }
  0xb3   : > { %1215 = vrot.lane.b32.xlu0 %v7670_v54, %s7243_s24  ;;  %13952 = vst [vmem:[#allocation28_spill] sm:$0xff] %v7691_v11  ;;  %v884_v44 = vrot.slane %v548_v38, 1  ;;  %v886_v45 = vrot.slane %v549_v39, 1  ;;  %v550_v57 = vld [vmem:[#allocation2 + $0x168] sm:$0xff] }
  0xb4   : > { %1219 = vrot.lane.b32.xlu2 %v7673_v56, %s7243_s24  ;;  %441 = vst.msk [vmem:[#allocation2 + $0x1c9] sm:$0xff] %vm194_vm0, %v345_v8  ;;  %v551_v59 = vld [vmem:[#allocation2 + $0x170] sm:$0xff]  ;;  %v888_v1 = vrot.slane %v550_v57, 1  ;;  %v893_v8 = vrot.slane %v559_v61, 1  ;;  %v552_v17 = vld [vmem:[#allocation2 + $0x178] sm:$0x3] }
  0xb5   : > { %442 = vst.msk [vmem:[#allocation2 + $0x1d1] sm:$0xff] %vm194_vm0, %v346_v9  ;;  %v7734_v55 = vsel %vm812_vm1, %v884_v44, %v886_v45  ;;  %v889_v4 = vrot.slane %v551_v59, 1  ;;  %v894_v9 = vrot.slane %v560_v62, 1  ;;  %v891_v25 = vrot.slane %v552_v17, 1  ;;  %v358_v38 = vld [vmem:[%s7299_s23 + $0x168] sm:$0xff] }
  0xb6   : > { %443 = vst.msk [vmem:[#allocation2 + $0x1e1] sm:$0xff] %vm194_vm0, %v347_v10  ;;  %v7747_v10 = vsel %vm812_vm1, %v883_v0, %v884_v44 }
  0xb7   : > { %444 = vst.msk [vmem:[#allocation2 + $0x1e9] sm:$0xff] %vm194_vm0, %v348_v16  ;;  %v7752_v16 = vsel %vm812_vm1, %v888_v1, %v889_v4  ;;  %v7756_v18 = vsel %vm812_vm1, %v893_v8, %v894_v9  ;;  %v7766_v32 = vsel %vm812_vm1, %v889_v4, %v891_v25  ;;  %v7771_v39 = vsel %vm812_vm1, %v894_v9, %v896_v26  ;;  %v361_v4 = vld [vmem:[%s7299_s23 + $0x180] sm:$0xff]  ;;  %v362_v8 = vld [vmem:[%s7299_s23 + $0x188] sm:$0xff] }
  0xb8   : > { %13953 = vst [vmem:[#allocation29_spill] sm:$0xff] %v7705_v27 }
  0xb9   : > { %13954 = vst [vmem:[#allocation30_spill] sm:$0xff] %v7710_v30  ;;  %v7809_v26 = vpop.permute.xlu2 %1189 }
  0xba   : > { %1217 = vrot.lane.b32.xlu1 %v7682_v3, %s7243_s24  ;;  %445 = vst.msk [vmem:[#allocation2 + $0x1f9] sm:$0xff] %vm194_vm0, %v349_v28 }
  0xbb   : > { %1221 = vrot.lane.b32.xlu0 %v7685_v7, %s7243_s24  ;;  %13955 = vst [vmem:[#allocation31_spill] sm:$0xff] %v7714_v35  ;;  %v562_v41 = vld [vmem:[#allocation2 + $0x1c8] sm:$0xff]  ;;  %v393_v7 = vld [vmem:[%s7299_s23 + $0x280] sm:$0xff] }
  0xbc   : > { %1225 = vrot.lane.b32.xlu2 %v7691_v11, %s7243_s24  ;;  %446 = vst.msk [vmem:[#allocation2 + $0x201] sm:$0xff] %vm194_vm0, %v350_v29  ;;  %v563_v21 = vld [vmem:[#allocation2 + $0x1d0] sm:$0xff]  ;;  %v564_v23 = vld [vmem:[#allocation2 + $0x1d8] sm:$0x3]  ;;  %v898_v59 = vrot.slane %v562_v41, 1 }
  0xbd   : > { %13956 = vst [vmem:[#allocation32_spill] sm:$0xff] %v7724_v46  ;;  %v899_v28 = vrot.slane %v563_v21, 1  ;;  %v901_v29 = vrot.slane %v564_v23, 1  ;;  %v565_v45 = vld [vmem:[#allocation2 + $0x1e0] sm:$0xff]  ;;  %v364_v41 = vld [vmem:[%s7299_s23 + $0x198] sm:$0xff] }
  0xbe   : > { %13957 = vst [vmem:[#allocation33_spill] sm:$0xff] %v7729_v49 }
  0xbf   : > { %447 = vst.msk [vmem:[#allocation2 + $0x211] sm:$0xff] %vm194_vm0, %v351_v47  ;;  %v7776_v44 = vsel %vm812_vm1, %v899_v28, %v901_v29  ;;  %v566_v47 = vld [vmem:[#allocation2 + $0x1e8] sm:$0xff]  ;;  %v7791_v1 = vsel %vm812_vm1, %v898_v59, %v899_v28 }
  0xc0   : > { %13958 = vst [vmem:[#allocation34_spill] sm:$0xff] %v7734_v55  ;;  %v904_v61 = vrot.slane %v566_v47, 1  ;;  %v365_v47 = vld [vmem:[%s7299_s23 + $0x1a0] sm:$0xff]  ;;  %v366_v59 = vld [vmem:[%s7299_s23 + $0x1a8] sm:$0xff] }
  0xc1   : > { %448 = vst.msk [vmem:[#allocation2 + $0x219] sm:$0xff] %vm194_vm0, %v352_v48  ;;  %v360_v48 = vld [vmem:[%s7299_s23 + $0x178] sm:$0xff] }
  0xc2   : > { %1223 = vrot.lane.b32.xlu1 %v7705_v27, %s7243_s24  ;;  %449 = vst.msk [vmem:[#allocation2 + $0x229] sm:$0xff] %vm194_vm0, %v353_v52  ;;  %v568_v52 = vld [vmem:[#allocation2 + $0x1f8] sm:$0xff] }
  0xc3   : > { %1227 = vrot.lane.b32.xlu0 %v7710_v30, %s7243_s24  ;;  %450 = vst.msk [vmem:[#allocation2 + $0x231] sm:$0xff] %vm194_vm0, %v354_v60  ;;  %v569_v57 = vld [vmem:[#allocation2 + $0x200] sm:$0xff]  ;;  %v903_v60 = vrot.slane %v565_v45, 1  ;;  %v908_v62 = vrot.slane %v568_v52, 1  ;;  %v570_v17 = vld [vmem:[#allocation2 + $0x208] sm:$0x3] }
  0xc4   : > { %1231 = vrot.lane.b32.xlu2 %v7714_v35, %s7243_s24  ;;  %13959 = vst [vmem:[#allocation35_spill] sm:$0xff] %v7747_v10  ;;  %v909_v0 = vrot.slane %v569_v57, 1  ;;  %v911_v25 = vrot.slane %v570_v17, 1  ;;  %v387_v35 = vld [vmem:[%s7299_s23 + $0x250] sm:$0xff]  ;;  %v388_v30 = vld [vmem:[%s7299_s23 + $0x258] sm:$0xff] }
  0xc5   : > { %13960 = vst [vmem:[#allocation36_spill] sm:$0xff] %v7752_v16  ;;  %v7796_v9 = vsel %vm812_vm1, %v903_v60, %v904_v61 }
  0xc6   : > { %451 = vst.msk [vmem:[#allocation2 + $0x241] sm:$0xff] %vm194_vm0, %v355_v13  ;;  %v567_v13 = vld [vmem:[#allocation2 + $0x1f0] sm:$0x3] }
  0xc7   : > { %13961 = vst [vmem:[#allocation37_spill] sm:$0xff] %v7756_v18  ;;  %v906_v23 = vrot.slane %v567_v13, 1  ;;  %v7819_v45 = vld [vmem:[#allocation2 + $0x210] sm:$0xff] }
  0xc8   : > { %452 = vst.msk [vmem:[#allocation2 + $0x249] sm:$0xff] %vm194_vm0, %v356_v14  ;;  %v7800_v14 = vsel %vm812_vm1, %v908_v62, %v909_v0  ;;  %v572_v20 = vld [vmem:[#allocation2 + $0x218] sm:$0xff]  ;;  %v573_v21 = vld [vmem:[#allocation2 + $0x220] sm:$0x3]  ;;  %v913_v62 = vrot.slane %v7819_v45, 1 }
  0xc9   : > { %13962 = vst [vmem:[#allocation38_spill] sm:$0xff] %v7766_v32  ;;  %v914_v28 = vrot.slane %v572_v20, 1  ;;  %v916_v29 = vrot.slane %v573_v21, 1  ;;  %v7826_v52 = vld [vmem:[#allocation2 + $0x228] sm:$0xff]  ;;  %v367_v21 = vld [vmem:[%s7299_s23 + $0x1b0] sm:$0xff] }
  0xca   : > { %1229 = vrot.lane.b32.xlu1 %v7724_v46, %s7243_s24  ;;  %13963 = vst [vmem:[#allocation39_spill] sm:$0xff] %v7771_v39  ;;  %v7828_v57 = vld [vmem:[#allocation2 + $0x230] sm:$0xff] }
  0xcb   : > { %1233 = vrot.lane.b32.xlu0 %v7729_v49, %s7243_s24  ;;  %453 = vst.msk [vmem:[#allocation2 + $0x259] sm:$0xff] %vm194_vm0, %v357_v36  ;;  %v7812_v36 = vsel %vm812_vm1, %v904_v61, %v906_v23  ;;  %v7852_v20 = vsel %vm812_vm1, %v913_v62, %v914_v28  ;;  %v368_v23 = vld [vmem:[%s7299_s23 + $0x1b8] sm:$0xff] }
  0xcc   : > { %1237 = vrot.lane.b32.xlu2 %v7734_v55, %s7243_s24  ;;  %13964 = vst [vmem:[#allocation40_spill] sm:$0xff] %v7776_v44 }
  0xcd   : > { %454 = vst.msk [vmem:[#allocation2 + $0x261] sm:$0xff] %vm194_vm0, %v358_v38  ;;  %v363_v38 = vld [vmem:[%s7299_s23 + $0x190] sm:$0xff]  ;;  %v7834_v60 = vld [vmem:[#allocation2 + $0x240] sm:$0xff] }
  0xce   : > { %13965 = vst [vmem:[#allocation41_spill] sm:$0xff] %v7782_v50 }
  0xcf   : > { %455 = vst.msk [vmem:[#allocation2 + $0x271] sm:$0xff] %vm194_vm0, %v359_v42  ;;  %v7817_v42 = vsel %vm812_vm1, %v909_v0, %v911_v25  ;;  %v7836_v61 = vld [vmem:[#allocation2 + $0x248] sm:$0xff]  ;;  %v918_v0 = vrot.slane %v7826_v52, 1 }
  0xd0   : > { %456 = vst.msk [vmem:[#allocation2 + $0x279] sm:$0xff] %vm194_vm0, %v360_v48  ;;  %v7824_v48 = vsel %vm812_vm1, %v914_v28, %v916_v29  ;;  %v924_v13 = vrot.slane %v7836_v61, 1  ;;  %v576_v29 = vld [vmem:[#allocation2 + $0x238] sm:$0x3] }
  0xd1   : > { %13966 = vst [vmem:[#allocation42_spill] sm:$0xff] %v7791_v1  ;;  %v921_v62 = vrot.slane %v576_v29, 1  ;;  %v371_v29 = vld [vmem:[%s7299_s23 + $0x1d0] sm:$0xff] }
  0xd2   : > { %1235 = vrot.lane.b32.xlu1 %v7747_v10, %s7243_s24  ;;  %13967 = vst [vmem:[#allocation43_spill] sm:$0xff] %v7796_v9 }
  0xd3   : > { %1239 = vrot.lane.b32.xlu0 %v7752_v16, %s7243_s24  ;;  %457 = vst.msk [vmem:[#allocation2 + $0x289] sm:$0xff] %vm194_vm0, %v361_v4  ;;  %v919_v4 = vrot.slane %v7828_v57, 1 }
  0xd4   : > { %1243 = vrot.lane.b32.xlu2 %v7756_v18, %s7243_s24  ;;  %13968 = vst [vmem:[#allocation44_spill] sm:$0xff] %v7800_v14  ;;  %v7866_v28 = vld [vmem:[#allocation2 + $0x260] sm:$0xff] }
  0xd5   : > { %458 = vst.msk [vmem:[#allocation2 + $0x291] sm:$0xff] %vm194_vm0, %v362_v8  ;;  %v923_v8 = vrot.slane %v7834_v60, 1  ;;  %v7857_v25 = vsel %vm812_vm1, %v918_v0, %v919_v4  ;;  %v369_v18 = vld [vmem:[%s7299_s23 + $0x1c0] sm:$0xff] }
  0xd6   : > { %13969 = vst [vmem:[#allocation45_spill] sm:$0xff] %v7809_v26  ;;  %v7892_v26 = vld [vmem:[#allocation2 + $0x270] sm:$0xff] }
  0xd7   : > { %13970 = vst [vmem:[#allocation46_spill] sm:$0xff] %v7812_v36 }
  0xd8   : > { %13971 = vst [vmem:[#allocation47_spill] sm:$0xff] %v7817_v42 }
  0xd9   : > { %459 = vst.msk [vmem:[#allocation2 + $0x2a1] sm:$0xff] %vm194_vm0, %v363_v38  ;;  %v7861_v38 = vsel %vm812_vm1, %v923_v8, %v924_v13  ;;  %v929_v8 = vrot.slane %v7866_v28, 1 }
  0xda   : > { %1241 = vrot.lane.b32.xlu1 %v7766_v32, %s7243_s24  ;;  %13972 = vst [vmem:[#allocation48_spill] sm:$0xff] %v7824_v48 }
  0xdb   : > { %1245 = vrot.lane.b32.xlu0 %v7771_v39, %s7243_s24  ;;  %460 = vst.msk [vmem:[#allocation2 + $0x2a9] sm:$0xff] %vm194_vm0, %v364_v41  ;;  %v579_v41 = vld [vmem:[#allocation2 + $0x250] sm:$0x3]  ;;  %v7878_v39 = vsel %vm812_vm1, %v919_v4, %v921_v62  ;;  %v372_v4 = vld [vmem:[%s7299_s23 + $0x1d8] sm:$0xff] }
  0xdc   : > { %1249 = vrot.lane.b32.xlu2 %v7776_v44, %s7243_s24  ;;  %461 = vst.msk [vmem:[#allocation2 + $0x2b9] sm:$0xff] %vm194_vm0, %v365_v47  ;;  %v582_v47 = vld [vmem:[#allocation2 + $0x268] sm:$0x3]  ;;  %v926_v0 = vrot.slane %v579_v41, 1  ;;  %v7902_v62 = vld [vmem:[#allocation2 + $0x290] sm:$0xff] }
  0xdd   : > { %462 = vst.msk [vmem:[#allocation2 + $0x2c1] sm:$0xff] %vm194_vm0, %v366_v59  ;;  %v7870_v59 = vpop.permute.xlu0 %1179  ;;  %v939_v50 = vrot.slane %v7902_v62, 1 }
  0xde   : > { %13974 = vst [vmem:[#allocation50_spill] sm:$0xff] %v7852_v20  ;;  %v7883_v6 = vsel %vm812_vm1, %v924_v13, %v926_v0  ;;  %v7900_v13 = vld [vmem:[#allocation2 + $0x288] sm:$0xff]  ;;  %v933_v0 = vrot.slane %v7892_v26, 1 }
  0xdf   : > { %13975 = vst [vmem:[#allocation51_spill] sm:$0xff] %v7857_v25 }
  0xe0   : > { %463 = vst.msk [vmem:[#allocation2 + $0x2d1] sm:$0xff] %vm194_vm0, %v367_v21  ;;  %v931_v21 = vrot.slane %v582_v47, 1  ;;  %v7894_v47 = vld [vmem:[#allocation2 + $0x278] sm:$0xff] }
  0xe1   : > { %13976 = vst [vmem:[#allocation52_spill] sm:$0xff] %v7861_v38 }
  0xe2   : > { %1247 = vrot.lane.b32.xlu1 %v7791_v1, %s7243_s24  ;;  %464 = vst.msk [vmem:[#allocation2 + $0x2d9] sm:$0xff] %vm194_vm0, %v368_v23  ;;  %v7890_v41 = vsel %vm812_vm1, %v929_v8, %v931_v21  ;;  %v934_v21 = vrot.slane %v7894_v47, 1  ;;  %v381_v1 = vld [vmem:[%s7299_s23 + $0x220] sm:$0xff] }
  0xe3   : > { %1251 = vrot.lane.b32.xlu0 %v7796_v9, %s7243_s24  ;;  %13977 = vst [vmem:[#allocation53_spill] sm:$0xff] %v7870_v59  ;;  %v380_v9 = vld [vmem:[%s7299_s23 + $0x218] sm:$0xff] }
  0xe4   : > { %1255 = vrot.lane.b32.xlu2 %v7800_v14, %s7243_s24  ;;  %13979 = vst [vmem:[#allocation55_spill] sm:$0xff] %v7878_v39  ;;  %v378_v14 = vld [vmem:[%s7299_s23 + $0x208] sm:$0xff] }
  0xe5   : > { %13980 = vst [vmem:[#allocation56_spill] sm:$0xff] %v7883_v6 }
  0xe6   : > { %465 = vst.msk [vmem:[#allocation2 + $0x2e9] sm:$0xff] %vm194_vm0, %v369_v18 }
  0xe7   : > { %13981 = vst [vmem:[#allocation57_spill] sm:$0xff] %v7890_v41 }
  0xe8   : > { %466 = vst.msk [vmem:[#allocation2 + $0x2f1] sm:$0xff] %vm194_vm0, %v370_v33 }
  0xe9   : > { %467 = vst.msk [vmem:[#allocation2 + $0x301] sm:$0xff] %vm194_vm0, %v371_v29  ;;  %v938_v29 = vrot.slane %v7900_v13, 1 }
  0xea   : > { %1253 = vrot.lane.b32.xlu1 %v7812_v36, %s7243_s24  ;;  %468 = vst.msk [vmem:[#allocation2 + $0x309] sm:$0xff] %vm194_vm0, %v372_v4  ;;  %v373_v4 = vld [vmem:[%s7299_s23 + $0x1e0] sm:$0xff] }
  0xeb   : > { %1257 = vrot.lane.b32.xlu0 %v7817_v42, %s7243_s24  ;;  %469 = vst.msk [vmem:[#allocation2 + $0x319] sm:$0xff] %vm194_vm0, %v373_v4 }
  0xec   : > { %1261 = vrot.lane.b32.xlu2 %v7824_v48, %s7243_s24  ;;  %474 = vst.msk [vmem:[#allocation2 + $0x381] sm:$0xff] %vm194_vm0, %v378_v14 }
  0xed   : > { %476 = vst.msk [vmem:[#allocation2 + $0x399] sm:$0xff] %vm194_vm0, %v380_v9 }
  0xee   : > { %v7849_v17 = vpop.permute.xlu2 %1195  ;;  %477 = vst.msk [vmem:[#allocation2 + $0x3a9] sm:$0xff] %vm194_vm0, %v381_v1 }
  0xef   : > { %13973 = vst [vmem:[#allocation49_spill] sm:$0xff] %v7849_v17  ;;  %v7885_v17 = vld [vmem:[#allocation2 + $0x258] sm:$0xff] }
  0xf0   : > { %v928_v18 = vrot.slane %v7885_v17, 1  ;;  %483 = vst.msk [vmem:[#allocation2 + $0x3f1] sm:$0xff] %vm194_vm0, %v387_v35 }
  0xf1   : > { %484 = vst.msk [vmem:[#allocation2 + $0x3f9] sm:$0xff] %vm194_vm0, %v388_v30 }
  0xf2   : > { %1259 = vrot.lane.b32.xlu1 %v7852_v20, %s7243_s24  ;;  %v7922_v59 = vsel %vm812_vm1, %v928_v18, %v929_v8  ;;  %v7936_v8 = vld [vmem:[#allocation2 + $0x2a8] sm:$0xff]  ;;  %v591_v18 = vld [vmem:[#allocation2 + $0x2b0] sm:$0x3]  ;;  %v377_v20 = vld [vmem:[%s7299_s23 + $0x200] sm:$0xff]  ;;  %489 = vst.msk [vmem:[#allocation2 + $0x439] sm:$0xff] %vm194_vm0, %v393_v7 }
  0xf3   : > { %1263 = vrot.lane.b32.xlu0 %v7857_v25, %s7243_s24  ;;  %13985 = vst [vmem:[#allocation61_spill] sm:$0xff] %v7922_v59  ;;  %v7927_v25 = vsel %vm812_vm1, %v933_v0, %v934_v21  ;;  %v946_v48 = vrot.slane %v591_v18, 1  ;;  %v7965_v18 = vld [vmem:[#allocation2 + $0x2c0] sm:$0xff] }
  0xf4   : > { %1267 = vrot.lane.b32.xlu2 %v7861_v38, %s7243_s24  ;;  %v374_v38 = vld [vmem:[%s7299_s23 + $0x1e8] sm:$0xff]  ;;  %13986 = vst [vmem:[#allocation62_spill] sm:$0xff] %v7927_v25 }
  0xf5   : > { %470 = vst.msk [vmem:[#allocation2 + $0x321] sm:$0xff] %vm194_vm0, %v374_v38  ;;  %v944_v38 = vrot.slane %v7936_v8, 1 }
  0xf6   : > { %v7875_v23 = vpop.permute.xlu2 %1201  ;;  %473 = vst.msk [vmem:[#allocation2 + $0x379] sm:$0xff] %vm194_vm0, %v377_v20 }
  0xf7   : > { %13978 = vst [vmem:[#allocation54_spill] sm:$0xff] %v7875_v23 }
  0xf8   : > { %495 = vst.msk [vmem:[#allocation2 + $0x481] sm:$0xff] %vm194_vm0, %v399_v37 }
  0xf9   : > { %501 = vst.msk [vmem:[#allocation2 + $0x4c9] sm:$0xff] %vm194_vm0, %v405_v2 }
  0xfa   : > { %1265 = vrot.lane.b32.xlu1 %v7878_v39, %s7243_s24  ;;  %v7931_v39 = vsel %vm812_vm1, %v938_v29, %v939_v50  ;;  %502 = vst.msk [vmem:[#allocation2 + $0x4d1] sm:$0xff] %vm194_vm0, %v406_v19 }
  0xfb   : > { %1269 = vrot.lane.b32.xlu0 %v7883_v6, %s7243_s24  ;;  %13987 = vst [vmem:[#allocation63_spill] sm:$0xff] %v7931_v39 }
  0xfc   : > { %v7909_v33 = vpop.permute.xlu1 %1183  ;;  %1273 = vrot.lane.b32.xlu2 %v7890_v41, %s7243_s24  ;;  %v585_v41 = vld [vmem:[#allocation2 + $0x280] sm:$0x3] }
  0xfd   : > { %13982 = vst [vmem:[#allocation58_spill] sm:$0xff] %v7909_v33  ;;  %v7915_v23 = vpop.permute.xlu0 %1181  ;;  %v936_v0 = vrot.slane %v585_v41, 1 }
  0xfe   : > { %13983 = vst [vmem:[#allocation59_spill] sm:$0xff] %v7915_v23  ;;  %v7919_v6 = vpop.permute.xlu2 %1207  ;;  %v588_v23 = vld [vmem:[#allocation2 + $0x298] sm:$0x3] }
  0xff   : > { %13984 = vst [vmem:[#allocation60_spill] sm:$0xff] %v7919_v6  ;;  %v941_v29 = vrot.slane %v588_v23, 1  ;;  %v7961_v23 = vsel %vm812_vm1, %v944_v38, %v946_v48 }
 0x100   : > { %13993 = vst [vmem:[#allocation69_spill] sm:$0xff] %v7961_v23 }
 0x101   : > { %v7955_v41 = vsel %vm812_vm1, %v939_v50, %v941_v29  ;;  %v7972_v50 = vld [vmem:[#allocation2 + $0x2d8] sm:$0xff] }
 0x102   : > { %1271 = vrot.lane.b32.xlu1 %v7922_v59, %s7243_s24  ;;  %v7950_v59 = vsel %vm812_vm1, %v934_v21, %v936_v0  ;;  %13992 = vst [vmem:[#allocation68_spill] sm:$0xff] %v7955_v41  ;;  %v7970_v21 = vld [vmem:[#allocation2 + $0x2d0] sm:$0xff]  ;;  %v949_v0 = vrot.slane %v7965_v18, 1 }
 0x103   : > { %1275 = vrot.lane.b32.xlu0 %v7927_v25, %s7243_s24  ;;  %13991 = vst [vmem:[#allocation67_spill] sm:$0xff] %v7950_v59  ;;  %v7957_v25 = vld [vmem:[#allocation2 + $0x2a0] sm:$0xff] }
 0x104   : > { %v7940_v6 = vpop.permute.xlu1 %1185  ;;  %1279 = vrot.lane.b32.xlu2 %v7931_v39, %s7243_s24  ;;  %v943_v48 = vrot.slane %v7957_v25, 1  ;;  %v954_v39 = vrot.slane %v7972_v50, 1 }
 0x105   : > { %13988 = vst [vmem:[#allocation64_spill] sm:$0xff] %v7940_v6  ;;  %v7944_v4 = vpop.permute.xlu0 %1191  ;;  %v379_v6 = vld [vmem:[%s7299_s23 + $0x210] sm:$0xff] }
 0x106   : > { %13989 = vst [vmem:[#allocation65_spill] sm:$0xff] %v7944_v4  ;;  %v7947_v42 = vpop.permute.xlu2 %1213  ;;  %v7963_v4 = vld [vmem:[#allocation2 + $0x2b8] sm:$0xff] }
 0x107   : > { %13990 = vst [vmem:[#allocation66_spill] sm:$0xff] %v7947_v42  ;;  %v948_v14 = vrot.slane %v7963_v4, 1  ;;  %v953_v42 = vrot.slane %v7970_v21, 1 }
 0x108   : > { %475 = vst.msk [vmem:[#allocation2 + $0x391] sm:$0xff] %vm194_vm0, %v379_v6 }
 0x109   : > { %v7999_v33 = vsel %vm812_vm1, %v953_v42, %v954_v39 }
 0x10a   : > { %1277 = vrot.lane.b32.xlu1 %v7950_v59, %s7243_s24  ;;  %13999 = vst [vmem:[#allocation75_spill] sm:$0xff] %v7999_v33 }
 0x10b   : > { %1281 = vrot.lane.b32.xlu0 %v7955_v41, %s7243_s24  ;;  %v7990_v41 = vsel %vm812_vm1, %v943_v48, %v944_v38  ;;  %v8004_v38 = vld [vmem:[#allocation2 + $0x2f0] sm:$0xff]  ;;  %v600_v48 = vld [vmem:[#allocation2 + $0x2f8] sm:$0x3] }
 0x10c   : > { %v7977_v20 = vpop.permute.xlu1 %1193  ;;  %1285 = vrot.lane.b32.xlu2 %v7961_v23, %s7243_s24  ;;  %13997 = vst [vmem:[#allocation73_spill] sm:$0xff] %v7990_v41  ;;  %v594_v23 = vld [vmem:[#allocation2 + $0x2c8] sm:$0x3]  ;;  %v959_v9 = vrot.slane %v8004_v38, 1 }
 0x10d   : > { %13994 = vst [vmem:[#allocation70_spill] sm:$0xff] %v7977_v20  ;;  %v7983_v29 = vpop.permute.xlu0 %1197  ;;  %v7994_v20 = vsel %vm812_vm1, %v948_v14, %v949_v0  ;;  %v951_v14 = vrot.slane %v594_v23, 1 }
 0x10e   : > { %13995 = vst [vmem:[#allocation71_spill] sm:$0xff] %v7983_v29  ;;  %v7987_v59 = vpop.permute.xlu2 %1219  ;;  %v597_v29 = vld [vmem:[#allocation2 + $0x2e0] sm:$0x3] }
 0x10f   : > { %13996 = vst [vmem:[#allocation72_spill] sm:$0xff] %v7987_v59  ;;  %v956_v42 = vrot.slane %v597_v29, 1  ;;  %v8018_v44 = vsel %vm812_vm1, %v949_v0, %v951_v14  ;;  %v383_v29 = vld [vmem:[%s7299_s23 + $0x230] sm:$0xff]  ;;  %v384_v0 = vld [vmem:[%s7299_s23 + $0x238] sm:$0xff]  ;;  %v8042_v14 = vld [vmem:[#allocation2 + $0x320] sm:$0xff] }
 0x110   : > { %13998 = vst [vmem:[#allocation74_spill] sm:$0xff] %v7994_v20 }
 0x111   : > { %14003 = vst [vmem:[#allocation79_spill] sm:$0xff] %v8018_v44  ;;  %v8023_v23 = vsel %vm812_vm1, %v954_v39, %v956_v42  ;;  %v8040_v39 = vld [vmem:[#allocation2 + $0x318] sm:$0xff] }
 0x112   : > { %1283 = vrot.lane.b32.xlu1 %v7990_v41, %s7243_s24  ;;  %v961_v41 = vrot.slane %v600_v48, 1  ;;  %14004 = vst [vmem:[#allocation80_spill] sm:$0xff] %v8023_v23  ;;  %v8034_v48 = vld [vmem:[#allocation2 + $0x308] sm:$0xff] }
 0x113   : > { %1287 = vrot.lane.b32.xlu0 %v7994_v20, %s7243_s24  ;;  %v382_v20 = vld [vmem:[%s7299_s23 + $0x228] sm:$0xff]  ;;  %479 = vst.msk [vmem:[#allocation2 + $0x3c1] sm:$0xff] %vm194_vm0, %v383_v29  ;;  %v964_v42 = vrot.slane %v8034_v48, 1  ;;  %v968_v29 = vrot.slane %v8040_v39, 1 }
 0x114   : > { %v8008_v6 = vpop.permute.xlu1 %1199  ;;  %1291 = vrot.lane.b32.xlu2 %v7999_v33, %s7243_s24  ;;  %v8032_v33 = vld [vmem:[#allocation2 + $0x300] sm:$0xff]  ;;  %478 = vst.msk [vmem:[#allocation2 + $0x3b1] sm:$0xff] %vm194_vm0, %v382_v20 }
 0x115   : > { %14000 = vst [vmem:[#allocation76_spill] sm:$0xff] %v8008_v6  ;;  %v8012_v59 = vpop.permute.xlu0 %1203  ;;  %v8025_v6 = vld [vmem:[#allocation2 + $0x2e8] sm:$0xff]  ;;  %v963_v20 = vrot.slane %v8032_v33, 1 }
 0x116   : > { %14001 = vst [vmem:[#allocation77_spill] sm:$0xff] %v8012_v59  ;;  %v8015_v36 = vpop.permute.xlu2 %1225  ;;  %v8030_v59 = vsel %vm812_vm1, %v959_v9, %v961_v41  ;;  %v958_v1 = vrot.slane %v8025_v6, 1 }
 0x117   : > { %14002 = vst [vmem:[#allocation78_spill] sm:$0xff] %v8015_v36  ;;  %v8067_v32 = vsel %vm812_vm1, %v963_v20, %v964_v42 }
 0x118   : > { %14005 = vst [vmem:[#allocation81_spill] sm:$0xff] %v8030_v59  ;;  %v8062_v16 = vsel %vm812_vm1, %v958_v1, %v959_v9  ;;  %v614_v9 = vld [vmem:[#allocation2 + $0x368] sm:$0xff]  ;;  %v615_v1 = vld [vmem:[#allocation2 + $0x370] sm:$0x3] }
 0x119   : > { %480 = vst.msk [vmem:[#allocation2 + $0x3c9] sm:$0xff] %vm194_vm0, %v384_v0  ;;  %v385_v0 = vld [vmem:[%s7299_s23 + $0x240] sm:$0xff]  ;;  %v976_v49 = vrot.slane %v615_v1, 1  ;;  %v8109_v1 = vld [vmem:[#allocation2 + $0x398] sm:$0xff] }
 0x11a   : > { %1289 = vrot.lane.b32.xlu1 %v8018_v44, %s7243_s24  ;;  %v969_v44 = vrot.slane %v8042_v14, 1  ;;  %14009 = vst [vmem:[#allocation85_spill] sm:$0xff] %v8062_v16 }
 0x11b   : > { %1293 = vrot.lane.b32.xlu0 %v8023_v23, %s7243_s24  ;;  %14010 = vst [vmem:[#allocation86_spill] sm:$0xff] %v8067_v32 }
 0x11c   : > { %v8049_v41 = vpop.permute.xlu1 %1205  ;;  %1297 = vrot.lane.b32.xlu2 %v8030_v59, %s7243_s24  ;;  %v603_v59 = vld [vmem:[#allocation2 + $0x310] sm:$0x3]  ;;  %481 = vst.msk [vmem:[#allocation2 + $0x3d9] sm:$0xff] %vm194_vm0, %v385_v0  ;;  %v8071_v55 = vsel %vm812_vm1, %v968_v29, %v969_v44 }
 0x11d   : > { %14006 = vst [vmem:[#allocation82_spill] sm:$0xff] %v8049_v41  ;;  %v8055_v36 = vpop.permute.xlu0 %1209  ;;  %v386_v41 = vld [vmem:[%s7299_s23 + $0x248] sm:$0xff]  ;;  %v966_v20 = vrot.slane %v603_v59, 1 }
 0x11e   : > { %14007 = vst [vmem:[#allocation83_spill] sm:$0xff] %v8055_v36  ;;  %v8059_v23 = vpop.permute.xlu2 %1231  ;;  %v606_v36 = vld [vmem:[#allocation2 + $0x328] sm:$0x3] }
 0x11f   : > { %14008 = vst [vmem:[#allocation84_spill] sm:$0xff] %v8059_v23  ;;  %v971_v29 = vrot.slane %v606_v36, 1 }
 0x120   : > { %14011 = vst [vmem:[#allocation87_spill] sm:$0xff] %v8071_v55 }
 0x121   : > { %482 = vst.msk [vmem:[#allocation2 + $0x3e1] sm:$0xff] %vm194_vm0, %v386_v41  ;;  %v974_v41 = vrot.slane %v614_v9, 1  ;;  %v8092_v59 = vsel %vm812_vm1, %v969_v44, %v971_v29  ;;  %v8101_v9 = vld [vmem:[#allocation2 + $0x380] sm:$0xff]  ;;  %v8107_v44 = vld [vmem:[#allocation2 + $0x390] sm:$0xff] }
 0x122   : > { %1295 = vrot.lane.b32.xlu1 %v8062_v16, %s7243_s24  ;;  %v8087_v16 = vsel %vm812_vm1, %v964_v42, %v966_v20  ;;  %14016 = vst [vmem:[#allocation92_spill] sm:$0xff] %v8092_v59  ;;  %v390_v42 = vld [vmem:[%s7299_s23 + $0x268] sm:$0xff]  ;;  %v979_v20 = vrot.slane %v8101_v9, 1 }
 0x123   : > { %1299 = vrot.lane.b32.xlu0 %v8067_v32, %s7243_s24  ;;  %14015 = vst [vmem:[#allocation91_spill] sm:$0xff] %v8087_v16  ;;  %v8097_v36 = vsel %vm812_vm1, %v974_v41, %v976_v49 }
 0x124   : > { %v8078_v23 = vpop.permute.xlu1 %1211  ;;  %1303 = vrot.lane.b32.xlu2 %v8071_v55, %s7243_s24  ;;  %v389_v55 = vld [vmem:[%s7299_s23 + $0x260] sm:$0xff]  ;;  %14017 = vst [vmem:[#allocation93_spill] sm:$0xff] %v8097_v36 }
 0x125   : > { %14012 = vst [vmem:[#allocation88_spill] sm:$0xff] %v8078_v23  ;;  %v8082_v0 = vpop.permute.xlu0 %1215  ;;  %v613_v23 = vld [vmem:[#allocation2 + $0x360] sm:$0xff] }
 0x126   : > { %14013 = vst [vmem:[#allocation89_spill] sm:$0xff] %v8082_v0  ;;  %v8084_v10 = vpop.permute.xlu2 %1237  ;;  %v8099_v0 = vld [vmem:[#allocation2 + $0x378] sm:$0xff]  ;;  %v973_v35 = vrot.slane %v613_v23, 1 }
 0x127   : > { %14014 = vst [vmem:[#allocation90_spill] sm:$0xff] %v8084_v10  ;;  %v978_v30 = vrot.slane %v8099_v0, 1  ;;  %v983_v10 = vrot.slane %v8107_v44, 1 }
 0x128   : > { %485 = vst.msk [vmem:[#allocation2 + $0x409] sm:$0xff] %vm194_vm0, %v389_v55  ;;  %v984_v55 = vrot.slane %v8109_v1, 1  ;;  %v8128_v23 = vsel %vm812_vm1, %v973_v35, %v974_v41  ;;  %v8142_v41 = vld [vmem:[#allocation2 + $0x3b0] sm:$0xff]  ;;  %v624_v35 = vld [vmem:[#allocation2 + $0x3b8] sm:$0x3] }
 0x129   : > { %486 = vst.msk [vmem:[#allocation2 + $0x411] sm:$0xff] %vm194_vm0, %v390_v42  ;;  %v391_v42 = vld [vmem:[%s7299_s23 + $0x270] sm:$0xff] }
 0x12a   : > { %1301 = vrot.lane.b32.xlu1 %v8087_v16, %s7243_s24  ;;  %14021 = vst [vmem:[#allocation97_spill] sm:$0xff] %v8128_v23  ;;  %v8137_v16 = vsel %vm812_vm1, %v983_v10, %v984_v55 }
 0x12b   : > { %1305 = vrot.lane.b32.xlu0 %v8092_v59, %s7243_s24  ;;  %v8133_v59 = vsel %vm812_vm1, %v978_v30, %v979_v20  ;;  %487 = vst.msk [vmem:[#allocation2 + $0x421] sm:$0xff] %vm194_vm0, %v391_v42 }
 0x12c   : > { %v8115_v49 = vpop.permute.xlu1 %1217  ;;  %1309 = vrot.lane.b32.xlu2 %v8097_v36, %s7243_s24  ;;  %14022 = vst [vmem:[#allocation98_spill] sm:$0xff] %v8133_v59  ;;  %v618_v36 = vld [vmem:[#allocation2 + $0x388] sm:$0x3] }
 0x12d   : > { %14018 = vst [vmem:[#allocation94_spill] sm:$0xff] %v8115_v49  ;;  %v8121_v29 = vpop.permute.xlu0 %1221  ;;  %v392_v49 = vld [vmem:[%s7299_s23 + $0x278] sm:$0xff]  ;;  %v981_v30 = vrot.slane %v618_v36, 1 }
 0x12e   : > { %14019 = vst [vmem:[#allocation95_spill] sm:$0xff] %v8121_v29  ;;  %v8125_v32 = vpop.permute.xlu2 %1243  ;;  %v621_v29 = vld [vmem:[#allocation2 + $0x3a0] sm:$0x3] }
 0x12f   : > { %14020 = vst [vmem:[#allocation96_spill] sm:$0xff] %v8125_v32  ;;  %v986_v10 = vrot.slane %v621_v29, 1  ;;  %v8156_v11 = vsel %vm812_vm1, %v979_v20, %v981_v30  ;;  %v395_v29 = vld [vmem:[%s7299_s23 + $0x290] sm:$0xff]  ;;  %v396_v20 = vld [vmem:[%s7299_s23 + $0x298] sm:$0xff]  ;;  %v8180_v30 = vld [vmem:[#allocation2 + $0x3e0] sm:$0xff] }
 0x130   : > { %14023 = vst [vmem:[#allocation99_spill] sm:$0xff] %v8137_v16 }
 0x131   : > { %488 = vst.msk [vmem:[#allocation2 + $0x429] sm:$0xff] %vm194_vm0, %v392_v49  ;;  %v989_v49 = vrot.slane %v8142_v41, 1  ;;  %v8161_v36 = vsel %vm812_vm1, %v984_v55, %v986_v10  ;;  %v8178_v55 = vld [vmem:[#allocation2 + $0x3d8] sm:$0xff] }
 0x132   : > { %1307 = vrot.lane.b32.xlu1 %v8128_v23, %s7243_s24  ;;  %v991_v23 = vrot.slane %v624_v35, 1  ;;  %14027 = vst [vmem:[#allocation103_spill] sm:$0xff] %v8156_v11  ;;  %v8172_v35 = vld [vmem:[#allocation2 + $0x3c8] sm:$0xff] }
 0x133   : > { %1311 = vrot.lane.b32.xlu0 %v8133_v59, %s7243_s24  ;;  %v394_v59 = vld [vmem:[%s7299_s23 + $0x288] sm:$0xff]  ;;  %14028 = vst [vmem:[#allocation104_spill] sm:$0xff] %v8161_v36  ;;  %v994_v10 = vrot.slane %v8172_v35, 1 }
 0x134   : > { %v8146_v42 = vpop.permute.xlu1 %1223  ;;  %1315 = vrot.lane.b32.xlu2 %v8137_v16, %s7243_s24  ;;  %v8170_v16 = vld [vmem:[#allocation2 + $0x3c0] sm:$0xff]  ;;  %490 = vst.msk [vmem:[#allocation2 + $0x441] sm:$0xff] %vm194_vm0, %v394_v59 }
 0x135   : > { %14024 = vst [vmem:[#allocation100_spill] sm:$0xff] %v8146_v42  ;;  %v8150_v32 = vpop.permute.xlu0 %1227  ;;  %v8163_v42 = vld [vmem:[#allocation2 + $0x3a8] sm:$0xff] }
 0x136   : > { %14025 = vst [vmem:[#allocation101_spill] sm:$0xff] %v8150_v32  ;;  %v8153_v46 = vpop.permute.xlu2 %1249  ;;  %v8168_v32 = vsel %vm812_vm1, %v989_v49, %v991_v23  ;;  %v988_v7 = vrot.slane %v8163_v42, 1  ;;  %v993_v23 = vrot.slane %v8170_v16, 1 }
 0x137   : > { %14026 = vst [vmem:[#allocation102_spill] sm:$0xff] %v8153_v46 }
 0x138   : > { %14029 = vst [vmem:[#allocation105_spill] sm:$0xff] %v8168_v32  ;;  %v8200_v27 = vsel %vm812_vm1, %v988_v7, %v989_v49  ;;  %v8205_v56 = vsel %vm812_vm1, %v993_v23, %v994_v10  ;;  %v8214_v49 = vld [vmem:[#allocation2 + $0x3f8] sm:$0xff]  ;;  %v633_v7 = vld [vmem:[#allocation2 + $0x400] sm:$0x3] }
 0x139   : > { %491 = vst.msk [vmem:[#allocation2 + $0x451] sm:$0xff] %vm194_vm0, %v395_v29  ;;  %v998_v29 = vrot.slane %v8178_v55, 1 }
 0x13a   : > { %1313 = vrot.lane.b32.xlu1 %v8156_v11, %s7243_s24  ;;  %492 = vst.msk [vmem:[#allocation2 + $0x459] sm:$0xff] %vm194_vm0, %v396_v20  ;;  %v999_v11 = vrot.slane %v8180_v30, 1  ;;  %v397_v20 = vld [vmem:[%s7299_s23 + $0x2a0] sm:$0xff] }
 0x13b   : > { %1317 = vrot.lane.b32.xlu0 %v8161_v36, %s7243_s24  ;;  %14033 = vst [vmem:[#allocation109_spill] sm:$0xff] %v8200_v27 }
 0x13c   : > { %v8187_v59 = vpop.permute.xlu1 %1229  ;;  %1321 = vrot.lane.b32.xlu2 %v8168_v32, %s7243_s24  ;;  %14034 = vst [vmem:[#allocation110_spill] sm:$0xff] %v8205_v56  ;;  %v627_v32 = vld [vmem:[#allocation2 + $0x3d0] sm:$0x3]  ;;  %v8209_v54 = vsel %vm812_vm1, %v998_v29, %v999_v11 }
 0x13d   : > { %14030 = vst [vmem:[#allocation106_spill] sm:$0xff] %v8187_v59  ;;  %v8193_v46 = vpop.permute.xlu0 %1233  ;;  %v398_v59 = vld [vmem:[%s7299_s23 + $0x2a8] sm:$0xff]  ;;  %v996_v23 = vrot.slane %v627_v32, 1 }
 0x13e   : > { %14031 = vst [vmem:[#allocation107_spill] sm:$0xff] %v8193_v46  ;;  %v8197_v36 = vpop.permute.xlu2 %1255  ;;  %v630_v46 = vld [vmem:[#allocation2 + $0x3e8] sm:$0x3] }
 0x13f   : > { %14032 = vst [vmem:[#allocation108_spill] sm:$0xff] %v8197_v36  ;;  %v1001_v29 = vrot.slane %v630_v46, 1  ;;  %v8228_v40 = vsel %vm812_vm1, %v994_v10, %v996_v23  ;;  %v401_v46 = vld [vmem:[%s7299_s23 + $0x2c0] sm:$0xff]  ;;  %v402_v10 = vld [vmem:[%s7299_s23 + $0x2c8] sm:$0xff] }
 0x140   : > { %493 = vst.msk [vmem:[#allocation2 + $0x469] sm:$0xff] %vm194_vm0, %v397_v20  ;;  %v8252_v23 = vld [vmem:[#allocation2 + $0x428] sm:$0xff] }
 0x141   : > { %14035 = vst [vmem:[#allocation111_spill] sm:$0xff] %v8209_v54  ;;  %v8233_v32 = vsel %vm812_vm1, %v999_v11, %v1001_v29  ;;  %v8250_v11 = vld [vmem:[#allocation2 + $0x420] sm:$0xff] }
 0x142   : > { %494 = vst.msk [vmem:[#allocation2 + $0x471] sm:$0xff] %vm194_vm0, %v398_v59  ;;  %1319 = vrot.lane.b32.xlu1 %v8200_v27, %s7243_s24  ;;  %v1004_v59 = vrot.slane %v8214_v49, 1  ;;  %v1006_v27 = vrot.slane %v633_v7, 1  ;;  %v8244_v7 = vld [vmem:[#allocation2 + $0x410] sm:$0xff] }
 0x143   : > { %1323 = vrot.lane.b32.xlu0 %v8205_v56, %s7243_s24  ;;  %14039 = vst [vmem:[#allocation115_spill] sm:$0xff] %v8228_v40  ;;  %v400_v56 = vld [vmem:[%s7299_s23 + $0x2b8] sm:$0xff]  ;;  %v1009_v29 = vrot.slane %v8244_v7, 1 }
 0x144   : > { %v8218_v20 = vpop.permute.xlu1 %1235  ;;  %1327 = vrot.lane.b32.xlu2 %v8209_v54, %s7243_s24  ;;  %14040 = vst [vmem:[#allocation116_spill] sm:$0xff] %v8233_v32  ;;  %v8242_v54 = vld [vmem:[#allocation2 + $0x408] sm:$0xff] }
 0x145   : > { %14036 = vst [vmem:[#allocation112_spill] sm:$0xff] %v8218_v20  ;;  %v8222_v36 = vpop.permute.xlu0 %1239  ;;  %v8235_v20 = vld [vmem:[#allocation2 + $0x3f0] sm:$0xff] }
 0x146   : > { %14037 = vst [vmem:[#allocation113_spill] sm:$0xff] %v8222_v36  ;;  %v8225_v3 = vpop.permute.xlu2 %1261  ;;  %v8240_v36 = vsel %vm812_vm1, %v1004_v59, %v1006_v27  ;;  %v1003_v37 = vrot.slane %v8235_v20, 1  ;;  %v1008_v27 = vrot.slane %v8242_v54, 1 }
 0x147   : > { %14038 = vst [vmem:[#allocation114_spill] sm:$0xff] %v8225_v3 }
 0x148   : > { %14041 = vst [vmem:[#allocation117_spill] sm:$0xff] %v8240_v36  ;;  %v8272_v53 = vsel %vm812_vm1, %v1003_v37, %v1004_v59  ;;  %v8277_v24 = vsel %vm812_vm1, %v1008_v27, %v1009_v29  ;;  %v8286_v59 = vld [vmem:[#allocation2 + $0x440] sm:$0xff]  ;;  %v642_v37 = vld [vmem:[#allocation2 + $0x448] sm:$0x3] }
 0x149   : > { %496 = vst.msk [vmem:[#allocation2 + $0x489] sm:$0xff] %vm194_vm0, %v400_v56  ;;  %v1021_v34 = vrot.slane %v642_v37, 1  ;;  %v8315_v37 = vld [vmem:[#allocation2 + $0x458] sm:$0xff] }
 0x14a   : > { %1325 = vrot.lane.b32.xlu1 %v8228_v40, %s7243_s24  ;;  %497 = vst.msk [vmem:[#allocation2 + $0x499] sm:$0xff] %vm194_vm0, %v401_v46  ;;  %v1013_v46 = vrot.slane %v8250_v11, 1  ;;  %v1014_v40 = vrot.slane %v8252_v23, 1  ;;  %v1024_v19 = vrot.slane %v8315_v37, 1  ;;  %v648_v58 = vld [vmem:[#allocation2 + $0x478] sm:$0x3] }
 0x14b   : > { %1329 = vrot.lane.b32.xlu0 %v8233_v32, %s7243_s24  ;;  %498 = vst.msk [vmem:[#allocation2 + $0x4a1] sm:$0xff] %vm194_vm0, %v402_v10  ;;  %v403_v10 = vld [vmem:[%s7299_s23 + $0x2d0] sm:$0xff] }
 0x14c   : > { %v8259_v56 = vpop.permute.xlu1 %1241  ;;  %1333 = vrot.lane.b32.xlu2 %v8240_v36, %s7243_s24  ;;  %14045 = vst [vmem:[#allocation121_spill] sm:$0xff] %v8272_v53  ;;  %v636_v36 = vld [vmem:[#allocation2 + $0x418] sm:$0x3]  ;;  %v8281_v22 = vsel %vm812_vm1, %v1013_v46, %v1014_v40 }
 0x14d   : > { %14042 = vst [vmem:[#allocation118_spill] sm:$0xff] %v8259_v56  ;;  %v8265_v3 = vpop.permute.xlu0 %1245  ;;  %v404_v56 = vld [vmem:[%s7299_s23 + $0x2d8] sm:$0xff]  ;;  %v1011_v27 = vrot.slane %v636_v36, 1 }
 0x14e   : > { %14043 = vst [vmem:[#allocation119_spill] sm:$0xff] %v8265_v3  ;;  %v8269_v32 = vpop.permute.xlu2 %1267  ;;  %v639_v3 = vld [vmem:[#allocation2 + $0x430] sm:$0x3] }
 0x14f   : > { %14044 = vst [vmem:[#allocation120_spill] sm:$0xff] %v8269_v32  ;;  %v1016_v46 = vrot.slane %v639_v3, 1 }
 0x150   : > { %14046 = vst [vmem:[#allocation122_spill] sm:$0xff] %v8277_v24  ;;  %v651_v51 = vld [vmem:[#allocation2 + $0x490] sm:$0x3] }
 0x151   : > { %499 = vst.msk [vmem:[#allocation2 + $0x4b1] sm:$0xff] %vm194_vm0, %v403_v10  ;;  %v8305_v36 = vsel %vm812_vm1, %v1014_v40, %v1016_v46  ;;  %v8322_v40 = vld [vmem:[#allocation2 + $0x470] sm:$0xff]  ;;  %v1036_v63 = vrot.slane %v651_v51, 1 }
 0x152   : > { %14047 = vst [vmem:[#allocation123_spill] sm:$0xff] %v8281_v22  ;;  %1331 = vrot.lane.b32.xlu1 %v8272_v53, %s7243_s24  ;;  %v8300_v53 = vsel %vm812_vm1, %v1009_v29, %v1011_v27  ;;  %v8320_v29 = vld [vmem:[#allocation2 + $0x468] sm:$0xff] }
 0x153   : > { %500 = vst.msk [vmem:[#allocation2 + $0x4b9] sm:$0xff] %vm194_vm0, %v404_v56  ;;  %1335 = vrot.lane.b32.xlu0 %v8277_v24, %s7243_s24  ;;  %v1019_v56 = vrot.slane %v8286_v59, 1  ;;  %v654_v12 = vld [vmem:[#allocation2 + $0x4a8] sm:$0x3] }
 0x154   : > { %v8290_v32 = vpop.permute.xlu1 %1247  ;;  %1339 = vrot.lane.b32.xlu2 %v8281_v22, %s7243_s24  ;;  %14051 = vst [vmem:[#allocation127_spill] sm:$0xff] %v8300_v53  ;;  %v1029_v22 = vrot.slane %v8322_v40, 1 }
 0x155   : > { %14048 = vst [vmem:[#allocation124_spill] sm:$0xff] %v8290_v32  ;;  %v8294_v10 = vpop.permute.xlu0 %1251  ;;  %v8307_v32 = vld [vmem:[#allocation2 + $0x438] sm:$0xff]  ;;  %v8311_v3 = vsel %vm812_vm1, %v1019_v56, %v1021_v34 }
 0x156   : > { %14049 = vst [vmem:[#allocation125_spill] sm:$0xff] %v8294_v10  ;;  %v8297_v5 = vpop.permute.xlu2 %1273  ;;  %v8313_v10 = vld [vmem:[#allocation2 + $0x450] sm:$0xff]  ;;  %v1018_v2 = vrot.slane %v8307_v32, 1 }
 0x157   : > { %14050 = vst [vmem:[#allocation126_spill] sm:$0xff] %v8297_v5  ;;  %v1023_v27 = vrot.slane %v8313_v10, 1  ;;  %v1028_v5 = vrot.slane %v8320_v29, 1 }
 0x158   : > { %14052 = vst [vmem:[#allocation128_spill] sm:$0xff] %v8305_v36  ;;  %v8380_v51 = vld [vmem:[#allocation2 + $0x4b0] sm:$0xff] }
 0x159   : > { %14053 = vst [vmem:[#allocation129_spill] sm:$0xff] %v8311_v3 }
 0x15a   : > { %1337 = vrot.lane.b32.xlu1 %v8300_v53, %s7243_s24  ;;  %v645_v53 = vld [vmem:[#allocation2 + $0x460] sm:$0x3]  ;;  %14068 = vst [vmem:[#allocation144_spill] sm:$0xff] %v8380_v51 }
 0x15b   : > { %1341 = vrot.lane.b32.xlu0 %v8305_v36, %s7243_s24  ;;  %v8340_v36 = vsel %vm812_vm1, %v1018_v2, %v1019_v56  ;;  %v1031_v2 = vrot.slane %v648_v58, 1  ;;  %v8376_v58 = vld [vmem:[#allocation2 + $0x4a0] sm:$0xff] }
 0x15c   : > { %v8327_v34 = vpop.permute.xlu1 %1253  ;;  %1345 = vrot.lane.b32.xlu2 %v8311_v3, %s7243_s24  ;;  %14057 = vst [vmem:[#allocation133_spill] sm:$0xff] %v8340_v36  ;;  %v8346_v3 = vsel %vm812_vm1, %v1028_v5, %v1029_v22  ;;  %v657_v31 = vld [vmem:[#allocation2 + $0x4c0] sm:$0x3] }
 0x15d   : > { %14054 = vst [vmem:[#allocation130_spill] sm:$0xff] %v8327_v34  ;;  %v8333_v46 = vpop.permute.xlu0 %1257  ;;  %v8343_v34 = vsel %vm812_vm1, %v1023_v27, %v1024_v19  ;;  %v8367_v43 = vsel %vm812_vm1, %v1029_v22, %v1031_v2 }
 0x15e   : > { %14055 = vst [vmem:[#allocation131_spill] sm:$0xff] %v8333_v46  ;;  %v8337_v24 = vpop.permute.xlu2 %1279  ;;  %v8350_v46 = vld [vmem:[#allocation2 + $0x488] sm:$0xff] }
 0x15f   : > { %14056 = vst [vmem:[#allocation132_spill] sm:$0xff] %v8337_v24  ;;  %v1026_v24 = vrot.slane %v645_v53, 1  ;;  %v1034_v5 = vrot.slane %v8350_v46, 1  ;;  %v8369_v53 = vld [vmem:[#allocation2 + $0x480] sm:$0xff] }
 0x160   : > { %14058 = vst [vmem:[#allocation134_spill] sm:$0xff] %v8343_v34  ;;  %v1033_v22 = vrot.slane %v8369_v53, 1 }
 0x161   : > { %14059 = vst [vmem:[#allocation135_spill] sm:$0xff] %v8346_v3 }
 0x162   : > { %1343 = vrot.lane.b32.xlu1 %v8340_v36, %s7243_s24  ;;  %v8364_v36 = vsel %vm812_vm1, %v1024_v19, %v1026_v24  ;;  %14064 = vst [vmem:[#allocation140_spill] sm:$0xff] %v8367_v43  ;;  %v1039_v19 = vrot.slane %v8376_v58, 1 }
 0x163   : > { %1347 = vrot.lane.b32.xlu0 %v8343_v34, %s7243_s24  ;;  %14063 = vst [vmem:[#allocation139_spill] sm:$0xff] %v8364_v36 }
 0x164   : > { %v8354_v56 = vpop.permute.xlu1 %1259  ;;  %1351 = vrot.lane.b32.xlu2 %v8346_v3, %s7243_s24  ;;  %v8374_v3 = vld [vmem:[#allocation2 + $0x498] sm:$0xff]  ;;  %14067 = vst [vmem:[#allocation143_spill] sm:$0xff] %v8376_v58 }
 0x165   : > { %14060 = vst [vmem:[#allocation136_spill] sm:$0xff] %v8354_v56  ;;  %v8358_v27 = vpop.permute.xlu0 %1263  ;;  %v8372_v56 = vsel %vm812_vm1, %v1034_v5, %v1036_v63  ;;  %v1038_v63 = vrot.slane %v8374_v3, 1 }
 0x166   : > { %14061 = vst [vmem:[#allocation137_spill] sm:$0xff] %v8358_v27  ;;  %v8361_v15 = vpop.permute.xlu2 %1285  ;;  %v1043_v27 = vrot.slane %v8380_v51, 1  ;;  %v660_v51 = vld [vmem:[#allocation2 + $0x4d8] sm:$0x3] }
 0x167   : > { %14062 = vst [vmem:[#allocation138_spill] sm:$0xff] %v8361_v15  ;;  %v8382_v15 = vld [vmem:[#allocation2 + $0x4b8] sm:$0xff] }
 0x168   : > { %14065 = vst [vmem:[#allocation141_spill] sm:$0xff] %v8372_v56  ;;  %v1044_v34 = vrot.slane %v8382_v15, 1 }
 0x169   : > { %14066 = vst [vmem:[#allocation142_spill] sm:$0xff] %v8374_v3 }
 0x16a   : > { %1349 = vrot.lane.b32.xlu1 %v8364_v36, %s7243_s24  ;;  %14069 = vst [vmem:[#allocation145_spill] sm:$0xff] %v8382_v15  ;;  %v1051_v15 = vrot.slane %v660_v51, 1 }
 0x16b   : > { %1353 = vrot.lane.b32.xlu0 %v8367_v43, %s7243_s24  ;;  %v8400_v43 = vsel %vm812_vm1, %v1033_v22, %v1034_v5  ;;  %v1046_v22 = vrot.slane %v657_v31, 1 }
 0x16c   : > { %v8387_v24 = vpop.permute.xlu1 %1265  ;;  %1357 = vrot.lane.b32.xlu2 %v8372_v56, %s7243_s24  ;;  %14073 = vst [vmem:[#allocation149_spill] sm:$0xff] %v8400_v43  ;;  %v8406_v56 = vsel %vm812_vm1, %v1043_v27, %v1044_v34 }
 0x16d   : > { %14070 = vst [vmem:[#allocation146_spill] sm:$0xff] %v8387_v24  ;;  %v8393_v2 = vpop.permute.xlu0 %1269  ;;  %v8403_v24 = vsel %vm812_vm1, %v1038_v63, %v1039_v19  ;;  %v8427_v58 = vsel %vm812_vm1, %v1044_v34, %v1046_v22 }
 0x16e   : > { %14071 = vst [vmem:[#allocation147_spill] sm:$0xff] %v8393_v2  ;;  %v8397_v36 = vpop.permute.xlu2 %1291  ;;  %v8410_v2 = vld [vmem:[#allocation2 + $0x4d0] sm:$0xff] }
 0x16f   : > { %14072 = vst [vmem:[#allocation148_spill] sm:$0xff] %v8397_v36  ;;  %v1041_v36 = vrot.slane %v654_v12, 1  ;;  %v1049_v27 = vrot.slane %v8410_v2, 1  ;;  %v8429_v12 = vld [vmem:[#allocation2 + $0x4c8] sm:$0xff] }
 0x170   : > { %14074 = vst [vmem:[#allocation150_spill] sm:$0xff] %v8403_v24  ;;  %v1048_v31 = vrot.slane %v8429_v12, 1 }
 0x171   : > { %14075 = vst [vmem:[#allocation151_spill] sm:$0xff] %v8406_v56 }
 0x172   : > { %1355 = vrot.lane.b32.xlu1 %v8400_v43, %s7243_s24  ;;  %v8424_v43 = vsel %vm812_vm1, %v1039_v19, %v1041_v36  ;;  %14080 = vst [vmem:[#allocation156_spill] sm:$0xff] %v8427_v58  ;;  %v8452_v19 = vld [vmem:[#allocation2 + $0x18] sm:$0xff] }
 0x173   : > { %1359 = vrot.lane.b32.xlu0 %v8403_v24, %s7243_s24  ;;  %14079 = vst [vmem:[#allocation155_spill] sm:$0xff] %v8424_v43  ;;  %v8512_v24 = vld [vmem:[#allocation2 + $0x98] sm:$0xff] }
 0x174   : > { %v8414_v5 = vpop.permute.xlu1 %1271  ;;  %1363 = vrot.lane.b32.xlu2 %v8406_v56, %s7243_s24  ;;  %v8506_v56 = vld [vmem:[#allocation2 + $0x80] sm:$0xff]  ;;  %14102 = vst [vmem:[#allocation178_spill] sm:$0xff] %v8512_v24 }
 0x175   : > { %14076 = vst [vmem:[#allocation152_spill] sm:$0xff] %v8414_v5  ;;  %v8418_v63 = vpop.permute.xlu0 %1275  ;;  %v8432_v5 = vsel %vm812_vm1, %v1049_v27, %v1051_v15  ;;  %v8448_v15 = vsel %vm812_vm1, %v1048_v31, %v1049_v27  ;;  %v8466_v31 = vld [vmem:[#allocation2 + $0x20] sm:$0xff] }
 0x176   : > { %14077 = vst [vmem:[#allocation153_spill] sm:$0xff] %v8418_v63  ;;  %v8421_v3 = vpop.permute.xlu2 %1297  ;;  %v8484_v63 = vld [vmem:[#allocation2 + $0x48] sm:$0xff] }
 0x177   : > { %14078 = vst [vmem:[#allocation154_spill] sm:$0xff] %v8421_v3  ;;  %v8458_v3 = vld [vmem:[#allocation2 + $0x30] sm:$0xff] }
 0x178   : > { %14081 = vst [vmem:[#allocation157_spill] sm:$0xff] %v8432_v5 }
 0x179   : > { %14085 = vst [vmem:[#allocation161_spill] sm:$0xff] %v8448_v15 }
 0x17a   : > { %1361 = vrot.lane.b32.xlu1 %v8424_v43, %s7243_s24  ;;  %14093 = vst [vmem:[#allocation169_spill] sm:$0xff] %v8484_v63  ;;  %v8520_v43 = vld [vmem:[#allocation2 + $0x90] sm:$0xff] }
 0x17b   : > { %1365 = vrot.lane.b32.xlu0 %v8427_v58, %s7243_s24  ;;  %v8494_v58 = vld [vmem:[#allocation2 + $0x78] sm:$0xff]  ;;  %14100 = vst [vmem:[#allocation176_spill] sm:$0xff] %v8506_v56 }
 0x17c   : > { %v8439_v51 = vpop.permute.xlu1 %1277  ;;  %1369 = vrot.lane.b32.xlu2 %v8432_v5, %s7243_s24  ;;  %v8488_v5 = vld [vmem:[#allocation2 + $0x60] sm:$0xff]  ;;  %14096 = vst [vmem:[#allocation172_spill] sm:$0xff] %v8494_v58 }
 0x17d   : > { %14082 = vst [vmem:[#allocation158_spill] sm:$0xff] %v8439_v51  ;;  %v8443_v36 = vpop.permute.xlu0 %1281  ;;  %v8476_v51 = vld [vmem:[#allocation2 + $0x50] sm:$0xff] }
 0x17e   : > { %14083 = vst [vmem:[#allocation159_spill] sm:$0xff] %v8443_v36  ;;  %v8445_v34 = vpop.permute.xlu2 %1303  ;;  %v8470_v36 = vld [vmem:[#allocation2 + $0x38] sm:$0xff] }
 0x17f   : > { %14084 = vst [vmem:[#allocation160_spill] sm:$0xff] %v8445_v34 }
 0x180   : > { %14090 = vst [vmem:[#allocation166_spill] sm:$0xff] %v8476_v51 }
 0x181   : > { %14094 = vst [vmem:[#allocation170_spill] sm:$0xff] %v8488_v5 }
 0x182   : > { %1367 = vrot.lane.b32.xlu1 %v8448_v15, %s7243_s24  ;;  %v8502_v15 = vld [vmem:[#allocation2 + $0x68] sm:$0xff]  ;;  %14105 = vst [vmem:[#allocation181_spill] sm:$0xff] %v8520_v43 }
 0x183   : > { %1467 = vrot.lane.b32.xlu0 %v8452_v19, %s7244_s25  ;;  %14099 = vst [vmem:[#allocation175_spill] sm:$0xff] %v8502_v15 }
 0x184   : > { %v8456_v22 = vpop.permute.xlu1 %1283  ;;  %1471 = vrot.lane.b32.xlu2 %v8458_v3, %s7244_s25 }
 0x185   : > { %14086 = vst [vmem:[#allocation162_spill] sm:$0xff] %v8456_v22  ;;  %v8462_v34 = vpop.permute.xlu0 %1287 }
 0x186   : > { %14087 = vst [vmem:[#allocation163_spill] sm:$0xff] %v8462_v34  ;;  %v8464_v27 = vpop.permute.xlu2 %1309 }
 0x187   : > { %14088 = vst [vmem:[#allocation164_spill] sm:$0xff] %v8464_v27 }
 0x18a   : > { %1469 = vrot.lane.b32.xlu1 %v8466_v31, %s7244_s25 }
 0x18b   : > { %1473 = vrot.lane.b32.xlu0 %v8470_v36, %s7244_s25 }
 0x18c   : > { %v8474_v22 = vpop.permute.xlu1 %1289  ;;  %1477 = vrot.lane.b32.xlu2 %v8476_v51, %s7244_s25 }
 0x18d   : > { %14089 = vst [vmem:[#allocation165_spill] sm:$0xff] %v8474_v22  ;;  %v8480_v34 = vpop.permute.xlu0 %1293 }
 0x18e   : > { %14091 = vst [vmem:[#allocation167_spill] sm:$0xff] %v8480_v34  ;;  %v8482_v27 = vpop.permute.xlu2 %1315 }
 0x18f   : > { %14092 = vst [vmem:[#allocation168_spill] sm:$0xff] %v8482_v27 }
 0x192   : > { %1475 = vrot.lane.b32.xlu1 %v8484_v63, %s7244_s25 }
 0x193   : > { %1479 = vrot.lane.b32.xlu0 %v8488_v5, %s7244_s25  ;;  %v6980_v5 = vld [vmem:[#allocation2 + $0x110] sm:$0xff] }
 0x194   : > { %v8492_v22 = vpop.permute.xlu1 %1295  ;;  %1483 = vrot.lane.b32.xlu2 %v8494_v58, %s7244_s25  ;;  %v8524_v58 = vld [vmem:[#allocation2 + $0xa8] sm:$0xff] }
 0x195   : > { %14095 = vst [vmem:[#allocation171_spill] sm:$0xff] %v8492_v22  ;;  %v8498_v34 = vpop.permute.xlu0 %1299 }
 0x196   : > { %14097 = vst [vmem:[#allocation173_spill] sm:$0xff] %v8498_v34  ;;  %v8500_v27 = vpop.permute.xlu2 %1321 }
 0x197   : > { %14098 = vst [vmem:[#allocation174_spill] sm:$0xff] %v8500_v27 }
 0x198   : > { %14106 = vst [vmem:[#allocation182_spill] sm:$0xff] %v8524_v58 }
 0x19a   : > { %1481 = vrot.lane.b32.xlu1 %v8502_v15, %s7244_s25  ;;  %v8543_v15 = vld [vmem:[#allocation2 + $0xc8] sm:$0xff] }
 0x19b   : > { %1485 = vrot.lane.b32.xlu0 %v8506_v56, %s7244_s25  ;;  %v8530_v56 = vld [vmem:[#allocation2 + $0xc0] sm:$0xff]  ;;  %14112 = vst [vmem:[#allocation188_spill] sm:$0xff] %v8543_v15 }
 0x19c   : > { %v8510_v22 = vpop.permute.xlu1 %1301  ;;  %1489 = vrot.lane.b32.xlu2 %v8512_v24, %s7244_s25  ;;  %14108 = vst [vmem:[#allocation184_spill] sm:$0xff] %v8530_v56  ;;  %v8538_v24 = vld [vmem:[#allocation2 + $0xb0] sm:$0xff] }
 0x19d   : > { %14101 = vst [vmem:[#allocation177_spill] sm:$0xff] %v8510_v22  ;;  %v8516_v34 = vpop.permute.xlu0 %1305 }
 0x19e   : > { %14103 = vst [vmem:[#allocation179_spill] sm:$0xff] %v8516_v34  ;;  %v8518_v27 = vpop.permute.xlu2 %1327 }
 0x19f   : > { %14104 = vst [vmem:[#allocation180_spill] sm:$0xff] %v8518_v27 }
 0x1a0   : > { %14111 = vst [vmem:[#allocation187_spill] sm:$0xff] %v8538_v24 }
 0x1a2   : > { %1487 = vrot.lane.b32.xlu1 %v8520_v43, %s7244_s25  ;;  %v343_v43 = vld [vmem:[%s7299_s23 + $0xf0] sm:$0xff] }
 0x1a3   : > { %1491 = vrot.lane.b32.xlu0 %v8524_v58, %s7244_s25  ;;  %439 = vst.msk [vmem:[#allocation2 + $0x181] sm:$0xff] %vm194_vm0, %v343_v43  ;;  %v344_v58 = vld [vmem:[%s7299_s23 + $0xf8] sm:$0xff] }
 0x1a4   : > { %v8528_v22 = vpop.permute.xlu1 %1307  ;;  %1495 = vrot.lane.b32.xlu2 %v8530_v56, %s7244_s25  ;;  %v8550_v56 = vld [vmem:[#allocation2 + $0xe0] sm:$0xff]  ;;  %440 = vst.msk [vmem:[#allocation2 + $0x189] sm:$0xff] %vm194_vm0, %v344_v58 }
 0x1a5   : > { %14107 = vst [vmem:[#allocation183_spill] sm:$0xff] %v8528_v22  ;;  %v8534_v34 = vpop.permute.xlu0 %1311 }
 0x1a6   : > { %14109 = vst [vmem:[#allocation185_spill] sm:$0xff] %v8534_v34  ;;  %v8536_v27 = vpop.permute.xlu2 %1333 }
 0x1a7   : > { %14110 = vst [vmem:[#allocation186_spill] sm:$0xff] %v8536_v27 }
 0x1a8   : > { %14114 = vst [vmem:[#allocation190_spill] sm:$0xff] %v8550_v56 }
 0x1aa   : > { %1493 = vrot.lane.b32.xlu1 %v8538_v24, %s7244_s25  ;;  %v8558_v24 = vld [vmem:[#allocation2 + $0xd8] sm:$0xff] }
 0x1ab   : > { %1497 = vrot.lane.b32.xlu0 %v8543_v15, %s7244_s25  ;;  %14117 = vst [vmem:[#allocation193_spill] sm:$0xff] %v8558_v24  ;;  %v6977_v15 = vld [vmem:[#allocation2 + $0xf0] sm:$0xff] }
 0x1ac   : > { %v8548_v22 = vpop.permute.xlu1 %1313  ;;  %1501 = vrot.lane.b32.xlu2 %v8550_v56, %s7244_s25 }
 0x1ad   : > { %14113 = vst [vmem:[#allocation189_spill] sm:$0xff] %v8548_v22  ;;  %v8554_v27 = vpop.permute.xlu0 %1317  ;;  %v6978_v22 = vld [vmem:[#allocation2 + $0x108] sm:$0xff] }
 0x1ae   : > { %14115 = vst [vmem:[#allocation191_spill] sm:$0xff] %v8554_v27  ;;  %v8556_v34 = vpop.permute.xlu2 %1339 }
 0x1af   : > { %14116 = vst [vmem:[#allocation192_spill] sm:$0xff] %v8556_v34  ;;  %v6979_v34 = vld [vmem:[#allocation2 + $0xf8] sm:$0xff] }
 0x1b2   : > { %1499 = vrot.lane.b32.xlu1 %v8558_v24, %s7244_s25 }
 0x1b3   : > { %1503 = vrot.lane.b32.xlu0 %v6977_v15, %s7244_s25  ;;  %v6981_v15 = vld [vmem:[#allocation2 + $0x128] sm:$0xff] }
 0x1b4   : > { %v8565_v43 = vpop.permute.xlu1 %1319  ;;  %1507 = vrot.lane.b32.xlu2 %v6978_v22, %s7244_s25  ;;  %v6982_v22 = vld [vmem:[#allocation2 + $0x120] sm:$0xff] }
 0x1b5   : > { %14118 = vst [vmem:[#allocation194_spill] sm:$0xff] %v8565_v43  ;;  %v8568_v56 = vpop.permute.xlu0 %1323 }
 0x1b6   : > { %14119 = vst [vmem:[#allocation195_spill] sm:$0xff] %v8568_v56  ;;  %v8570_v27 = vpop.permute.xlu2 %1345  ;;  %v6983_v56 = vld [vmem:[#allocation2 + $0x138] sm:$0xff] }
 0x1b7   : > { %14120 = vst [vmem:[#allocation196_spill] sm:$0xff] %v8570_v27 }
 0x1ba   : > { %1505 = vrot.lane.b32.xlu1 %v6979_v34, %s7244_s25  ;;  %v6984_v34 = vld [vmem:[#allocation2 + $0x150] sm:$0xff] }
 0x1bb   : > { %1509 = vrot.lane.b32.xlu0 %v6980_v5, %s7244_s25 }
 0x1bc   : > { %v8574_v24 = vpop.permute.xlu1 %1325  ;;  %1513 = vrot.lane.b32.xlu2 %v6981_v15, %s7244_s25  ;;  %v6985_v15 = vld [vmem:[#allocation2 + $0x140] sm:$0xff] }
 0x1bd   : > { %14121 = vst [vmem:[#allocation197_spill] sm:$0xff] %v8574_v24  ;;  %v8577_v58 = vpop.permute.xlu0 %1329 }
 0x1be   : > { %14122 = vst [vmem:[#allocation198_spill] sm:$0xff] %v8577_v58  ;;  %v8579_v43 = vpop.permute.xlu2 %1351  ;;  %v6986_v58 = vld [vmem:[#allocation2 + $0x158] sm:$0xff] }
 0x1bf   : > { %14123 = vst [vmem:[#allocation199_spill] sm:$0xff] %v8579_v43 }
 0x1c2   : > { %1511 = vrot.lane.b32.xlu1 %v6982_v22, %s7244_s25  ;;  %v6987_v22 = vld [vmem:[#allocation2 + $0x170] sm:$0xff] }
 0x1c3   : > { %1515 = vrot.lane.b32.xlu0 %v6983_v56, %s7244_s25 }
 0x1c4   : > { %v8583_v27 = vpop.permute.xlu1 %1331  ;;  %1519 = vrot.lane.b32.xlu2 %v6984_v34, %s7244_s25  ;;  %v8599_v34 = vld [vmem:[#allocation2 + $0x180] sm:$0xff] }
 0x1c5   : > { %14124 = vst [vmem:[#allocation200_spill] sm:$0xff] %v8583_v27  ;;  %v8586_v5 = vpop.permute.xlu0 %1335 }
 0x1c6   : > { %14125 = vst [vmem:[#allocation201_spill] sm:$0xff] %v8586_v5  ;;  %v8588_v24 = vpop.permute.xlu2 %1357  ;;  %v6988_v5 = vld [vmem:[#allocation2 + $0x168] sm:$0xff] }
 0x1c7   : > { %14126 = vst [vmem:[#allocation202_spill] sm:$0xff] %v8588_v24 }
 0x1ca   : > { %1517 = vrot.lane.b32.xlu1 %v6985_v15, %s7244_s25 }
 0x1cb   : > { %1521 = vrot.lane.b32.xlu0 %v6986_v58, %s7244_s25  ;;  %v6989_v58 = vld [vmem:[#allocation2 + $0x1c8] sm:$0xff] }
 0x1cc   : > { %v8592_v43 = vpop.permute.xlu1 %1337  ;;  %1525 = vrot.lane.b32.xlu2 %v6987_v22, %s7244_s25 }
 0x1cd   : > { %14127 = vst [vmem:[#allocation203_spill] sm:$0xff] %v8592_v43  ;;  %v8595_v56 = vpop.permute.xlu0 %1341  ;;  %v6991_v43 = vld [vmem:[#allocation2 + $0x1e8] sm:$0xff] }
 0x1ce   : > { %14128 = vst [vmem:[#allocation204_spill] sm:$0xff] %v8595_v56  ;;  %v8597_v27 = vpop.permute.xlu2 %1363  ;;  %v8611_v56 = vld [vmem:[#allocation2 + $0x188] sm:$0xff] }
 0x1cf   : > { %14129 = vst [vmem:[#allocation205_spill] sm:$0xff] %v8597_v27  ;;  %v6990_v27 = vld [vmem:[#allocation2 + $0x1d0] sm:$0xff] }
 0x1d2   : > { %1523 = vrot.lane.b32.xlu1 %v6988_v5, %s7244_s25 }
 0x1d3   : > { %1527 = vrot.lane.b32.xlu0 %v8599_v34, %s7244_s25 }
 0x1d4   : > { %v8604_v15 = vpop.permute.xlu1 %1343  ;;  %1531 = vrot.lane.b32.xlu2 %v6989_v58, %s7244_s25 }
 0x1d5   : > { %14130 = vst [vmem:[#allocation206_spill] sm:$0xff] %v8604_v15  ;;  %v8607_v24 = vpop.permute.xlu0 %1347 }
 0x1d6   : > { %14131 = vst [vmem:[#allocation207_spill] sm:$0xff] %v8607_v24  ;;  %v8609_v22 = vpop.permute.xlu2 %1369  ;;  %v6992_v24 = vld [vmem:[#allocation2 + $0x1e0] sm:$0xff] }
 0x1d7   : > { %14132 = vst [vmem:[#allocation208_spill] sm:$0xff] %v8609_v22  ;;  %v6993_v22 = vld [vmem:[#allocation2 + $0x1f8] sm:$0xff] }
 0x1da   : > { %1529 = vrot.lane.b32.xlu1 %v8611_v56, %s7244_s25 }
 0x1db   : > { %1533 = vrot.lane.b32.xlu0 %v6990_v27, %s7244_s25 }
 0x1dc   : > { %v8616_v5 = vpop.permute.xlu1 %1349  ;;  %1537 = vrot.lane.b32.xlu2 %v6991_v43, %s7244_s25  ;;  %v6994_v43 = vld [vmem:[#allocation2 + $0x200] sm:$0xff] }
 0x1dd   : > { %14133 = vst [vmem:[#allocation209_spill] sm:$0xff] %v8616_v5  ;;  %v8619_v15 = vpop.permute.xlu0 %1353 }
 0x1de   : > { %14134 = vst [vmem:[#allocation210_spill] sm:$0xff] %v8619_v15  ;;  %v8621_v58 = vpop.permute.xlu2 %1471  ;;  %v6995_v15 = vld [vmem:[#allocation2 + $0x218] sm:$0xff] }
 0x1e2   : > { %1535 = vrot.lane.b32.xlu1 %v6992_v24, %s7244_s25 }
 0x1e3   : > { %1539 = vrot.lane.b32.xlu0 %v6993_v22, %s7244_s25 }
 0x1e4   : > { %v8625_v51 = vpop.permute.xlu1 %1355  ;;  %1543 = vrot.lane.b32.xlu2 %v7819_v45, %s7244_s25 }
 0x1e5   : > { %14135 = vst [vmem:[#allocation211_spill] sm:$0xff] %v8625_v51  ;;  %v8629_v27 = vpop.permute.xlu0 %1359  ;;  %v408_v51 = vld [vmem:[%s7299_s23 + $0x2f8] sm:$0xff] }
 0x1e6   : > { %14136 = vst [vmem:[#allocation212_spill] sm:$0xff] %v8629_v27  ;;  %v8631_v5 = vpop.permute.xlu2 %1477 }
 0x1e7   : > { %504 = vst.msk [vmem:[#allocation2 + $0x4e9] sm:$0xff] %vm194_vm0, %v408_v51 }
 0x1ea   : > { %1541 = vrot.lane.b32.xlu1 %v6994_v43, %s7244_s25 }
 0x1eb   : > { %1545 = vrot.lane.b32.xlu0 %v6995_v15, %s7244_s25 }
 0x1ec   : > { %v8635_v63 = vpop.permute.xlu1 %1361  ;;  %1549 = vrot.lane.b32.xlu2 %v7828_v57, %s7244_s25 }
 0x1ed   : > { %14137 = vst [vmem:[#allocation213_spill] sm:$0xff] %v8635_v63  ;;  %v8639_v24 = vpop.permute.xlu0 %1365 }
 0x1ee   : > { %14138 = vst [vmem:[#allocation214_spill] sm:$0xff] %v8639_v24  ;;  %v8641_v45 = vpop.permute.xlu2 %1483 }
 0x1f2   : > { %1547 = vrot.lane.b32.xlu1 %v7826_v52, %s7244_s25 }
 0x1f3   : > { %1551 = vrot.lane.b32.xlu0 %v7834_v60, %s7244_s25 }
 0x1f4   : > { %v8647_v22 = vpop.permute.xlu1 %1367  ;;  %1555 = vrot.lane.b32.xlu2 %v7885_v17, %s7244_s25  ;;  %v375_v17 = vld [vmem:[%s7299_s23 + $0x1f0] sm:$0xff] }
 0x1f5   : > { %14139 = vst [vmem:[#allocation215_spill] sm:$0xff] %v8647_v22  ;;  %v8651_v15 = vpop.permute.xlu0 %1467  ;;  %v376_v22 = vld [vmem:[%s7299_s23 + $0x1f8] sm:$0xff] }
 0x1f6   : > { %v8653_v57 = vpop.permute.xlu2 %1489  ;;  %471 = vst.msk [vmem:[#allocation2 + $0x331] sm:$0xff] %vm194_vm0, %v375_v17 }
 0x1f7   : > { %472 = vst.msk [vmem:[#allocation2 + $0x339] sm:$0xff] %vm194_vm0, %v376_v22 }
 0x1fa   : > { %1553 = vrot.lane.b32.xlu1 %v7836_v61, %s7244_s25 }
 0x1fb   : > { %1557 = vrot.lane.b32.xlu0 %v7866_v28, %s7244_s25 }
 0x1fc   : > { %v8659_v43 = vpop.permute.xlu1 %1469  ;;  %1561 = vrot.lane.b32.xlu2 %v7894_v47, %s7244_s25 }
 0x1fd   : > { %v8663_v52 = vpop.permute.xlu0 %1473 }
 0x1fe   : > { %v8665_v60 = vpop.permute.xlu2 %1495  ;;  %v8733_v17 = vld [vmem:[#allocation2 + $0x338] sm:$0xff] }
 0x202   : > { %1559 = vrot.lane.b32.xlu1 %v7892_v26, %s7244_s25 }
 0x203   : > { %1563 = vrot.lane.b32.xlu0 %v7900_v13, %s7244_s25 }
 0x204   : > { %v8674_v61 = vpop.permute.xlu1 %1475  ;;  %1567 = vrot.lane.b32.xlu2 %v7957_v25, %s7244_s25 }
 0x205   : > { %v8679_v28 = vpop.permute.xlu0 %1479 }
 0x206   : > { %v8681_v47 = vpop.permute.xlu2 %1501 }
 0x20a   : > { %1565 = vrot.lane.b32.xlu1 %v7902_v62, %s7244_s25 }
 0x20b   : > { %1569 = vrot.lane.b32.xlu0 %v7936_v8, %s7244_s25 }
 0x20c   : > { %v8687_v26 = vpop.permute.xlu1 %1481  ;;  %1573 = vrot.lane.b32.xlu2 %v7965_v18, %s7244_s25 }
 0x20d   : > { %v8691_v13 = vpop.permute.xlu0 %1485 }
 0x20e   : > { %v8693_v25 = vpop.permute.xlu2 %1507 }
 0x212   : > { %1571 = vrot.lane.b32.xlu1 %v7963_v4, %s7244_s25 }
 0x213   : > { %1575 = vrot.lane.b32.xlu0 %v7970_v21, %s7244_s25 }
 0x214   : > { %v8699_v22 = vpop.permute.xlu1 %1487  ;;  %1579 = vrot.lane.b32.xlu2 %v8025_v6, %s7244_s25  ;;  %v8719_v6 = vld [vmem:[#allocation2 + $0x330] sm:$0xff] }
 0x215   : > { %v8703_v62 = vpop.permute.xlu0 %1491 }
 0x216   : > { %v8705_v8 = vpop.permute.xlu2 %1513 }
 0x21a   : > { %1577 = vrot.lane.b32.xlu1 %v7972_v50, %s7244_s25 }
 0x21b   : > { %1581 = vrot.lane.b32.xlu0 %v8004_v38, %s7244_s25 }
 0x21c   : > { %v8711_v18 = vpop.permute.xlu1 %1493  ;;  %1585 = vrot.lane.b32.xlu2 %v8034_v48, %s7244_s25 }
 0x21d   : > { %v8715_v4 = vpop.permute.xlu0 %1497 }
 0x21e   : > { %v8717_v21 = vpop.permute.xlu2 %1519 }
 0x222   : > { %1583 = vrot.lane.b32.xlu1 %v8032_v33, %s7244_s25 }
 0x223   : > { %1587 = vrot.lane.b32.xlu0 %v8040_v39, %s7244_s25 }
 0x224   : > { %v8725_v50 = vpop.permute.xlu1 %1499  ;;  %1591 = vrot.lane.b32.xlu2 %v8719_v6, %s7244_s25 }
 0x225   : > { %v8729_v38 = vpop.permute.xlu0 %1503 }
 0x226   : > { %v8731_v48 = vpop.permute.xlu2 %1525 }
 0x22a   : > { %1589 = vrot.lane.b32.xlu1 %v8042_v14, %s7244_s25 }
 0x22b   : > { %1593 = vrot.lane.b32.xlu0 %v8733_v17, %s7244_s25 }
 0x22c   : > { %v8739_v33 = vpop.permute.xlu1 %1505  ;;  %1597 = vrot.lane.b32.xlu2 %v8101_v9, %s7244_s25 }
 0x22d   : > { %v8743_v39 = vpop.permute.xlu0 %1509 }
 0x22e   : > { %v8745_v24 = vpop.permute.xlu2 %1531 }
 0x22f   : > { %14140 = vst [vmem:[#allocation216_spill] sm:$0xff] %v8745_v24 }
 0x232   : > { %1595 = vrot.lane.b32.xlu1 %v8099_v0, %s7244_s25 }
 0x233   : > { %1599 = vrot.lane.b32.xlu0 %v8107_v44, %s7244_s25 }
 0x234   : > { %v8751_v63 = vpop.permute.xlu1 %1511  ;;  %1603 = vrot.lane.b32.xlu2 %v8163_v42, %s7244_s25 }
 0x235   : > { %v8755_v14 = vpop.permute.xlu0 %1515 }
 0x236   : > { %v8757_v27 = vpop.permute.xlu2 %1537 }
 0x237   : > { %14141 = vst [vmem:[#allocation217_spill] sm:$0xff] %v8757_v27 }
 0x23a   : > { %1601 = vrot.lane.b32.xlu1 %v8109_v1, %s7244_s25 }
 0x23b   : > { %1605 = vrot.lane.b32.xlu0 %v8142_v41, %s7244_s25 }
 0x23c   : > { %v8763_v9 = vpop.permute.xlu1 %1517  ;;  %1609 = vrot.lane.b32.xlu2 %v8172_v35, %s7244_s25 }
 0x23d   : > { %v8767_v0 = vpop.permute.xlu0 %1521 }
 0x23e   : > { %v8769_v44 = vpop.permute.xlu2 %1543 }
 0x23f   : > { %14142 = vst [vmem:[#allocation218_spill] sm:$0xff] %v8769_v44 }
 0x242   : > { %1607 = vrot.lane.b32.xlu1 %v8170_v16, %s7244_s25 }
 0x243   : > { %1611 = vrot.lane.b32.xlu0 %v8178_v55, %s7244_s25 }
 0x244   : > { %v8775_v42 = vpop.permute.xlu1 %1523  ;;  %1615 = vrot.lane.b32.xlu2 %v8235_v20, %s7244_s25 }
 0x245   : > { %v8779_v1 = vpop.permute.xlu0 %1527 }
 0x246   : > { %v8781_v41 = vpop.permute.xlu2 %1549 }
 0x247   : > { %14143 = vst [vmem:[#allocation219_spill] sm:$0xff] %v8781_v41 }
 0x24a   : > { %1613 = vrot.lane.b32.xlu1 %v8180_v30, %s7244_s25 }
 0x24b   : > { %1617 = vrot.lane.b32.xlu0 %v8214_v49, %s7244_s25 }
 0x24c   : > { %v8787_v16 = vpop.permute.xlu1 %1529  ;;  %1621 = vrot.lane.b32.xlu2 %v8244_v7, %s7244_s25  ;;  %v407_v7 = vld [vmem:[%s7299_s23 + $0x2f0] sm:$0xff] }
 0x24d   : > { %14144 = vst [vmem:[#allocation220_spill] sm:$0xff] %v8787_v16  ;;  %v8791_v35 = vpop.permute.xlu0 %1533 }
 0x24e   : > { %14145 = vst [vmem:[#allocation221_spill] sm:$0xff] %v8791_v35  ;;  %v8793_v55 = vpop.permute.xlu2 %1555  ;;  %v14201_v35 = vld [vmem:[#allocation26_spill] sm:$0xff] }
 0x24f   : > { %14146 = vst [vmem:[#allocation222_spill] sm:$0xff] %v8793_v55 }
 0x250   : > { %503 = vst.msk [vmem:[#allocation2 + $0x4e1] sm:$0xff] %vm194_vm0, %v407_v7 }
 0x252   : > { %1619 = vrot.lane.b32.xlu1 %v8242_v54, %s7244_s25 }
 0x253   : > { %1623 = vrot.lane.b32.xlu0 %v8250_v11, %s7244_s25 }
 0x254   : > { %v8799_v20 = vpop.permute.xlu1 %1535  ;;  %1627 = vrot.lane.b32.xlu2 %v8307_v32, %s7244_s25 }
 0x255   : > { %14147 = vst [vmem:[#allocation223_spill] sm:$0xff] %v8799_v20  ;;  %v8803_v30 = vpop.permute.xlu0 %1539  ;;  %v14198_v20 = vld [vmem:[#allocation21_spill] sm:$0xff] }
 0x256   : > { %14148 = vst [vmem:[#allocation224_spill] sm:$0xff] %v8803_v30  ;;  %v8805_v49 = vpop.permute.xlu2 %1561  ;;  %v14195_v30 = vld [vmem:[#allocation23_spill] sm:$0xff] }
 0x257   : > { %14149 = vst [vmem:[#allocation225_spill] sm:$0xff] %v8805_v49  ;;  %v14165_v49 = vld [vmem:[#allocation145_spill] sm:$0xff] }
 0x25a   : > { %1625 = vrot.lane.b32.xlu1 %v8252_v23, %s7244_s25 }
 0x25b   : > { %1629 = vrot.lane.b32.xlu0 %v8286_v59, %s7244_s25 }
 0x25c   : > { %v8814_v54 = vpop.permute.xlu1 %1541  ;;  %1633 = vrot.lane.b32.xlu2 %v8315_v37, %s7244_s25 }
 0x25d   : > { %14150 = vst [vmem:[#allocation226_spill] sm:$0xff] %v8814_v54  ;;  %v8819_v32 = vpop.permute.xlu0 %1545  ;;  %v14192_v54 = vld [vmem:[#allocation18_spill] sm:$0xff] }
 0x25e   : > { %14151 = vst [vmem:[#allocation227_spill] sm:$0xff] %v8819_v32  ;;  %v8821_v11 = vpop.permute.xlu2 %1567  ;;  %v14189_v32 = vld [vmem:[#allocation20_spill] sm:$0xff] }
 0x25f   : > { %14152 = vst [vmem:[#allocation228_spill] sm:$0xff] %v8821_v11 }
 0x262   : > { %1631 = vrot.lane.b32.xlu1 %v8313_v10, %s7244_s25  ;;  %v14157_v10 = vld [vmem:[#allocation143_spill] sm:$0xff] }
 0x263   : > { %1635 = vrot.lane.b32.xlu0 %v8320_v29, %s7244_s25 }
 0x264   : > { %v8827_v23 = vpop.permute.xlu1 %1547  ;;  %1639 = vrot.lane.b32.xlu2 %v8369_v53, %s7244_s25  ;;  %v14160_v53 = vld [vmem:[#allocation142_spill] sm:$0xff] }
 0x265   : > { %14153 = vst [vmem:[#allocation229_spill] sm:$0xff] %v8827_v23  ;;  %v8831_v59 = vpop.permute.xlu0 %1551  ;;  %v14186_v23 = vld [vmem:[#allocation15_spill] sm:$0xff] }
 0x266   : > { %14154 = vst [vmem:[#allocation230_spill] sm:$0xff] %v8831_v59  ;;  %v8833_v37 = vpop.permute.xlu2 %1573  ;;  %v14183_v59 = vld [vmem:[#allocation17_spill] sm:$0xff] }
 0x267   : > { %14155 = vst [vmem:[#allocation231_spill] sm:$0xff] %v8833_v37  ;;  %v14161_v37 = vld [vmem:[#allocation144_spill] sm:$0xff] }
 0x26a   : > { %1637 = vrot.lane.b32.xlu1 %v8322_v40, %s7244_s25 }
 0x26b   : > { %1641 = vrot.lane.b32.xlu0 %v8350_v46, %s7244_s25 }
 0x26c   : > { %v8839_v51 = vpop.permute.xlu1 %1553  ;;  %1645 = vrot.lane.b32.xlu2 %v14157_v10, %s7244_s25  ;;  %v8859_v10 = vld [vmem:[#allocation2 + $0x4e8] sm:$0xff] }
 0x26d   : > { %14156 = vst [vmem:[#allocation232_spill] sm:$0xff] %v8839_v51  ;;  %v8843_v29 = vpop.permute.xlu0 %1557  ;;  %v14180_v51 = vld [vmem:[#allocation12_spill] sm:$0xff] }
 0x26e   : > { %14158 = vst [vmem:[#allocation143_spill] sm:$0xff] %v8843_v29  ;;  %v8845_v7 = vpop.permute.xlu2 %1579  ;;  %v14177_v29 = vld [vmem:[#allocation14_spill] sm:$0xff] }
 0x26f   : > { %14159 = vst [vmem:[#allocation233_spill] sm:$0xff] %v8845_v7  ;;  %v8873_v7 = vld [vmem:[#allocation2 + $0x4e0] sm:$0xff] }
 0x272   : > { %1643 = vrot.lane.b32.xlu1 %v14160_v53, %s7244_s25 }
 0x273   : > { %1647 = vrot.lane.b32.xlu0 %v14161_v37, %s7244_s25 }
 0x274   : > { %v8851_v11 = vpop.permute.xlu1 %1559  ;;  %1651 = vrot.lane.b32.xlu2 %v8429_v12, %s7244_s25 }
 0x275   : > { %14162 = vst [vmem:[#allocation142_spill] sm:$0xff] %v8851_v11  ;;  %v8855_v40 = vpop.permute.xlu0 %1563 }
 0x276   : > { %14163 = vst [vmem:[#allocation144_spill] sm:$0xff] %v8855_v40  ;;  %v8857_v46 = vpop.permute.xlu2 %1585 }
 0x277   : > { %14164 = vst [vmem:[#allocation234_spill] sm:$0xff] %v8857_v46 }
 0x27a   : > { %1649 = vrot.lane.b32.xlu1 %v14165_v49, %s7244_s25  ;;  %v14169_v49 = vld [vmem:[#allocation9_spill] sm:$0xff] }
 0x27b   : > { %1653 = vrot.lane.b32.xlu0 %v8410_v2, %s7244_s25  ;;  %v14171_v2 = vld [vmem:[#allocation7_spill] sm:$0xff] }
 0x27c   : > { %v8865_v53 = vpop.permute.xlu1 %1565  ;;  %1657 = vrot.lane.b32.xlu2 %v8859_v10, %s7244_s25 }
 0x27d   : > { %14166 = vst [vmem:[#allocation145_spill] sm:$0xff] %v8865_v53  ;;  %v8869_v37 = vpop.permute.xlu0 %1569 }
 0x27e   : > { %14167 = vst [vmem:[#allocation235_spill] sm:$0xff] %v8869_v37  ;;  %v8871_v12 = vpop.permute.xlu2 %1591  ;;  %v14175_v37 = vld [vmem:[#allocation8_spill] sm:$0xff] }
 0x27f   : > { %14168 = vst [vmem:[#allocation236_spill] sm:$0xff] %v8871_v12  ;;  %v14174_v12 = vld [vmem:[#allocation11_spill] sm:$0xff] }
 0x282   : > { %1655 = vrot.lane.b32.xlu1 %v8873_v7, %s7244_s25 }
 0x283   : > { %1755 = vrot.lane.b32.xlu0 %v14169_v49, %s7245_s26 }
 0x284   : > { %v8879_v46 = vpop.permute.xlu1 %1571  ;;  %1759 = vrot.lane.b32.xlu2 %v14171_v2, %s7245_s26 }
 0x285   : > { %14170 = vst [vmem:[#allocation9_spill] sm:$0xff] %v8879_v46  ;;  %v8883_v53 = vpop.permute.xlu0 %1575 }
 0x286   : > { %14172 = vst [vmem:[#allocation7_spill] sm:$0xff] %v8883_v53  ;;  %v8885_v40 = vpop.permute.xlu2 %1597 }
 0x287   : > { %14173 = vst [vmem:[#allocation237_spill] sm:$0xff] %v8885_v40  ;;  %v14181_v40 = vld [vmem:[#allocation13_spill] sm:$0xff] }
 0x28a   : > { %1757 = vrot.lane.b32.xlu1 %v14174_v12, %s7245_s26 }
 0x28b   : > { %1761 = vrot.lane.b32.xlu0 %v14175_v37, %s7245_s26 }
 0x28c   : > { %v8891_v11 = vpop.permute.xlu1 %1577  ;;  %1765 = vrot.lane.b32.xlu2 %v14177_v29, %s7245_s26 }
 0x28d   : > { %14176 = vst [vmem:[#allocation11_spill] sm:$0xff] %v8891_v11  ;;  %v8895_v55 = vpop.permute.xlu0 %1581 }
 0x28e   : > { %14178 = vst [vmem:[#allocation8_spill] sm:$0xff] %v8895_v55  ;;  %v8897_v46 = vpop.permute.xlu2 %1603 }
 0x28f   : > { %14179 = vst [vmem:[#allocation14_spill] sm:$0xff] %v8897_v46  ;;  %v14187_v46 = vld [vmem:[#allocation16_spill] sm:$0xff] }
 0x292   : > { %1763 = vrot.lane.b32.xlu1 %v14180_v51, %s7245_s26 }
 0x293   : > { %1767 = vrot.lane.b32.xlu0 %v14181_v40, %s7245_s26 }
 0x294   : > { %v8903_v53 = vpop.permute.xlu1 %1583  ;;  %1771 = vrot.lane.b32.xlu2 %v14183_v59, %s7245_s26 }
 0x295   : > { %14182 = vst [vmem:[#allocation12_spill] sm:$0xff] %v8903_v53  ;;  %v8907_v41 = vpop.permute.xlu0 %1587 }
 0x296   : > { %14184 = vst [vmem:[#allocation13_spill] sm:$0xff] %v8907_v41  ;;  %v8909_v11 = vpop.permute.xlu2 %1609 }
 0x297   : > { %14185 = vst [vmem:[#allocation17_spill] sm:$0xff] %v8909_v11  ;;  %v14193_v11 = vld [vmem:[#allocation19_spill] sm:$0xff] }
 0x29a   : > { %1769 = vrot.lane.b32.xlu1 %v14186_v23, %s7245_s26 }
 0x29b   : > { %1773 = vrot.lane.b32.xlu0 %v14187_v46, %s7245_s26 }
 0x29c   : > { %v8915_v55 = vpop.permute.xlu1 %1589  ;;  %1777 = vrot.lane.b32.xlu2 %v14189_v32, %s7245_s26 }
 0x29d   : > { %14188 = vst [vmem:[#allocation15_spill] sm:$0xff] %v8915_v55  ;;  %v8919_v44 = vpop.permute.xlu0 %1593 }
 0x29e   : > { %14190 = vst [vmem:[#allocation16_spill] sm:$0xff] %v8919_v44  ;;  %v8921_v53 = vpop.permute.xlu2 %1615 }
 0x29f   : > { %14191 = vst [vmem:[#allocation238_spill] sm:$0xff] %v8921_v53  ;;  %v14199_v53 = vld [vmem:[#allocation22_spill] sm:$0xff] }
 0x2a2   : > { %1775 = vrot.lane.b32.xlu1 %v14192_v54, %s7245_s26 }
 0x2a3   : > { %1779 = vrot.lane.b32.xlu0 %v14193_v11, %s7245_s26 }
 0x2a4   : > { %v8927_v41 = vpop.permute.xlu1 %1595  ;;  %1783 = vrot.lane.b32.xlu2 %v14195_v30, %s7245_s26  ;;  %v14204_v30 = vld [vmem:[#allocation24_spill] sm:$0xff] }
 0x2a5   : > { %14194 = vst [vmem:[#allocation239_spill] sm:$0xff] %v8927_v41  ;;  %v8931_v27 = vpop.permute.xlu0 %1599 }
 0x2a6   : > { %14196 = vst [vmem:[#allocation240_spill] sm:$0xff] %v8931_v27  ;;  %v8933_v55 = vpop.permute.xlu2 %1621 }
 0x2a7   : > { %14197 = vst [vmem:[#allocation241_spill] sm:$0xff] %v8933_v55  ;;  %v14205_v55 = vld [vmem:[#allocation25_spill] sm:$0xff] }
 0x2aa   : > { %1781 = vrot.lane.b32.xlu1 %v14198_v20, %s7245_s26  ;;  %v14207_v20 = vld [vmem:[#allocation29_spill] sm:$0xff] }
 0x2ab   : > { %1785 = vrot.lane.b32.xlu0 %v14199_v53, %s7245_s26 }
 0x2ac   : > { %v8939_v44 = vpop.permute.xlu1 %1601  ;;  %1789 = vrot.lane.b32.xlu2 %v14201_v35, %s7245_s26  ;;  %v14210_v35 = vld [vmem:[#allocation27_spill] sm:$0xff] }
 0x2ad   : > { %14200 = vst [vmem:[#allocation242_spill] sm:$0xff] %v8939_v44  ;;  %v8943_v24 = vpop.permute.xlu0 %1605 }
 0x2ae   : > { %14202 = vst [vmem:[#allocation243_spill] sm:$0xff] %v8943_v24  ;;  %v8945_v41 = vpop.permute.xlu2 %1627 }
 0x2af   : > { %14203 = vst [vmem:[#allocation244_spill] sm:$0xff] %v8945_v41  ;;  %v14211_v41 = vld [vmem:[#allocation28_spill] sm:$0xff] }
 0x2b2   : > { %1787 = vrot.lane.b32.xlu1 %v14204_v30, %s7245_s26  ;;  %v14213_v30 = vld [vmem:[#allocation32_spill] sm:$0xff] }
 0x2b3   : > { %1791 = vrot.lane.b32.xlu0 %v14205_v55, %s7245_s26 }
 0x2b4   : > { %v8951_v27 = vpop.permute.xlu1 %1607  ;;  %1795 = vrot.lane.b32.xlu2 %v14207_v20, %s7245_s26 }
 0x2b5   : > { %14206 = vst [vmem:[#allocation245_spill] sm:$0xff] %v8951_v27  ;;  %v8955_v53 = vpop.permute.xlu0 %1611 }
 0x2b6   : > { %14208 = vst [vmem:[#allocation246_spill] sm:$0xff] %v8955_v53  ;;  %v8957_v44 = vpop.permute.xlu2 %1633  ;;  %v6542_v53 = vld [vmem:[%s13670_s1 + $0x58] sm:$0xff] }
 0x2b7   : > { %14209 = vst [vmem:[#allocation247_spill] sm:$0xff] %v8957_v44  ;;  %v6541_v44 = vld [vmem:[%s13670_s1 + $0x50] sm:$0xff]  ;;  %5264 = vmatpush.msra.mxu2 %v6542_v53 }
 0x2b9   : > { %5265 = vmatpush.msra.mxu2 %v6541_v44  ;;  %v6539_v44 = vld [vmem:[%s13670_s1 + $0x40] sm:$0xff] }
 0x2ba   : > { %1793 = vrot.lane.b32.xlu1 %v14210_v35, %s7245_s26 }
 0x2bb   : > { %1797 = vrot.lane.b32.xlu0 %v14211_v41, %s7245_s26  ;;  %v14216_v41 = vld [vmem:[#allocation30_spill] sm:$0xff] }
 0x2bc   : > { %v8963_v24 = vpop.permute.xlu1 %1613  ;;  %1801 = vrot.lane.b32.xlu2 %v14213_v30, %s7245_s26  ;;  %v14219_v30 = vld [vmem:[#allocation35_spill] sm:$0xff] }
 0x2bd   : > { %14212 = vst [vmem:[#allocation248_spill] sm:$0xff] %v8963_v24  ;;  %v8967_v55 = vpop.permute.xlu0 %1617  ;;  %v14217_v24 = vld [vmem:[#allocation31_spill] sm:$0xff] }
 0x2be   : > { %14214 = vst [vmem:[#allocation249_spill] sm:$0xff] %v8967_v55  ;;  %v8969_v27 = vpop.permute.xlu2 %1639 }
 0x2bf   : > { %14215 = vst [vmem:[#allocation250_spill] sm:$0xff] %v8969_v27  ;;  %v6540_v27 = vld [vmem:[%s13670_s1 + $0x48] sm:$0xff] }
 0x2c0   : > { %5266 = vmatpush.msra.mxu2 %v6540_v27 }
 0x2c2   : > { %1799 = vrot.lane.b32.xlu1 %v14216_v41, %s7245_s26  ;;  %5267 = vmatpush.msra.mxu2 %v6539_v44  ;;  %v14223_v41 = vld [vmem:[#allocation34_spill] sm:$0xff] }
 0x2c3   : > { %1803 = vrot.lane.b32.xlu0 %v14217_v24, %s7245_s26  ;;  %v14222_v24 = vld [vmem:[#allocation33_spill] sm:$0xff]  ;;  %v2336_v44 = vld [vmem:[%s13670_s1 + $0x18] sm:$0xff] }
 0x2c4   : > { %v8984_v55 = vpop.permute.xlu1 %1619  ;;  %1807 = vrot.lane.b32.xlu2 %v14219_v30, %s7245_s26  ;;  %v1159_v30 = vrot.slane %v8611_v56, 1  ;;  %2641 = vmatpush.msra.mxu0 %v2336_v44  ;;  %v14231_v44 = vld [vmem:[#allocation42_spill] sm:$0xff] }
 0x2c5   : > { %14218 = vst [vmem:[#allocation251_spill] sm:$0xff] %v8984_v55  ;;  %v8988_v20 = vpop.permute.xlu0 %1623  ;;  %v1158_v55 = vrot.slane %v8599_v34, 1  ;;  %v555_v34 = vld [vmem:[#allocation2 + $0x190] sm:$0x3] }
 0x2c6   : > { %14220 = vst [vmem:[#allocation252_spill] sm:$0xff] %v8988_v20  ;;  %v8993_v53 = vpop.permute.xlu2 %1645  ;;  %v14225_v20 = vld [vmem:[#allocation38_spill] sm:$0xff] }
 0x2c7   : > { %14221 = vst [vmem:[#allocation253_spill] sm:$0xff] %v8993_v53  ;;  %v2335_v53 = vld [vmem:[%s13670_s1 + $0x10] sm:$0xff]  ;;  %v9016_v56 = vsel %vm812_vm1, %v1158_v55, %v1159_v30 }
 0x2c8   : > { %14228 = vst [vmem:[#allocation257_spill] sm:$0xff] %v9016_v56  ;;  %2642 = vmatpush.msra.mxu0 %v2335_v53  ;;  %v2333_v53 = vld [vmem:[%s13670_s1] sm:$0xff] }
 0x2ca   : > { %1805 = vrot.lane.b32.xlu1 %v14222_v24, %s7245_s26  ;;  %v9099_v24 = vld [vmem:[#allocation2 + $0x8] sm:$0xff] }
 0x2cb   : > { %1809 = vrot.lane.b32.xlu0 %v14223_v41, %s7245_s26 }
 0x2cc   : > { %v9001_v27 = vpop.permute.xlu1 %1625  ;;  %1813 = vrot.lane.b32.xlu2 %v14225_v20, %s7245_s26 }
 0x2cd   : > { %14224 = vst [vmem:[#allocation254_spill] sm:$0xff] %v9001_v27  ;;  %v9005_v35 = vpop.permute.xlu0 %1629  ;;  %v14229_v27 = vld [vmem:[#allocation36_spill] sm:$0xff] }
 0x2ce   : > { %14226 = vst [vmem:[#allocation255_spill] sm:$0xff] %v9005_v35  ;;  %v9007_v11 = vpop.permute.xlu2 %1651  ;;  %v2334_v35 = vld [vmem:[%s13670_s1 + $0x8] sm:$0xff] }
 0x2cf   : > { %14227 = vst [vmem:[#allocation256_spill] sm:$0xff] %v9007_v11  ;;  %v1161_v11 = vrot.slane %v555_v34, 1  ;;  %2643 = vmatpush.msra.mxu0 %v2334_v35 }
 0x2d1   : > { %2644 = vmatpush.msra.mxu0 %v2333_v53  ;;  %v9037_v34 = vsel %vm812_vm1, %v1159_v30, %v1161_v11 }
 0x2d2   : > { %1811 = vrot.lane.b32.xlu1 %v14229_v27, %s7245_s26  ;;  %14234 = vst [vmem:[#allocation261_spill] sm:$0xff] %v9037_v34 }
 0x2d3   : > { %1815 = vrot.lane.b32.xlu0 %v9016_v56, %s7245_s26 }
 0x2d4   : > { %v9025_v20 = vpop.permute.xlu1 %1631  ;;  %1819 = vrot.lane.b32.xlu2 %v14231_v44, %s7245_s26  ;;  %v14238_v44 = vld [vmem:[#allocation58_spill] sm:$0xff] }
 0x2d5   : > { %14230 = vst [vmem:[#allocation258_spill] sm:$0xff] %v9025_v20  ;;  %v9029_v55 = vpop.permute.xlu0 %1635  ;;  %v14235_v20 = vld [vmem:[#allocation40_spill] sm:$0xff]  ;;  %v2045_v53 = vsel %vm194_vm0, %v8452_v19, %v14238_v44  ;;  %v14243_v19 = vld [vmem:[#allocation50_spill] sm:$0xff] }
 0x2d6   : > { %14232 = vst [vmem:[#allocation259_spill] sm:$0xff] %v9029_v55  ;;  %v9034_v27 = vpop.permute.xlu2 %1657  ;;  %v14237_v55 = vld [vmem:[#allocation46_spill] sm:$0xff]  ;;  %v2142_v30 = vsel %vm2139_vm4, %v2045_v53, %v8621_v58  ;;  %v14245_v58 = vld [vmem:[#allocation47_spill] sm:$0xff]  ;;  %v14246_v53 = vld [vmem:[#allocation48_spill] sm:$0xff] }
 0x2d7   : > { %14233 = vst [vmem:[#allocation260_spill] sm:$0xff] %v9034_v27 }
 0x2da   : > { %1817 = vrot.lane.b32.xlu1 %v9037_v34, %s7245_s26 }
 0x2db   : > { %1821 = vrot.lane.b32.xlu0 %v14235_v20, %s7245_s26  ;;  %v14241_v20 = vld [vmem:[#allocation44_spill] sm:$0xff] }
 0x2dc   : > { %v9043_v35 = vpop.permute.xlu1 %1637  ;;  %1825 = vrot.lane.b32.xlu2 %v14237_v55, %s7245_s26 }
 0x2dd   : > { %14236 = vst [vmem:[#allocation262_spill] sm:$0xff] %v9043_v35  ;;  %v9050_v27 = vpop.permute.xlu0 %1641  ;;  %v14240_v35 = vld [vmem:[#allocation43_spill] sm:$0xff] }
 0x2de   : > { %14239 = vst [vmem:[#allocation58_spill] sm:$0xff] %v9050_v27  ;;  %v1760_v11 = vpop.permute.xlu2 %1759 }
 0x2df   : > { %v2239_v34 = vsel %vm2236_vm5, %v2142_v30, %v1760_v11  ;;  %v14248_v11 = vld [vmem:[#allocation55_spill] sm:$0xff] }
 0x2e0   : > { %6543 = vmatmul.msk.f32.vlgmr.msra.gmra.mxu2 %vm2340_vm6, %v2239_v34 }
 0x2e2   : > { %1823 = vrot.lane.b32.xlu1 %v14240_v35, %s7245_s26  ;;  %v9082_v35 = vld [vmem:[#allocation2] sm:$0xff] }
 0x2e3   : > { %1827 = vrot.lane.b32.xlu0 %v14241_v20, %s7245_s26 }
 0x2e4   : > { %v9060_v55 = vpop.permute.xlu1 %1643  ;;  %1831 = vrot.lane.b32.xlu2 %v14243_v19, %s7245_s26  ;;  %v14250_v19 = vld [vmem:[#allocation51_spill] sm:$0xff] }
 0x2e5   : > { %14242 = vst [vmem:[#allocation263_spill] sm:$0xff] %v9060_v55  ;;  %v9064_v44 = vpop.permute.xlu0 %1647 }
 0x2e6   : > { %14244 = vst [vmem:[#allocation264_spill] sm:$0xff] %v9064_v44  ;;  %v1766_v27 = vpop.permute.xlu2 %1765  ;;  %v14251_v44 = vld [vmem:[#allocation52_spill] sm:$0xff] }
 0x2ea   : > { %1829 = vrot.lane.b32.xlu1 %v14245_v58, %s7245_s26  ;;  %v14252_v58 = vld [vmem:[#allocation53_spill] sm:$0xff] }
 0x2eb   : > { %1833 = vrot.lane.b32.xlu0 %v14246_v53, %s7245_s26  ;;  %v2043_v53 = vsel %vm194_vm0, %v9082_v35, %v14252_v58  ;;  %v14256_v58 = vld [vmem:[#allocation59_spill] sm:$0xff] }
 0x2ec   : > { %v9070_v30 = vpop.permute.xlu1 %1649  ;;  %1837 = vrot.lane.b32.xlu2 %v14248_v11, %s7245_s26  ;;  %v14254_v11 = vld [vmem:[#allocation61_spill] sm:$0xff] }
 0x2ed   : > { %14247 = vst [vmem:[#allocation265_spill] sm:$0xff] %v9070_v30  ;;  %v9074_v20 = vpop.permute.xlu0 %1653 }
 0x2ee   : > { %14249 = vst [vmem:[#allocation266_spill] sm:$0xff] %v9074_v20  ;;  %v9076_v55 = vpop.permute.xlu2 %1771  ;;  %v2140_v20 = vsel %vm2139_vm4, %v2043_v53, %v8651_v15  ;;  %v14258_v15 = vld [vmem:[#allocation64_spill] sm:$0xff]  ;;  %v14259_v53 = vld [vmem:[#allocation67_spill] sm:$0xff] }
 0x2f2   : > { %1835 = vrot.lane.b32.xlu1 %v14250_v19, %s7245_s26 }
 0x2f3   : > { %1839 = vrot.lane.b32.xlu0 %v14251_v44, %s7245_s26  ;;  %v14255_v44 = vld [vmem:[#allocation56_spill] sm:$0xff] }
 0x2f4   : > { %v9087_v30 = vpop.permute.xlu1 %1655  ;;  %1843 = vrot.lane.b32.xlu2 %v14254_v11, %s7245_s26  ;;  %v14257_v11 = vld [vmem:[#allocation57_spill] sm:$0xff] }
 0x2f5   : > { %14253 = vst [vmem:[#allocation53_spill] sm:$0xff] %v9087_v30  ;;  %v1756_v56 = vpop.permute.xlu0 %1755  ;;  %v2044_v30 = vsel %vm194_vm0, %v9099_v24, %v14256_v58 }
 0x2f6   : > { %v2237_v19 = vsel %vm2236_vm5, %v2140_v20, %v1756_v56  ;;  %v9094_v41 = vpop.permute.xlu2 %1777  ;;  %v2046_v20 = vsel %vm194_vm0, %v8466_v31, %v14258_v15  ;;  %v2141_v56 = vsel %vm2139_vm4, %v2044_v30, %v8659_v43  ;;  %v14260_v31 = vld [vmem:[#allocation62_spill] sm:$0xff]  ;;  %v14261_v43 = vld [vmem:[#allocation41_spill] sm:$0xff] }
 0x2f7   : > { %6247 = vmatmul.msk.f32.vlgmr.msra.gmra.mxu0 %vm2340_vm6, %v2237_v19  ;;  %v2047_v30 = vsel %vm194_vm0, %v8458_v3, %v14261_v43  ;;  %v14264_v3 = vld [vmem:[#allocation68_spill] sm:$0xff] }
 0x2f8   : > { %v2144_v15 = vsel %vm2139_vm4, %v2047_v30, %v8674_v61  ;;  %v14266_v61 = vld [vmem:[#allocation45_spill] sm:$0xff] }
 0x2f9   : > { %v2048_v43 = vsel %vm194_vm0, %v8470_v36, %v14266_v61  ;;  %v14269_v36 = vld [vmem:[#allocation75_spill] sm:$0xff]  ;;  %v14270_v61 = vld [vmem:[#allocation65_spill] sm:$0xff] }
 0x2fa   : > { %1841 = vrot.lane.b32.xlu1 %v14255_v44, %s7245_s26  ;;  %v2143_v44 = vsel %vm2139_vm4, %v2046_v20, %v8663_v52  ;;  %v14262_v52 = vld [vmem:[#allocation63_spill] sm:$0xff] }
 0x2fb   : > { %1845 = vrot.lane.b32.xlu0 %v14257_v11, %s7245_s26 }
 0x2fc   : > { %v1758_v19 = vpop.permute.xlu1 %1757  ;;  %1849 = vrot.lane.b32.xlu2 %v14259_v53, %s7245_s26 }
 0x2fd   : > { %v1762_v32 = vpop.permute.xlu0 %1761  ;;  %v2238_v58 = vsel %vm2236_vm5, %v2141_v56, %v1758_v19 }
 0x2fe   : > { %v2240_v54 = vsel %vm2236_vm5, %v2143_v44, %v1762_v32  ;;  %v9117_v11 = vpop.permute.xlu2 %1783  ;;  %v14263_v44 = vld [vmem:[#allocation73_spill] sm:$0xff] }
 0x2ff   : > { %6248 = vmatmul.msk.f32.gmra.mxu0 %vm2340_vm6, %v2238_v58  ;;  %6544 = vmatmul.msk.f32.gmra.mxu2 %vm2340_vm6, %v2240_v54  ;;  %v14265_v58 = vld [vmem:[#allocation69_spill] sm:$0xff] }
 0x302   : > { %1847 = vrot.lane.b32.xlu1 %v14260_v31, %s7245_s26 }
 0x303   : > { %1851 = vrot.lane.b32.xlu0 %v14262_v52, %s7245_s26 }
 0x304   : > { %v1764_v32 = vpop.permute.xlu1 %1763  ;;  %1855 = vrot.lane.b32.xlu2 %v14263_v44, %s7245_s26  ;;  %v14267_v44 = vld [vmem:[#allocation79_spill] sm:$0xff] }
 0x305   : > { %v1768_v20 = vpop.permute.xlu0 %1767  ;;  %v2241_v56 = vsel %vm2236_vm5, %v2144_v15, %v1764_v32  ;;  %v2145_v15 = vsel %vm2139_vm4, %v2048_v43, %v8631_v5  ;;  %v14272_v43 = vld [vmem:[#allocation85_spill] sm:$0xff] }
 0x306   : > { %v9133_v19 = vpop.permute.xlu2 %1789  ;;  %v2242_v32 = vsel %vm2236_vm5, %v2145_v15, %v1766_v27 }
 0x307   : > { %6249 = vmatmul.msk.f32.gmra.mxu0 %vm2340_vm6, %v2239_v34  ;;  %6545 = vmatmul.msk.f32.gmra.mxu2 %vm2340_vm6, %v2241_v56 }
 0x30a   : > { %1853 = vrot.lane.b32.xlu1 %v14264_v3, %s7245_s26 }
 0x30b   : > { %1857 = vrot.lane.b32.xlu0 %v14265_v58, %s7245_s26  ;;  %v14268_v58 = vld [vmem:[#allocation74_spill] sm:$0xff] }
 0x30c   : > { %v1770_v30 = vpop.permute.xlu1 %1769  ;;  %1861 = vrot.lane.b32.xlu2 %v14267_v44, %s7245_s26  ;;  %v14271_v44 = vld [vmem:[#allocation169_spill] sm:$0xff] }
 0x30d   : > { %v1774_v34 = vpop.permute.xlu0 %1773  ;;  %v2049_v3 = vsel %vm194_vm0, %v14271_v44, %v14270_v61  ;;  %v14274_v44 = vld [vmem:[#allocation81_spill] sm:$0xff]  ;;  %v14275_v61 = vld [vmem:[#allocation70_spill] sm:$0xff] }
 0x30e   : > { %v9149_v52 = vpop.permute.xlu2 %1795  ;;  %v2146_v27 = vsel %vm2139_vm4, %v2049_v3, %v8679_v28 }
 0x30f   : > { %6250 = vmatmul.msk.f32.gmra.mxu0 %vm2340_vm6, %v2240_v54  ;;  %6546 = vmatmul.msk.f32.gmra.mxu2 %vm2340_vm6, %v2242_v32  ;;  %v2243_v15 = vsel %vm2236_vm5, %v2146_v27, %v1768_v20  ;;  %v14277_v20 = vld [vmem:[#allocation91_spill] sm:$0xff]  ;;  %v1163_v27 = vrot.slane %v8719_v6, 1 }
 0x310   : > { %v14280_v6 = vld [vmem:[#allocation87_spill] sm:$0xff] }
 0x312   : > { %1859 = vrot.lane.b32.xlu1 %v14268_v58, %s7245_s26  ;;  %v1164_v58 = vrot.slane %v8733_v17, 1  ;;  %v14281_v17 = vld [vmem:[#allocation49_spill] sm:$0xff] }
 0x313   : > { %1863 = vrot.lane.b32.xlu0 %v14269_v36, %s7245_s26  ;;  %v14273_v36 = vld [vmem:[#allocation80_spill] sm:$0xff] }
 0x314   : > { %v1776_v5 = vpop.permute.xlu1 %1775  ;;  %1867 = vrot.lane.b32.xlu2 %v14272_v43, %s7245_s26  ;;  %v14276_v43 = vld [vmem:[#allocation166_spill] sm:$0xff] }
 0x315   : > { %v9164_v54 = vpop.permute.xlu0 %1779  ;;  %v2050_v28 = vsel %vm194_vm0, %v14276_v43, %v14275_v61  ;;  %v9194_v43 = vsel %vm812_vm1, %v1163_v27, %v1164_v58  ;;  %v609_v61 = vld [vmem:[#allocation2 + $0x340] sm:$0x3] }
 0x316   : > { %v9167_v53 = vpop.permute.xlu2 %1801  ;;  %14278 = vst [vmem:[#allocation59_spill] sm:$0xff] %v9194_v43 }
 0x317   : > { %6251 = vmatmul.msk.f32.gmra.mxu0 %vm2340_vm6, %v2241_v56  ;;  %6547 = vmatmul.msk.f32.gmra.mxu2 %vm2340_vm6, %v2243_v15  ;;  %v2147_v56 = vsel %vm2139_vm4, %v2050_v28, %v8687_v26  ;;  %v14279_v26 = vld [vmem:[#allocation86_spill] sm:$0xff] }
 0x318   : > { %v14282_v28 = vld [vmem:[#allocation170_spill] sm:$0xff] }
 0x31a   : > { %1865 = vrot.lane.b32.xlu1 %v14273_v36, %s7245_s26 }
 0x31b   : > { %1869 = vrot.lane.b32.xlu0 %v14274_v44, %s7245_s26  ;;  %v2244_v44 = vsel %vm2236_vm5, %v2147_v56, %v1770_v30  ;;  %v2051_v30 = vsel %vm194_vm0, %v14282_v28, %v14281_v17  ;;  %v14284_v28 = vld [vmem:[#allocation92_spill] sm:$0xff] }
 0x31c   : > { %v9178_v3 = vpop.permute.xlu1 %1781  ;;  %1873 = vrot.lane.b32.xlu2 %v14277_v20, %s7245_s26  ;;  %v2148_v27 = vsel %vm2139_vm4, %v2051_v30, %v8641_v45  ;;  %v14285_v45 = vld [vmem:[#allocation71_spill] sm:$0xff] }
 0x31d   : > { %v9186_v36 = vpop.permute.xlu0 %1785 }
 0x31e   : > { %v9189_v31 = vpop.permute.xlu2 %1807 }
 0x31f   : > { %6252 = vmatmul.msk.f32.gmra.mxu0 %vm2340_vm6, %v2242_v32  ;;  %6548 = vmatmul.msk.f32.gmra.mxu2 %vm2340_vm6, %v2244_v44  ;;  %v1166_v32 = vrot.slane %v609_v61, 1  ;;  %v14286_v61 = vld [vmem:[#allocation175_spill] sm:$0xff] }
 0x320   : > { %v2052_v30 = vsel %vm194_vm0, %v14286_v61, %v14285_v45  ;;  %v14288_v45 = vld [vmem:[#allocation98_spill] sm:$0xff]  ;;  %v14289_v61 = vld [vmem:[#allocation99_spill] sm:$0xff] }
 0x321   : > { %v9218_v17 = vsel %vm812_vm1, %v1164_v58, %v1166_v32 }
 0x322   : > { %1871 = vrot.lane.b32.xlu1 %v14279_v26, %s7245_s26  ;;  %v2245_v26 = vsel %vm2236_vm5, %v2148_v27, %v9076_v55  ;;  %14283 = vst [vmem:[#allocation64_spill] sm:$0xff] %v9218_v17  ;;  %v14287_v27 = vld [vmem:[#allocation103_spill] sm:$0xff] }
 0x323   : > { %1875 = vrot.lane.b32.xlu0 %v14280_v6, %s7245_s26 }
 0x324   : > { %v9203_v56 = vpop.permute.xlu1 %1787  ;;  %1879 = vrot.lane.b32.xlu2 %v9194_v43, %s7245_s26 }
 0x325   : > { %v9209_v20 = vpop.permute.xlu0 %1791 }
 0x326   : > { %v9213_v16 = vpop.permute.xlu2 %1813 }
 0x327   : > { %6253 = vmatmul.msk.f32.gmra.mxu0 %vm2340_vm6, %v2243_v15  ;;  %6549 = vmatmul.msk.f32.gmra.mxu2 %vm2340_vm6, %v2245_v26  ;;  %v2149_v15 = vsel %vm2139_vm4, %v2052_v30, %v8691_v13 }
 0x328   : > { %v2246_v32 = vsel %vm2236_vm5, %v2149_v15, %v1774_v34  ;;  %v14292_v34 = vld [vmem:[#allocation109_spill] sm:$0xff] }
 0x32a   : > { %1877 = vrot.lane.b32.xlu1 %v14284_v28, %s7245_s26 }
 0x32b   : > { %1881 = vrot.lane.b32.xlu0 %v9218_v17, %s7245_s26  ;;  %v14291_v17 = vld [vmem:[#allocation172_spill] sm:$0xff] }
 0x32c   : > { %v9227_v55 = vpop.permute.xlu1 %1793  ;;  %1885 = vrot.lane.b32.xlu2 %v14287_v27, %s7245_s26  ;;  %v14290_v27 = vld [vmem:[#allocation76_spill] sm:$0xff] }
 0x32d   : > { %v9233_v58 = vpop.permute.xlu0 %1797  ;;  %v2053_v13 = vsel %vm194_vm0, %v14291_v17, %v14290_v27  ;;  %v14293_v17 = vld [vmem:[#allocation104_spill] sm:$0xff]  ;;  %v14294_v27 = vld [vmem:[#allocation105_spill] sm:$0xff] }
 0x32e   : > { %v9236_v43 = vpop.permute.xlu2 %1819 }
 0x32f   : > { %6254 = vmatmul.msk.f32.gmra.mxu0 %vm2340_vm6, %v2244_v44  ;;  %6550 = vmatmul.msk.f32.gmra.mxu2 %vm2340_vm6, %v2246_v32  ;;  %v2150_v44 = vsel %vm2139_vm4, %v2053_v13, %v8699_v22 }
 0x330   : > { %v2247_v28 = vsel %vm2236_vm5, %v2150_v44, %v1776_v5  ;;  %v14297_v5 = vld [vmem:[#allocation115_spill] sm:$0xff] }
 0x332   : > { %1883 = vrot.lane.b32.xlu1 %v14288_v45, %s7245_s26 }
 0x333   : > { %1887 = vrot.lane.b32.xlu0 %v14289_v61, %s7245_s26  ;;  %v14296_v61 = vld [vmem:[#allocation176_spill] sm:$0xff] }
 0x334   : > { %v9247_v30 = vpop.permute.xlu1 %1799  ;;  %1891 = vrot.lane.b32.xlu2 %v14292_v34, %s7245_s26  ;;  %v14295_v34 = vld [vmem:[#allocation54_spill] sm:$0xff] }
 0x335   : > { %v9253_v15 = vpop.permute.xlu0 %1803  ;;  %v2054_v22 = vsel %vm194_vm0, %v14296_v61, %v14295_v34  ;;  %v14299_v61 = vld [vmem:[#allocation110_spill] sm:$0xff]  ;;  %v14300_v34 = vld [vmem:[#allocation111_spill] sm:$0xff] }
 0x336   : > { %v9256_v45 = vpop.permute.xlu2 %1825 }
 0x337   : > { %6255 = vmatmul.msk.f32.gmra.mxu0 %vm2340_vm6, %v2245_v26  ;;  %6551 = vmatmul.msk.f32.gmra.mxu2 %vm2340_vm6, %v2247_v28  ;;  %v2151_v26 = vsel %vm2139_vm4, %v2054_v22, %v8653_v57 }
 0x33a   : > { %1889 = vrot.lane.b32.xlu1 %v14293_v17, %s7245_s26  ;;  %v2248_v17 = vsel %vm2236_vm5, %v2151_v26, %v9094_v41  ;;  %v14303_v41 = vld [vmem:[#allocation121_spill] sm:$0xff] }
 0x33b   : > { %1893 = vrot.lane.b32.xlu0 %v14294_v27, %s7245_s26  ;;  %v14302_v27 = vld [vmem:[#allocation181_spill] sm:$0xff] }
 0x33c   : > { %v9267_v13 = vpop.permute.xlu1 %1805  ;;  %1897 = vrot.lane.b32.xlu2 %v14297_v5, %s7245_s26  ;;  %v14301_v5 = vld [vmem:[#allocation77_spill] sm:$0xff] }
 0x33d   : > { %v9273_v44 = vpop.permute.xlu0 %1809  ;;  %v2055_v57 = vsel %vm194_vm0, %v14302_v27, %v14301_v5  ;;  %v14305_v27 = vld [vmem:[#allocation116_spill] sm:$0xff]  ;;  %v14306_v5 = vld [vmem:[#allocation117_spill] sm:$0xff] }
 0x33e   : > { %v9277_v6 = vpop.permute.xlu2 %1831 }
 0x33f   : > { %14298 = vst [vmem:[#allocation41_spill] sm:$0xff] %v9277_v6  ;;  %6256 = vmatmul.msk.f32.gmra.mxu0 %vm2340_vm6, %v2246_v32  ;;  %6552 = vmatmul.msk.f32.gmra.mxu2 %vm2340_vm6, %v2248_v17  ;;  %v2152_v32 = vsel %vm2139_vm4, %v2055_v57, %v8703_v62 }
 0x342   : > { %1895 = vrot.lane.b32.xlu1 %v14299_v61, %s7245_s26  ;;  %v2249_v61 = vsel %vm2236_vm5, %v2152_v32, %v9164_v54  ;;  %v14309_v54 = vld [vmem:[#allocation127_spill] sm:$0xff] }
 0x343   : > { %1899 = vrot.lane.b32.xlu0 %v14300_v34, %s7245_s26  ;;  %v14308_v34 = vld [vmem:[#allocation178_spill] sm:$0xff] }
 0x344   : > { %v9288_v22 = vpop.permute.xlu1 %1811  ;;  %1903 = vrot.lane.b32.xlu2 %v14303_v41, %s7245_s26  ;;  %v14307_v41 = vld [vmem:[#allocation82_spill] sm:$0xff] }
 0x345   : > { %v9294_v26 = vpop.permute.xlu0 %1815  ;;  %v2056_v62 = vsel %vm194_vm0, %v14308_v34, %v14307_v41  ;;  %v14311_v34 = vld [vmem:[#allocation122_spill] sm:$0xff]  ;;  %v14312_v41 = vld [vmem:[#allocation123_spill] sm:$0xff] }
 0x346   : > { %v9298_v6 = vpop.permute.xlu2 %1837 }
 0x347   : > { %14304 = vst [vmem:[#allocation45_spill] sm:$0xff] %v9298_v6  ;;  %6257 = vmatmul.msk.f32.gmra.mxu0 %vm2340_vm6, %v2247_v28  ;;  %6553 = vmatmul.msk.f32.gmra.mxu2 %vm2340_vm6, %v2249_v61  ;;  %v2153_v28 = vsel %vm2139_vm4, %v2056_v62, %v8711_v18 }
 0x34a   : > { %1901 = vrot.lane.b32.xlu1 %v14305_v27, %s7245_s26  ;;  %v2250_v27 = vsel %vm2236_vm5, %v2153_v28, %v9178_v3  ;;  %v14315_v3 = vld [vmem:[#allocation133_spill] sm:$0xff] }
 0x34b   : > { %1905 = vrot.lane.b32.xlu0 %v14306_v5, %s7245_s26  ;;  %v14314_v5 = vld [vmem:[#allocation182_spill] sm:$0xff] }
 0x34c   : > { %v9309_v57 = vpop.permute.xlu1 %1817  ;;  %1909 = vrot.lane.b32.xlu2 %v14309_v54, %s7245_s26  ;;  %v14313_v54 = vld [vmem:[#allocation60_spill] sm:$0xff] }
 0x34d   : > { %v9315_v32 = vpop.permute.xlu0 %1821  ;;  %v2057_v18 = vsel %vm194_vm0, %v14314_v5, %v14313_v54  ;;  %v14317_v5 = vld [vmem:[#allocation128_spill] sm:$0xff]  ;;  %v14318_v54 = vld [vmem:[#allocation129_spill] sm:$0xff] }
 0x34e   : > { %v9319_v6 = vpop.permute.xlu2 %1843 }
 0x34f   : > { %14310 = vst [vmem:[#allocation65_spill] sm:$0xff] %v9319_v6  ;;  %6258 = vmatmul.msk.f32.gmra.mxu0 %vm2340_vm6, %v2248_v17  ;;  %6554 = vmatmul.msk.f32.gmra.mxu2 %vm2340_vm6, %v2250_v27  ;;  %v2154_v17 = vsel %vm2139_vm4, %v2057_v18, %v8665_v60  ;;  %v14320_v60 = vld [vmem:[#allocation187_spill] sm:$0xff] }
 0x352   : > { %1907 = vrot.lane.b32.xlu1 %v14311_v34, %s7245_s26  ;;  %v2251_v34 = vsel %vm2236_vm5, %v2154_v17, %v9117_v11  ;;  %v14322_v11 = vld [vmem:[#allocation139_spill] sm:$0xff] }
 0x353   : > { %1911 = vrot.lane.b32.xlu0 %v14312_v41, %s7245_s26 }
 0x354   : > { %v9330_v62 = vpop.permute.xlu1 %1823  ;;  %1915 = vrot.lane.b32.xlu2 %v14315_v3, %s7245_s26  ;;  %v14319_v3 = vld [vmem:[#allocation83_spill] sm:$0xff] }
 0x355   : > { %v9336_v28 = vpop.permute.xlu0 %1827  ;;  %v2058_v18 = vsel %vm194_vm0, %v14320_v60, %v14319_v3  ;;  %v9366_v3 = vld [vmem:[#allocation3] ss:$0 sm:$0xff]  ;;  %v14325_v60 = vld [vmem:[#allocation134_spill] sm:$0xff] }
 0x356   : > { %v9340_v6 = vpop.permute.xlu2 %1849 }
 0x357   : > { %14316 = vst [vmem:[#allocation169_spill] sm:$0xff] %v9340_v6  ;;  %6259 = vmatmul.msk.f32.gmra.mxu0 %vm2340_vm6, %v2249_v61  ;;  %6555 = vmatmul.msk.f32.gmra.mxu2 %vm2340_vm6, %v2251_v34  ;;  %v2155_v61 = vsel %vm2139_vm4, %v2058_v18, %v8715_v4  ;;  %v14326_v4 = vld [vmem:[#allocation135_spill] sm:$0xff]  ;;  %v14327_v18 = vld [vmem:[#allocation88_spill] sm:$0xff] }
 0x35a   : > { %1913 = vrot.lane.b32.xlu1 %v14317_v5, %s7245_s26  ;;  %v2252_v5 = vsel %vm2236_vm5, %v2155_v61, %v9186_v36 }
 0x35b   : > { %1917 = vrot.lane.b32.xlu0 %v14318_v54, %s7245_s26 }
 0x35c   : > { %v9351_v41 = vpop.permute.xlu1 %1829  ;;  %1921 = vrot.lane.b32.xlu2 %v14322_v11, %s7245_s26 }
 0x35d   : > { %14321 = vst [vmem:[#allocation70_spill] sm:$0xff] %v9351_v41  ;;  %v9357_v17 = vpop.permute.xlu0 %1833 }
 0x35e   : > { %14323 = vst [vmem:[#allocation166_spill] sm:$0xff] %v9357_v17  ;;  %v9361_v6 = vpop.permute.xlu2 %1855 }
 0x35f   : > { %14324 = vst [vmem:[#allocation49_spill] sm:$0xff] %v9361_v6  ;;  %6260 = vmatmul.msk.f32.gmra.mxu0 %vm2340_vm6, %v2250_v27  ;;  %6556 = vmatmul.msk.f32.gmra.mxu2 %vm2340_vm6, %v2252_v5  ;;  %v14328_v27 = vld [vmem:[#allocation184_spill] sm:$0xff] }
 0x360   : > { %v2059_v61 = vsel %vm194_vm0, %v14328_v27, %v14327_v18  ;;  %v14333_v18 = vld [vmem:[#allocation141_spill] sm:$0xff]  ;;  %v14335_v27 = vld [vmem:[#allocation188_spill] sm:$0xff] }
 0x361   : > { %v2156_v6 = vsel %vm2139_vm4, %v2059_v61, %v8725_v50  ;;  %v14334_v50 = vld [vmem:[#allocation66_spill] sm:$0xff] }
 0x362   : > { %1919 = vrot.lane.b32.xlu1 %v14325_v60, %s7245_s26  ;;  %v14329_v60 = vld [vmem:[#allocation149_spill] sm:$0xff]  ;;  %v2060_v61 = vsel %vm194_vm0, %v14335_v27, %v14334_v50  ;;  %v14340_v50 = vld [vmem:[#allocation150_spill] sm:$0xff] }
 0x363   : > { %1923 = vrot.lane.b32.xlu0 %v14326_v4, %s7245_s26  ;;  %v5269_v36 = vpop.f32.mrf.mxu2  ;;  %v2253_v4 = vsel %vm2236_vm5, %v2156_v6, %v9203_v56  ;;  %v14337_v6 = vld [vmem:[#allocation155_spill] sm:$0xff]  ;;  %v2157_v56 = vsel %vm2139_vm4, %v2060_v61, %v8681_v47  ;;  %v663_v27 = vld [vmem:[#allocation2 + $0x4f0] sm:$0x3] }
 0x364   : > { %v9380_v11 = vpop.permute.xlu1 %1835  ;;  %v5270_v54 = vadd.f32 %v9366_v3, %v5269_v36  ;;  %1927 = vrot.lane.b32.xlu2 %v14329_v60, %s7245_s26  ;;  %v14332_v36 = vld [vmem:[#allocation140_spill] sm:$0xff]  ;;  %v14342_v47 = vld [vmem:[#allocation89_spill] sm:$0xff] }
 0x365   : > { %v9387_v17 = vpop.permute.xlu0 %1839  ;;  %v14343_v61 = vld [vmem:[#allocation193_spill] sm:$0xff] }
 0x366   : > { %14330 = vst [vmem:[#allocation170_spill] sm:$0xff] %v9387_v17  ;;  %v9393_v41 = vpop.permute.xlu2 %1861 }
 0x367   : > { %6639 = vst.msk [vmem:[%s9373_s21 + $0x200] sm:$0xff] %vm194_vm0, %v5270_v54  ;;  %6261 = vmatmul.msk.f32.gmra.mxu0 %vm2340_vm6, %v2251_v34  ;;  %6557 = vmatmul.msk.f32.gmra.mxu2 %vm2340_vm6, %v2253_v4  ;;  %v2254_v54 = vsel %vm2236_vm5, %v2157_v56, %v9133_v19  ;;  %v14345_v56 = vld [vmem:[#allocation161_spill] sm:$0xff] }
 0x368   : > { %14331 = vst [vmem:[#allocation71_spill] sm:$0xff] %v9393_v41 }
 0x36a   : > { %1925 = vrot.lane.b32.xlu1 %v14332_v36, %s7245_s26 }
 0x36b   : > { %1929 = vrot.lane.b32.xlu0 %v14333_v18, %s7245_s26  ;;  %v2061_v18 = vsel %vm194_vm0, %v14343_v61, %v14342_v47  ;;  %v14352_v61 = vld [vmem:[#allocation157_spill] sm:$0xff] }
 0x36c   : > { %v9404_v60 = vpop.permute.xlu1 %1841  ;;  %1933 = vrot.lane.b32.xlu2 %v14337_v6, %s7245_s26  ;;  %v14341_v6 = vld [vmem:[#allocation151_spill] sm:$0xff] }
 0x36d   : > { %14336 = vst [vmem:[#allocation175_spill] sm:$0xff] %v9404_v60  ;;  %v9410_v34 = vpop.permute.xlu0 %1845 }
 0x36e   : > { %14338 = vst [vmem:[#allocation76_spill] sm:$0xff] %v9410_v34  ;;  %v9414_v36 = vpop.permute.xlu2 %1867 }
 0x36f   : > { %14339 = vst [vmem:[#allocation172_spill] sm:$0xff] %v9414_v36  ;;  %6262 = vmatmul.msk.f32.gmra.mxu0 %vm2340_vm6, %v2252_v5  ;;  %6558 = vmatmul.msk.f32.gmra.mxu2 %vm2340_vm6, %v2254_v54  ;;  %v2158_v5 = vsel %vm2139_vm4, %v2061_v18, %v8729_v38  ;;  %v1169_v36 = vrot.slane %v8859_v10, 1  ;;  %v14349_v10 = vld [vmem:[#allocation156_spill] sm:$0xff]  ;;  %v14351_v18 = vld [vmem:[#allocation190_spill] sm:$0xff] }
 0x370   : > { %v2255_v60 = vsel %vm2236_vm5, %v2158_v5, %v9209_v20  ;;  %v1168_v20 = vrot.slane %v8873_v7, 1 }
 0x372   : > { %1931 = vrot.lane.b32.xlu1 %v14340_v50, %s7245_s26 }
 0x373   : > { %1935 = vrot.lane.b32.xlu0 %v14341_v6, %s7245_s26  ;;  %v1171_v6 = vrot.slane %v663_v27, 1 }
 0x374   : > { %v2646_v41 = vpop.f32.mrf.mxu0  ;;  %v9425_v19 = vpop.permute.xlu1 %1847  ;;  %1939 = vrot.lane.b32.xlu2 %v14345_v56, %s7245_s26  ;;  %v3032_v56 = vrot.slane %v9099_v24, 2  ;;  %v9477_v24 = vsel %vm812_vm1, %v1168_v20, %v1169_v36 }
 0x375   : > { %14344 = vst [vmem:[#allocation54_spill] sm:$0xff] %v9425_v19  ;;  %v2647_v50 = vadd.f32 %v9366_v3, %v2646_v41  ;;  %v9433_v34 = vpop.permute.xlu0 %1851  ;;  %v9444_v38 = vsel %vm812_vm1, %v1169_v36, %v1171_v6  ;;  %v14350_v41 = vld [vmem:[#allocation94_spill] sm:$0xff]  ;;  %v3031_v6 = vrot.slane %v9082_v35, 2  ;;  %v14357_v36 = vld [vmem:[#allocation72_spill] sm:$0xff] }
 0x376   : > { %14346 = vst [vmem:[#allocation176_spill] sm:$0xff] %v9433_v34  ;;  %v9437_v47 = vpop.permute.xlu2 %1873  ;;  %v2062_v27 = vsel %vm194_vm0, %v14351_v18, %v14350_v41  ;;  %v6998_v18 = vld [vmem:[#allocation2 + $0x18] sm:$0xff] }
 0x377   : > { %14347 = vst [vmem:[#allocation77_spill] sm:$0xff] %v9437_v47  ;;  %6263 = vmatmul.msk.f32.gmra.mxu0 %vm2340_vm6, %v2253_v4  ;;  %6559 = vmatmul.msk.f32.gmra.mxu2 %vm2340_vm6, %v2255_v60  ;;  %v2159_v4 = vsel %vm2139_vm4, %v2062_v27, %v8739_v33  ;;  %v3033_v35 = vsel %vm3030_vm7, %v3031_v6, %v3032_v56 }
 0x378   : > { %2934 = vst.msk [vmem:[%s9373_s21] sm:$0xff] %vm194_vm0, %v2647_v50  ;;  %v9467_v33 = vsel %vm2236_vm5, %v2159_v4, %v9227_v55 }
 0x379   : > { %14348 = vst [vmem:[#allocation181_spill] sm:$0xff] %v9444_v38 }
 0x37a   : > { %1937 = vrot.lane.b32.xlu1 %v14349_v10, %s7245_s26  ;;  %v6999_v10 = vld [vmem:[#allocation2 + $0x20] sm:$0xff]  ;;  %14356 = vst [vmem:[#allocation182_spill] sm:$0xff] %v9477_v24 }
 0x37b   : > { %1941 = vrot.lane.b32.xlu0 %v14352_v61, %s7245_s26  ;;  %v3036_v61 = vrot.slane %v6998_v18, 2  ;;  %v3037_v47 = vrot.slane %v6999_v10, 2  ;;  %v7002_v18 = vld [vmem:[#allocation2 + $0x28] sm:$0x3] }
 0x37c   : > { %v2649_v50 = vpop.f32.mrf.mxu0  ;;  %v9456_v5 = vpop.permute.xlu1 %1853  ;;  %1945 = vrot.lane.b32.xlu2 %v9444_v38, %s7245_s26  ;;  %v3039_v38 = vrot.slane %v7002_v18, 2 }
 0x37d   : > { %14353 = vst [vmem:[#allocation82_spill] sm:$0xff] %v9456_v5  ;;  %v2650_v41 = vadd.f32 %v9366_v3, %v2649_v50  ;;  %v9463_v7 = vpop.permute.xlu0 %1857  ;;  %v9481_v10 = vsel %vm3030_vm7, %v3036_v61, %v3037_v47 }
 0x37e   : > { %14354 = vst [vmem:[#allocation178_spill] sm:$0xff] %v9463_v7  ;;  %v9469_v27 = vpop.permute.xlu2 %1879 }
 0x37f   : > { %14355 = vst [vmem:[#allocation60_spill] sm:$0xff] %v9469_v27  ;;  %6264 = vmatmul.msk.f32.gmra.mxu0 %vm2340_vm6, %v2254_v54  ;;  %6560 = vmatmul.msk.f32.gmra.mxu2 %vm2340_vm6, %v9467_v33  ;;  %v7000_v54 = vld [vmem:[#allocation2 + $0x10] sm:$0x3]  ;;  %v7004_v27 = vld [vmem:[#allocation2 + $0x40] sm:$0x3] }
 0x380   : > { %2935 = vst.msk [vmem:[%s9373_s21 + $0x8] sm:$0xff] %vm194_vm0, %v2650_v41  ;;  %v3034_v50 = vrot.slane %v7000_v54, 2  ;;  %v9487_v41 = vld [vmem:[#allocation2 + $0xf0] sm:$0xff]  ;;  %v3044_v7 = vrot.slane %v7004_v27, 2 }
 0x381   : > { %v2063_v20 = vsel %vm194_vm0, %v9487_v41, %v14357_v36 }
 0x382   : > { %v5272_v55 = vpop.f32.mrf.mxu2  ;;  %1943 = vrot.lane.b32.xlu1 %v9477_v24, %s7245_s26  ;;  %v7003_v24 = vld [vmem:[#allocation2 + $0x38] sm:$0xff] }
 0x383   : > { %v5273_v4 = vadd.f32 %v9366_v3, %v5272_v55  ;;  %3286 = vrot.lane.b32.xlu0 %v3033_v35, %s7243_s24  ;;  %v2160_v35 = vsel %vm2139_vm4, %v2063_v20, %v8693_v25  ;;  %v3042_v36 = vrot.slane %v7003_v24, 2  ;;  %v3035_v25 = vsel %vm3030_vm7, %v3032_v56, %v3034_v50  ;;  %v14361_v56 = vld [vmem:[#allocation95_spill] sm:$0xff]  ;;  %v7007_v50 = vld [vmem:[#allocation2 + $0x48] sm:$0xff] }
 0x384   : > { %v2652_v6 = vpop.f32.mrf.mxu0  ;;  %v9492_v61 = vpop.permute.xlu1 %1859  ;;  %3290 = vrot.lane.b32.xlu2 %v9481_v10, %s7243_s24  ;;  %v3046_v18 = vrot.slane %v7007_v50, 2 }
 0x385   : > { %14358 = vst [vmem:[#allocation83_spill] sm:$0xff] %v9492_v61  ;;  %v2653_v55 = vadd.f32 %v9366_v3, %v2652_v6  ;;  %v9501_v54 = vpop.permute.xlu0 %1863  ;;  %v9505_v61 = vsel %vm2236_vm5, %v2160_v35, %v9149_v52  ;;  %v9519_v27 = vsel %vm3030_vm7, %v3042_v36, %v3044_v7  ;;  %v9525_v6 = vld [vmem:[#allocation2 + $0xf8] sm:$0xff]  ;;  %v7008_v35 = vld [vmem:[#allocation2 + $0x50] sm:$0xff] }
 0x386   : > { %6640 = vst.msk [vmem:[%s9373_s21 + $0x208] sm:$0xff] %vm194_vm0, %v5273_v4  ;;  %v9507_v5 = vpop.permute.xlu2 %1885  ;;  %v9516_v4 = vsel %vm3030_vm7, %v3037_v47, %v3039_v38  ;;  %v2064_v47 = vsel %vm194_vm0, %v9525_v6, %v14361_v56  ;;  %v7009_v56 = vld [vmem:[#allocation2 + $0x60] sm:$0xff] }
 0x387   : > { %14359 = vst [vmem:[#allocation187_spill] sm:$0xff] %v9501_v54  ;;  %6265 = vmatmul.msk.f32.gmra.mxu0 %vm2340_vm6, %v2255_v60  ;;  %6561 = vmatmul.msk.f32.gmra.mxu2 %vm2340_vm6, %v9505_v61  ;;  %v7005_v60 = vld [vmem:[#allocation2 + $0x30] sm:$0xff] }
 0x388   : > { %14360 = vst [vmem:[#allocation88_spill] sm:$0xff] %v9507_v5  ;;  %v3041_v20 = vrot.slane %v7005_v60, 2  ;;  %v3051_v5 = vrot.slane %v7009_v56, 2 }
 0x389   : > { %2936 = vst.msk [vmem:[%s9373_s21 + $0x10] sm:$0xff] %vm194_vm0, %v2653_v55  ;;  %v3047_v55 = vrot.slane %v7008_v35, 2  ;;  %v7013_v35 = vld [vmem:[#allocation2 + $0x70] sm:$0x3] }
 0x38a   : > { %v5275_v24 = vpop.f32.mrf.mxu2  ;;  %3288 = vrot.lane.b32.xlu1 %v3035_v25, %s7243_s24  ;;  %v2161_v25 = vsel %vm2139_vm4, %v2064_v47, %v8743_v39  ;;  %v9551_v39 = vsel %vm3030_vm7, %v3041_v20, %v3042_v36  ;;  %v9564_v36 = vld [vmem:[#allocation2 + $0x108] sm:$0xff] }
 0x38b   : > { %v5276_v52 = vadd.f32 %v9366_v3, %v5275_v24  ;;  %3292 = vrot.lane.b32.xlu0 %v9516_v4, %s7243_s24  ;;  %v2258_v34 = vsel %vm2236_vm5, %v2161_v25, %v9233_v58  ;;  %v14365_v20 = vld [vmem:[#allocation100_spill] sm:$0xff]  ;;  %v3054_v25 = vrot.slane %v7013_v35, 2 }
 0x38c   : > { %v2655_v38 = vpop.f32.mrf.mxu0  ;;  %v9530_v7 = vpop.permute.xlu1 %1865  ;;  %3296 = vrot.lane.b32.xlu2 %v9519_v27, %s7243_s24  ;;  %v2065_v50 = vsel %vm194_vm0, %v9564_v36, %v14365_v20 }
 0x38d   : > { %14362 = vst [vmem:[#allocation184_spill] sm:$0xff] %v9530_v7  ;;  %v2656_v24 = vadd.f32 %v9366_v3, %v2655_v38  ;;  %v9539_v60 = vpop.permute.xlu0 %1869  ;;  %v7010_v7 = vld [vmem:[#allocation2 + $0x68] sm:$0xff] }
 0x38e   : > { %6641 = vst.msk [vmem:[%s9373_s21 + $0x210] sm:$0xff] %vm194_vm0, %v5276_v52  ;;  %v3052_v54 = vrot.slane %v7010_v7, 2  ;;  %v9543_v19 = vpop.permute.xlu2 %1891  ;;  %v9554_v52 = vsel %vm3030_vm7, %v3046_v18, %v3047_v55 }
 0x38f   : > { %14363 = vst [vmem:[#allocation66_spill] sm:$0xff] %v9539_v60  ;;  %6266 = vmatmul.msk.f32.gmra.mxu0 %vm2340_vm6, %v9467_v33  ;;  %6562 = vmatmul.msk.f32.gmra.mxu2 %vm2340_vm6, %v2258_v34  ;;  %v7011_v33 = vld [vmem:[#allocation2 + $0x58] sm:$0x3] }
 0x390   : > { %14364 = vst [vmem:[#allocation188_spill] sm:$0xff] %v9543_v19  ;;  %v9557_v47 = vsel %vm3030_vm7, %v3051_v5, %v3052_v54  ;;  %v3049_v7 = vrot.slane %v7011_v33, 2  ;;  %v7014_v33 = vld [vmem:[#allocation2 + $0x80] sm:$0xff]  ;;  %v7015_v19 = vld [vmem:[#allocation2 + $0x88] sm:$0x3] }
 0x391   : > { %2937 = vst.msk [vmem:[%s9373_s21 + $0x18] sm:$0xff] %vm194_vm0, %v2656_v24  ;;  %v2162_v24 = vsel %vm2139_vm4, %v2065_v50, %v8751_v63  ;;  %v3057_v20 = vrot.slane %v7014_v33, 2  ;;  %v3059_v60 = vrot.slane %v7015_v19, 2 }
 0x392   : > { %v5278_v58 = vpop.f32.mrf.mxu2  ;;  %3294 = vrot.lane.b32.xlu1 %v9551_v39, %s7243_s24  ;;  %v9590_v63 = vsel %vm3030_vm7, %v3047_v55, %v3049_v7  ;;  %v9603_v55 = vld [vmem:[#allocation2 + $0x110] sm:$0xff] }
 0x393   : > { %v5279_v38 = vadd.f32 %v9366_v3, %v5278_v58  ;;  %3298 = vrot.lane.b32.xlu0 %v9554_v52, %s7243_s24  ;;  %v9596_v19 = vsel %vm3030_vm7, %v3057_v20, %v3059_v60 }
 0x394   : > { %v2658_v5 = vpop.f32.mrf.mxu0  ;;  %v9569_v18 = vpop.permute.xlu1 %1871  ;;  %3302 = vrot.lane.b32.xlu2 %v9557_v47, %s7243_s24 }
 0x395   : > { %14366 = vst [vmem:[#allocation89_spill] sm:$0xff] %v9569_v18  ;;  %v2659_v56 = vadd.f32 %v9366_v3, %v2658_v5  ;;  %v9578_v58 = vpop.permute.xlu0 %1875  ;;  %v2259_v18 = vsel %vm2236_vm5, %v2162_v24, %v9247_v30 }
 0x396   : > { %6642 = vst.msk [vmem:[%s9373_s21 + $0x218] sm:$0xff] %vm194_vm0, %v5279_v38  ;;  %v9582_v17 = vpop.permute.xlu2 %1897  ;;  %v9593_v38 = vsel %vm3030_vm7, %v3052_v54, %v3054_v25  ;;  %v14369_v54 = vld [vmem:[#allocation78_spill] sm:$0xff] }
 0x397   : > { %14367 = vst [vmem:[#allocation193_spill] sm:$0xff] %v9578_v58  ;;  %6267 = vmatmul.msk.f32.gmra.mxu0 %vm2340_vm6, %v9505_v61  ;;  %6563 = vmatmul.msk.f32.gmra.mxu2 %vm2340_vm6, %v2259_v18  ;;  %v7016_v61 = vld [vmem:[#allocation2 + $0x78] sm:$0xff]  ;;  %v2066_v60 = vsel %vm194_vm0, %v9603_v55, %v14369_v54  ;;  %v7018_v25 = vld [vmem:[#allocation2 + $0x90] sm:$0xff] }
 0x398   : > { %14368 = vst [vmem:[#allocation94_spill] sm:$0xff] %v9582_v17  ;;  %v3056_v5 = vrot.slane %v7016_v61, 2  ;;  %v3061_v24 = vrot.slane %v7018_v25, 2 }
 0x399   : > { %2938 = vst.msk [vmem:[%s9373_s21 + $0x20] sm:$0xff] %vm194_vm0, %v2659_v56  ;;  %v9612_v56 = vld [vmem:[#allocation2 + $0x98] sm:$0xff] }
 0x39a   : > { %v5281_v50 = vpop.f32.mrf.mxu2  ;;  %3300 = vrot.lane.b32.xlu1 %v9590_v63, %s7243_s24  ;;  %v13889_v33 = vrot.slane %v9612_v56, 2 }
 0x39b   : > { %v5282_v30 = vadd.f32 %v9366_v3, %v5281_v50  ;;  %3304 = vrot.lane.b32.xlu0 %v9593_v38, %s7243_s24  ;;  %v2163_v50 = vsel %vm2139_vm4, %v2066_v60, %v8705_v8  ;;  %v9631_v8 = vsel %vm3030_vm7, %v3056_v5, %v3057_v20 }
 0x39c   : > { %v2661_v7 = vpop.f32.mrf.mxu0  ;;  %v9608_v35 = vpop.permute.xlu1 %1877  ;;  %3308 = vrot.lane.b32.xlu2 %v9596_v19, %s7243_s24  ;;  %v2260_v17 = vsel %vm2236_vm5, %v2163_v50, %v9167_v53 }
 0x39d   : > { %14370 = vst [vmem:[#allocation190_spill] sm:$0xff] %v9608_v35  ;;  %v2662_v61 = vadd.f32 %v9366_v3, %v2661_v7  ;;  %v9620_v54 = vpop.permute.xlu0 %1881  ;;  %v14373_v7 = vld [vmem:[#allocation101_spill] sm:$0xff] }
 0x39e   : > { %6643 = vst.msk [vmem:[%s9373_s21 + $0x220] sm:$0xff] %vm194_vm0, %v5282_v30  ;;  %v9624_v35 = vpop.permute.xlu2 %1903  ;;  %v9636_v30 = vsel %vm3030_vm7, %v3061_v24, %v13889_v33 }
 0x39f   : > { %14371 = vst [vmem:[#allocation72_spill] sm:$0xff] %v9620_v54  ;;  %6268 = vmatmul.msk.f32.gmra.mxu0 %vm2340_vm6, %v2258_v34  ;;  %6564 = vmatmul.msk.f32.gmra.mxu2 %vm2340_vm6, %v2260_v17  ;;  %v9643_v34 = vld [vmem:[#allocation2 + $0x120] sm:$0xff] }
 0x3a0   : > { %14372 = vst [vmem:[#allocation95_spill] sm:$0xff] %v9624_v35  ;;  %v2067_v20 = vsel %vm194_vm0, %v9643_v34, %v14373_v7 }
 0x3a1   : > { %2939 = vst.msk [vmem:[%s9373_s21 + $0x28] sm:$0xff] %vm194_vm0, %v2662_v61  ;;  %v2164_v24 = vsel %vm2139_vm4, %v2067_v20, %v8755_v14 }
 0x3a2   : > { %v5284_v60 = vpop.f32.mrf.mxu2  ;;  %3306 = vrot.lane.b32.xlu1 %v9631_v8, %s7243_s24 }
 0x3a3   : > { %v5285_v53 = vadd.f32 %v9366_v3, %v5284_v60  ;;  %3310 = vrot.lane.b32.xlu0 %v9636_v30, %s7243_s24  ;;  %v2261_v60 = vsel %vm2236_vm5, %v2164_v24, %v9253_v15  ;;  %v14377_v15 = vld [vmem:[#allocation106_spill] sm:$0xff] }
 0x3a4   : > { %v2664_v5 = vpop.f32.mrf.mxu0  ;;  %v9648_v25 = vpop.permute.xlu1 %1883  ;;  %3866 = vrot.lane.b32.xlu2 %v9551_v39, %s7245_s26 }
 0x3a5   : > { %14374 = vst [vmem:[#allocation100_spill] sm:$0xff] %v9648_v25  ;;  %v2665_v50 = vadd.f32 %v9366_v3, %v2664_v5  ;;  %v9657_v61 = vpop.permute.xlu0 %1887 }
 0x3a6   : > { %6644 = vst.msk [vmem:[%s9373_s21 + $0x228] sm:$0xff] %vm194_vm0, %v5285_v53  ;;  %v9661_v7 = vpop.permute.xlu2 %1909  ;;  %v9672_v53 = vld [vmem:[#allocation2 + $0x128] sm:$0xff] }
 0x3a7   : > { %14375 = vst [vmem:[#allocation78_spill] sm:$0xff] %v9657_v61  ;;  %6269 = vmatmul.msk.f32.gmra.mxu0 %vm2340_vm6, %v2259_v18  ;;  %6565 = vmatmul.msk.f32.gmra.mxu2 %vm2340_vm6, %v2261_v60  ;;  %v2068_v20 = vsel %vm194_vm0, %v9672_v53, %v14377_v15 }
 0x3a8   : > { %14376 = vst [vmem:[#allocation101_spill] sm:$0xff] %v9661_v7  ;;  %v2165_v24 = vsel %vm2139_vm4, %v2068_v20, %v8763_v9  ;;  %v9701_v20 = vld [vmem:[#allocation2 + $0x138] sm:$0xff] }
 0x3a9   : > { %2940 = vst.msk [vmem:[%s9373_s21 + $0x30] sm:$0xff] %vm194_vm0, %v2665_v50  ;;  %v2262_v33 = vsel %vm2236_vm5, %v2165_v24, %v9267_v13  ;;  %v14381_v13 = vld [vmem:[#allocation84_spill] sm:$0xff]  ;;  %v14421_v7 = vld [vmem:[#allocation22_spill] sm:$0xff] }
 0x3aa   : > { %v5287_v14 = vpop.f32.mrf.mxu2  ;;  %3578 = vrot.lane.b32.xlu1 %v14171_v2, %s7244_s25 }
 0x3ab   : > { %v5288_v39 = vadd.f32 %v9366_v3, %v5287_v14  ;;  %3574 = vrot.lane.b32.xlu0 %v14169_v49, %s7244_s25 }
 0x3ac   : > { %v2667_v5 = vpop.f32.mrf.mxu0  ;;  %v9677_v18 = vpop.permute.xlu1 %1889  ;;  %3580 = vrot.lane.b32.xlu2 %v14175_v37, %s7244_s25 }
 0x3ad   : > { %14378 = vst [vmem:[#allocation106_spill] sm:$0xff] %v9677_v18  ;;  %v2668_v50 = vadd.f32 %v9366_v3, %v2667_v5  ;;  %v9686_v14 = vpop.permute.xlu0 %1893  ;;  %v2069_v5 = vsel %vm194_vm0, %v9701_v20, %v14381_v13  ;;  %v6343_v18 = vld [vmem:[%s13670_s1 + $0x20] sm:$0xff] }
 0x3ae   : > { %6645 = vst.msk [vmem:[%s9373_s21 + $0x230] sm:$0xff] %vm194_vm0, %v5288_v39  ;;  %v9690_v15 = vpop.permute.xlu2 %1915 }
 0x3af   : > { %14379 = vst [vmem:[#allocation267_spill] sm:$0xff] %v9686_v14  ;;  %6270 = vmatmul.msk.f32.gmra.mxu0 %vm2340_vm6, %v2260_v17  ;;  %6566 = vmatmul.msk.f32.gmra.mxu2 %vm2340_vm6, %v2262_v33 }
 0x3b0   : > { %14380 = vst [vmem:[#allocation268_spill] sm:$0xff] %v9690_v15 }
 0x3b1   : > { %2941 = vst.msk [vmem:[%s9373_s21 + $0x38] sm:$0xff] %vm194_vm0, %v2668_v50 }
 0x3b2   : > { %v5290_v9 = vpop.f32.mrf.mxu2  ;;  %3862 = vrot.lane.b32.xlu1 %v9481_v10, %s7245_s26  ;;  %v2166_v10 = vsel %vm2139_vm4, %v2069_v5, %v8717_v21 }
 0x3b3   : > { %v5291_v39 = vadd.f32 %v9366_v3, %v5290_v9  ;;  %3868 = vrot.lane.b32.xlu0 %v9519_v27, %s7245_s26  ;;  %v2263_v9 = vsel %vm2236_vm5, %v2166_v10, %v9189_v31  ;;  %v14385_v31 = vld [vmem:[#allocation107_spill] sm:$0xff] }
 0x3b4   : > { %v2670_v24 = vpop.f32.mrf.mxu0  ;;  %v9706_v17 = vpop.permute.xlu1 %1895  ;;  %3864 = vrot.lane.b32.xlu2 %v9516_v4, %s7245_s26 }
 0x3b5   : > { %14382 = vst [vmem:[#allocation84_spill] sm:$0xff] %v9706_v17  ;;  %v2671_v50 = vadd.f32 %v9366_v3, %v2670_v24  ;;  %v9715_v27 = vpop.permute.xlu0 %1899 }
 0x3b6   : > { %6646 = vst.msk [vmem:[%s9373_s21 + $0x238] sm:$0xff] %vm194_vm0, %v5291_v39  ;;  %v9719_v13 = vpop.permute.xlu2 %1921  ;;  %v9730_v39 = vld [vmem:[#allocation2 + $0x140] sm:$0xff] }
 0x3b7   : > { %14383 = vst [vmem:[#allocation269_spill] sm:$0xff] %v9715_v27  ;;  %6271 = vmatmul.msk.f32.gmra.mxu0 %vm2340_vm6, %v2261_v60  ;;  %6567 = vmatmul.msk.f32.gmra.mxu2 %vm2340_vm6, %v2263_v9  ;;  %v2070_v5 = vsel %vm194_vm0, %v9730_v39, %v14385_v31  ;;  %v14425_v27 = vld [vmem:[#allocation223_spill] sm:$0xff] }
 0x3b8   : > { %14384 = vst [vmem:[#allocation270_spill] sm:$0xff] %v9719_v13  ;;  %v2167_v10 = vsel %vm2139_vm4, %v2070_v5, %v8767_v0  ;;  %v9759_v5 = vld [vmem:[#allocation2 + $0x150] sm:$0xff] }
 0x3b9   : > { %2942 = vst.msk [vmem:[%s9373_s21 + $0x40] sm:$0xff] %vm194_vm0, %v2671_v50  ;;  %v2264_v13 = vsel %vm2236_vm5, %v2167_v10, %v9273_v44  ;;  %v14389_v44 = vld [vmem:[#allocation112_spill] sm:$0xff] }
 0x3ba   : > { %v5293_v21 = vpop.f32.mrf.mxu2  ;;  %3576 = vrot.lane.b32.xlu1 %v14174_v12, %s7244_s25 }
 0x3bb   : > { %v5294_v4 = vadd.f32 %v9366_v3, %v5293_v21  ;;  %3582 = vrot.lane.b32.xlu0 %v14180_v51, %s7244_s25 }
 0x3bc   : > { %v2673_v24 = vpop.f32.mrf.mxu0  ;;  %v9735_v60 = vpop.permute.xlu1 %1901  ;;  %3584 = vrot.lane.b32.xlu2 %v14177_v29, %s7244_s25 }
 0x3bd   : > { %14386 = vst [vmem:[#allocation107_spill] sm:$0xff] %v9735_v60  ;;  %v2674_v50 = vadd.f32 %v9366_v3, %v2673_v24  ;;  %v9744_v21 = vpop.permute.xlu0 %1905  ;;  %v2071_v24 = vsel %vm194_vm0, %v9759_v5, %v14389_v44  ;;  %v6735_v60 = vld [vmem:[%s13670_s1 + $0x60] sm:$0xff] }
 0x3be   : > { %6647 = vst.msk [vmem:[%s9373_s21 + $0x240] sm:$0xff] %vm194_vm0, %v5294_v4  ;;  %v9748_v31 = vpop.permute.xlu2 %1927 }
 0x3bf   : > { %14387 = vst [vmem:[#allocation271_spill] sm:$0xff] %v9744_v21  ;;  %6272 = vmatmul.msk.f32.gmra.mxu0 %vm2340_vm6, %v2262_v33  ;;  %6568 = vmatmul.msk.f32.gmra.mxu2 %vm2340_vm6, %v2264_v13 }
 0x3c0   : > { %14388 = vst [vmem:[#allocation272_spill] sm:$0xff] %v9748_v31 }
 0x3c1   : > { %2943 = vst.msk [vmem:[%s9373_s21 + $0x48] sm:$0xff] %vm194_vm0, %v2674_v50 }
 0x3c2   : > { %v5296_v0 = vpop.f32.mrf.mxu2  ;;  %3870 = vrot.lane.b32.xlu1 %v9554_v52, %s7245_s26  ;;  %v2168_v52 = vsel %vm2139_vm4, %v2071_v24, %v8775_v42 }
 0x3c3   : > { %v5297_v4 = vadd.f32 %v9366_v3, %v5296_v0  ;;  %3872 = vrot.lane.b32.xlu0 %v9590_v63, %s7245_s26  ;;  %v2265_v0 = vsel %vm2236_vm5, %v2168_v52, %v9288_v22  ;;  %v14393_v22 = vld [vmem:[#allocation90_spill] sm:$0xff] }
 0x3c4   : > { %v2676_v10 = vpop.f32.mrf.mxu0  ;;  %v9764_v33 = vpop.permute.xlu1 %1907  ;;  %3874 = vrot.lane.b32.xlu2 %v9557_v47, %s7245_s26 }
 0x3c5   : > { %14390 = vst [vmem:[#allocation112_spill] sm:$0xff] %v9764_v33  ;;  %v2677_v50 = vadd.f32 %v9366_v3, %v2676_v10  ;;  %v9773_v63 = vpop.permute.xlu0 %1911 }
 0x3c6   : > { %6648 = vst.msk [vmem:[%s9373_s21 + $0x248] sm:$0xff] %vm194_vm0, %v5297_v4  ;;  %v9777_v44 = vpop.permute.xlu2 %1933  ;;  %v9788_v4 = vld [vmem:[#allocation2 + $0x158] sm:$0xff] }
 0x3c7   : > { %14391 = vst [vmem:[#allocation273_spill] sm:$0xff] %v9773_v63  ;;  %6273 = vmatmul.msk.f32.gmra.mxu0 %vm2340_vm6, %v2263_v9  ;;  %6569 = vmatmul.msk.f32.gmra.mxu2 %vm2340_vm6, %v2265_v0  ;;  %v2072_v24 = vsel %vm194_vm0, %v9788_v4, %v14393_v22 }
 0x3c8   : > { %14392 = vst [vmem:[#allocation274_spill] sm:$0xff] %v9777_v44  ;;  %v2169_v52 = vsel %vm2139_vm4, %v2072_v24, %v8731_v48 }
 0x3c9   : > { %2944 = vst.msk [vmem:[%s9373_s21 + $0x50] sm:$0xff] %vm194_vm0, %v2677_v50  ;;  %v2266_v44 = vsel %vm2236_vm5, %v2169_v52, %v9213_v16  ;;  %v9817_v16 = vld [vmem:[#allocation2 + $0x168] sm:$0xff]  ;;  %v7027_v52 = vld [vmem:[#allocation2 + $0xa0] sm:$0x3] }
 0x3ca   : > { %v5299_v42 = vpop.f32.mrf.mxu2  ;;  %3586 = vrot.lane.b32.xlu1 %v14181_v40, %s7244_s25 }
 0x3cb   : > { %v5300_v47 = vadd.f32 %v9366_v3, %v5299_v42  ;;  %3588 = vrot.lane.b32.xlu0 %v14186_v23, %s7244_s25 }
 0x3cc   : > { %v2679_v10 = vpop.f32.mrf.mxu0  ;;  %v9793_v9 = vpop.permute.xlu1 %1913  ;;  %3590 = vrot.lane.b32.xlu2 %v14183_v59, %s7244_s25 }
 0x3cd   : > { %14394 = vst [vmem:[#allocation90_spill] sm:$0xff] %v9793_v9  ;;  %v2680_v50 = vadd.f32 %v9366_v3, %v2679_v10  ;;  %v9802_v42 = vpop.permute.xlu0 %1917 }
 0x3ce   : > { %6649 = vst.msk [vmem:[%s9373_s21 + $0x250] sm:$0xff] %vm194_vm0, %v5300_v47  ;;  %v9806_v31 = vpop.permute.xlu2 %1939  ;;  %v14397_v47 = vld [vmem:[#allocation113_spill] sm:$0xff] }
 0x3cf   : > { %14395 = vst [vmem:[#allocation275_spill] sm:$0xff] %v9802_v42  ;;  %6274 = vmatmul.msk.f32.gmra.mxu0 %vm2340_vm6, %v2264_v13  ;;  %6570 = vmatmul.msk.f32.gmra.mxu2 %vm2340_vm6, %v2266_v44  ;;  %v2073_v24 = vsel %vm194_vm0, %v9817_v16, %v14397_v47 }
 0x3d0   : > { %14396 = vst [vmem:[#allocation276_spill] sm:$0xff] %v9806_v31 }
 0x3d1   : > { %2945 = vst.msk [vmem:[%s9373_s21 + $0x58] sm:$0xff] %vm194_vm0, %v2680_v50  ;;  %v3064_v50 = vrot.slane %v7027_v52, 2 }
 0x3d2   : > { %v5302_v22 = vpop.f32.mrf.mxu2  ;;  %3876 = vrot.lane.b32.xlu1 %v9593_v38, %s7245_s26  ;;  %v2170_v38 = vsel %vm2139_vm4, %v2073_v24, %v8779_v1 }
 0x3d3   : > { %v5303_v48 = vadd.f32 %v9366_v3, %v5302_v22  ;;  %3878 = vrot.lane.b32.xlu0 %v9631_v8, %s7245_s26  ;;  %v2267_v47 = vsel %vm2236_vm5, %v2170_v38, %v9294_v26  ;;  %v9848_v26 = vld [vmem:[#allocation2 + $0x170] sm:$0xff]  ;;  %v7029_v38 = vld [vmem:[#allocation2 + $0xa8] sm:$0xff] }
 0x3d4   : > { %v2682_v10 = vpop.f32.mrf.mxu0  ;;  %v9822_v13 = vpop.permute.xlu1 %1919  ;;  %3880 = vrot.lane.b32.xlu2 %v9596_v19, %s7245_s26  ;;  %v14401_v19 = vrot.slane %v9612_v56, 2 }
 0x3d5   : > { %14398 = vst [vmem:[#allocation113_spill] sm:$0xff] %v9822_v13  ;;  %v2683_v8 = vadd.f32 %v9366_v3, %v2682_v10  ;;  %v9831_v22 = vpop.permute.xlu0 %1923  ;;  %v14402_v10 = vld [vmem:[#allocation118_spill] sm:$0xff] }
 0x3d6   : > { %6650 = vst.msk [vmem:[%s9373_s21 + $0x258] sm:$0xff] %vm194_vm0, %v5303_v48  ;;  %v9835_v31 = vpop.permute.xlu2 %1945  ;;  %v3065_v1 = vsel %vm3030_vm7, %v14401_v19, %v3064_v50  ;;  %v3066_v50 = vrot.slane %v7029_v38, 2  ;;  %v7031_v38 = vld [vmem:[#allocation2 + $0xb8] sm:$0x3] }
 0x3d7   : > { %14399 = vst [vmem:[#allocation277_spill] sm:$0xff] %v9831_v22  ;;  %6275 = vmatmul.msk.f32.gmra.mxu0 %vm2340_vm6, %v2265_v0  ;;  %6571 = vmatmul.msk.f32.gmra.mxu2 %vm2340_vm6, %v2267_v47  ;;  %v2074_v0 = vsel %vm194_vm0, %v9848_v26, %v14402_v10 }
 0x3d8   : > { %14400 = vst [vmem:[#allocation278_spill] sm:$0xff] %v9835_v31 }
 0x3d9   : > { %2946 = vst.msk [vmem:[%s9373_s21 + $0x60] sm:$0xff] %vm194_vm0, %v2683_v8  ;;  %v7030_v8 = vld [vmem:[#allocation2 + $0xb0] sm:$0xff] }
 0x3da   : > { %v5305_v48 = vpop.f32.mrf.mxu2  ;;  %3592 = vrot.lane.b32.xlu1 %v14187_v46, %s7244_s25  ;;  %v3067_v19 = vrot.slane %v7030_v8, 2 }
 0x3db   : > { %v5306_v24 = vadd.f32 %v9366_v3, %v5305_v48  ;;  %3312 = vrot.lane.b32.xlu0 %v3065_v1, %s7243_s24  ;;  %v14404_v48 = vld [vmem:[#allocation220_spill] sm:$0xff] }
 0x3dc   : > { %v2685_v52 = vpop.f32.mrf.mxu0  ;;  %v9853_v56 = vpop.permute.xlu1 %1925  ;;  %3882 = vrot.lane.b32.xlu2 %v9636_v30, %s7245_s26  ;;  %v2171_v31 = vsel %vm2139_vm4, %v2074_v0, %v14404_v48  ;;  %v3068_v30 = vsel %vm3030_vm7, %v3066_v50, %v3067_v19  ;;  %v14406_v0 = vld [vmem:[#allocation18_spill] sm:$0xff]  ;;  %v3069_v50 = vrot.slane %v7031_v38, 2 }
 0x3dd   : > { %14403 = vst [vmem:[#allocation118_spill] sm:$0xff] %v9853_v56  ;;  %v2686_v22 = vadd.f32 %v9366_v3, %v2685_v52  ;;  %v9862_v13 = vpop.permute.xlu0 %1929  ;;  %v2268_v10 = vsel %vm2236_vm5, %v2171_v31, %v9309_v57 }
 0x3de   : > { %6651 = vst.msk [vmem:[%s9373_s21 + $0x260] sm:$0xff] %vm194_vm0, %v5306_v24  ;;  %v9866_v56 = vpop.permute.xlu2 %3290  ;;  %v3070_v48 = vsel %vm3030_vm7, %v3067_v19, %v3069_v50 }
 0x3df   : > { %14405 = vst [vmem:[#allocation220_spill] sm:$0xff] %v9862_v13  ;;  %6276 = vmatmul.msk.f32.gmra.mxu0 %vm2340_vm6, %v2266_v44  ;;  %6572 = vmatmul.msk.f32.gmra.mxu2 %vm2340_vm6, %v2268_v10 }
 0x3e0   : > { %2947 = vst.msk [vmem:[%s9373_s21 + $0x68] sm:$0xff] %vm194_vm0, %v2686_v22 }
 0x3e2   : > { %v5308_v24 = vpop.f32.mrf.mxu2  ;;  %3594 = vrot.lane.b32.xlu1 %v14406_v0, %s7244_s25 }
 0x3e3   : > { %v5309_v52 = vadd.f32 %v9366_v3, %v5308_v24  ;;  %3314 = vrot.lane.b32.xlu0 %v3068_v30, %s7243_s24 }
 0x3e4   : > { %v2688_v57 = vpop.f32.mrf.mxu0  ;;  %v9877_v31 = vpop.permute.xlu1 %1931  ;;  %3884 = vrot.lane.b32.xlu2 %v3065_v1, %s7245_s26  ;;  %v14409_v1 = vld [vmem:[#allocation20_spill] sm:$0xff] }
 0x3e5   : > { %14407 = vst [vmem:[#allocation18_spill] sm:$0xff] %v9877_v31  ;;  %v2689_v44 = vadd.f32 %v9366_v3, %v2688_v57  ;;  %v9883_v22 = vpop.permute.xlu0 %1935  ;;  %v14410_v57 = vld [vmem:[#allocation19_spill] sm:$0xff]  ;;  %v7033_v31 = vld [vmem:[#allocation2 + $0xc8] sm:$0xff] }
 0x3e6   : > { %6652 = vst.msk [vmem:[%s9373_s21 + $0x268] sm:$0xff] %vm194_vm0, %v5309_v52  ;;  %v9885_v8 = vpop.permute.xlu2 %3296  ;;  %v3072_v13 = vrot.slane %v7033_v31, 2  ;;  %v14415_v31 = vld [vmem:[#allocation96_spill] sm:$0xff] }
 0x3e7   : > { %14408 = vst [vmem:[#allocation279_spill] sm:$0xff] %v9883_v22  ;;  %6277 = vmatmul.msk.f32.gmra.mxu0 %vm2340_vm6, %v2267_v47 }
 0x3e8   : > { %2948 = vst.msk [vmem:[%s9373_s21 + $0x70] sm:$0xff] %vm194_vm0, %v2689_v44  ;;  %v7032_v44 = vld [vmem:[#allocation2 + $0xc0] sm:$0xff] }
 0x3e9   : > { %v3071_v50 = vrot.slane %v7032_v44, 2  ;;  %v9914_v44 = vld [vmem:[#allocation2 + $0x1b0] sm:$0xff] }
 0x3ea   : > { %v5311_v24 = vpop.f32.mrf.mxu2  ;;  %3596 = vrot.lane.b32.xlu1 %v14409_v1, %s7244_s25 }
 0x3eb   : > { %v5312_v52 = vadd.f32 %v9366_v3, %v5311_v24  ;;  %3598 = vrot.lane.b32.xlu0 %v14410_v57, %s7244_s25 }
 0x3ec   : > { %v2691_v22 = vpop.f32.mrf.mxu0  ;;  %v9896_v38 = vpop.permute.xlu1 %1937  ;;  %3316 = vrot.lane.b32.xlu2 %v3070_v48, %s7243_s24 }
 0x3ed   : > { %14411 = vst [vmem:[#allocation20_spill] sm:$0xff] %v9896_v38  ;;  %v2692_v47 = vadd.f32 %v9366_v3, %v2691_v22  ;;  %v9902_v19 = vpop.permute.xlu0 %1941  ;;  %v3073_v38 = vsel %vm3030_vm7, %v3071_v50, %v3072_v13 }
 0x3ee   : > { %6653 = vst.msk [vmem:[%s9373_s21 + $0x270] sm:$0xff] %vm194_vm0, %v5312_v52  ;;  %v9904_v24 = vpop.permute.xlu2 %3302  ;;  %v14413_v52 = vld [vmem:[#allocation21_spill] sm:$0xff] }
 0x3ef   : > { %14412 = vst [vmem:[#allocation19_spill] sm:$0xff] %v9902_v19  ;;  %6278 = vmatmul.msk.f32.gmra.mxu0 %vm2340_vm6, %v2268_v10  ;;  %v2075_v19 = vsel %vm194_vm0, %v9914_v44, %v14415_v31  ;;  %v14417_v10 = vld [vmem:[#allocation216_spill] sm:$0xff]  ;;  %v6738_v31 = vld [vmem:[%s13670_s1 + $0x78] sm:$0xff] }
 0x3f0   : > { %2949 = vst.msk [vmem:[%s9373_s21 + $0x78] sm:$0xff] %vm194_vm0, %v2692_v47  ;;  %v2172_v50 = vsel %vm2139_vm4, %v2075_v19, %v14417_v10  ;;  %5776 = vmatpush.msra.mxu3 %v6738_v31  ;;  %v14420_v10 = vld [vmem:[#allocation119_spill] sm:$0xff] }
 0x3f1   : > { %14414 = vst [vmem:[#allocation21_spill] sm:$0xff] %v9914_v44  ;;  %v2269_v9 = vsel %vm2236_vm5, %v2172_v50, %v9236_v43  ;;  %v14437_v44 = vld [vmem:[#allocation70_spill] sm:$0xff] }
 0x3f2   : > { %v5314_v42 = vpop.f32.mrf.mxu2  ;;  %3886 = vrot.lane.b32.xlu1 %v3068_v30, %s7245_s26 }
 0x3f3   : > { %v5315_v22 = vadd.f32 %v9366_v3, %v5314_v42  ;;  %3600 = vrot.lane.b32.xlu0 %v14413_v52, %s7244_s25 }
 0x3f4   : > { %v2694_v47 = vpop.f32.mrf.mxu0  ;;  %v9919_v15 = vpop.permute.xlu1 %1943  ;;  %3318 = vrot.lane.b32.xlu2 %v3073_v38, %s7243_s24 }
 0x3f5   : > { %14416 = vst [vmem:[#allocation96_spill] sm:$0xff] %v9919_v15  ;;  %v2695_v42 = vadd.f32 %v9366_v3, %v2694_v47  ;;  %v9927_v30 = vpop.permute.xlu0 %3286  ;;  %v14418_v47 = vld [vmem:[#allocation23_spill] sm:$0xff] }
 0x3f6   : > { %6654 = vst.msk [vmem:[%s9373_s21 + $0x278] sm:$0xff] %vm194_vm0, %v5315_v22  ;;  %v9931_v63 = vpop.permute.xlu2 %3308  ;;  %v6737_v22 = vld [vmem:[%s13670_s1 + $0x70] sm:$0xff] }
 0x3f7   : > { %2950 = vst.msk [vmem:[%s9373_s21 + $0x80] sm:$0xff] %vm194_vm0, %v2695_v42  ;;  %6279 = vmatmul.msk.f32.gmra.mxu0 %vm2340_vm6, %v2269_v9  ;;  %5777 = vmatpush.msra.mxu3 %v6737_v22  ;;  %v9946_v9 = vld [vmem:[#allocation2 + $0x1b8] sm:$0xff]  ;;  %v14422_v22 = vld [vmem:[#allocation221_spill] sm:$0xff] }
 0x3f8   : > { %14419 = vst [vmem:[#allocation216_spill] sm:$0xff] %v9946_v9  ;;  %v2076_v50 = vsel %vm194_vm0, %v9946_v9, %v14420_v10 }
 0x3f9   : > { %v2173_v33 = vsel %vm2139_vm4, %v2076_v50, %v14422_v22  ;;  %v6345_v50 = vld [vmem:[%s13670_s1 + $0x30] sm:$0xff] }
 0x3fa   : > { %v5317_v19 = vpop.f32.mrf.mxu2  ;;  %3888 = vrot.lane.b32.xlu1 %v3070_v48, %s7245_s26  ;;  %v7036_v48 = vld [vmem:[#allocation2 + $0xd0] sm:$0x3] }
 0x3fb   : > { %v5318_v43 = vadd.f32 %v9366_v3, %v5317_v19  ;;  %3602 = vrot.lane.b32.xlu0 %v14418_v47, %s7244_s25  ;;  %v3074_v15 = vrot.slane %v7036_v48, 2  ;;  %v6736_v19 = vld [vmem:[%s13670_s1 + $0x68] sm:$0xff]  ;;  %v2270_v48 = vsel %vm2236_vm5, %v2173_v33, %v9315_v32 }
 0x3fc   : > { %v2697_v42 = vpop.f32.mrf.mxu0  ;;  %v9951_v31 = vpop.permute.xlu1 %3288  ;;  %3604 = vrot.lane.b32.xlu2 %v14421_v7, %s7244_s25  ;;  %5778 = vmatpush.msra.mxu3 %v6736_v19  ;;  %v14423_v19 = vld [vmem:[#allocation124_spill] sm:$0xff] }
 0x3fd   : > { %6655 = vst.msk [vmem:[%s9373_s21 + $0x280] sm:$0xff] %vm194_vm0, %v5318_v43  ;;  %v2698_v21 = vadd.f32 %v9366_v3, %v2697_v42  ;;  %v9963_v10 = vpop.permute.xlu0 %3292  ;;  %v6346_v43 = vld [vmem:[%s13670_s1 + $0x38] sm:$0xff]  ;;  %v3075_v32 = vsel %vm3030_vm7, %v3072_v13, %v3074_v15  ;;  %v9988_v42 = vld [vmem:[#allocation2 + $0x1c8] sm:$0xff] }
 0x3fe   : > { %v9967_v35 = vpop.permute.xlu2 %3866  ;;  %5779 = vmatpush.msra.mxu3 %v6735_v60  ;;  %4743 = vmatpush.msra.mxu1 %v6346_v43  ;;  %v6344_v60 = vld [vmem:[%s13670_s1 + $0x28] sm:$0xff]  ;;  %v2077_v15 = vsel %vm194_vm0, %v9988_v42, %v14423_v19  ;;  %v7039_v43 = vld [vmem:[#allocation2 + $0xe0] sm:$0xff] }
 0x3ff   : > { %2951 = vst.msk [vmem:[%s9373_s21 + $0x88] sm:$0xff] %vm194_vm0, %v2698_v21  ;;  %6280 = vmatmul.msk.f32.gmra.mxu0 %vm2340_vm6, %v2270_v48  ;;  %v2174_v17 = vsel %vm2139_vm4, %v2077_v15, %v14425_v27 }
 0x400   : > { %4744 = vmatpush.msra.mxu1 %v6345_v50  ;;  %v3077_v50 = vrot.slane %v7039_v43, 2 }
 0x402   : > { %v5320_v33 = vpop.f32.mrf.mxu2  ;;  %3890 = vrot.lane.b32.xlu1 %v3073_v38, %s7245_s26  ;;  %v7038_v38 = vld [vmem:[#allocation2 + $0xd8] sm:$0xff]  ;;  %4745 = vmatpush.msra.mxu1 %v6344_v60 }
 0x403   : > { %v5321_v21 = vadd.f32 %v9366_v3, %v5320_v33  ;;  %3892 = vrot.lane.b32.xlu0 %v3075_v32, %s7245_s26  ;;  %v3076_v48 = vrot.slane %v7038_v38, 2  ;;  %v14424_v33 = vld [vmem:[#allocation24_spill] sm:$0xff]  ;;  %v10009_v38 = vsel %vm2236_vm5, %v2174_v17, %v9330_v62  ;;  %v10021_v62 = vld [vmem:[#allocation2 + $0x1d0] sm:$0xff] }
 0x404   : > { %v2700_v13 = vpop.f32.mrf.mxu0  ;;  %v9993_v22 = vpop.permute.xlu1 %3294  ;;  %3606 = vrot.lane.b32.xlu2 %v14424_v33, %s7244_s25  ;;  %14426 = vst [vmem:[#allocation23_spill] sm:$0xff] %v10009_v38  ;;  %4746 = vmatpush.msra.mxu1 %v6343_v18  ;;  %v14427_v17 = vld [vmem:[#allocation102_spill] sm:$0xff] }
 0x405   : > { %6656 = vst.msk [vmem:[%s9373_s21 + $0x288] sm:$0xff] %vm194_vm0, %v5321_v21  ;;  %v2701_v14 = vadd.f32 %v9366_v3, %v2700_v13  ;;  %v10002_v19 = vpop.permute.xlu0 %3298  ;;  %v3078_v27 = vsel %vm3030_vm7, %v3076_v48, %v3077_v50  ;;  %v2078_v18 = vsel %vm194_vm0, %v10021_v62, %v14427_v17  ;;  %v7041_v13 = vld [vmem:[#allocation2 + $0xe8] sm:$0x3]  ;;  %v14428_v48 = vld [vmem:[#allocation26_spill] sm:$0xff] }
 0x406   : > { %v10011_v43 = vpop.permute.xlu2 %3580 }
 0x407   : > { %2952 = vst.msk [vmem:[%s9373_s21 + $0x90] sm:$0xff] %vm194_vm0, %v2701_v14  ;;  %6281 = vmatmul.msk.f32.gmra.mxu0 %vm2340_vm6, %v10009_v38  ;;  %v3079_v38 = vrot.slane %v7041_v13, 2 }
 0x40a   : > { %v5323_v21 = vpop.f32.mrf.mxu2  ;;  %3320 = vrot.lane.b32.xlu1 %v3075_v32, %s7243_s24  ;;  %v14429_v32 = vld [vmem:[#allocation217_spill] sm:$0xff] }
 0x40b   : > { %v5324_v60 = vadd.f32 %v9366_v3, %v5323_v21  ;;  %3894 = vrot.lane.b32.xlu0 %v3078_v27, %s7245_s26  ;;  %v2175_v61 = vsel %vm2139_vm4, %v2078_v18, %v14429_v32  ;;  %v3081_v18 = vrot.slane %v9487_v41, 2  ;;  %v10054_v32 = vld [vmem:[#allocation2 + $0x1e0] sm:$0xff] }
 0x40c   : > { %v2703_v14 = vpop.f32.mrf.mxu0  ;;  %v10026_v15 = vpop.permute.xlu1 %3300  ;;  %3608 = vrot.lane.b32.xlu2 %v14428_v48, %s7244_s25  ;;  %v10039_v17 = vsel %vm2236_vm5, %v2175_v61, %v9256_v45 }
 0x40d   : > { %6657 = vst.msk [vmem:[%s9373_s21 + $0x290] sm:$0xff] %vm194_vm0, %v5324_v60  ;;  %v2704_v21 = vadd.f32 %v9366_v3, %v2703_v14  ;;  %v10035_v25 = vpop.permute.xlu0 %3304  ;;  %v3082_v60 = vrot.slane %v9525_v6, 2  ;;  %v3080_v14 = vsel %vm3030_vm7, %v3077_v50, %v3079_v38  ;;  %v14432_v50 = vld [vmem:[#allocation224_spill] sm:$0xff] }
 0x40e   : > { %14430 = vst [vmem:[#allocation119_spill] sm:$0xff] %v10039_v17  ;;  %v10041_v54 = vpop.permute.xlu2 %3864 }
 0x40f   : > { %2953 = vst.msk [vmem:[%s9373_s21 + $0x98] sm:$0xff] %vm194_vm0, %v2704_v21  ;;  %6282 = vmatmul.msk.f32.gmra.mxu0 %vm2340_vm6, %v10039_v17  ;;  %v3083_v61 = vsel %vm3030_vm7, %v3081_v18, %v3082_v60  ;;  %v14431_v21 = vld [vmem:[#allocation125_spill] sm:$0xff] }
 0x410   : > { %v2079_v41 = vsel %vm194_vm0, %v10054_v32, %v14431_v21  ;;  %v7043_v21 = vld [vmem:[#allocation2 + $0x100] sm:$0x3] }
 0x411   : > { %v2176_v38 = vsel %vm2139_vm4, %v2079_v41, %v14432_v50  ;;  %v3084_v41 = vrot.slane %v7043_v21, 2  ;;  %v4152_v21 = vsel %vm194_vm0, %v14169_v49, %v9866_v56 }
 0x412   : > { %v5326_v13 = vpop.f32.mrf.mxu2  ;;  %3322 = vrot.lane.b32.xlu1 %v3078_v27, %s7243_s24  ;;  %v10071_v18 = vsel %vm2236_vm5, %v2176_v38, %v9336_v28  ;;  %v10084_v38 = vld [vmem:[#allocation2 + $0x1e8] sm:$0xff] }
 0x413   : > { %v5327_v45 = vadd.f32 %v9366_v3, %v5326_v13  ;;  %3896 = vrot.lane.b32.xlu0 %v3080_v14, %s7245_s26  ;;  %14433 = vst [vmem:[#allocation22_spill] sm:$0xff] %v10071_v18  ;;  %v3085_v28 = vsel %vm3030_vm7, %v3082_v60, %v3084_v41 }
 0x414   : > { %v2706_v17 = vpop.f32.mrf.mxu0  ;;  %v10059_v6 = vpop.permute.xlu1 %3306  ;;  %3898 = vrot.lane.b32.xlu2 %v3083_v61, %s7245_s26 }
 0x415   : > { %6658 = vst.msk [vmem:[%s9373_s21 + $0x298] sm:$0xff] %vm194_vm0, %v5327_v45  ;;  %v2707_v27 = vadd.f32 %v9366_v3, %v2706_v17  ;;  %v10067_v13 = vpop.permute.xlu0 %3310  ;;  %v14434_v45 = vld [vmem:[#allocation25_spill] sm:$0xff] }
 0x416   : > { %v10073_v58 = vpop.permute.xlu2 %3584 }
 0x417   : > { %2954 = vst.msk [vmem:[%s9373_s21 + $0xa0] sm:$0xff] %vm194_vm0, %v2707_v27  ;;  %6283 = vmatmul.msk.f32.gmra.mxu0 %vm2340_vm6, %v10071_v18  ;;  %v14435_v27 = vld [vmem:[#allocation130_spill] sm:$0xff] }
 0x418   : > { %v2080_v48 = vsel %vm194_vm0, %v10084_v38, %v14435_v27 }
 0x41a   : > { %v5329_v50 = vpop.f32.mrf.mxu2  ;;  %3610 = vrot.lane.b32.xlu1 %v14434_v45, %s7244_s25 }
 0x41b   : > { %v5330_v17 = vadd.f32 %v9366_v3, %v5329_v50  ;;  %3324 = vrot.lane.b32.xlu0 %v3080_v14, %s7243_s24  ;;  %v14436_v50 = vld [vmem:[#allocation226_spill] sm:$0xff] }
 0x41c   : > { %v2709_v18 = vpop.f32.mrf.mxu0  ;;  %v3579_v9 = vpop.permute.xlu1 %3578  ;;  %3900 = vrot.lane.b32.xlu2 %v3085_v28, %s7245_s26  ;;  %v2177_v14 = vsel %vm2139_vm4, %v2080_v48, %v14436_v50  ;;  %v3087_v48 = vrot.slane %v9603_v55, 2 }
 0x41d   : > { %6659 = vst.msk [vmem:[%s9373_s21 + $0x2a0] sm:$0xff] %vm194_vm0, %v5330_v17  ;;  %v2710_v60 = vadd.f32 %v9366_v3, %v2709_v18  ;;  %v4248_v41 = vsel %vm2139_vm4, %v4152_v21, %v3579_v9  ;;  %v3575_v45 = vpop.permute.xlu0 %3574  ;;  %v10101_v27 = vsel %vm2236_vm5, %v2177_v14, %v14437_v44  ;;  %v3086_v9 = vrot.slane %v9564_v36, 2  ;;  %v14439_v18 = vld [vmem:[#allocation27_spill] sm:$0xff]  ;;  %v14442_v36 = vld [vmem:[#allocation108_spill] sm:$0xff] }
 0x41e   : > { %14438 = vst [vmem:[#allocation221_spill] sm:$0xff] %v10101_v27  ;;  %v10105_v49 = vsel %vm2236_vm5, %v4248_v41, %v9967_v35  ;;  %v10107_v56 = vpop.permute.xlu2 %3874  ;;  %v14440_v35 = vld [vmem:[#allocation6_spill] sm:$0xff] }
 0x41f   : > { %2955 = vst.msk [vmem:[%s9373_s21 + $0xa8] sm:$0xff] %vm194_vm0, %v2710_v60  ;;  %6284 = vmatmul.msk.f32.gmra.mxu0 %vm2340_vm6, %v10101_v27  ;;  %6739 = vmatmul.msk.f32.vlgmr.msra.gmra.mxu3 %vm2340_vm6, %v10105_v49  ;;  %v4150_v17 = vsel %vm194_vm0, %v14440_v35, %v9927_v30  ;;  %v3088_v50 = vsel %vm3030_vm7, %v3086_v9, %v3087_v48  ;;  %v10125_v14 = vld [vmem:[#allocation2 + $0x1f8] sm:$0xff] }
 0x420   : > { %14441 = vst [vmem:[#allocation124_spill] sm:$0xff] %v10125_v14  ;;  %v2081_v55 = vsel %vm194_vm0, %v10125_v14, %v14442_v36  ;;  %v4153_v60 = vsel %vm194_vm0, %v14174_v12, %v9963_v10  ;;  %v4246_v41 = vsel %vm2139_vm4, %v4150_v17, %v3575_v45  ;;  %v14444_v12 = vld [vmem:[#allocation41_spill] sm:$0xff] }
 0x422   : > { %v5332_v44 = vpop.f32.mrf.mxu2  ;;  %3612 = vrot.lane.b32.xlu1 %v14439_v18, %s7244_s25 }
 0x423   : > { %v5333_v21 = vadd.f32 %v9366_v3, %v5332_v44  ;;  %3326 = vrot.lane.b32.xlu0 %v3083_v61, %s7243_s24  ;;  %v14443_v61 = vld [vmem:[#allocation218_spill] sm:$0xff]  ;;  %v4249_v44 = vsel %vm2139_vm4, %v4153_v60, %v10011_v43  ;;  %v14446_v60 = vld [vmem:[#allocation29_spill] sm:$0xff] }
 0x424   : > { %v2712_v30 = vpop.f32.mrf.mxu0  ;;  %v3863_v35 = vpop.permute.xlu1 %3862  ;;  %3902 = vrot.lane.b32.xlu2 %v3088_v50, %s7245_s26  ;;  %v2178_v9 = vsel %vm2139_vm4, %v2081_v55, %v14443_v61  ;;  %v7046_v43 = vld [vmem:[#allocation2 + $0x118] sm:$0x3] }
 0x425   : > { %6660 = vst.msk [vmem:[%s9373_s21 + $0x2a8] sm:$0xff] %vm194_vm0, %v5333_v21  ;;  %v2713_v36 = vadd.f32 %v9366_v3, %v2712_v30  ;;  %v3869_v27 = vpop.permute.xlu0 %3868  ;;  %v4342_v14 = vsel %vm2236_vm5, %v4246_v41, %v3863_v35  ;;  %v10145_v10 = vsel %vm2236_vm5, %v2178_v9, %v14444_v12  ;;  %v3089_v21 = vrot.slane %v7046_v43, 2  ;;  %v10164_v41 = vld [vmem:[#allocation2 + $0x200] sm:$0xff]  ;;  %v14448_v61 = vld [vmem:[#allocation10_spill] sm:$0xff] }
 0x426   : > { %14445 = vst [vmem:[#allocation24_spill] sm:$0xff] %v10145_v10  ;;  %6347 = vmatmul.msk.f32.vlgmr.msra.gmra.mxu1 %vm2340_vm6, %v4342_v14  ;;  %v10149_v45 = vsel %vm2236_vm5, %v4249_v44, %v3869_v27  ;;  %v10151_v17 = vpop.permute.xlu2 %3590  ;;  %v14447_v30 = vld [vmem:[#allocation131_spill] sm:$0xff]  ;;  %v4151_v9 = vsel %vm194_vm0, %v14448_v61, %v9951_v31 }
 0x427   : > { %2956 = vst.msk [vmem:[%s9373_s21 + $0xb0] sm:$0xff] %vm194_vm0, %v2713_v36  ;;  %6285 = vmatmul.msk.f32.gmra.mxu0 %vm2340_vm6, %v10145_v10  ;;  %6740 = vmatmul.msk.f32.gmra.mxu3 %vm2340_vm6, %v10149_v45  ;;  %v3090_v14 = vsel %vm3030_vm7, %v3087_v48, %v3089_v21  ;;  %v2082_v35 = vsel %vm194_vm0, %v10164_v41, %v14447_v30  ;;  %v14449_v12 = vld [vmem:[#allocation227_spill] sm:$0xff]  ;;  %v7064_v10 = vld [vmem:[#allocation2 + $0x190] sm:$0x3] }
 0x42a   : > { %v5335_v55 = vpop.f32.mrf.mxu2  ;;  %3614 = vrot.lane.b32.xlu1 %v14446_v60, %s7244_s25 }
 0x42b   : > { %v5336_v27 = vadd.f32 %v9366_v3, %v5335_v55  ;;  %3328 = vrot.lane.b32.xlu0 %v3085_v28, %s7243_s24  ;;  %v2179_v28 = vsel %vm2139_vm4, %v2082_v35, %v14449_v12  ;;  %v14450_v55 = vld [vmem:[#allocation166_spill] sm:$0xff] }
 0x42c   : > { %v2715_v44 = vpop.f32.mrf.mxu0  ;;  %v3577_v36 = vpop.permute.xlu1 %3576  ;;  %3904 = vrot.lane.b32.xlu2 %v3090_v14, %s7245_s26  ;;  %v10181_v30 = vsel %vm2236_vm5, %v2179_v28, %v14450_v55  ;;  %v10204_v12 = vld [vmem:[#allocation2 + $0x210] sm:$0xff] }
 0x42d   : > { %6661 = vst.msk [vmem:[%s9373_s21 + $0x2b0] sm:$0xff] %vm194_vm0, %v5336_v27  ;;  %v2716_v48 = vadd.f32 %v9366_v3, %v2715_v44  ;;  %v4247_v43 = vsel %vm2139_vm4, %v4151_v9, %v3577_v36  ;;  %v3583_v21 = vpop.permute.xlu0 %3582  ;;  %v3091_v3 = vrot.slane %v9643_v34, 2  ;;  %v3092_v27 = vrot.slane %v9672_v53, 2  ;;  %v14452_v9 = vld [vmem:[#allocation28_spill] sm:$0xff]  ;;  %v10199_v44 = vld [vmem:[#allocation3] ss:$0 sm:$0xff] }
 0x42e   : > { %14451 = vst [vmem:[#allocation223_spill] sm:$0xff] %v10181_v30  ;;  %v4343_v31 = vsel %vm2236_vm5, %v4247_v43, %v10041_v54  ;;  %v10185_v61 = vpop.permute.xlu2 %3880  ;;  %v4154_v54 = vsel %vm194_vm0, %v14171_v2, %v9993_v22  ;;  %v14453_v53 = vld [vmem:[#allocation136_spill] sm:$0xff]  ;;  %v14454_v2 = vld [vmem:[#allocation229_spill] sm:$0xff] }
 0x42f   : > { %2957 = vst.msk [vmem:[%s9373_s21 + $0xb8] sm:$0xff] %vm194_vm0, %v2716_v48  ;;  %6286 = vmatmul.msk.f32.gmra.mxu0 %vm2340_vm6, %v10181_v30  ;;  %6348 = vmatmul.msk.f32.gmra.mxu1 %vm2340_vm6, %v4343_v31  ;;  %v3093_v34 = vsel %vm3030_vm7, %v3091_v3, %v3092_v27  ;;  %v2083_v28 = vsel %vm194_vm0, %v10204_v12, %v14453_v53 }
 0x430   : > { %v4250_v48 = vsel %vm2139_vm4, %v4154_v54, %v3583_v21  ;;  %v2180_v22 = vsel %vm2139_vm4, %v2083_v28, %v14454_v2  ;;  %v7050_v54 = vld [vmem:[#allocation2 + $0x130] sm:$0x3]  ;;  %v14456_v28 = vld [vmem:[#allocation30_spill] sm:$0xff] }
 0x432   : > { %v5338_v35 = vpop.f32.mrf.mxu2  ;;  %3616 = vrot.lane.b32.xlu1 %v14452_v9, %s7244_s25 }
 0x433   : > { %v5339_v36 = vadd.f32 %v10199_v44, %v5338_v35  ;;  %3330 = vrot.lane.b32.xlu0 %v3088_v50, %s7243_s24  ;;  %v10219_v35 = vsel %vm2236_vm5, %v2180_v22, %v9380_v11  ;;  %v4155_v11 = vsel %vm194_vm0, %v14175_v37, %v9885_v8  ;;  %v14458_v37 = vld [vmem:[#allocation219_spill] sm:$0xff] }
 0x434   : > { %v2718_v43 = vpop.f32.mrf.mxu0  ;;  %v3871_v55 = vpop.permute.xlu1 %3870  ;;  %3906 = vrot.lane.b32.xlu2 %v3093_v34, %s7245_s26  ;;  %14455 = vst [vmem:[#allocation102_spill] sm:$0xff] %v10219_v35  ;;  %v4251_v22 = vsel %vm2139_vm4, %v4155_v11, %v10073_v58  ;;  %v3096_v11 = vrot.slane %v9701_v20, 2  ;;  %v10276_v20 = vld [vmem:[#allocation2 + $0x228] sm:$0xff] }
 0x435   : > { %6662 = vst.msk [vmem:[%s9373_s21 + $0x2b8] sm:$0xff] %vm194_vm0, %v5339_v36  ;;  %v2719_v50 = vadd.f32 %v10199_v44, %v2718_v43  ;;  %v3873_v31 = vpop.permute.xlu0 %3872  ;;  %v4346_v3 = vsel %vm2236_vm5, %v4250_v48, %v3871_v55  ;;  %v3094_v36 = vrot.slane %v7050_v54, 2  ;;  %v10238_v55 = vld [vmem:[#allocation2 + $0x218] sm:$0xff] }
 0x436   : > { %6741 = vmatmul.msk.f32.gmra.mxu3 %vm2340_vm6, %v4346_v3  ;;  %v10222_v21 = vpop.permute.xlu2 %3882 }
 0x437   : > { %2958 = vst.msk [vmem:[%s9373_s21 + $0xc0] sm:$0xff] %vm194_vm0, %v2719_v50  ;;  %6287 = vmatmul.msk.f32.gmra.mxu0 %vm2340_vm6, %v10219_v35  ;;  %6349 = vmatmul.msk.f32.gmra.mxu1 %vm2340_vm6, %v10105_v49  ;;  %v3095_v43 = vsel %vm3030_vm7, %v3092_v27, %v3094_v36  ;;  %v14457_v49 = vld [vmem:[#allocation114_spill] sm:$0xff]  ;;  %v4347_v36 = vsel %vm2236_vm5, %v4251_v22, %v3873_v31  ;;  %v3097_v31 = vrot.slane %v9730_v39, 2  ;;  %v14462_v39 = vld [vmem:[#allocation137_spill] sm:$0xff] }
 0x438   : > { %v2084_v2 = vsel %vm194_vm0, %v10238_v55, %v14457_v49 }
 0x439   : > { %v2181_v8 = vsel %vm2139_vm4, %v2084_v2, %v14458_v37 }
 0x43a   : > { %v5341_v53 = vpop.f32.mrf.mxu2  ;;  %3618 = vrot.lane.b32.xlu1 %v14456_v28, %s7244_s25 }
 0x43b   : > { %v5342_v48 = vadd.f32 %v10199_v44, %v5341_v53  ;;  %3332 = vrot.lane.b32.xlu0 %v3090_v14, %s7243_s24  ;;  %v14459_v53 = vld [vmem:[#allocation45_spill] sm:$0xff] }
 0x43c   : > { %v2721_v50 = vpop.f32.mrf.mxu0  ;;  %v3587_v54 = vpop.permute.xlu1 %3586  ;;  %3908 = vrot.lane.b32.xlu2 %v3095_v43, %s7245_s26  ;;  %v10254_v49 = vsel %vm2236_vm5, %v2181_v8, %v14459_v53  ;;  %v2085_v8 = vsel %vm194_vm0, %v10276_v20, %v14462_v39 }
 0x43d   : > { %6663 = vst.msk [vmem:[%s9373_s21 + $0x2c0] sm:$0xff] %vm194_vm0, %v5342_v48  ;;  %v2722_v14 = vadd.f32 %v10199_v44, %v2721_v50  ;;  %v3589_v27 = vpop.permute.xlu0 %3588  ;;  %v4156_v48 = vsel %vm194_vm0, %v14180_v51, %v10002_v19  ;;  %v14461_v50 = vld [vmem:[#allocation32_spill] sm:$0xff] }
 0x43e   : > { %14460 = vst [vmem:[#allocation217_spill] sm:$0xff] %v10254_v49  ;;  %6742 = vmatmul.msk.f32.gmra.mxu3 %vm2340_vm6, %v4347_v36  ;;  %v10257_v58 = vpop.permute.xlu2 %3884  ;;  %v4252_v2 = vsel %vm2139_vm4, %v4156_v48, %v3587_v54  ;;  %v14463_v54 = vld [vmem:[#allocation230_spill] sm:$0xff] }
 0x43f   : > { %2959 = vst.msk [vmem:[%s9373_s21 + $0xc8] sm:$0xff] %vm194_vm0, %v2722_v14  ;;  %6288 = vmatmul.msk.f32.gmra.mxu0 %vm2340_vm6, %v10254_v49  ;;  %6350 = vmatmul.msk.f32.gmra.mxu1 %vm2340_vm6, %v10149_v45  ;;  %v3098_v45 = vsel %vm3030_vm7, %v3096_v11, %v3097_v31  ;;  %v2182_v14 = vsel %vm2139_vm4, %v2085_v8, %v14463_v54  ;;  %v14464_v48 = vld [vmem:[#allocation170_spill] sm:$0xff] }
 0x440   : > { %v4348_v11 = vsel %vm2236_vm5, %v4252_v2, %v10107_v56  ;;  %v14466_v56 = vld [vmem:[#allocation31_spill] sm:$0xff]  ;;  %v4157_v2 = vsel %vm194_vm0, %v14177_v29, %v10026_v15  ;;  %v14468_v29 = vld [vmem:[#allocation232_spill] sm:$0xff] }
 0x442   : > { %v5344_v22 = vpop.f32.mrf.mxu2  ;;  %3620 = vrot.lane.b32.xlu1 %v14461_v50, %s7244_s25 }
 0x443   : > { %v5345_v37 = vadd.f32 %v10199_v44, %v5344_v22  ;;  %3334 = vrot.lane.b32.xlu0 %v3093_v34, %s7243_s24  ;;  %v10291_v22 = vsel %vm2236_vm5, %v2182_v14, %v14464_v48 }
 0x444   : > { %v2724_v51 = vpop.f32.mrf.mxu0  ;;  %v3877_v19 = vpop.permute.xlu1 %3876  ;;  %3910 = vrot.lane.b32.xlu2 %v3098_v45, %s7245_s26  ;;  %14465 = vst [vmem:[#allocation125_spill] sm:$0xff] %v10291_v22 }
 0x445   : > { %6664 = vst.msk [vmem:[%s9373_s21 + $0x2c8] sm:$0xff] %vm194_vm0, %v5345_v37  ;;  %v2725_v53 = vadd.f32 %v10199_v44, %v2724_v51  ;;  %v3879_v34 = vpop.permute.xlu0 %3878  ;;  %v7053_v37 = vld [vmem:[#allocation2 + $0x148] sm:$0x3] }
 0x446   : > { %6743 = vmatmul.msk.f32.gmra.mxu3 %vm2340_vm6, %v4348_v11  ;;  %v10294_v39 = vpop.permute.xlu2 %3316  ;;  %v3099_v8 = vrot.slane %v7053_v37, 2  ;;  %v4253_v37 = vsel %vm2139_vm4, %v4157_v2, %v3589_v27 }
 0x447   : > { %2960 = vst.msk [vmem:[%s9373_s21 + $0xd0] sm:$0xff] %vm194_vm0, %v2725_v53  ;;  %6289 = vmatmul.msk.f32.gmra.mxu0 %vm2340_vm6, %v10291_v22  ;;  %6351 = vmatmul.msk.f32.gmra.mxu1 %vm2340_vm6, %v4346_v3  ;;  %v10309_v53 = vld [vmem:[#allocation2 + $0x230] sm:$0xff] }
 0x448   : > { %v3100_v14 = vsel %vm3030_vm7, %v3097_v31, %v3099_v8  ;;  %v14467_v3 = vld [vmem:[#allocation146_spill] sm:$0xff]  ;;  %v4349_v8 = vsel %vm2236_vm5, %v4253_v37, %v3877_v19  ;;  %v3102_v19 = vrot.slane %v9788_v4, 2 }
 0x449   : > { %v2086_v48 = vsel %vm194_vm0, %v10309_v53, %v14467_v3 }
 0x44a   : > { %v5347_v51 = vpop.f32.mrf.mxu2  ;;  %3622 = vrot.lane.b32.xlu1 %v14466_v56, %s7244_s25  ;;  %v2183_v15 = vsel %vm2139_vm4, %v2086_v48, %v14468_v29  ;;  %v4158_v48 = vsel %vm194_vm0, %v14181_v40, %v9904_v24  ;;  %v10346_v29 = vld [vmem:[#allocation2 + $0x240] sm:$0xff]  ;;  %v14473_v40 = vld [vmem:[#allocation222_spill] sm:$0xff] }
 0x44b   : > { %v5348_v54 = vadd.f32 %v10199_v44, %v5347_v51  ;;  %3336 = vrot.lane.b32.xlu0 %v3095_v43, %s7243_s24  ;;  %v14469_v51 = vld [vmem:[#allocation175_spill] sm:$0xff] }
 0x44c   : > { %v2727_v22 = vpop.f32.mrf.mxu0  ;;  %v3593_v49 = vpop.permute.xlu1 %3592  ;;  %3912 = vrot.lane.b32.xlu2 %v3100_v14, %s7245_s26  ;;  %v10326_v3 = vsel %vm2236_vm5, %v2183_v15, %v14469_v51  ;;  %v4254_v15 = vsel %vm2139_vm4, %v4158_v48, %v10151_v17  ;;  %v7056_v48 = vld [vmem:[#allocation2 + $0x160] sm:$0x3] }
 0x44d   : > { %6665 = vst.msk [vmem:[%s9373_s21 + $0x2d0] sm:$0xff] %vm194_vm0, %v5348_v54  ;;  %v2728_v43 = vadd.f32 %v10199_v44, %v2727_v22  ;;  %v10321_v31 = vpop.permute.xlu0 %3312  ;;  %v3101_v22 = vrot.slane %v9759_v5, 2  ;;  %v14471_v54 = vld [vmem:[#allocation33_spill] sm:$0xff]  ;;  %v14472_v5 = vld [vmem:[#allocation120_spill] sm:$0xff] }
 0x44e   : > { %14470 = vst [vmem:[#allocation224_spill] sm:$0xff] %v10326_v3  ;;  %6744 = vmatmul.msk.f32.gmra.mxu3 %vm2340_vm6, %v4349_v8  ;;  %v10329_v27 = vpop.permute.xlu2 %3318  ;;  %v2087_v4 = vsel %vm194_vm0, %v10346_v29, %v14472_v5 }
 0x44f   : > { %2961 = vst.msk [vmem:[%s9373_s21 + $0xd8] sm:$0xff] %vm194_vm0, %v2728_v43  ;;  %6290 = vmatmul.msk.f32.gmra.mxu0 %vm2340_vm6, %v10326_v3  ;;  %6352 = vmatmul.msk.f32.gmra.mxu1 %vm2340_vm6, %v4347_v36  ;;  %v3103_v36 = vsel %vm3030_vm7, %v3101_v22, %v3102_v19  ;;  %v2184_v24 = vsel %vm2139_vm4, %v2087_v4, %v14473_v40  ;;  %v14474_v3 = vld [vmem:[#allocation65_spill] sm:$0xff] }
 0x450   : > { %v10364_v5 = vsel %vm2236_vm5, %v2184_v24, %v14474_v3  ;;  %v10383_v40 = vld [vmem:[#allocation2 + $0x248] sm:$0xff]  ;;  %v14477_v24 = vld [vmem:[#allocation147_spill] sm:$0xff] }
 0x451   : > { %14475 = vst [vmem:[#allocation130_spill] sm:$0xff] %v10364_v5 }
 0x452   : > { %v5350_v2 = vpop.f32.mrf.mxu2  ;;  %3624 = vrot.lane.b32.xlu1 %v14471_v54, %s7244_s25 }
 0x453   : > { %v5351_v37 = vadd.f32 %v10199_v44, %v5350_v2  ;;  %3338 = vrot.lane.b32.xlu0 %v3098_v45, %s7243_s24  ;;  %v4350_v2 = vsel %vm2236_vm5, %v4254_v15, %v3879_v34  ;;  %v4159_v34 = vsel %vm194_vm0, %v14186_v23, %v10035_v25  ;;  %v14476_v15 = vld [vmem:[#allocation35_spill] sm:$0xff] }
 0x454   : > { %v2730_v43 = vpop.f32.mrf.mxu0  ;;  %v3595_v51 = vpop.permute.xlu1 %3594  ;;  %3914 = vrot.lane.b32.xlu2 %v3103_v36, %s7245_s26  ;;  %v4255_v3 = vsel %vm2139_vm4, %v4159_v34, %v3593_v49  ;;  %v14478_v49 = vld [vmem:[#allocation143_spill] sm:$0xff] }
 0x455   : > { %6666 = vst.msk [vmem:[%s9373_s21 + $0x2d8] sm:$0xff] %vm194_vm0, %v5351_v37  ;;  %v2731_v45 = vadd.f32 %v10199_v44, %v2730_v43  ;;  %v10359_v22 = vpop.permute.xlu0 %3314  ;;  %v3104_v37 = vrot.slane %v7056_v48, 2 }
 0x456   : > { %6745 = vmatmul.msk.f32.gmra.mxu3 %vm2340_vm6, %v4350_v2  ;;  %v10367_v17 = vpop.permute.xlu2 %3604 }
 0x457   : > { %2962 = vst.msk [vmem:[%s9373_s21 + $0xe0] sm:$0xff] %vm194_vm0, %v2731_v45  ;;  %6291 = vmatmul.msk.f32.gmra.mxu0 %vm2340_vm6, %v10364_v5  ;;  %6353 = vmatmul.msk.f32.gmra.mxu1 %vm2340_vm6, %v4348_v11  ;;  %v3105_v11 = vsel %vm3030_vm7, %v3102_v19, %v3104_v37  ;;  %v2088_v45 = vsel %vm194_vm0, %v10383_v40, %v14477_v24  ;;  %v14479_v37 = vld [vmem:[#allocation76_spill] sm:$0xff] }
 0x458   : > { %v2185_v48 = vsel %vm2139_vm4, %v2088_v45, %v14478_v49  ;;  %v4351_v19 = vsel %vm2236_vm5, %v4255_v3, %v10185_v61  ;;  %v3107_v61 = vrot.slane %v9848_v26, 2  ;;  %v4160_v3 = vsel %vm194_vm0, %v14183_v59, %v10059_v6  ;;  %v14481_v49 = vld [vmem:[#allocation34_spill] sm:$0xff]  ;;  %v14482_v26 = vld [vmem:[#allocation152_spill] sm:$0xff] }
 0x459   : > { %v4256_v45 = vsel %vm2139_vm4, %v4160_v3, %v3595_v51  ;;  %v14483_v51 = vld [vmem:[#allocation142_spill] sm:$0xff] }
 0x45a   : > { %v5353_v4 = vpop.f32.mrf.mxu2  ;;  %3626 = vrot.lane.b32.xlu1 %v14476_v15, %s7244_s25 }
 0x45b   : > { %v5354_v43 = vadd.f32 %v10199_v44, %v5353_v4  ;;  %3340 = vrot.lane.b32.xlu0 %v3100_v14, %s7243_s24  ;;  %v10400_v4 = vsel %vm2236_vm5, %v2185_v48, %v14479_v37 }
 0x45c   : > { %v2733_v23 = vpop.f32.mrf.mxu0  ;;  %v3597_v25 = vpop.permute.xlu1 %3596  ;;  %3916 = vrot.lane.b32.xlu2 %v3105_v11, %s7245_s26  ;;  %14480 = vst [vmem:[#allocation226_spill] sm:$0xff] %v10400_v4 }
 0x45d   : > { %6667 = vst.msk [vmem:[%s9373_s21 + $0x2e0] sm:$0xff] %vm194_vm0, %v5354_v43  ;;  %v2734_v34 = vadd.f32 %v10199_v44, %v2733_v23  ;;  %v10394_v14 = vpop.permute.xlu0 %3598  ;;  %v3106_v43 = vrot.slane %v9817_v16, 2  ;;  %v10421_v16 = vld [vmem:[#allocation2 + $0x258] sm:$0xff] }
 0x45e   : > { %6746 = vmatmul.msk.f32.gmra.mxu3 %vm2340_vm6, %v4351_v19  ;;  %v10403_v24 = vpop.permute.xlu2 %3606 }
 0x45f   : > { %2963 = vst.msk [vmem:[%s9373_s21 + $0xe8] sm:$0xff] %vm194_vm0, %v2734_v34  ;;  %6292 = vmatmul.msk.f32.gmra.mxu0 %vm2340_vm6, %v10400_v4  ;;  %6354 = vmatmul.msk.f32.gmra.mxu1 %vm2340_vm6, %v4349_v8  ;;  %v3108_v8 = vsel %vm3030_vm7, %v3106_v43, %v3107_v61  ;;  %v2089_v34 = vsel %vm194_vm0, %v10421_v16, %v14482_v26 }
 0x460   : > { %v2186_v37 = vsel %vm2139_vm4, %v2089_v34, %v14483_v51  ;;  %v4352_v43 = vsel %vm2236_vm5, %v4256_v45, %v10222_v21  ;;  %v4161_v21 = vsel %vm194_vm0, %v14187_v46, %v9931_v63  ;;  %v14488_v46 = vld [vmem:[#allocation225_spill] sm:$0xff] }
 0x461   : > { %v4257_v45 = vsel %vm2139_vm4, %v4161_v21, %v3597_v25 }
 0x462   : > { %v5356_v23 = vpop.f32.mrf.mxu2  ;;  %3628 = vrot.lane.b32.xlu1 %v14481_v49, %s7244_s25 }
 0x463   : > { %v5357_v48 = vadd.f32 %v10199_v44, %v5356_v23  ;;  %3342 = vrot.lane.b32.xlu0 %v3103_v36, %s7243_s24  ;;  %v14484_v23 = vld [vmem:[#allocation54_spill] sm:$0xff] }
 0x464   : > { %v2736_v59 = vpop.f32.mrf.mxu0  ;;  %v3887_v6 = vpop.permute.xlu1 %3886  ;;  %3918 = vrot.lane.b32.xlu2 %v3108_v8, %s7245_s26  ;;  %v10438_v4 = vsel %vm2236_vm5, %v2186_v37, %v14484_v23  ;;  %v10456_v37 = vld [vmem:[#allocation2 + $0x260] sm:$0xff] }
 0x465   : > { %6668 = vst.msk [vmem:[%s9373_s21 + $0x2e8] sm:$0xff] %vm194_vm0, %v5357_v48  ;;  %v2737_v3 = vadd.f32 %v10199_v44, %v2736_v59  ;;  %v10432_v36 = vpop.permute.xlu0 %3600  ;;  %v7059_v48 = vld [vmem:[#allocation2 + $0x178] sm:$0x3]  ;;  %v14486_v59 = vld [vmem:[#allocation36_spill] sm:$0xff] }
 0x466   : > { %14485 = vst [vmem:[#allocation70_spill] sm:$0xff] %v10438_v4  ;;  %6747 = vmatmul.msk.f32.gmra.mxu3 %vm2340_vm6, %v4352_v43  ;;  %v10441_v26 = vpop.permute.xlu2 %3608  ;;  %v3109_v34 = vrot.slane %v7059_v48, 2 }
 0x467   : > { %2964 = vst.msk [vmem:[%s9373_s21 + $0xf0] sm:$0xff] %vm194_vm0, %v2737_v3  ;;  %6293 = vmatmul.msk.f32.gmra.mxu0 %vm2340_vm6, %v10438_v4  ;;  %6355 = vmatmul.msk.f32.gmra.mxu1 %vm2340_vm6, %v4350_v2  ;;  %v14487_v3 = vld [vmem:[#allocation126_spill] sm:$0xff]  ;;  %v10476_v4 = vld [vmem:[#allocation2 + $0x180] sm:$0xff] }
 0x468   : > { %v3110_v51 = vsel %vm3030_vm7, %v3107_v61, %v3109_v34  ;;  %v2090_v2 = vsel %vm194_vm0, %v10456_v37, %v14487_v3  ;;  %v14489_v61 = vld [vmem:[#allocation169_spill] sm:$0xff]  ;;  %v3271_v5 = vrot.slane %v10476_v4, 2 }
 0x469   : > { %v2187_v63 = vsel %vm2139_vm4, %v2090_v2, %v14488_v46  ;;  %v10479_v2 = vld [vmem:[#allocation2 + $0x188] sm:$0xff] }
 0x46a   : > { %3630 = vrot.lane.b32.xlu1 %v14486_v59, %s7244_s25  ;;  %v10471_v34 = vsel %vm2236_vm5, %v2187_v63, %v14489_v61  ;;  %14491 = vst [vmem:[#allocation6_spill] sm:$0xff] %v10479_v2  ;;  %v10496_v63 = vld [vmem:[#allocation2 + $0x270] sm:$0xff] }
 0x46b   : > { %3344 = vrot.lane.b32.xlu0 %v3105_v11, %s7243_s24  ;;  %v4353_v11 = vsel %vm2236_vm5, %v4257_v45, %v10257_v58  ;;  %14490 = vst [vmem:[#allocation27_spill] sm:$0xff] %v10471_v34  ;;  %v14492_v58 = vld [vmem:[#allocation38_spill] sm:$0xff]  ;;  %v4162_v45 = vsel %vm194_vm0, %v14406_v0, %v10067_v13  ;;  %v14495_v0 = vld [vmem:[#allocation144_spill] sm:$0xff] }
 0x46c   : > { %v2739_v23 = vpop.f32.mrf.mxu0  ;;  %v3889_v48 = vpop.permute.xlu1 %3888  ;;  %3920 = vrot.lane.b32.xlu2 %v3110_v51, %s7245_s26  ;;  %14493 = vst [vmem:[#allocation108_spill] sm:$0xff] %v10496_v63 }
 0x46d   : > { %v2740_v25 = vadd.f32 %v10199_v44, %v2739_v23  ;;  %v10465_v21 = vpop.permute.xlu0 %3602  ;;  %v3272_v23 = vrot.slane %v10479_v2, 2  ;;  %v3274_v2 = vrot.slane %v7064_v10, 2  ;;  %v14498_v10 = vld [vmem:[#allocation257_spill] sm:$0xff] }
 0x46e   : > { %6748 = vmatmul.msk.f32.gmra.mxu3 %vm2340_vm6, %v4353_v11  ;;  %v10474_v3 = vpop.permute.xlu2 %3898 }
 0x46f   : > { %2965 = vst.msk [vmem:[%s9373_s21 + $0xf8] sm:$0xff] %vm194_vm0, %v2740_v25  ;;  %6294 = vmatmul.msk.f32.gmra.mxu0 %vm2340_vm6, %v10471_v34  ;;  %6356 = vmatmul.msk.f32.gmra.mxu1 %vm2340_vm6, %v4351_v19  ;;  %v10494_v46 = vsel %vm3030_vm7, %v3271_v5, %v3272_v23  ;;  %v14494_v25 = vld [vmem:[#allocation153_spill] sm:$0xff]  ;;  %v4258_v19 = vsel %vm2139_vm4, %v4162_v45, %v10394_v14  ;;  %v10532_v45 = vld [vmem:[#allocation2 + $0x278] sm:$0xff] }
 0x470   : > { %v2091_v61 = vsel %vm194_vm0, %v10496_v63, %v14494_v25  ;;  %v4354_v30 = vsel %vm2236_vm5, %v4258_v19, %v3887_v6  ;;  %v14496_v25 = vld [vmem:[#allocation176_spill] sm:$0xff]  ;;  %v4163_v6 = vsel %vm194_vm0, %v14409_v1, %v10321_v31  ;;  %14499 = vst [vmem:[#allocation41_spill] sm:$0xff] %v10532_v45 }
 0x471   : > { %v2188_v13 = vsel %vm2139_vm4, %v2091_v61, %v14495_v0  ;;  %v14500_v61 = vld [vmem:[#allocation158_spill] sm:$0xff]  ;;  %v14501_v0 = vld [vmem:[#allocation145_spill] sm:$0xff] }
 0x472   : > { %3632 = vrot.lane.b32.xlu1 %v14492_v58, %s7244_s25  ;;  %v10513_v63 = vsel %vm2236_vm5, %v2188_v13, %v14496_v25  ;;  %v2092_v19 = vsel %vm194_vm0, %v10532_v45, %v14500_v61  ;;  %v10561_v61 = vld [vmem:[#allocation2 + $0x1a0] sm:$0xff] }
 0x473   : > { %3346 = vrot.lane.b32.xlu0 %v3108_v8, %s7243_s24  ;;  %14497 = vst [vmem:[#allocation218_spill] sm:$0xff] %v10513_v63  ;;  %v2189_v1 = vsel %vm2139_vm4, %v2092_v19, %v14501_v0  ;;  %v7066_v19 = vld [vmem:[#allocation2 + $0x288] sm:$0xff]  ;;  %v4164_v0 = vsel %vm194_vm0, %v14410_v57, %v10359_v22 }
 0x474   : > { %v2742_v34 = vpop.f32.mrf.mxu0  ;;  %v3891_v35 = vpop.permute.xlu1 %3890  ;;  %3922 = vrot.lane.b32.xlu2 %v10494_v46, %s7245_s26 }
 0x475   : > { %v2743_v5 = vadd.f32 %v10199_v44, %v2742_v34  ;;  %v10508_v8 = vpop.permute.xlu0 %3892  ;;  %v10524_v34 = vsel %vm3030_vm7, %v3272_v23, %v3274_v2 }
 0x476   : > { %6749 = vmatmul.msk.f32.gmra.mxu3 %vm2340_vm6, %v4354_v30  ;;  %v10516_v14 = vpop.permute.xlu2 %3900 }
 0x477   : > { %2966 = vst.msk [vmem:[%s9373_s21 + $0x400] sm:$0xff] %vm194_vm0, %v2743_v5  ;;  %6295 = vmatmul.msk.f32.gmra.mxu0 %vm2340_vm6, %v10513_v63  ;;  %6357 = vmatmul.msk.f32.gmra.mxu1 %vm2340_vm6, %v4352_v43  ;;  %v4259_v43 = vsel %vm2139_vm4, %v4163_v6, %v10432_v36  ;;  %v14502_v5 = vld [vmem:[#allocation82_spill] sm:$0xff] }
 0x478   : > { %v4355_v13 = vsel %vm2236_vm5, %v4259_v43, %v3889_v48  ;;  %v10551_v25 = vsel %vm2236_vm5, %v2189_v1, %v14502_v5  ;;  %v556_v6 = vld [vmem:[#allocation2 + $0x198] sm:$0xff]  ;;  %v14504_v48 = vld [vmem:[#allocation261_spill] sm:$0xff]  ;;  %v14505_v43 = vld [vmem:[#allocation132_spill] sm:$0xff] }
 0x479   : > { %14503 = vst [vmem:[#allocation29_spill] sm:$0xff] %v10551_v25  ;;  %v14506_v1 = vld [vmem:[#allocation228_spill] sm:$0xff]  ;;  %v5142_v63 = vrot.slane %v556_v6, 1  ;;  %v5654_v45 = vrot.slane %v556_v6, 2 }
 0x47a   : > { %3634 = vrot.lane.b32.xlu1 %v14498_v10, %s7244_s25 }
 0x47b   : > { %3348 = vrot.lane.b32.xlu0 %v3110_v51, %s7243_s24 }
 0x47c   : > { %v2745_v2 = vpop.f32.mrf.mxu0  ;;  %v10539_v23 = vpop.permute.xlu1 %3320  ;;  %3924 = vrot.lane.b32.xlu2 %v10524_v34, %s7245_s26 }
 0x47d   : > { %v2746_v31 = vadd.f32 %v10199_v44, %v2745_v2  ;;  %v10546_v51 = vpop.permute.xlu0 %3894  ;;  %v2093_v2 = vsel %vm194_vm0, %v7066_v19, %v14505_v43  ;;  %v5143_v19 = vrot.slane %v10561_v61, 1 }
 0x47e   : > { %6750 = vmatmul.msk.f32.gmra.mxu3 %vm2340_vm6, %v4355_v13  ;;  %v10554_v36 = vpop.permute.xlu2 %3902 }
 0x47f   : > { %2967 = vst.msk [vmem:[%s9373_s21 + $0x408] sm:$0xff] %vm194_vm0, %v2746_v31  ;;  %6296 = vmatmul.msk.f32.gmra.mxu0 %vm2340_vm6, %v10551_v25  ;;  %6358 = vmatmul.msk.f32.gmra.mxu1 %vm2340_vm6, %v4353_v11  ;;  %v2190_v11 = vsel %vm2139_vm4, %v2093_v2, %v14506_v1  ;;  %v4260_v31 = vsel %vm2139_vm4, %v4164_v0, %v10465_v21  ;;  %v5655_v2 = vrot.slane %v10561_v61, 2  ;;  %v14507_v1 = vld [vmem:[#allocation49_spill] sm:$0xff] }
 0x480   : > { %v4356_v43 = vsel %vm2236_vm5, %v4260_v31, %v3891_v35  ;;  %v10587_v21 = vsel %vm2236_vm5, %v2190_v11, %v14507_v1  ;;  %v5144_v35 = vsel %vm812_vm1, %v5142_v63, %v5143_v19  ;;  %v10605_v31 = vld [vmem:[#allocation2 + $0x290] sm:$0xff] }
 0x481   : > { %14508 = vst [vmem:[#allocation131_spill] sm:$0xff] %v10587_v21  ;;  %v5656_v11 = vsel %vm3030_vm7, %v5654_v45, %v5655_v2 }
 0x482   : > { %3636 = vrot.lane.b32.xlu1 %v14504_v48, %s7244_s25 }
 0x483   : > { %5157 = vrot.lane.b32.xlu0 %v14498_v10, %s7243_s24  ;;  %v14511_v10 = vld [vmem:[#allocation178_spill] sm:$0xff] }
 0x484   : > { %v2748_v5 = vpop.f32.mrf.mxu0  ;;  %v10576_v25 = vpop.permute.xlu1 %3322  ;;  %5175 = vrot.lane.b32.xlu2 %v556_v6, %s7244_s25  ;;  %v4165_v6 = vsel %vm194_vm0, %v14413_v52, %v10294_v39  ;;  %v14510_v52 = vld [vmem:[#allocation235_spill] sm:$0xff] }
 0x485   : > { %v2749_v57 = vadd.f32 %v10199_v44, %v2748_v5  ;;  %v10581_v22 = vpop.permute.xlu0 %3896  ;;  %v14509_v5 = vld [vmem:[#allocation159_spill] sm:$0xff]  ;;  %v4261_v63 = vsel %vm2139_vm4, %v4165_v6, %v10367_v17  ;;  %v4166_v6 = vsel %vm194_vm0, %v14418_v47, %v10329_v27  ;;  %v14513_v47 = vld [vmem:[#allocation9_spill] sm:$0xff] }
 0x486   : > { %6751 = vmatmul.msk.f32.gmra.mxu3 %vm2340_vm6, %v4356_v43  ;;  %v10590_v0 = vpop.permute.xlu2 %3904 }
 0x487   : > { %2968 = vst.msk [vmem:[%s9373_s21 + $0x410] sm:$0xff] %vm194_vm0, %v2749_v57  ;;  %6297 = vmatmul.msk.f32.gmra.mxu0 %vm2340_vm6, %v10587_v21  ;;  %6359 = vmatmul.msk.f32.gmra.mxu1 %vm2340_vm6, %v4354_v30  ;;  %v2094_v30 = vsel %vm194_vm0, %v10605_v31, %v14509_v5  ;;  %v4357_v21 = vsel %vm2236_vm5, %v4261_v63, %v10508_v8  ;;  %v558_v8 = vld [vmem:[#allocation2 + $0x1a8] sm:$0x3] }
 0x488   : > { %v2191_v39 = vsel %vm2139_vm4, %v2094_v30, %v14510_v52  ;;  %v4262_v63 = vsel %vm2139_vm4, %v4166_v6, %v10403_v24  ;;  %v5145_v52 = vrot.slane %v558_v8, 1  ;;  %v14514_v24 = vld [vmem:[#allocation83_spill] sm:$0xff] }
 0x489   : > { %v10624_v5 = vsel %vm2236_vm5, %v2191_v39, %v14511_v10  ;;  %v7068_v10 = vld [vmem:[#allocation2 + $0x2a0] sm:$0xff] }
 0x48a   : > { %5669 = vrot.lane.b32.xlu1 %v10494_v46, %s7243_s24 }
 0x48b   : > { %5687 = vrot.lane.b32.xlu0 %v5144_v35, %s7244_s25 }
 0x48c   : > { %v2751_v57 = vpop.f32.mrf.mxu0  ;;  %v10612_v1 = vpop.permute.xlu1 %3610  ;;  %5705 = vrot.lane.b32.xlu2 %v5656_v11, %s7245_s26  ;;  %v14512_v11 = vld [vmem:[#allocation162_spill] sm:$0xff] }
 0x48d   : > { %v2752_v46 = vadd.f32 %v10199_v44, %v2751_v57  ;;  %v10618_v45 = vpop.permute.xlu0 %3324  ;;  %v2095_v30 = vsel %vm194_vm0, %v7068_v10, %v14512_v11  ;;  %v5657_v10 = vrot.slane %v558_v8, 2  ;;  %v4167_v8 = vsel %vm194_vm0, %v14421_v7, %v10539_v23 }
 0x48e   : > { %6752 = vmatmul.msk.f32.gmra.mxu3 %vm2340_vm6, %v4357_v21  ;;  %v10627_v17 = vpop.permute.xlu2 %3906  ;;  %v2192_v27 = vsel %vm2139_vm4, %v2095_v30, %v14513_v47  ;;  %v10677_v30 = vld [vmem:[#allocation2 + $0x2a8] sm:$0xff]  ;;  %v4263_v7 = vsel %vm2139_vm4, %v4167_v8, %v10441_v26  ;;  %v13915_v26 = vrot.slane %v10084_v38, 2 }
 0x48f   : > { %2969 = vst.msk [vmem:[%s9373_s21 + $0x418] sm:$0xff] %vm194_vm0, %v2752_v46  ;;  %6298 = vmatmul.msk.f32.gmra.mxu0 %vm2340_vm6, %v10624_v5  ;;  %6360 = vmatmul.msk.f32.gmra.mxu1 %vm2340_vm6, %v4355_v13  ;;  %v10655_v46 = vsel %vm2236_vm5, %v4262_v63, %v10546_v51  ;;  %v10659_v6 = vsel %vm2236_vm5, %v2192_v27, %v14514_v24  ;;  %v14515_v63 = vld [vmem:[#allocation138_spill] sm:$0xff]  ;;  %v14517_v24 = vld [vmem:[#allocation71_spill] sm:$0xff] }
 0x490   : > { %v5146_v51 = vsel %vm812_vm1, %v5143_v19, %v5145_v52  ;;  %v5658_v11 = vsel %vm3030_vm7, %v5655_v2, %v5657_v10  ;;  %v3117_v52 = vrot.slane %v10021_v62, 2  ;;  %v3121_v10 = vrot.slane %v10054_v32, 2 }
 0x491   : > { %v4168_v32 = vsel %vm194_vm0, %v14424_v33, %v10576_v25  ;;  %v14519_v33 = vld [vmem:[#allocation163_spill] sm:$0xff] }
 0x492   : > { %5193 = vrot.lane.b32.xlu1 %v5144_v35, %s7245_s26 }
 0x493   : > { %5159 = vrot.lane.b32.xlu0 %v14504_v48, %s7243_s24 }
 0x494   : > { %v2754_v57 = vpop.f32.mrf.mxu0  ;;  %v10644_v13 = vpop.permute.xlu1 %3612  ;;  %5177 = vrot.lane.b32.xlu2 %v10561_v61, %s7244_s25 }
 0x495   : > { %v2755_v35 = vadd.f32 %v10199_v44, %v2754_v57  ;;  %v10651_v39 = vpop.permute.xlu0 %3326  ;;  %v2096_v57 = vsel %vm194_vm0, %v10677_v30, %v14515_v63 }
 0x496   : > { %6753 = vmatmul.msk.f32.gmra.mxu3 %vm2340_vm6, %v10655_v46  ;;  %v10663_v61 = vpop.permute.xlu2 %3908 }
 0x497   : > { %2970 = vst.msk [vmem:[%s9373_s21 + $0x420] sm:$0xff] %vm194_vm0, %v2755_v35  ;;  %6299 = vmatmul.msk.f32.gmra.mxu0 %vm2340_vm6, %v10659_v6  ;;  %6361 = vmatmul.msk.f32.gmra.mxu1 %vm2340_vm6, %v4356_v43  ;;  %v14516_v43 = vld [vmem:[#allocation231_spill] sm:$0xff]  ;;  %v10697_v35 = vsel %vm2236_vm5, %v4263_v7, %v10581_v22  ;;  %v10723_v22 = vsel %vm3030_vm7, %v3121_v10, %v13915_v26 }
 0x498   : > { %v2193_v19 = vsel %vm2139_vm4, %v2096_v57, %v14516_v43  ;;  %v7070_v43 = vld [vmem:[#allocation2 + $0x2b8] sm:$0xff] }
 0x499   : > { %v10703_v8 = vsel %vm2236_vm5, %v2193_v19, %v14517_v24  ;;  %v2097_v25 = vsel %vm194_vm0, %v7070_v43, %v14519_v33  ;;  %v14522_v10 = vld [vmem:[#allocation7_spill] sm:$0xff]  ;;  %v7071_v43 = vld [vmem:[#allocation2 + $0x1d8] sm:$0x3] }
 0x49a   : > { %5671 = vrot.lane.b32.xlu1 %v10524_v34, %s7243_s24  ;;  %v3116_v34 = vrot.slane %v9988_v42, 2  ;;  %14518 = vst [vmem:[#allocation10_spill] sm:$0xff] %v10703_v8  ;;  %v2194_v24 = vsel %vm2139_vm4, %v2097_v25, %v14522_v10  ;;  %v3119_v33 = vrot.slane %v7071_v43, 2  ;;  %v14525_v25 = vld [vmem:[#allocation26_spill] sm:$0xff] }
 0x49b   : > { %5689 = vrot.lane.b32.xlu0 %v5146_v51, %s7244_s25 }
 0x49c   : > { %v2757_v23 = vpop.f32.mrf.mxu0  ;;  %v10687_v2 = vpop.permute.xlu1 %3614  ;;  %5707 = vrot.lane.b32.xlu2 %v5658_v11, %s7245_s26  ;;  %v10715_v62 = vsel %vm3030_vm7, %v3116_v34, %v3117_v52  ;;  %v4264_v11 = vsel %vm2139_vm4, %v4168_v32, %v10612_v1  ;;  %v14520_v1 = vld [vmem:[#allocation21_spill] sm:$0xff]  ;;  %v14521_v34 = vld [vmem:[#allocation216_spill] sm:$0xff] }
 0x49d   : > { %v2758_v47 = vadd.f32 %v10199_v44, %v2757_v23  ;;  %v10693_v27 = vpop.permute.xlu0 %3328 }
 0x49e   : > { %6754 = vmatmul.msk.f32.gmra.mxu3 %vm2340_vm6, %v10697_v35  ;;  %v10707_v42 = vpop.permute.xlu2 %3910 }
 0x49f   : > { %2971 = vst.msk [vmem:[%s9373_s21 + $0x428] sm:$0xff] %vm194_vm0, %v2758_v47  ;;  %6300 = vmatmul.msk.f32.gmra.mxu0 %vm2340_vm6, %v10703_v8  ;;  %6362 = vmatmul.msk.f32.gmra.mxu1 %vm2340_vm6, %v4357_v21  ;;  %v13916_v47 = vrot.slane %v14521_v34, 2 }
 0x4a2   : > { %5195 = vrot.lane.b32.xlu1 %v5146_v51, %s7245_s26  ;;  %v5781_v63 = vpop.f32.mrf.mxu3  ;;  %v3111_v51 = vrot.slane %v14520_v1, 2  ;;  %v14523_v1 = vld [vmem:[#allocation187_spill] sm:$0xff] }
 0x4a3   : > { %v5782_v21 = vadd.f32 %v10199_v44, %v5781_v63  ;;  %3354 = vrot.lane.b32.xlu0 %v10715_v62, %s7243_s24  ;;  %v4748_v57 = vpop.f32.mrf.mxu1  ;;  %v10753_v26 = vsel %vm2236_vm5, %v2194_v24, %v14523_v1 }
 0x4a4   : > { %v2760_v19 = vpop.f32.mrf.mxu0  ;;  %v4749_v7 = vadd.f32 %v10199_v44, %v4748_v57  ;;  %v10734_v23 = vpop.permute.xlu1 %3616  ;;  %3930 = vrot.lane.b32.xlu2 %v10723_v22, %s7245_s26  ;;  %v10749_v57 = vsel %vm2236_vm5, %v4264_v11, %v10474_v3  ;;  %14524 = vst [vmem:[#allocation227_spill] sm:$0xff] %v10753_v26  ;;  %v3113_v3 = vsel %vm3030_vm7, %v3111_v51, %v13916_v47  ;;  %v14529_v47 = vld [vmem:[#allocation184_spill] sm:$0xff] }
 0x4a5   : > { %6835 = vst.msk [vmem:[%s9373_s21 + $0x300] sm:$0xff] %vm194_vm0, %v5782_v21  ;;  %v2761_v32 = vadd.f32 %v10199_v44, %v2760_v19  ;;  %v10745_v63 = vpop.permute.xlu0 %3330  ;;  %v4169_v19 = vsel %vm194_vm0, %v14525_v25, %v10618_v45  ;;  %v10774_v11 = vsel %vm3030_vm7, %v3117_v52, %v3119_v33  ;;  %v14526_v45 = vld [vmem:[#allocation43_spill] sm:$0xff] }
 0x4a6   : > { %6443 = vst.msk [vmem:[%s9373_s21 + $0x100] sm:$0xff] %vm194_vm0, %v4749_v7  ;;  %6755 = vmatmul.msk.f32.gmra.mxu3 %vm2340_vm6, %v10749_v57  ;;  %v10759_v21 = vpop.permute.xlu2 %3912  ;;  %v4265_v7 = vsel %vm2139_vm4, %v4169_v19, %v10644_v13  ;;  %v14528_v13 = vld [vmem:[#allocation11_spill] sm:$0xff] }
 0x4a7   : > { %2972 = vst.msk [vmem:[%s9373_s21 + $0x430] sm:$0xff] %vm194_vm0, %v2761_v32  ;;  %6301 = vmatmul.msk.f32.gmra.mxu0 %vm2340_vm6, %v10753_v26  ;;  %6363 = vmatmul.msk.f32.gmra.mxu1 %vm2340_vm6, %v10655_v46  ;;  %v10782_v32 = vld [vmem:[#allocation2 + $0x2c0] sm:$0xff]  ;;  %v14527_v46 = vld [vmem:[#allocation165_spill] sm:$0xff] }
 0x4a8   : > { %v2098_v51 = vsel %vm194_vm0, %v10782_v32, %v14527_v46 }
 0x4a9   : > { %v2195_v33 = vsel %vm2139_vm4, %v2098_v51, %v14528_v13  ;;  %v7074_v13 = vld [vmem:[#allocation2 + $0x2d0] sm:$0xff] }
 0x4aa   : > { %3642 = vrot.lane.b32.xlu1 %v14526_v45, %s7244_s25  ;;  %v5784_v10 = vpop.f32.mrf.mxu3  ;;  %v10802_v26 = vsel %vm2236_vm5, %v2195_v33, %v14529_v47  ;;  %v14533_v33 = vld [vmem:[#allocation148_spill] sm:$0xff] }
 0x4ab   : > { %v5785_v24 = vadd.f32 %v10199_v44, %v5784_v10  ;;  %3350 = vrot.lane.b32.xlu0 %v3113_v3, %s7243_s24  ;;  %v4361_v3 = vsel %vm2236_vm5, %v4265_v7, %v10516_v14  ;;  %v7073_v10 = vld [vmem:[#allocation2 + $0x1f0] sm:$0x3]  ;;  %v14531_v14 = vrot.slane %v10084_v38, 2  ;;  %v7075_v38 = vld [vmem:[#allocation2 + $0x1c0] sm:$0x3] }
 0x4ac   : > { %v2763_v43 = vpop.f32.mrf.mxu0  ;;  %v10787_v52 = vpop.permute.xlu1 %3618  ;;  %3356 = vrot.lane.b32.xlu2 %v10774_v11, %s7243_s24  ;;  %v3124_v46 = vrot.slane %v7073_v10, 2 }
 0x4ad   : > { %6836 = vst.msk [vmem:[%s9373_s21 + $0x308] sm:$0xff] %vm194_vm0, %v5785_v24  ;;  %v2764_v1 = vadd.f32 %v10199_v44, %v2763_v43  ;;  %v4751_v25 = vpop.f32.mrf.mxu1  ;;  %v10796_v19 = vpop.permute.xlu0 %3332  ;;  %v14530_v24 = vld [vmem:[#allocation25_spill] sm:$0xff] }
 0x4ae   : > { %v4752_v8 = vadd.f32 %v10199_v44, %v4751_v25  ;;  %6756 = vmatmul.msk.f32.gmra.mxu3 %vm2340_vm6, %v4361_v3  ;;  %v10806_v51 = vpop.permute.xlu2 %3914  ;;  %v4170_v43 = vsel %vm194_vm0, %v14530_v24, %v10651_v39  ;;  %v10822_v47 = vsel %vm3030_vm7, %v14531_v14, %v3124_v46  ;;  %v14532_v39 = vld [vmem:[#allocation42_spill] sm:$0xff]  ;;  %v3114_v25 = vrot.slane %v7075_v38, 2  ;;  %v14535_v14 = vld [vmem:[#allocation172_spill] sm:$0xff] }
 0x4af   : > { %2973 = vst.msk [vmem:[%s9373_s21 + $0x438] sm:$0xff] %vm194_vm0, %v2764_v1  ;;  %6302 = vmatmul.msk.f32.gmra.mxu0 %vm2340_vm6, %v10802_v26  ;;  %6364 = vmatmul.msk.f32.gmra.mxu1 %vm2340_vm6, %v10697_v35  ;;  %v4266_v7 = vsel %vm2139_vm4, %v4170_v43, %v10687_v2  ;;  %v2099_v35 = vsel %vm194_vm0, %v7074_v13, %v14533_v33  ;;  %v14534_v2 = vld [vmem:[#allocation233_spill] sm:$0xff] }
 0x4b0   : > { %6444 = vst.msk [vmem:[%s9373_s21 + $0x108] sm:$0xff] %vm194_vm0, %v4752_v8  ;;  %v2196_v10 = vsel %vm2139_vm4, %v2099_v35, %v14534_v2  ;;  %v4362_v43 = vsel %vm2236_vm5, %v4266_v7, %v10554_v36  ;;  %v4171_v35 = vsel %vm194_vm0, %v14439_v18, %v10693_v27  ;;  %v14536_v36 = vrot.slane %v14521_v34, 2  ;;  %v14537_v27 = vld [vmem:[#allocation46_spill] sm:$0xff] }
 0x4b1   : > { %v10845_v13 = vsel %vm2236_vm5, %v2196_v10, %v14535_v14  ;;  %v4267_v2 = vsel %vm2139_vm4, %v4171_v35, %v10734_v23  ;;  %v10871_v10 = vld [vmem:[#allocation2 + $0x2d8] sm:$0xff]  ;;  %v14539_v23 = vld [vmem:[#allocation8_spill] sm:$0xff] }
 0x4b2   : > { %3638 = vrot.lane.b32.xlu1 %v14532_v39, %s7244_s25  ;;  %v3115_v7 = vsel %vm3030_vm7, %v14536_v36, %v3114_v25  ;;  %v10889_v36 = vsel %vm2236_vm5, %v4267_v2, %v10590_v0  ;;  %v14541_v0 = vld [vmem:[#allocation124_spill] sm:$0xff] }
 0x4b3   : > { %3926 = vrot.lane.b32.xlu0 %v10715_v62, %s7245_s26  ;;  %v3126_v2 = vrot.slane %v14541_v0, 2 }
 0x4b4   : > { %v2766_v8 = vpop.f32.mrf.mxu0  ;;  %v10832_v1 = vpop.permute.xlu1 %3620  ;;  %3932 = vrot.lane.b32.xlu2 %v10822_v47, %s7245_s26 }
 0x4b5   : > { %v2767_v46 = vadd.f32 %v10199_v44, %v2766_v8  ;;  %v4754_v62 = vpop.f32.mrf.mxu1  ;;  %v10839_v24 = vpop.permute.xlu0 %3334 }
 0x4b6   : > { %v4755_v33 = vadd.f32 %v10199_v44, %v4754_v62  ;;  %6757 = vmatmul.msk.f32.gmra.mxu3 %vm2340_vm6, %v4362_v43  ;;  %v10849_v38 = vpop.permute.xlu2 %3916 }
 0x4b7   : > { %2974 = vst.msk [vmem:[%s9373_s21 + $0x440] sm:$0xff] %vm194_vm0, %v2767_v46  ;;  %6303 = vmatmul.msk.f32.gmra.mxu0 %vm2340_vm6, %v10845_v13  ;;  %6365 = vmatmul.msk.f32.gmra.mxu1 %vm2340_vm6, %v10749_v57  ;;  %v14538_v57 = vld [vmem:[#allocation167_spill] sm:$0xff] }
 0x4b8   : > { %6445 = vst.msk [vmem:[%s9373_s21 + $0x110] sm:$0xff] %vm194_vm0, %v4755_v33  ;;  %v2100_v34 = vsel %vm194_vm0, %v10871_v10, %v14538_v57  ;;  %v4172_v57 = vsel %vm194_vm0, %v14446_v60, %v10745_v63  ;;  %v14542_v60 = vld [vmem:[#allocation40_spill] sm:$0xff] }
 0x4b9   : > { %v5787_v8 = vpop.f32.mrf.mxu3  ;;  %v2197_v62 = vsel %vm2139_vm4, %v2100_v34, %v14539_v23  ;;  %v3127_v34 = vrot.slane %v10164_v41, 2  ;;  %v4268_v23 = vsel %vm2139_vm4, %v4172_v57, %v10787_v52  ;;  %v14544_v52 = vld [vmem:[#allocation12_spill] sm:$0xff] }
 0x4ba   : > { %v5788_v18 = vadd.f32 %v10199_v44, %v5787_v8  ;;  %3644 = vrot.lane.b32.xlu1 %v14537_v27, %s7244_s25 }
 0x4bb   : > { %3352 = vrot.lane.b32.xlu0 %v3115_v7, %s7243_s24  ;;  %v14540_v7 = vld [vmem:[#allocation66_spill] sm:$0xff]  ;;  %v3128_v63 = vsel %vm3030_vm7, %v3126_v2, %v3127_v34  ;;  %v10934_v2 = vsel %vm2236_vm5, %v4268_v23, %v10627_v17  ;;  %v7078_v17 = vld [vmem:[#allocation2 + $0x208] sm:$0x3] }
 0x4bc   : > { %6837 = vst.msk [vmem:[%s9373_s21 + $0x310] sm:$0xff] %vm194_vm0, %v5788_v18  ;;  %v2769_v25 = vpop.f32.mrf.mxu0  ;;  %v10878_v46 = vpop.permute.xlu1 %3622  ;;  %3358 = vrot.lane.b32.xlu2 %v10723_v22, %s7243_s24  ;;  %v10893_v8 = vsel %vm2236_vm5, %v2197_v62, %v14540_v7  ;;  %v3129_v23 = vrot.slane %v7078_v17, 2 }
 0x4bd   : > { %v2770_v14 = vadd.f32 %v10199_v44, %v2769_v25  ;;  %v4757_v33 = vpop.f32.mrf.mxu1  ;;  %v10885_v35 = vpop.permute.xlu0 %3336 }
 0x4be   : > { %v4758_v18 = vadd.f32 %v10199_v44, %v4757_v33  ;;  %6758 = vmatmul.msk.f32.gmra.mxu3 %vm2340_vm6, %v10889_v36  ;;  %v10898_v22 = vpop.permute.xlu2 %3918 }
 0x4bf   : > { %2975 = vst.msk [vmem:[%s9373_s21 + $0x448] sm:$0xff] %vm194_vm0, %v2770_v14  ;;  %6304 = vmatmul.msk.f32.gmra.mxu0 %vm2340_vm6, %v10893_v8  ;;  %6366 = vmatmul.msk.f32.gmra.mxu1 %vm2340_vm6, %v4361_v3  ;;  %v7077_v3 = vld [vmem:[#allocation2 + $0x2e8] sm:$0xff]  ;;  %v14543_v14 = vld [vmem:[#allocation171_spill] sm:$0xff] }
 0x4c0   : > { %6446 = vst.msk [vmem:[%s9373_s21 + $0x118] sm:$0xff] %vm194_vm0, %v4758_v18  ;;  %v2101_v41 = vsel %vm194_vm0, %v7077_v3, %v14543_v14 }
 0x4c1   : > { %v5790_v25 = vpop.f32.mrf.mxu3  ;;  %v2198_v18 = vsel %vm2139_vm4, %v2101_v41, %v14544_v52  ;;  %v4173_v41 = vsel %vm194_vm0, %v14452_v9, %v10796_v19  ;;  %v3130_v9 = vsel %vm3030_vm7, %v3127_v34, %v3129_v23  ;;  %v7079_v19 = vld [vmem:[#allocation2 + $0x2f0] sm:$0xff] }
 0x4c2   : > { %v5791_v62 = vadd.f32 %v10199_v44, %v5790_v25  ;;  %3640 = vrot.lane.b32.xlu1 %v14542_v60, %s7244_s25  ;;  %v14545_v25 = vld [vmem:[#allocation89_spill] sm:$0xff]  ;;  %v4269_v52 = vsel %vm2139_vm4, %v4173_v41, %v10832_v1  ;;  %v14548_v1 = vld [vmem:[#allocation234_spill] sm:$0xff] }
 0x4c3   : > { %3928 = vrot.lane.b32.xlu0 %v10774_v11, %s7245_s26  ;;  %v10977_v23 = vsel %vm2236_vm5, %v4269_v52, %v10663_v61  ;;  %v3131_v61 = vrot.slane %v10204_v12, 2  ;;  %v3132_v52 = vrot.slane %v10238_v55, 2 }
 0x4c4   : > { %6838 = vst.msk [vmem:[%s9373_s21 + $0x318] sm:$0xff] %vm194_vm0, %v5791_v62  ;;  %v2772_v33 = vpop.f32.mrf.mxu0  ;;  %v10924_v7 = vpop.permute.xlu1 %3624  ;;  %3934 = vrot.lane.b32.xlu2 %v3128_v63, %s7245_s26  ;;  %v10938_v62 = vsel %vm2236_vm5, %v2198_v18, %v14545_v25 }
 0x4c5   : > { %v2773_v11 = vadd.f32 %v10199_v44, %v2772_v33  ;;  %v4760_v57 = vpop.f32.mrf.mxu1  ;;  %v10930_v0 = vpop.permute.xlu0 %3338 }
 0x4c6   : > { %v4761_v3 = vadd.f32 %v10199_v44, %v4760_v57  ;;  %6759 = vmatmul.msk.f32.gmra.mxu3 %vm2340_vm6, %v10934_v2  ;;  %v10943_v14 = vpop.permute.xlu2 %3920  ;;  %v14546_v57 = vld [vmem:[#allocation44_spill] sm:$0xff] }
 0x4c7   : > { %2976 = vst.msk [vmem:[%s9373_s21 + $0x450] sm:$0xff] %vm194_vm0, %v2773_v11  ;;  %6305 = vmatmul.msk.f32.gmra.mxu0 %vm2340_vm6, %v10938_v62  ;;  %6367 = vmatmul.msk.f32.gmra.mxu1 %vm2340_vm6, %v4362_v43  ;;  %v14547_v43 = vld [vmem:[#allocation154_spill] sm:$0xff] }
 0x4c8   : > { %6447 = vst.msk [vmem:[%s9373_s21 + $0x120] sm:$0xff] %vm194_vm0, %v4761_v3  ;;  %v2102_v11 = vsel %vm194_vm0, %v7079_v19, %v14547_v43 }
 0x4c9   : > { %v5793_v33 = vpop.f32.mrf.mxu3  ;;  %v2199_v41 = vsel %vm2139_vm4, %v2102_v11, %v14548_v1  ;;  %v4174_v11 = vsel %vm194_vm0, %v14456_v28, %v10839_v24  ;;  %v14550_v24 = vld [vmem:[#allocation47_spill] sm:$0xff] }
 0x4ca   : > { %v5794_v18 = vadd.f32 %v10199_v44, %v5793_v33  ;;  %3646 = vrot.lane.b32.xlu1 %v14546_v57, %s7244_s25  ;;  %v14549_v33 = vld [vmem:[#allocation77_spill] sm:$0xff]  ;;  %v4270_v1 = vsel %vm2139_vm4, %v4174_v11, %v10878_v46 }
 0x4cb   : > { %3360 = vrot.lane.b32.xlu0 %v10822_v47, %s7243_s24  ;;  %v14552_v46 = vld [vmem:[#allocation13_spill] sm:$0xff] }
 0x4cc   : > { %6839 = vst.msk [vmem:[%s9373_s21 + $0x320] sm:$0xff] %vm194_vm0, %v5794_v18  ;;  %v2775_v25 = vpop.f32.mrf.mxu0  ;;  %v10967_v3 = vpop.permute.xlu1 %3626  ;;  %3936 = vrot.lane.b32.xlu2 %v3130_v9, %s7245_s26  ;;  %v10981_v18 = vsel %vm2236_vm5, %v2199_v41, %v14549_v33  ;;  %v3133_v41 = vsel %vm3030_vm7, %v3131_v61, %v3132_v52  ;;  %v11022_v61 = vsel %vm2236_vm5, %v4270_v1, %v10707_v42  ;;  %v7081_v42 = vld [vmem:[#allocation2 + $0x220] sm:$0x3] }
 0x4cd   : > { %v2776_v47 = vadd.f32 %v10199_v44, %v2775_v25  ;;  %v4763_v17 = vpop.f32.mrf.mxu1  ;;  %v10973_v34 = vpop.permute.xlu0 %3340  ;;  %v3134_v1 = vrot.slane %v7081_v42, 2 }
 0x4ce   : > { %v4764_v19 = vadd.f32 %v10199_v44, %v4763_v17  ;;  %6760 = vmatmul.msk.f32.gmra.mxu3 %vm2340_vm6, %v10977_v23  ;;  %v10986_v43 = vpop.permute.xlu2 %3922 }
 0x4cf   : > { %2977 = vst.msk [vmem:[%s9373_s21 + $0x458] sm:$0xff] %vm194_vm0, %v2776_v47  ;;  %6306 = vmatmul.msk.f32.gmra.mxu0 %vm2340_vm6, %v10981_v18  ;;  %6368 = vmatmul.msk.f32.gmra.mxu1 %vm2340_vm6, %v10889_v36  ;;  %v7080_v36 = vld [vmem:[#allocation2 + $0x300] sm:$0xff]  ;;  %v14551_v47 = vld [vmem:[#allocation173_spill] sm:$0xff] }
 0x4d0   : > { %6448 = vst.msk [vmem:[%s9373_s21 + $0x128] sm:$0xff] %vm194_vm0, %v4764_v19  ;;  %v2103_v12 = vsel %vm194_vm0, %v7080_v36, %v14551_v47 }
 0x4d1   : > { %v5796_v25 = vpop.f32.mrf.mxu3  ;;  %v2200_v33 = vsel %vm2139_vm4, %v2103_v12, %v14552_v46  ;;  %v4175_v12 = vsel %vm194_vm0, %v14461_v50, %v10885_v35  ;;  %v14554_v50 = vld [vmem:[#allocation50_spill] sm:$0xff]  ;;  %v3135_v35 = vsel %vm3030_vm7, %v3132_v52, %v3134_v1 }
 0x4d2   : > { %v5797_v28 = vadd.f32 %v10199_v44, %v5796_v25  ;;  %3648 = vrot.lane.b32.xlu1 %v14550_v24, %s7244_s25  ;;  %v14553_v25 = vld [vmem:[#allocation193_spill] sm:$0xff]  ;;  %v4271_v46 = vsel %vm2139_vm4, %v4175_v12, %v10924_v7  ;;  %v14556_v7 = vld [vmem:[#allocation15_spill] sm:$0xff] }
 0x4d3   : > { %3362 = vrot.lane.b32.xlu0 %v3128_v63, %s7243_s24  ;;  %v11065_v1 = vsel %vm2236_vm5, %v4271_v46, %v10759_v21  ;;  %v3136_v21 = vrot.slane %v10276_v20, 2  ;;  %v3137_v46 = vrot.slane %v10309_v53, 2 }
 0x4d4   : > { %6840 = vst.msk [vmem:[%s9373_s21 + $0x328] sm:$0xff] %vm194_vm0, %v5797_v28  ;;  %v2778_v55 = vpop.f32.mrf.mxu0  ;;  %v11012_v17 = vpop.permute.xlu1 %3628  ;;  %3938 = vrot.lane.b32.xlu2 %v3133_v41, %s7245_s26  ;;  %v11026_v28 = vsel %vm2236_vm5, %v2200_v33, %v14553_v25 }
 0x4d5   : > { %v2779_v63 = vadd.f32 %v10199_v44, %v2778_v55  ;;  %v4766_v19 = vpop.f32.mrf.mxu1  ;;  %v11018_v11 = vpop.permute.xlu0 %3342 }
 0x4d6   : > { %v4767_v36 = vadd.f32 %v10199_v44, %v4766_v19  ;;  %6761 = vmatmul.msk.f32.gmra.mxu3 %vm2340_vm6, %v11022_v61  ;;  %v11031_v47 = vpop.permute.xlu2 %3924  ;;  %v14555_v19 = vld [vmem:[#allocation177_spill] sm:$0xff] }
 0x4d7   : > { %2978 = vst.msk [vmem:[%s9373_s21 + $0x460] sm:$0xff] %vm194_vm0, %v2779_v63  ;;  %6307 = vmatmul.msk.f32.gmra.mxu0 %vm2340_vm6, %v11026_v28  ;;  %6369 = vmatmul.msk.f32.gmra.mxu1 %vm2340_vm6, %v10934_v2  ;;  %v7082_v63 = vld [vmem:[#allocation2 + $0x308] sm:$0xff] }
 0x4d8   : > { %6449 = vst.msk [vmem:[%s9373_s21 + $0x130] sm:$0xff] %vm194_vm0, %v4767_v36  ;;  %v2104_v2 = vsel %vm194_vm0, %v7082_v63, %v14555_v19  ;;  %v11071_v63 = vld [vmem:[#allocation3] ss:$0 sm:$0xff] }
 0x4d9   : > { %v5799_v55 = vpop.f32.mrf.mxu3  ;;  %v2201_v12 = vsel %vm2139_vm4, %v2104_v2, %v14556_v7 }
 0x4da   : > { %v5800_v33 = vadd.f32 %v10199_v44, %v5799_v55  ;;  %3650 = vrot.lane.b32.xlu1 %v14554_v50, %s7244_s25  ;;  %v14557_v55 = vld [vmem:[#allocation190_spill] sm:$0xff] }
 0x4db   : > { %3364 = vrot.lane.b32.xlu0 %v3130_v9, %s7243_s24 }
 0x4dc   : > { %6841 = vst.msk [vmem:[%s9373_s21 + $0x330] sm:$0xff] %vm194_vm0, %v5800_v33  ;;  %v2781_v25 = vpop.f32.mrf.mxu0  ;;  %v11055_v36 = vpop.permute.xlu1 %3630  ;;  %3940 = vrot.lane.b32.xlu2 %v3135_v35, %s7245_s26  ;;  %v11069_v33 = vsel %vm2236_vm5, %v2201_v12, %v14557_v55  ;;  %v3138_v12 = vsel %vm3030_vm7, %v3136_v21, %v3137_v46 }
 0x4dd   : > { %v2782_v9 = vadd.f32 %v10199_v44, %v2781_v25  ;;  %v4769_v42 = vpop.f32.mrf.mxu1  ;;  %v11061_v52 = vpop.permute.xlu0 %3344  ;;  %v4176_v44 = vsel %vm194_vm0, %v14466_v56, %v10930_v0  ;;  %v14558_v0 = vld [vmem:[#allocation48_spill] sm:$0xff] }
 0x4de   : > { %v4770_v19 = vadd.f32 %v11071_v63, %v4769_v42  ;;  %6762 = vmatmul.msk.f32.gmra.mxu3 %vm2340_vm6, %v11065_v1  ;;  %v11076_v2 = vpop.permute.xlu2 %5175  ;;  %v4272_v7 = vsel %vm2139_vm4, %v4176_v44, %v10967_v3  ;;  %v14560_v3 = vld [vmem:[#allocation236_spill] sm:$0xff] }
 0x4df   : > { %2979 = vst.msk [vmem:[%s9373_s21 + $0x468] sm:$0xff] %vm194_vm0, %v2782_v9  ;;  %6308 = vmatmul.msk.f32.gmra.mxu0 %vm2340_vm6, %v11069_v33  ;;  %6370 = vmatmul.msk.f32.gmra.mxu1 %vm2340_vm6, %v10977_v23  ;;  %v7084_v23 = vld [vmem:[#allocation2 + $0x318] sm:$0xff]  ;;  %v14559_v9 = vld [vmem:[#allocation160_spill] sm:$0xff]  ;;  %v11112_v21 = vsel %vm2236_vm5, %v4272_v7, %v10806_v51 }
 0x4e0   : > { %6450 = vst.msk [vmem:[%s9373_s21 + $0x138] sm:$0xff] %vm194_vm0, %v4770_v19  ;;  %v2105_v20 = vsel %vm194_vm0, %v7084_v23, %v14559_v9  ;;  %v7085_v51 = vld [vmem:[#allocation2 + $0x238] sm:$0x3] }
 0x4e1   : > { %v5802_v25 = vpop.f32.mrf.mxu3  ;;  %v2202_v55 = vsel %vm2139_vm4, %v2105_v20, %v14560_v3  ;;  %v4177_v20 = vsel %vm194_vm0, %v14471_v54, %v10973_v34  ;;  %v3139_v7 = vrot.slane %v7085_v51, 2  ;;  %v14562_v54 = vld [vmem:[#allocation51_spill] sm:$0xff] }
 0x4e2   : > { %v5803_v56 = vadd.f32 %v11071_v63, %v5802_v25  ;;  %3652 = vrot.lane.b32.xlu1 %v14558_v0, %s7244_s25  ;;  %v14561_v25 = vld [vmem:[#allocation60_spill] sm:$0xff]  ;;  %v4273_v3 = vsel %vm2139_vm4, %v4177_v20, %v11012_v17 }
 0x4e3   : > { %3366 = vrot.lane.b32.xlu0 %v3133_v41, %s7243_s24  ;;  %v3140_v34 = vsel %vm3030_vm7, %v3137_v46, %v3139_v7  ;;  %v14564_v17 = vld [vmem:[#allocation16_spill] sm:$0xff]  ;;  %v11155_v7 = vsel %vm2236_vm5, %v4273_v3, %v10849_v38  ;;  %v3141_v38 = vrot.slane %v10346_v29, 2  ;;  %v3142_v3 = vrot.slane %v10383_v40, 2 }
 0x4e4   : > { %6842 = vst.msk [vmem:[%s9373_s21 + $0x338] sm:$0xff] %vm194_vm0, %v5803_v56  ;;  %v2784_v53 = vpop.f32.mrf.mxu0  ;;  %v11102_v42 = vpop.permute.xlu1 %3632  ;;  %3942 = vrot.lane.b32.xlu2 %v3138_v12, %s7245_s26  ;;  %v11116_v56 = vsel %vm2236_vm5, %v2202_v55, %v14561_v25 }
 0x4e5   : > { %v2785_v41 = vadd.f32 %v11071_v63, %v2784_v53  ;;  %v4772_v19 = vpop.f32.mrf.mxu1  ;;  %v11108_v44 = vpop.permute.xlu0 %3346 }
 0x4e6   : > { %v4773_v23 = vadd.f32 %v11071_v63, %v4772_v19  ;;  %6763 = vmatmul.msk.f32.gmra.mxu3 %vm2340_vm6, %v11112_v21  ;;  %v11121_v9 = vpop.permute.xlu2 %5705  ;;  %v14563_v19 = vld [vmem:[#allocation179_spill] sm:$0xff] }
 0x4e7   : > { %2980 = vst.msk [vmem:[%s9373_s21 + $0x470] sm:$0xff] %vm194_vm0, %v2785_v41  ;;  %6309 = vmatmul.msk.f32.gmra.mxu0 %vm2340_vm6, %v11116_v56  ;;  %6371 = vmatmul.msk.f32.gmra.mxu1 %vm2340_vm6, %v11022_v61  ;;  %v7086_v41 = vld [vmem:[#allocation2 + $0x320] sm:$0xff] }
 0x4e8   : > { %6451 = vst.msk [vmem:[%s9373_s21 + $0x140] sm:$0xff] %vm194_vm0, %v4773_v23  ;;  %v2106_v61 = vsel %vm194_vm0, %v7086_v41, %v14563_v19 }
 0x4e9   : > { %v5805_v53 = vpop.f32.mrf.mxu3  ;;  %v2203_v20 = vsel %vm2139_vm4, %v2106_v61, %v14564_v17  ;;  %v4178_v61 = vsel %vm194_vm0, %v14476_v15, %v11018_v11  ;;  %v14566_v11 = vld [vmem:[#allocation55_spill] sm:$0xff] }
 0x4ea   : > { %v5806_v55 = vadd.f32 %v11071_v63, %v5805_v53  ;;  %3654 = vrot.lane.b32.xlu1 %v14562_v54, %s7244_s25  ;;  %v14565_v53 = vld [vmem:[#allocation72_spill] sm:$0xff]  ;;  %v4274_v17 = vsel %vm2139_vm4, %v4178_v61, %v11055_v36  ;;  %v14568_v36 = vld [vmem:[#allocation239_spill] sm:$0xff] }
 0x4eb   : > { %3368 = vrot.lane.b32.xlu0 %v3135_v35, %s7243_s24 }
 0x4ec   : > { %6843 = vst.msk [vmem:[%s9373_s21 + $0x340] sm:$0xff] %vm194_vm0, %v5806_v55  ;;  %v2787_v25 = vpop.f32.mrf.mxu0  ;;  %v11145_v23 = vpop.permute.xlu1 %3634  ;;  %3944 = vrot.lane.b32.xlu2 %v3140_v34, %s7245_s26  ;;  %v11159_v55 = vsel %vm2236_vm5, %v2203_v20, %v14565_v53  ;;  %v3143_v20 = vsel %vm3030_vm7, %v3141_v38, %v3142_v3  ;;  %v11198_v38 = vsel %vm2236_vm5, %v4274_v17, %v10898_v22  ;;  %v7088_v22 = vld [vmem:[#allocation2 + $0x250] sm:$0x3] }
 0x4ed   : > { %v2788_v35 = vadd.f32 %v11071_v63, %v2787_v25  ;;  %v4775_v51 = vpop.f32.mrf.mxu1  ;;  %v11151_v46 = vpop.permute.xlu0 %3348  ;;  %v3144_v17 = vrot.slane %v7088_v22, 2 }
 0x4ee   : > { %v4776_v41 = vadd.f32 %v11071_v63, %v4775_v51  ;;  %6764 = vmatmul.msk.f32.gmra.mxu3 %vm2340_vm6, %v11155_v7  ;;  %v11164_v19 = vpop.permute.xlu2 %5177 }
 0x4ef   : > { %2981 = vst.msk [vmem:[%s9373_s21 + $0x478] sm:$0xff] %vm194_vm0, %v2788_v35  ;;  %6310 = vmatmul.msk.f32.gmra.mxu0 %vm2340_vm6, %v11159_v55  ;;  %6372 = vmatmul.msk.f32.gmra.mxu1 %vm2340_vm6, %v11065_v1  ;;  %v7087_v1 = vld [vmem:[#allocation2 + $0x360] sm:$0xff] }
 0x4f0   : > { %6452 = vst.msk [vmem:[%s9373_s21 + $0x148] sm:$0xff] %vm194_vm0, %v4776_v41  ;;  %v14567_v35 = vld [vmem:[#allocation183_spill] sm:$0xff] }
 0x4f1   : > { %v5808_v25 = vpop.f32.mrf.mxu3  ;;  %v2107_v29 = vsel %vm194_vm0, %v7087_v1, %v14567_v35 }
 0x4f2   : > { %v5809_v15 = vadd.f32 %v11071_v63, %v5808_v25  ;;  %3656 = vrot.lane.b32.xlu1 %v14566_v11, %s7244_s25  ;;  %v2204_v53 = vsel %vm2139_vm4, %v2107_v29, %v14568_v36  ;;  %v14569_v25 = vld [vmem:[#allocation100_spill] sm:$0xff]  ;;  %v4179_v29 = vsel %vm194_vm0, %v14481_v49, %v11061_v52  ;;  %v3145_v49 = vsel %vm3030_vm7, %v3142_v3, %v3144_v17 }
 0x4f3   : > { %3370 = vrot.lane.b32.xlu0 %v3138_v12, %s7243_s24  ;;  %v4275_v36 = vsel %vm2139_vm4, %v4179_v29, %v11102_v42  ;;  %v7089_v52 = vld [vmem:[#allocation2 + $0x368] sm:$0xff] }
 0x4f4   : > { %6844 = vst.msk [vmem:[%s9373_s21 + $0x348] sm:$0xff] %vm194_vm0, %v5809_v15  ;;  %v2790_v40 = vpop.f32.mrf.mxu0  ;;  %v11190_v51 = vpop.permute.xlu1 %3636  ;;  %3946 = vrot.lane.b32.xlu2 %v3143_v20, %s7245_s26  ;;  %v2301_v15 = vsel %vm2236_vm5, %v2204_v53, %v14569_v25  ;;  %v14572_v42 = vld [vmem:[#allocation237_spill] sm:$0xff]  ;;  %v11238_v22 = vsel %vm2236_vm5, %v4275_v36, %v10943_v14  ;;  %v14573_v17 = vld [vmem:[#allocation88_spill] sm:$0xff]  ;;  %v3146_v14 = vrot.slane %v10421_v16, 2  ;;  %v3147_v36 = vrot.slane %v10456_v37, 2 }
 0x4f5   : > { %v2791_v12 = vadd.f32 %v11071_v63, %v2790_v40  ;;  %v4778_v41 = vpop.f32.mrf.mxu1  ;;  %v5158_v61 = vpop.permute.xlu0 %5157  ;;  %v14575_v37 = vld [vmem:[#allocation185_spill] sm:$0xff] }
 0x4f6   : > { %v4779_v1 = vadd.f32 %v11071_v63, %v4778_v41  ;;  %6765 = vmatmul.msk.f32.gmra.mxu3 %vm2340_vm6, %v11198_v38  ;;  %v11205_v35 = vpop.permute.xlu2 %5707  ;;  %v14570_v41 = vld [vmem:[#allocation52_spill] sm:$0xff]  ;;  %v3148_v16 = vsel %vm3030_vm7, %v3146_v14, %v3147_v36 }
 0x4f7   : > { %2982 = vst.msk [vmem:[%s9373_s21 + $0x480] sm:$0xff] %vm194_vm0, %v2791_v12  ;;  %6311 = vmatmul.msk.f32.gmra.mxu0 %vm2340_vm6, %v2301_v15  ;;  %6373 = vmatmul.msk.f32.gmra.mxu1 %vm2340_vm6, %v11112_v21  ;;  %v14571_v12 = vld [vmem:[#allocation164_spill] sm:$0xff] }
 0x4f8   : > { %6453 = vst.msk [vmem:[%s9373_s21 + $0x150] sm:$0xff] %vm194_vm0, %v4779_v1  ;;  %v2108_v21 = vsel %vm194_vm0, %v7089_v52, %v14571_v12  ;;  %v4180_v12 = vsel %vm194_vm0, %v14486_v59, %v11108_v44 }
 0x4f9   : > { %v5811_v40 = vpop.f32.mrf.mxu3  ;;  %v2205_v1 = vsel %vm2139_vm4, %v2108_v21, %v14572_v42  ;;  %v5211_v21 = vsel %vm194_vm0, %v10476_v4, %v5158_v61  ;;  %v4276_v59 = vsel %vm2139_vm4, %v4180_v12, %v11145_v23  ;;  %v14574_v42 = vld [vmem:[#allocation56_spill] sm:$0xff]  ;;  %v14577_v12 = vld [vmem:[#allocation78_spill] sm:$0xff] }
 0x4fa   : > { %v5812_v53 = vadd.f32 %v11071_v63, %v5811_v40  ;;  %3658 = vrot.lane.b32.xlu1 %v14570_v41, %s7244_s25  ;;  %v2302_v40 = vsel %vm2236_vm5, %v2205_v1, %v14573_v17  ;;  %v5217_v4 = vsel %vm2139_vm4, %v5211_v21, %v11076_v2  ;;  %v11281_v2 = vsel %vm2236_vm5, %v4276_v59, %v10986_v43  ;;  %v7091_v43 = vld [vmem:[#allocation2 + $0x268] sm:$0x3] }
 0x4fb   : > { %3372 = vrot.lane.b32.xlu0 %v3140_v34, %s7243_s24  ;;  %v3149_v59 = vrot.slane %v7091_v43, 2  ;;  %v14582_v43 = vld [vmem:[#allocation257_spill] sm:$0xff] }
 0x4fc   : > { %6845 = vst.msk [vmem:[%s9373_s21 + $0x350] sm:$0xff] %vm194_vm0, %v5812_v53  ;;  %v2793_v25 = vpop.f32.mrf.mxu0  ;;  %v11228_v15 = vpop.permute.xlu1 %5669  ;;  %3948 = vrot.lane.b32.xlu2 %v3145_v49, %s7245_s26 }
 0x4fd   : > { %v2794_v34 = vadd.f32 %v11071_v63, %v2793_v25  ;;  %v4781_v29 = vpop.f32.mrf.mxu1  ;;  %v11234_v3 = vpop.permute.xlu0 %5687 }
 0x4fe   : > { %v4782_v53 = vadd.f32 %v11071_v63, %v4781_v29  ;;  %6766 = vmatmul.msk.f32.gmra.mxu3 %vm2340_vm6, %v11238_v22  ;;  %v11245_v52 = vpop.permute.xlu2 %3930 }
 0x4ff   : > { %2983 = vst.msk [vmem:[%s9373_s21 + $0x488] sm:$0xff] %vm194_vm0, %v2794_v34  ;;  %6312 = vmatmul.msk.f32.gmra.mxu0 %vm2340_vm6, %v2302_v40  ;;  %6374 = vmatmul.msk.f32.gmra.mxu1 %vm2340_vm6, %v11155_v7  ;;  %v7090_v7 = vld [vmem:[#allocation2 + $0x378] sm:$0xff]  ;;  %v14576_v34 = vld [vmem:[#allocation240_spill] sm:$0xff] }
 0x500   : > { %6454 = vst.msk [vmem:[%s9373_s21 + $0x158] sm:$0xff] %vm194_vm0, %v4782_v53  ;;  %v2109_v1 = vsel %vm194_vm0, %v7090_v7, %v14575_v37 }
 0x501   : > { %v5814_v25 = vpop.f32.mrf.mxu3  ;;  %v2206_v29 = vsel %vm2139_vm4, %v2109_v1, %v14576_v34 }
 0x502   : > { %v5815_v44 = vadd.f32 %v11071_v63, %v5814_v25  ;;  %3660 = vrot.lane.b32.xlu1 %v14574_v42, %s7244_s25  ;;  %v11285_v14 = vsel %vm2236_vm5, %v2206_v29, %v14577_v12 }
 0x503   : > { %3374 = vrot.lane.b32.xlu0 %v3143_v20, %s7243_s24 }
 0x504   : > { %6846 = vst.msk [vmem:[%s9373_s21 + $0x358] sm:$0xff] %vm194_vm0, %v5815_v44  ;;  %v2796_v23 = vpop.f32.mrf.mxu0  ;;  %v5194_v61 = vpop.permute.xlu1 %5193  ;;  %3950 = vrot.lane.b32.xlu2 %v3148_v16, %s7245_s26  ;;  %v4181_v44 = vsel %vm194_vm0, %v14492_v58, %v11151_v46  ;;  %v14578_v58 = vld [vmem:[#allocation61_spill] sm:$0xff]  ;;  %v3150_v46 = vsel %vm3030_vm7, %v3147_v36, %v3149_v59  ;;  %v5723_v59 = vsel %vm194_vm0, %v14582_v43, %v11228_v15 }
 0x505   : > { %v2797_v20 = vadd.f32 %v11071_v63, %v2796_v23  ;;  %v5223_v17 = vsel %vm2236_vm5, %v5217_v4, %v5194_v61  ;;  %v4784_v40 = vpop.f32.mrf.mxu1  ;;  %v5160_v53 = vpop.permute.xlu0 %5159  ;;  %v4277_v37 = vsel %vm2139_vm4, %v4181_v44, %v11190_v51  ;;  %v7092_v4 = vld [vmem:[#allocation2 + $0x380] sm:$0xff]  ;;  %v14579_v23 = vld [vmem:[#allocation189_spill] sm:$0xff]  ;;  %v14580_v51 = vld [vmem:[#allocation242_spill] sm:$0xff]  ;;  %v5729_v15 = vsel %vm2139_vm4, %v5723_v59, %v11234_v3 }
 0x506   : > { %v4785_v21 = vadd.f32 %v11071_v63, %v4784_v40  ;;  %6573 = vmatmul.msk.f32.gmra.mxu2 %vm2340_vm6, %v5223_v17  ;;  %6767 = vmatmul.msk.f32.gmra.mxu3 %vm2340_vm6, %v11281_v2  ;;  %v11291_v25 = vpop.permute.xlu2 %3356  ;;  %v11321_v36 = vsel %vm2236_vm5, %v4277_v37, %v11031_v47  ;;  %v14581_v40 = vld [vmem:[#allocation106_spill] sm:$0xff]  ;;  %v14583_v47 = vld [vmem:[#allocation108_spill] sm:$0xff]  ;;  %v14584_v37 = vld [vmem:[#allocation41_spill] sm:$0xff] }
 0x507   : > { %2984 = vst.msk [vmem:[%s9373_s21 + $0x490] sm:$0xff] %vm194_vm0, %v2797_v20  ;;  %6313 = vmatmul.msk.f32.gmra.mxu0 %vm2340_vm6, %v11285_v14  ;;  %6375 = vmatmul.msk.f32.gmra.mxu1 %vm2340_vm6, %v11198_v38  ;;  %v2110_v38 = vsel %vm194_vm0, %v7092_v4, %v14579_v23  ;;  %v14585_v4 = vld [vmem:[#allocation6_spill] sm:$0xff] }
 0x508   : > { %6455 = vst.msk [vmem:[%s9373_s21 + $0x160] sm:$0xff] %vm194_vm0, %v4785_v21  ;;  %v2207_v29 = vsel %vm2139_vm4, %v2110_v38, %v14580_v51  ;;  %v5212_v23 = vsel %vm194_vm0, %v14585_v4, %v5160_v53  ;;  %v14586_v51 = vld [vmem:[#allocation57_spill] sm:$0xff] }
 0x509   : > { %v5817_v7 = vpop.f32.mrf.mxu3  ;;  %v11325_v12 = vsel %vm2236_vm5, %v2207_v29, %v14581_v40  ;;  %v7093_v29 = vld [vmem:[#allocation2 + $0x390] sm:$0xff]  ;;  %v5218_v53 = vsel %vm2139_vm4, %v5212_v23, %v11164_v19 }
 0x50a   : > { %v5818_v1 = vadd.f32 %v11071_v63, %v5817_v7  ;;  %3662 = vrot.lane.b32.xlu1 %v14578_v58, %s7244_s25  ;;  %v3151_v7 = vrot.slane %v14583_v47, 2 }
 0x50b   : > { %3376 = vrot.lane.b32.xlu0 %v3145_v49, %s7243_s24 }
 0x50c   : > { %6847 = vst.msk [vmem:[%s9373_s21 + $0x360] sm:$0xff] %vm194_vm0, %v5818_v1  ;;  %v2799_v61 = vpop.f32.mrf.mxu0  ;;  %v5672_v34 = vpop.permute.xlu1 %5671  ;;  %3952 = vrot.lane.b32.xlu2 %v3150_v46, %s7245_s26  ;;  %v3152_v1 = vrot.slane %v14584_v37, 2  ;;  %v14589_v37 = vld [vmem:[#allocation188_spill] sm:$0xff] }
 0x50d   : > { %v2800_v20 = vadd.f32 %v11071_v63, %v2799_v61  ;;  %v4787_v49 = vpop.f32.mrf.mxu1  ;;  %v5690_v17 = vpop.permute.xlu0 %5689 }
 0x50e   : > { %v4788_v21 = vadd.f32 %v11071_v63, %v4787_v49  ;;  %6768 = vmatmul.msk.f32.gmra.mxu3 %vm2340_vm6, %v11321_v36  ;;  %v11330_v44 = vpop.permute.xlu2 %3932 }
 0x50f   : > { %2985 = vst.msk [vmem:[%s9373_s21 + $0x498] sm:$0xff] %vm194_vm0, %v2800_v20  ;;  %6314 = vmatmul.msk.f32.gmra.mxu0 %vm2340_vm6, %v11325_v12  ;;  %6376 = vmatmul.msk.f32.gmra.mxu1 %vm2340_vm6, %v11238_v22  ;;  %v3153_v22 = vsel %vm3030_vm7, %v3151_v7, %v3152_v1  ;;  %v14587_v20 = vld [vmem:[#allocation168_spill] sm:$0xff] }
 0x510   : > { %6456 = vst.msk [vmem:[%s9373_s21 + $0x168] sm:$0xff] %vm194_vm0, %v4788_v21  ;;  %v2111_v49 = vsel %vm194_vm0, %v7093_v29, %v14587_v20  ;;  %v14588_v21 = vld [vmem:[#allocation14_spill] sm:$0xff] }
 0x511   : > { %v5820_v38 = vpop.f32.mrf.mxu3  ;;  %v2208_v43 = vsel %vm2139_vm4, %v2111_v49, %v14588_v21 }
 0x512   : > { %v5821_v61 = vadd.f32 %v11071_v63, %v5820_v38  ;;  %3664 = vrot.lane.b32.xlu1 %v14586_v51, %s7244_s25  ;;  %v11369_v4 = vsel %vm2236_vm5, %v2208_v43, %v14589_v37 }
 0x513   : > { %3378 = vrot.lane.b32.xlu0 %v3148_v16, %s7243_s24  ;;  %v5735_v16 = vsel %vm2236_vm5, %v5729_v15, %v11121_v9  ;;  %v5724_v9 = vsel %vm194_vm0, %v14504_v48, %v5672_v34  ;;  %v7094_v15 = vld [vmem:[#allocation2 + $0x280] sm:$0x3]  ;;  %v7095_v34 = vld [vmem:[#allocation2 + $0x398] sm:$0xff] }
 0x514   : > { %6848 = vst.msk [vmem:[%s9373_s21 + $0x368] sm:$0xff] %vm194_vm0, %v5821_v61  ;;  %v2802_v3 = vpop.f32.mrf.mxu0  ;;  %v5196_v40 = vpop.permute.xlu1 %5195  ;;  %3954 = vrot.lane.b32.xlu2 %v3153_v22, %s7245_s26  ;;  %v3154_v61 = vrot.slane %v7094_v15, 2  ;;  %v5730_v20 = vsel %vm2139_vm4, %v5724_v9, %v5690_v17  ;;  %v14592_v17 = vld [vmem:[#allocation243_spill] sm:$0xff]  ;;  %v7096_v15 = vld [vmem:[#allocation2 + $0x288] sm:$0xff] }
 0x515   : > { %v2803_v59 = vadd.f32 %v11071_v63, %v2802_v3  ;;  %v5224_v47 = vsel %vm2236_vm5, %v5218_v53, %v5196_v40  ;;  %v4790_v7 = vpop.f32.mrf.mxu1  ;;  %v3355_v19 = vpop.permute.xlu0 %3354  ;;  %v14590_v53 = vld [vmem:[#allocation62_spill] sm:$0xff]  ;;  %v14591_v3 = vld [vmem:[#allocation191_spill] sm:$0xff] }
 0x516   : > { %v4791_v23 = vadd.f32 %v11071_v63, %v4790_v7  ;;  %6574 = vmatmul.msk.f32.gmra.mxu2 %vm2340_vm6, %v5224_v47  ;;  %6769 = vmatmul.msk.f32.gmra.mxu3 %vm2340_vm6, %v5735_v16  ;;  %v11374_v38 = vpop.permute.xlu2 %3358  ;;  %v3155_v48 = vsel %vm3030_vm7, %v3152_v1, %v3154_v61  ;;  %v5736_v16 = vsel %vm2236_vm5, %v5730_v20, %v11205_v35  ;;  %v14593_v47 = vld [vmem:[#allocation267_spill] sm:$0xff]  ;;  %v3156_v61 = vrot.slane %v7096_v15, 2 }
 0x517   : > { %2986 = vst.msk [vmem:[%s9373_s21 + $0x4a0] sm:$0xff] %vm194_vm0, %v2803_v59  ;;  %6315 = vmatmul.msk.f32.gmra.mxu0 %vm2340_vm6, %v11369_v4  ;;  %6377 = vmatmul.msk.f32.gmra.mxu1 %vm2340_vm6, %v11281_v2  ;;  %v2112_v2 = vsel %vm194_vm0, %v7095_v34, %v14591_v3  ;;  %v4184_v35 = vsel %vm194_vm0, %v14532_v39, %v3355_v19  ;;  %v14595_v34 = vld [vmem:[#allocation37_spill] sm:$0xff]  ;;  %v14596_v3 = vld [vmem:[#allocation67_spill] sm:$0xff] }
 0x518   : > { %6457 = vst.msk [vmem:[%s9373_s21 + $0x170] sm:$0xff] %vm194_vm0, %v4791_v23  ;;  %v2209_v43 = vsel %vm2139_vm4, %v2112_v2, %v14592_v17  ;;  %v14594_v23 = vld [vmem:[#allocation23_spill] sm:$0xff]  ;;  %v7097_v2 = vld [vmem:[#allocation2 + $0x3a8] sm:$0xff] }
 0x519   : > { %v5823_v29 = vpop.f32.mrf.mxu3  ;;  %v11404_v7 = vsel %vm2236_vm5, %v2209_v43, %v14593_v47  ;;  %v14598_v43 = vld [vmem:[#allocation245_spill] sm:$0xff] }
 0x51a   : > { %v5824_v49 = vadd.f32 %v11071_v63, %v5823_v29  ;;  %3666 = vrot.lane.b32.xlu1 %v14590_v53, %s7244_s25  ;;  %v3157_v29 = vrot.slane %v10605_v31, 2 }
 0x51b   : > { %3380 = vrot.lane.b32.xlu0 %v3150_v46, %s7243_s24 }
 0x51c   : > { %6849 = vst.msk [vmem:[%s9373_s21 + $0x370] sm:$0xff] %vm194_vm0, %v5824_v49  ;;  %v2805_v40 = vpop.f32.mrf.mxu0  ;;  %v3643_v21 = vpop.permute.xlu1 %3642  ;;  %3956 = vrot.lane.b32.xlu2 %v3155_v48, %s7245_s26 }
 0x51d   : > { %v2806_v46 = vadd.f32 %v11071_v63, %v2805_v40  ;;  %v4793_v1 = vpop.f32.mrf.mxu1  ;;  %v3351_v59 = vpop.permute.xlu0 %3350  ;;  %v4280_v49 = vsel %vm2139_vm4, %v4184_v35, %v3643_v21  ;;  %v14597_v40 = vld [vmem:[#allocation194_spill] sm:$0xff] }
 0x51e   : > { %v4794_v37 = vadd.f32 %v11071_v63, %v4793_v1  ;;  %6575 = vmatmul.msk.f32.gmra.mxu2 %vm2340_vm6, %v14594_v23  ;;  %6770 = vmatmul.msk.f32.gmra.mxu3 %vm2340_vm6, %v5736_v16  ;;  %v11410_v9 = vpop.permute.xlu2 %3934  ;;  %v4182_v39 = vsel %vm194_vm0, %v14595_v34, %v3351_v59  ;;  %v2113_v31 = vsel %vm194_vm0, %v7097_v2, %v14597_v40  ;;  %v7099_v40 = vld [vmem:[#allocation2 + $0x3b0] sm:$0xff] }
 0x51f   : > { %2987 = vst.msk [vmem:[%s9373_s21 + $0x4a8] sm:$0xff] %vm194_vm0, %v2806_v46  ;;  %6316 = vmatmul.msk.f32.gmra.mxu0 %vm2340_vm6, %v11404_v7  ;;  %6378 = vmatmul.msk.f32.gmra.mxu1 %vm2340_vm6, %v11321_v36  ;;  %v3158_v36 = vsel %vm3030_vm7, %v3156_v61, %v3157_v29  ;;  %v2210_v16 = vsel %vm2139_vm4, %v2113_v31, %v14598_v43  ;;  %v14600_v61 = vld [vmem:[#allocation119_spill] sm:$0xff]  ;;  %v14602_v31 = vld [vmem:[#allocation174_spill] sm:$0xff] }
 0x520   : > { %6458 = vst.msk [vmem:[%s9373_s21 + $0x178] sm:$0xff] %vm194_vm0, %v4794_v37  ;;  %v11442_v47 = vsel %vm2236_vm5, %v4280_v49, %v11245_v52  ;;  %v14599_v37 = vld [vmem:[#allocation84_spill] sm:$0xff]  ;;  %v7098_v52 = vld [vmem:[#allocation2 + $0x298] sm:$0x3] }
 0x521   : > { %v5826_v20 = vpop.f32.mrf.mxu3  ;;  %v11446_v23 = vsel %vm2236_vm5, %v2210_v16, %v14599_v37  ;;  %v3159_v49 = vrot.slane %v7098_v52, 2  ;;  %v14604_v37 = vld [vmem:[#allocation94_spill] sm:$0xff]  ;;  %v7100_v52 = vld [vmem:[#allocation2 + $0x2a0] sm:$0xff] }
 0x522   : > { %v5827_v19 = vadd.f32 %v11071_v63, %v5826_v20  ;;  %3668 = vrot.lane.b32.xlu1 %v14596_v3, %s7244_s25 }
 0x523   : > { %3382 = vrot.lane.b32.xlu0 %v3153_v22, %s7243_s24  ;;  %v3160_v2 = vsel %vm3030_vm7, %v3157_v29, %v3159_v49  ;;  %v3161_v49 = vrot.slane %v7100_v52, 2 }
 0x524   : > { %6850 = vst.msk [vmem:[%s9373_s21 + $0x378] sm:$0xff] %vm194_vm0, %v5827_v19  ;;  %v2808_v21 = vpop.f32.mrf.mxu0  ;;  %v3639_v17 = vpop.permute.xlu1 %3638  ;;  %3958 = vrot.lane.b32.xlu2 %v3158_v36, %s7245_s26  ;;  %v14601_v19 = vld [vmem:[#allocation63_spill] sm:$0xff] }
 0x525   : > { %v2809_v46 = vadd.f32 %v11071_v63, %v2808_v21  ;;  %v4278_v22 = vsel %vm2139_vm4, %v4182_v39, %v3639_v17  ;;  %v4796_v1 = vpop.f32.mrf.mxu1  ;;  %v3927_v59 = vpop.permute.xlu0 %3926  ;;  %v2114_v21 = vsel %vm194_vm0, %v7099_v40, %v14602_v31  ;;  %v4185_v17 = vsel %vm194_vm0, %v14542_v60, %v11291_v25  ;;  %v14605_v25 = vld [vmem:[#allocation22_spill] sm:$0xff] }
 0x526   : > { %v4797_v35 = vadd.f32 %v11071_v63, %v4796_v1  ;;  %v4374_v15 = vsel %vm2236_vm5, %v4278_v22, %v3927_v59  ;;  %6576 = vmatmul.msk.f32.gmra.mxu2 %vm2340_vm6, %v14600_v61  ;;  %6771 = vmatmul.msk.f32.gmra.mxu3 %vm2340_vm6, %v11442_v47  ;;  %v11454_v20 = vpop.permute.xlu2 %3936 }
 0x527   : > { %2988 = vst.msk [vmem:[%s9373_s21 + $0x4b0] sm:$0xff] %vm194_vm0, %v2809_v46  ;;  %6317 = vmatmul.msk.f32.gmra.mxu0 %vm2340_vm6, %v11446_v23  ;;  %6379 = vmatmul.msk.f32.gmra.mxu1 %vm2340_vm6, %v4374_v15  ;;  %v14603_v46 = vld [vmem:[#allocation17_spill] sm:$0xff] }
 0x528   : > { %6459 = vst.msk [vmem:[%s9373_s21 + $0x180] sm:$0xff] %vm194_vm0, %v4797_v35 }
 0x529   : > { %v5829_v34 = vpop.f32.mrf.mxu3 }
 0x52a   : > { %v5830_v39 = vadd.f32 %v11071_v63, %v5829_v34  ;;  %3670 = vrot.lane.b32.xlu1 %v14601_v19, %s7244_s25  ;;  %v3162_v34 = vrot.slane %v10677_v30, 2 }
 0x52b   : > { %3384 = vrot.lane.b32.xlu0 %v3155_v48, %s7243_s24  ;;  %v2211_v48 = vsel %vm2139_vm4, %v2114_v21, %v14603_v46  ;;  %v14607_v21 = vld [vmem:[#allocation68_spill] sm:$0xff] }
 0x52c   : > { %6851 = vst.msk [vmem:[%s9373_s21 + $0x380] sm:$0xff] %vm194_vm0, %v5830_v39  ;;  %v2811_v43 = vpop.f32.mrf.mxu0  ;;  %v3645_v16 = vpop.permute.xlu1 %3644  ;;  %3960 = vrot.lane.b32.xlu2 %v3160_v2, %s7245_s26  ;;  %v11482_v35 = vsel %vm2236_vm5, %v2211_v48, %v14604_v37 }
 0x52d   : > { %v2812_v29 = vadd.f32 %v11071_v63, %v2811_v43  ;;  %v4281_v22 = vsel %vm2139_vm4, %v4185_v17, %v3645_v16  ;;  %v4799_v1 = vpop.f32.mrf.mxu1  ;;  %v3353_v59 = vpop.permute.xlu0 %3352  ;;  %v3163_v17 = vsel %vm3030_vm7, %v3161_v49, %v3162_v34  ;;  %v7101_v43 = vld [vmem:[#allocation2 + $0x3c0] sm:$0xff] }
 0x52e   : > { %v4800_v60 = vadd.f32 %v11071_v63, %v4799_v1  ;;  %6577 = vmatmul.msk.f32.gmra.mxu2 %vm2340_vm6, %v14605_v25  ;;  %v11489_v15 = vsel %vm2236_vm5, %v4281_v22, %v11330_v44  ;;  %v11491_v61 = vpop.permute.xlu2 %3938  ;;  %v14606_v44 = vld [vmem:[#allocation39_spill] sm:$0xff] }
 0x52f   : > { %2989 = vst.msk [vmem:[%s9373_s21 + $0x4b8] sm:$0xff] %vm194_vm0, %v2812_v29  ;;  %6318 = vmatmul.msk.f32.gmra.mxu0 %vm2340_vm6, %v11482_v35  ;;  %6772 = vmatmul.msk.f32.gmra.mxu3 %vm2340_vm6, %v11489_v15  ;;  %v4183_v40 = vsel %vm194_vm0, %v14606_v44, %v3353_v59  ;;  %v14608_v16 = vld [vmem:[#allocation195_spill] sm:$0xff]  ;;  %v14609_v29 = vld [vmem:[#allocation246_spill] sm:$0xff] }
 0x530   : > { %6460 = vst.msk [vmem:[%s9373_s21 + $0x188] sm:$0xff] %vm194_vm0, %v4800_v60  ;;  %v2115_v30 = vsel %vm194_vm0, %v7101_v43, %v14608_v16  ;;  %v14610_v60 = vld [vmem:[#allocation269_spill] sm:$0xff] }
 0x531   : > { %v5832_v39 = vpop.f32.mrf.mxu3  ;;  %v2212_v22 = vsel %vm2139_vm4, %v2115_v30, %v14609_v29  ;;  %v14612_v30 = vld [vmem:[#allocation73_spill] sm:$0xff] }
 0x532   : > { %v5833_v31 = vadd.f32 %v11071_v63, %v5832_v39  ;;  %3672 = vrot.lane.b32.xlu1 %v14607_v21, %s7244_s25  ;;  %v11520_v25 = vsel %vm2236_vm5, %v2212_v22, %v14610_v60  ;;  %v14611_v39 = vld [vmem:[#allocation221_spill] sm:$0xff] }
 0x533   : > { %3386 = vrot.lane.b32.xlu0 %v3158_v36, %s7243_s24  ;;  %v14613_v29 = vld [vmem:[#allocation197_spill] sm:$0xff] }
 0x534   : > { %6852 = vst.msk [vmem:[%s9373_s21 + $0x388] sm:$0xff] %vm194_vm0, %v5833_v31  ;;  %v2814_v46 = vpop.f32.mrf.mxu0  ;;  %v3641_v48 = vpop.permute.xlu1 %3640  ;;  %3962 = vrot.lane.b32.xlu2 %v3163_v17, %s7245_s26 }
 0x535   : > { %v2815_v1 = vadd.f32 %v11071_v63, %v2814_v46  ;;  %v4279_v36 = vsel %vm2139_vm4, %v4183_v40, %v3641_v48  ;;  %v4802_v59 = vpop.f32.mrf.mxu1  ;;  %v3929_v37 = vpop.permute.xlu0 %3928  ;;  %v7102_v40 = vld [vmem:[#allocation2 + $0x2b0] sm:$0x3]  ;;  %v7103_v48 = vld [vmem:[#allocation2 + $0x3c8] sm:$0xff] }
 0x536   : > { %v4803_v52 = vadd.f32 %v11071_v63, %v4802_v59  ;;  %v4375_v49 = vsel %vm2236_vm5, %v4279_v36, %v3929_v37  ;;  %6578 = vmatmul.msk.f32.gmra.mxu2 %vm2340_vm6, %v14611_v39  ;;  %v11526_v44 = vpop.permute.xlu2 %3940  ;;  %v3164_v31 = vrot.slane %v7102_v40, 2  ;;  %v2116_v22 = vsel %vm194_vm0, %v7103_v48, %v14613_v29  ;;  %v14614_v37 = vld [vmem:[#allocation248_spill] sm:$0xff]  ;;  %v14615_v39 = vld [vmem:[#allocation107_spill] sm:$0xff] }
 0x537   : > { %2990 = vst.msk [vmem:[%s9373_s21 + $0x4c0] sm:$0xff] %vm194_vm0, %v2815_v1  ;;  %6319 = vmatmul.msk.f32.gmra.mxu0 %vm2340_vm6, %v11520_v25  ;;  %6380 = vmatmul.msk.f32.gmra.mxu1 %vm2340_vm6, %v4375_v49  ;;  %v4186_v1 = vsel %vm194_vm0, %v14526_v45, %v11374_v38  ;;  %v14616_v38 = vld [vmem:[#allocation24_spill] sm:$0xff]  ;;  %v3167_v29 = vrot.slane %v10782_v32, 2 }
 0x538   : > { %6461 = vst.msk [vmem:[%s9373_s21 + $0x190] sm:$0xff] %vm194_vm0, %v4803_v52  ;;  %v3165_v46 = vsel %vm3030_vm7, %v3162_v34, %v3164_v31  ;;  %v14618_v32 = vld [vmem:[#allocation180_spill] sm:$0xff] }
 0x539   : > { %v5835_v43 = vpop.f32.mrf.mxu3 }
 0x53a   : > { %v5836_v16 = vadd.f32 %v11071_v63, %v5835_v43  ;;  %3674 = vrot.lane.b32.xlu1 %v14612_v30, %s7244_s25 }
 0x53b   : > { %3388 = vrot.lane.b32.xlu0 %v3160_v2, %s7243_s24  ;;  %v2213_v2 = vsel %vm2139_vm4, %v2116_v22, %v14614_v37 }
 0x53c   : > { %6853 = vst.msk [vmem:[%s9373_s21 + $0x390] sm:$0xff] %vm194_vm0, %v5836_v16  ;;  %v2817_v36 = vpop.f32.mrf.mxu0  ;;  %v3647_v59 = vpop.permute.xlu1 %3646  ;;  %3964 = vrot.lane.b32.xlu2 %v3165_v46, %s7245_s26  ;;  %v11554_v40 = vsel %vm2236_vm5, %v2213_v2, %v14615_v39  ;;  %v7104_v16 = vld [vmem:[#allocation2 + $0x2b8] sm:$0xff] }
 0x53d   : > { %v2818_v34 = vadd.f32 %v11071_v63, %v2817_v36  ;;  %v4282_v60 = vsel %vm2139_vm4, %v4186_v1, %v3647_v59  ;;  %v4805_v52 = vpop.f32.mrf.mxu1  ;;  %v3361_v49 = vpop.permute.xlu0 %3360  ;;  %v3166_v48 = vrot.slane %v7104_v16, 2  ;;  %v14617_v36 = vld [vmem:[#allocation69_spill] sm:$0xff]  ;;  %v7105_v59 = vld [vmem:[#allocation2 + $0x3d8] sm:$0xff] }
 0x53e   : > { %v4806_v45 = vadd.f32 %v11071_v63, %v4805_v52  ;;  %6579 = vmatmul.msk.f32.gmra.mxu2 %vm2340_vm6, %v14616_v38  ;;  %v11561_v31 = vsel %vm2236_vm5, %v4282_v60, %v11410_v9  ;;  %v11563_v43 = vpop.permute.xlu2 %3942  ;;  %v4187_v22 = vsel %vm194_vm0, %v14537_v27, %v3361_v49  ;;  %v2117_v37 = vsel %vm194_vm0, %v7105_v59, %v14618_v32  ;;  %v14619_v27 = vld [vmem:[#allocation238_spill] sm:$0xff] }
 0x53f   : > { %2991 = vst.msk [vmem:[%s9373_s21 + $0x4c8] sm:$0xff] %vm194_vm0, %v2818_v34  ;;  %6320 = vmatmul.msk.f32.gmra.mxu0 %vm2340_vm6, %v11554_v40  ;;  %6381 = vmatmul.msk.f32.gmra.mxu1 %vm2340_vm6, %v11442_v47  ;;  %v3168_v47 = vsel %vm3030_vm7, %v3166_v48, %v3167_v29  ;;  %v2214_v60 = vsel %vm2139_vm4, %v2117_v37, %v14619_v27  ;;  %v14621_v48 = vld [vmem:[#allocation223_spill] sm:$0xff]  ;;  %v14623_v27 = vld [vmem:[#allocation198_spill] sm:$0xff] }
 0x540   : > { %6462 = vst.msk [vmem:[%s9373_s21 + $0x198] sm:$0xff] %vm194_vm0, %v4806_v45  ;;  %6773 = vmatmul.msk.f32.gmra.mxu3 %vm2340_vm6, %v11561_v31  ;;  %v14620_v45 = vld [vmem:[#allocation95_spill] sm:$0xff] }
 0x541   : > { %v5838_v9 = vpop.f32.mrf.mxu3  ;;  %v11594_v38 = vsel %vm2236_vm5, %v2214_v60, %v14620_v45 }
 0x542   : > { %v5839_v1 = vadd.f32 %v11071_v63, %v5838_v9  ;;  %3676 = vrot.lane.b32.xlu1 %v14617_v36, %s7244_s25 }
 0x543   : > { %3390 = vrot.lane.b32.xlu0 %v3163_v17, %s7243_s24 }
 0x544   : > { %6854 = vst.msk [vmem:[%s9373_s21 + $0x398] sm:$0xff] %vm194_vm0, %v5839_v1  ;;  %v2820_v2 = vpop.f32.mrf.mxu0  ;;  %v3649_v34 = vpop.permute.xlu1 %3648  ;;  %3966 = vrot.lane.b32.xlu2 %v3168_v47, %s7245_s26 }
 0x545   : > { %v2821_v52 = vadd.f32 %v11071_v63, %v2820_v2  ;;  %v4283_v17 = vsel %vm2139_vm4, %v4187_v22, %v3649_v34  ;;  %v4808_v49 = vpop.f32.mrf.mxu1  ;;  %v3363_v39 = vpop.permute.xlu0 %3362  ;;  %v7106_v22 = vld [vmem:[#allocation2 + $0x2c8] sm:$0x3]  ;;  %v14622_v2 = vld [vmem:[#allocation74_spill] sm:$0xff]  ;;  %v7107_v34 = vld [vmem:[#allocation2 + $0x3e0] sm:$0xff] }
 0x546   : > { %v4809_v16 = vadd.f32 %v11071_v63, %v4808_v49  ;;  %6580 = vmatmul.msk.f32.gmra.mxu2 %vm2340_vm6, %v14621_v48  ;;  %v11601_v9 = vsel %vm2236_vm5, %v4283_v17, %v11454_v20  ;;  %v11603_v1 = vpop.permute.xlu2 %3944  ;;  %v3169_v59 = vrot.slane %v7106_v22, 2  ;;  %v4188_v32 = vsel %vm194_vm0, %v14546_v57, %v3363_v39  ;;  %v14624_v57 = vld [vmem:[#allocation249_spill] sm:$0xff] }
 0x547   : > { %2992 = vst.msk [vmem:[%s9373_s21 + $0x4d0] sm:$0xff] %vm194_vm0, %v2821_v52  ;;  %6321 = vmatmul.msk.f32.gmra.mxu0 %vm2340_vm6, %v11594_v38  ;;  %6382 = vmatmul.msk.f32.gmra.mxu1 %vm2340_vm6, %v11489_v15  ;;  %v2118_v60 = vsel %vm194_vm0, %v7107_v34, %v14623_v27  ;;  %v3172_v27 = vrot.slane %v10871_v10, 2  ;;  %v14628_v10 = vld [vmem:[#allocation200_spill] sm:$0xff] }
 0x548   : > { %6463 = vst.msk [vmem:[%s9373_s21 + $0x1a0] sm:$0xff] %vm194_vm0, %v4809_v16  ;;  %6774 = vmatmul.msk.f32.gmra.mxu3 %vm2340_vm6, %v11601_v9  ;;  %v3170_v15 = vsel %vm3030_vm7, %v3167_v29, %v3169_v59  ;;  %v2215_v49 = vsel %vm2139_vm4, %v2118_v60, %v14624_v57  ;;  %v14625_v16 = vld [vmem:[#allocation271_spill] sm:$0xff]  ;;  %v14626_v59 = vld [vmem:[#allocation102_spill] sm:$0xff] }
 0x549   : > { %v5841_v20 = vpop.f32.mrf.mxu3  ;;  %v11633_v48 = vsel %vm2236_vm5, %v2215_v49, %v14625_v16  ;;  %v7109_v57 = vld [vmem:[#allocation2 + $0x3f0] sm:$0xff] }
 0x54a   : > { %v5842_v37 = vadd.f32 %v11071_v63, %v5841_v20  ;;  %3678 = vrot.lane.b32.xlu1 %v14622_v2, %s7244_s25  ;;  %v2119_v49 = vsel %vm194_vm0, %v7109_v57, %v14628_v10 }
 0x54b   : > { %3392 = vrot.lane.b32.xlu0 %v3165_v46, %s7243_s24 }
 0x54c   : > { %6855 = vst.msk [vmem:[%s9373_s21 + $0x3a0] sm:$0xff] %vm194_vm0, %v5842_v37  ;;  %v2823_v52 = vpop.f32.mrf.mxu0  ;;  %v3651_v17 = vpop.permute.xlu1 %3650  ;;  %3968 = vrot.lane.b32.xlu2 %v3170_v15, %s7245_s26 }
 0x54d   : > { %v2824_v39 = vadd.f32 %v11071_v63, %v2823_v52  ;;  %v4284_v46 = vsel %vm2139_vm4, %v4188_v32, %v3651_v17  ;;  %v4811_v29 = vpop.f32.mrf.mxu1  ;;  %v3365_v45 = vpop.permute.xlu0 %3364  ;;  %v7108_v32 = vld [vmem:[#allocation2 + $0x2d0] sm:$0xff]  ;;  %v14627_v17 = vld [vmem:[#allocation79_spill] sm:$0xff] }
 0x54e   : > { %v4812_v22 = vadd.f32 %v11071_v63, %v4811_v29  ;;  %6581 = vmatmul.msk.f32.gmra.mxu2 %vm2340_vm6, %v14626_v59  ;;  %v11640_v20 = vsel %vm2236_vm5, %v4284_v46, %v11491_v61  ;;  %v11642_v37 = vpop.permute.xlu2 %3946  ;;  %v3171_v34 = vrot.slane %v7108_v32, 2  ;;  %v4189_v60 = vsel %vm194_vm0, %v14550_v24, %v3365_v45  ;;  %v14629_v24 = vld [vmem:[#allocation251_spill] sm:$0xff]  ;;  %v14630_v59 = vld [vmem:[#allocation112_spill] sm:$0xff] }
 0x54f   : > { %2993 = vst.msk [vmem:[%s9373_s21 + $0x4d8] sm:$0xff] %vm194_vm0, %v2824_v39  ;;  %6322 = vmatmul.msk.f32.gmra.mxu0 %vm2340_vm6, %v11633_v48  ;;  %6383 = vmatmul.msk.f32.gmra.mxu1 %vm2340_vm6, %v11561_v31  ;;  %v2216_v29 = vsel %vm2139_vm4, %v2119_v49, %v14629_v24  ;;  %v7111_v24 = vld [vmem:[#allocation2 + $0x3f8] sm:$0xff] }
 0x550   : > { %6464 = vst.msk [vmem:[%s9373_s21 + $0x1a8] sm:$0xff] %vm194_vm0, %v4812_v22  ;;  %6775 = vmatmul.msk.f32.gmra.mxu3 %vm2340_vm6, %v11640_v20  ;;  %v3173_v31 = vsel %vm3030_vm7, %v3171_v34, %v3172_v27  ;;  %v11673_v32 = vsel %vm2236_vm5, %v2216_v29, %v14630_v59  ;;  %v14633_v29 = vld [vmem:[#allocation186_spill] sm:$0xff] }
 0x551   : > { %v5844_v61 = vpop.f32.mrf.mxu3 }
 0x552   : > { %v5845_v52 = vadd.f32 %v11071_v63, %v5844_v61  ;;  %3680 = vrot.lane.b32.xlu1 %v14627_v17, %s7244_s25  ;;  %v14631_v61 = vld [vmem:[#allocation217_spill] sm:$0xff] }
 0x553   : > { %3394 = vrot.lane.b32.xlu0 %v3168_v47, %s7243_s24 }
 0x554   : > { %6856 = vst.msk [vmem:[%s9373_s21 + $0x3a8] sm:$0xff] %vm194_vm0, %v5845_v52  ;;  %v2826_v39 = vpop.f32.mrf.mxu0  ;;  %v3653_v46 = vpop.permute.xlu1 %3652  ;;  %3970 = vrot.lane.b32.xlu2 %v3173_v31, %s7245_s26 }
 0x555   : > { %v2827_v45 = vadd.f32 %v11071_v63, %v2826_v39  ;;  %v4285_v47 = vsel %vm2139_vm4, %v4189_v60, %v3653_v46  ;;  %v4814_v16 = vpop.f32.mrf.mxu1  ;;  %v3367_v22 = vpop.permute.xlu0 %3366  ;;  %v7110_v60 = vld [vmem:[#allocation2 + $0x2e0] sm:$0x3] }
 0x556   : > { %v4815_v34 = vadd.f32 %v11071_v63, %v4814_v16  ;;  %6582 = vmatmul.msk.f32.gmra.mxu2 %vm2340_vm6, %v14631_v61  ;;  %v11680_v52 = vsel %vm2236_vm5, %v4285_v47, %v11526_v44  ;;  %v11682_v57 = vpop.permute.xlu2 %3948  ;;  %v3174_v10 = vrot.slane %v7110_v60, 2  ;;  %v4190_v49 = vsel %vm194_vm0, %v14554_v50, %v3367_v22  ;;  %v14632_v46 = vld [vmem:[#allocation75_spill] sm:$0xff]  ;;  %v14634_v50 = vld [vmem:[#allocation241_spill] sm:$0xff] }
 0x557   : > { %2994 = vst.msk [vmem:[%s9373_s21 + $0x4e0] sm:$0xff] %vm194_vm0, %v2827_v45  ;;  %6323 = vmatmul.msk.f32.gmra.mxu0 %vm2340_vm6, %v11673_v32  ;;  %6384 = vmatmul.msk.f32.gmra.mxu1 %vm2340_vm6, %v11601_v9  ;;  %v2120_v45 = vsel %vm194_vm0, %v7111_v24, %v14633_v29  ;;  %v14635_v61 = vld [vmem:[#allocation101_spill] sm:$0xff] }
 0x558   : > { %6465 = vst.msk [vmem:[%s9373_s21 + $0x1b0] sm:$0xff] %vm194_vm0, %v4815_v34  ;;  %6776 = vmatmul.msk.f32.gmra.mxu3 %vm2340_vm6, %v11680_v52  ;;  %v3175_v9 = vsel %vm3030_vm7, %v3172_v27, %v3174_v10  ;;  %v2217_v22 = vsel %vm2139_vm4, %v2120_v45, %v14634_v50  ;;  %v7113_v45 = vld [vmem:[#allocation2 + $0x2f0] sm:$0xff] }
 0x559   : > { %v5847_v44 = vpop.f32.mrf.mxu3  ;;  %v11712_v60 = vsel %vm2236_vm5, %v2217_v22, %v14635_v61  ;;  %v14638_v22 = vld [vmem:[#allocation80_spill] sm:$0xff] }
 0x55a   : > { %v5848_v39 = vadd.f32 %v11071_v63, %v5847_v44  ;;  %3682 = vrot.lane.b32.xlu1 %v14632_v46, %s7244_s25  ;;  %14636 = vst [vmem:[#allocation166_spill] sm:$0xff] %v11712_v60  ;;  %v14637_v44 = vld [vmem:[#allocation125_spill] sm:$0xff] }
 0x55b   : > { %3396 = vrot.lane.b32.xlu0 %v3170_v15, %s7243_s24 }
 0x55c   : > { %6857 = vst.msk [vmem:[%s9373_s21 + $0x3b0] sm:$0xff] %vm194_vm0, %v5848_v39  ;;  %v2829_v47 = vpop.f32.mrf.mxu0  ;;  %v3655_v16 = vpop.permute.xlu1 %3654  ;;  %3972 = vrot.lane.b32.xlu2 %v3175_v9, %s7245_s26 }
 0x55d   : > { %v2830_v59 = vadd.f32 %v11071_v63, %v2829_v47  ;;  %v4286_v15 = vsel %vm2139_vm4, %v4190_v49, %v3655_v16  ;;  %v4817_v27 = vpop.f32.mrf.mxu1  ;;  %v3369_v34 = vpop.permute.xlu0 %3368  ;;  %v7112_v49 = vld [vmem:[#allocation2 + $0x2e8] sm:$0xff]  ;;  %v3177_v47 = vrot.slane %v7113_v45, 2 }
 0x55e   : > { %v4818_v10 = vadd.f32 %v11071_v63, %v4817_v27  ;;  %6583 = vmatmul.msk.f32.gmra.mxu2 %vm2340_vm6, %v14637_v44  ;;  %v11719_v39 = vsel %vm2236_vm5, %v4286_v15, %v11563_v43  ;;  %v11721_v24 = vpop.permute.xlu2 %3950  ;;  %v3176_v29 = vrot.slane %v7112_v49, 2  ;;  %v4191_v16 = vsel %vm194_vm0, %v14558_v0, %v3369_v34  ;;  %v14639_v15 = vld [vmem:[#allocation201_spill] sm:$0xff]  ;;  %v14640_v0 = vld [vmem:[#allocation252_spill] sm:$0xff] }
 0x55f   : > { %2995 = vst.msk [vmem:[%s9373_s21 + $0x4e8] sm:$0xff] %vm194_vm0, %v2830_v59  ;;  %6324 = vmatmul.msk.f32.gmra.mxu0 %vm2340_vm6, %v11712_v60  ;;  %6385 = vmatmul.msk.f32.gmra.mxu1 %vm2340_vm6, %v11640_v20  ;;  %v7114_v59 = vld [vmem:[#allocation2 + $0x408] sm:$0xff] }
 0x560   : > { %6466 = vst.msk [vmem:[%s9373_s21 + $0x1b8] sm:$0xff] %vm194_vm0, %v4818_v10  ;;  %6777 = vmatmul.msk.f32.gmra.mxu3 %vm2340_vm6, %v11719_v39  ;;  %v3178_v20 = vsel %vm3030_vm7, %v3176_v29, %v3177_v47  ;;  %v2121_v27 = vsel %vm194_vm0, %v7114_v59, %v14639_v15  ;;  %v14641_v45 = vld [vmem:[#allocation273_spill] sm:$0xff]  ;;  %v14643_v59 = vld [vmem:[#allocation224_spill] sm:$0xff] }
 0x561   : > { %v5850_v43 = vpop.f32.mrf.mxu3  ;;  %v2218_v34 = vsel %vm2139_vm4, %v2121_v27, %v14640_v0  ;;  %v14679_v60 = vld [vmem:[#allocation29_spill] sm:$0xff] }
 0x562   : > { %v5851_v50 = vadd.f32 %v11071_v63, %v5850_v43  ;;  %3684 = vrot.lane.b32.xlu1 %v14638_v22, %s7244_s25  ;;  %v11751_v43 = vsel %vm2236_vm5, %v2218_v34, %v14641_v45  ;;  %v14644_v34 = vld [vmem:[#allocation85_spill] sm:$0xff] }
 0x563   : > { %3398 = vrot.lane.b32.xlu0 %v3173_v31, %s7243_s24  ;;  %14642 = vst [vmem:[#allocation28_spill] sm:$0xff] %v11751_v43 }
 0x564   : > { %6858 = vst.msk [vmem:[%s9373_s21 + $0x3b8] sm:$0xff] %vm194_vm0, %v5851_v50  ;;  %v2832_v61 = vpop.f32.mrf.mxu0  ;;  %v3657_v10 = vpop.permute.xlu1 %3656  ;;  %3974 = vrot.lane.b32.xlu2 %v3178_v20, %s7245_s26 }
 0x565   : > { %v2833_v44 = vadd.f32 %v11071_v63, %v2832_v61  ;;  %v4287_v31 = vsel %vm2139_vm4, %v4191_v16, %v3657_v10  ;;  %v4820_v49 = vpop.f32.mrf.mxu1  ;;  %v3371_v29 = vpop.permute.xlu0 %3370  ;;  %v7115_v16 = vld [vmem:[#allocation2 + $0x2f8] sm:$0x3] }
 0x566   : > { %v4821_v50 = vadd.f32 %v11071_v63, %v4820_v49  ;;  %6584 = vmatmul.msk.f32.gmra.mxu2 %vm2340_vm6, %v14643_v59  ;;  %v11758_v15 = vsel %vm2236_vm5, %v4287_v31, %v11603_v1  ;;  %v11760_v27 = vpop.permute.xlu2 %3952  ;;  %v3179_v61 = vrot.slane %v7115_v16, 2  ;;  %v4192_v10 = vsel %vm194_vm0, %v14562_v54, %v3371_v29  ;;  %v14645_v31 = vld [vmem:[#allocation203_spill] sm:$0xff]  ;;  %v14646_v54 = vld [vmem:[#allocation254_spill] sm:$0xff] }
 0x567   : > { %2996 = vst.msk [vmem:[%s9373_s21 + $0x4f0] sm:$0xff] %vm194_vm0, %v2833_v44  ;;  %6325 = vmatmul.msk.f32.gmra.mxu0 %vm2340_vm6, %v11751_v43  ;;  %6386 = vmatmul.msk.f32.gmra.mxu1 %vm2340_vm6, %v11680_v52  ;;  %v7116_v44 = vld [vmem:[#allocation2 + $0x410] sm:$0xff] }
 0x568   : > { %6467 = vst.msk [vmem:[%s9373_s21 + $0x1c0] sm:$0xff] %vm194_vm0, %v4821_v50  ;;  %6778 = vmatmul.msk.f32.gmra.mxu3 %vm2340_vm6, %v11758_v15  ;;  %v3180_v52 = vsel %vm3030_vm7, %v3177_v47, %v3179_v61  ;;  %v2122_v49 = vsel %vm194_vm0, %v7116_v44, %v14645_v31  ;;  %v14647_v61 = vld [vmem:[#allocation90_spill] sm:$0xff] }
 0x569   : > { %v5853_v1 = vpop.f32.mrf.mxu3  ;;  %v2219_v29 = vsel %vm2139_vm4, %v2122_v49, %v14646_v54  ;;  %v14649_v44 = vld [vmem:[#allocation130_spill] sm:$0xff] }
 0x56a   : > { %v5854_v0 = vadd.f32 %v11071_v63, %v5853_v1  ;;  %3686 = vrot.lane.b32.xlu1 %v14644_v34, %s7244_s25  ;;  %v11790_v1 = vsel %vm2236_vm5, %v2219_v29, %v14647_v61  ;;  %v14651_v61 = vld [vmem:[#allocation192_spill] sm:$0xff] }
 0x56b   : > { %3400 = vrot.lane.b32.xlu0 %v3175_v9, %s7243_s24  ;;  %14648 = vst [vmem:[#allocation136_spill] sm:$0xff] %v11790_v1 }
 0x56c   : > { %6859 = vst.msk [vmem:[%s9373_s21 + $0x3c0] sm:$0xff] %vm194_vm0, %v5854_v0  ;;  %v2835_v45 = vpop.f32.mrf.mxu0  ;;  %v3659_v50 = vpop.permute.xlu1 %3658  ;;  %3976 = vrot.lane.b32.xlu2 %v3180_v52, %s7245_s26 }
 0x56d   : > { %v2836_v59 = vadd.f32 %v11071_v63, %v2835_v45  ;;  %v4288_v9 = vsel %vm2139_vm4, %v4192_v10, %v3659_v50  ;;  %v4823_v47 = vpop.f32.mrf.mxu1  ;;  %v3373_v16 = vpop.permute.xlu0 %3372  ;;  %v7117_v10 = vld [vmem:[#allocation2 + $0x300] sm:$0xff]  ;;  %v7118_v50 = vld [vmem:[#allocation2 + $0x308] sm:$0xff] }
 0x56e   : > { %v4824_v0 = vadd.f32 %v11071_v63, %v4823_v47  ;;  %6585 = vmatmul.msk.f32.gmra.mxu2 %vm2340_vm6, %v14649_v44  ;;  %v11797_v31 = vsel %vm2236_vm5, %v4288_v9, %v11642_v37  ;;  %v11799_v49 = vpop.permute.xlu2 %3954  ;;  %v3181_v45 = vrot.slane %v7117_v10, 2  ;;  %v3182_v54 = vrot.slane %v7118_v50, 2  ;;  %v14650_v9 = vld [vmem:[#allocation81_spill] sm:$0xff]  ;;  %v7119_v47 = vld [vmem:[#allocation2 + $0x420] sm:$0xff] }
 0x56f   : > { %2997 = vst.msk [vmem:[%s9373_s21 + $0x4f8] sm:$0xff] %vm194_vm0, %v2836_v59  ;;  %6326 = vmatmul.msk.f32.gmra.mxu0 %vm2340_vm6, %v11790_v1  ;;  %6387 = vmatmul.msk.f32.gmra.mxu1 %vm2340_vm6, %v11719_v39  ;;  %v4193_v29 = vsel %vm194_vm0, %v14566_v11, %v3373_v16  ;;  %v14652_v11 = vld [vmem:[#allocation244_spill] sm:$0xff]  ;;  %v11825_v16 = vld [vmem:[#allocation3] ss:$0 sm:$0xff]  ;;  %v14655_v1 = vld [vmem:[#allocation226_spill] sm:$0xff] }
 0x570   : > { %6468 = vst.msk [vmem:[%s9373_s21 + $0x1c8] sm:$0xff] %vm194_vm0, %v4824_v0  ;;  %6779 = vmatmul.msk.f32.gmra.mxu3 %vm2340_vm6, %v11797_v31  ;;  %v3183_v39 = vsel %vm3030_vm7, %v3181_v45, %v3182_v54  ;;  %v2123_v0 = vsel %vm194_vm0, %v7119_v47, %v14651_v61  ;;  %v14653_v47 = vld [vmem:[#allocation268_spill] sm:$0xff] }
 0x571   : > { %v5856_v37 = vpop.f32.mrf.mxu3 }
 0x572   : > { %v5857_v59 = vadd.f32 %v11071_v63, %v5856_v37  ;;  %3688 = vrot.lane.b32.xlu1 %v14650_v9, %s7244_s25  ;;  %v2220_v63 = vsel %vm2139_vm4, %v2123_v0, %v14652_v11 }
 0x573   : > { %3402 = vrot.lane.b32.xlu0 %v3178_v20, %s7243_s24  ;;  %v11831_v61 = vsel %vm2236_vm5, %v2220_v63, %v14653_v47  ;;  %v14656_v63 = vld [vmem:[#allocation86_spill] sm:$0xff] }
 0x574   : > { %6860 = vst.msk [vmem:[%s9373_s21 + $0x3c8] sm:$0xff] %vm194_vm0, %v5857_v59  ;;  %v2838_v44 = vpop.f32.mrf.mxu0  ;;  %v3661_v10 = vpop.permute.xlu1 %3660  ;;  %3978 = vrot.lane.b32.xlu2 %v3183_v39, %s7245_s26 }
 0x575   : > { %v2839_v20 = vadd.f32 %v11825_v16, %v2838_v44  ;;  %v4289_v45 = vsel %vm2139_vm4, %v4193_v29, %v3661_v10  ;;  %v4826_v50 = vpop.f32.mrf.mxu1  ;;  %v3375_v37 = vpop.permute.xlu0 %3374  ;;  %14654 = vst [vmem:[#allocation229_spill] sm:$0xff] %v11831_v61  ;;  %v7121_v29 = vld [vmem:[#allocation2 + $0x310] sm:$0x3] }
 0x576   : > { %v4827_v59 = vadd.f32 %v11825_v16, %v4826_v50  ;;  %6586 = vmatmul.msk.f32.gmra.mxu2 %vm2340_vm6, %v14655_v1  ;;  %v11838_v0 = vsel %vm2236_vm5, %v4289_v45, %v11682_v57  ;;  %v11840_v11 = vpop.permute.xlu2 %3956  ;;  %v3184_v44 = vrot.slane %v7121_v29, 2  ;;  %v4194_v1 = vsel %vm194_vm0, %v14570_v41, %v3375_v37  ;;  %v14657_v45 = vld [vmem:[#allocation204_spill] sm:$0xff]  ;;  %v14658_v41 = vld [vmem:[#allocation255_spill] sm:$0xff] }
 0x577   : > { %2998 = vst.msk [vmem:[%s9373_s21 + $0x800] sm:$0xff] %vm194_vm0, %v2839_v20  ;;  %6327 = vmatmul.msk.f32.gmra.mxu0 %vm2340_vm6, %v11831_v61  ;;  %6388 = vmatmul.msk.f32.gmra.mxu1 %vm2340_vm6, %v11758_v15  ;;  %v7122_v20 = vld [vmem:[#allocation2 + $0x428] sm:$0xff] }
 0x578   : > { %6469 = vst.msk [vmem:[%s9373_s21 + $0x1d0] sm:$0xff] %vm194_vm0, %v4827_v59  ;;  %6780 = vmatmul.msk.f32.gmra.mxu3 %vm2340_vm6, %v11838_v0  ;;  %v3185_v15 = vsel %vm3030_vm7, %v3182_v54, %v3184_v44  ;;  %v2124_v50 = vsel %vm194_vm0, %v7122_v20, %v14657_v45  ;;  %v14661_v20 = vld [vmem:[#allocation70_spill] sm:$0xff] }
 0x579   : > { %v5859_v57 = vpop.f32.mrf.mxu3  ;;  %v2221_v37 = vsel %vm2139_vm4, %v2124_v50, %v14658_v41 }
 0x57a   : > { %v5860_v10 = vadd.f32 %v11825_v16, %v5859_v57  ;;  %3690 = vrot.lane.b32.xlu1 %v14656_v63, %s7244_s25  ;;  %v14659_v57 = vld [vmem:[#allocation275_spill] sm:$0xff] }
 0x57b   : > { %3404 = vrot.lane.b32.xlu0 %v3180_v52, %s7243_s24  ;;  %v11870_v61 = vsel %vm2236_vm5, %v2221_v37, %v14659_v57  ;;  %v14663_v57 = vld [vmem:[#allocation206_spill] sm:$0xff] }
 0x57c   : > { %6861 = vst.msk [vmem:[%s9373_s21 + $0x3d0] sm:$0xff] %vm194_vm0, %v5860_v10  ;;  %v2841_v47 = vpop.f32.mrf.mxu0  ;;  %v3663_v59 = vpop.permute.xlu1 %3662  ;;  %3980 = vrot.lane.b32.xlu2 %v3185_v15, %s7245_s26 }
 0x57d   : > { %v2842_v29 = vadd.f32 %v11825_v16, %v2841_v47  ;;  %v4290_v52 = vsel %vm2139_vm4, %v4194_v1, %v3663_v59  ;;  %v4829_v54 = vpop.f32.mrf.mxu1  ;;  %v3377_v44 = vpop.permute.xlu0 %3376  ;;  %14660 = vst [vmem:[#allocation30_spill] sm:$0xff] %v11870_v61  ;;  %v7123_v1 = vld [vmem:[#allocation2 + $0x318] sm:$0xff]  ;;  %v7124_v59 = vld [vmem:[#allocation2 + $0x320] sm:$0xff] }
 0x57e   : > { %v4830_v10 = vadd.f32 %v11825_v16, %v4829_v54  ;;  %6587 = vmatmul.msk.f32.gmra.mxu2 %vm2340_vm6, %v14661_v20  ;;  %v11877_v45 = vsel %vm2236_vm5, %v4290_v52, %v11721_v24  ;;  %v11879_v50 = vpop.permute.xlu2 %3958  ;;  %v3186_v47 = vrot.slane %v7123_v1, 2  ;;  %v3187_v41 = vrot.slane %v7124_v59, 2  ;;  %v14662_v52 = vld [vmem:[#allocation91_spill] sm:$0xff] }
 0x57f   : > { %2999 = vst.msk [vmem:[%s9373_s21 + $0x808] sm:$0xff] %vm194_vm0, %v2842_v29  ;;  %6328 = vmatmul.msk.f32.gmra.mxu0 %vm2340_vm6, %v11870_v61  ;;  %6389 = vmatmul.msk.f32.gmra.mxu1 %vm2340_vm6, %v11797_v31  ;;  %v4195_v37 = vsel %vm194_vm0, %v14574_v42, %v3377_v44  ;;  %v7125_v54 = vld [vmem:[#allocation2 + $0x438] sm:$0xff]  ;;  %v14665_v61 = vld [vmem:[#allocation113_spill] sm:$0xff] }
 0x580   : > { %6470 = vst.msk [vmem:[%s9373_s21 + $0x1d8] sm:$0xff] %vm194_vm0, %v4830_v10  ;;  %6781 = vmatmul.msk.f32.gmra.mxu3 %vm2340_vm6, %v11877_v45  ;;  %v3188_v31 = vsel %vm3030_vm7, %v3186_v47, %v3187_v41  ;;  %v2125_v10 = vsel %vm194_vm0, %v7125_v54, %v14663_v57  ;;  %v14664_v42 = vld [vmem:[#allocation258_spill] sm:$0xff]  ;;  %v14667_v54 = vld [vmem:[#allocation27_spill] sm:$0xff] }
 0x581   : > { %v5862_v24 = vpop.f32.mrf.mxu3  ;;  %v2222_v44 = vsel %vm2139_vm4, %v2125_v10, %v14664_v42 }
 0x582   : > { %v5863_v29 = vadd.f32 %v11825_v16, %v5862_v24  ;;  %3692 = vrot.lane.b32.xlu1 %v14662_v52, %s7244_s25  ;;  %v11909_v43 = vsel %vm2236_vm5, %v2222_v44, %v14665_v61  ;;  %v7126_v61 = vld [vmem:[#allocation2 + $0x328] sm:$0x3] }
 0x583   : > { %3406 = vrot.lane.b32.xlu0 %v3183_v39, %s7243_s24  ;;  %14666 = vst [vmem:[#allocation114_spill] sm:$0xff] %v11909_v43 }
 0x584   : > { %6862 = vst.msk [vmem:[%s9373_s21 + $0x3d8] sm:$0xff] %vm194_vm0, %v5863_v29  ;;  %v2844_v20 = vpop.f32.mrf.mxu0  ;;  %v3665_v1 = vpop.permute.xlu1 %3664  ;;  %3982 = vrot.lane.b32.xlu2 %v3188_v31, %s7245_s26 }
 0x585   : > { %v2845_v59 = vadd.f32 %v11825_v16, %v2844_v20  ;;  %v4291_v39 = vsel %vm2139_vm4, %v4195_v37, %v3665_v1  ;;  %v4832_v47 = vpop.f32.mrf.mxu1  ;;  %v3379_v24 = vpop.permute.xlu0 %3378  ;;  %v3189_v37 = vrot.slane %v7126_v61, 2 }
 0x586   : > { %v4833_v29 = vadd.f32 %v11825_v16, %v4832_v47  ;;  %6588 = vmatmul.msk.f32.gmra.mxu2 %vm2340_vm6, %v14667_v54  ;;  %v11916_v57 = vsel %vm2236_vm5, %v4291_v39, %v11760_v27  ;;  %v11918_v10 = vpop.permute.xlu2 %3960  ;;  %v4196_v1 = vsel %vm194_vm0, %v14578_v58, %v3379_v24  ;;  %v7127_v39 = vld [vmem:[#allocation2 + $0x440] sm:$0xff] }
 0x587   : > { %3000 = vst.msk [vmem:[%s9373_s21 + $0x810] sm:$0xff] %vm194_vm0, %v2845_v59  ;;  %6329 = vmatmul.msk.f32.gmra.mxu0 %vm2340_vm6, %v11909_v43  ;;  %6390 = vmatmul.msk.f32.gmra.mxu1 %vm2340_vm6, %v11838_v0  ;;  %v14668_v59 = vld [vmem:[#allocation87_spill] sm:$0xff]  ;;  %v3190_v0 = vsel %vm3030_vm7, %v3187_v41, %v3189_v37  ;;  %v14669_v47 = vld [vmem:[#allocation196_spill] sm:$0xff] }
 0x588   : > { %6471 = vst.msk [vmem:[%s9373_s21 + $0x1e0] sm:$0xff] %vm194_vm0, %v4833_v29  ;;  %6782 = vmatmul.msk.f32.gmra.mxu3 %vm2340_vm6, %v11916_v57  ;;  %v2126_v29 = vsel %vm194_vm0, %v7127_v39, %v14669_v47  ;;  %v14670_v58 = vld [vmem:[#allocation247_spill] sm:$0xff]  ;;  %v14673_v47 = vld [vmem:[#allocation218_spill] sm:$0xff] }
 0x589   : > { %v5359_v27 = vpop.f32.mrf.mxu2  ;;  %v5865_v20 = vpop.f32.mrf.mxu3  ;;  %v2223_v24 = vsel %vm2139_vm4, %v2126_v29, %v14670_v58 }
 0x58a   : > { %v5360_v42 = vadd.f32 %v11825_v16, %v5359_v27  ;;  %v5866_v44 = vadd.f32 %v11825_v16, %v5865_v20  ;;  %3694 = vrot.lane.b32.xlu1 %v14668_v59, %s7244_s25  ;;  %v14671_v20 = vld [vmem:[#allocation270_spill] sm:$0xff] }
 0x58b   : > { %3408 = vrot.lane.b32.xlu0 %v3185_v15, %s7243_s24 }
 0x58c   : > { %6669 = vst.msk [vmem:[%s9373_s21 + $0x2f0] sm:$0xff] %vm194_vm0, %v5360_v42  ;;  %v2847_v54 = vpop.f32.mrf.mxu0  ;;  %v3667_v61 = vpop.permute.xlu1 %3666  ;;  %3984 = vrot.lane.b32.xlu2 %v3190_v0, %s7245_s26  ;;  %v11951_v42 = vsel %vm2236_vm5, %v2223_v24, %v14671_v20  ;;  %v14675_v20 = vld [vmem:[#allocation207_spill] sm:$0xff] }
 0x58d   : > { %6863 = vst.msk [vmem:[%s9373_s21 + $0x3e0] sm:$0xff] %vm194_vm0, %v5866_v44  ;;  %v2848_v15 = vadd.f32 %v11825_v16, %v2847_v54  ;;  %v4292_v41 = vsel %vm2139_vm4, %v4196_v1, %v3667_v61  ;;  %v4835_v37 = vpop.f32.mrf.mxu1  ;;  %v3381_v27 = vpop.permute.xlu0 %3380  ;;  %v7128_v54 = vld [vmem:[#allocation2 + $0x330] sm:$0xff]  ;;  %v7129_v1 = vld [vmem:[#allocation2 + $0x338] sm:$0xff] }
 0x58e   : > { %14672 = vst [vmem:[#allocation219_spill] sm:$0xff] %v11951_v42  ;;  %v4836_v39 = vadd.f32 %v11825_v16, %v4835_v37  ;;  %6589 = vmatmul.msk.f32.gmra.mxu2 %vm2340_vm6, %v14673_v47  ;;  %v11958_v29 = vsel %vm2236_vm5, %v4292_v41, %v11799_v49  ;;  %v11960_v44 = vpop.permute.xlu2 %3962  ;;  %v3276_v58 = vrot.slane %v7128_v54, 2  ;;  %v3277_v61 = vrot.slane %v7129_v1, 2  ;;  %v14674_v37 = vld [vmem:[#allocation92_spill] sm:$0xff] }
 0x58f   : > { %3001 = vst.msk [vmem:[%s9373_s21 + $0x818] sm:$0xff] %vm194_vm0, %v2848_v15  ;;  %6330 = vmatmul.msk.f32.gmra.mxu0 %vm2340_vm6, %v11951_v42  ;;  %6391 = vmatmul.msk.f32.gmra.mxu1 %vm2340_vm6, %v11877_v45  ;;  %v4197_v24 = vsel %vm194_vm0, %v14586_v51, %v3381_v27  ;;  %v7130_v45 = vld [vmem:[#allocation2 + $0x450] sm:$0xff]  ;;  %v14676_v51 = vld [vmem:[#allocation259_spill] sm:$0xff] }
 0x590   : > { %6472 = vst.msk [vmem:[%s9373_s21 + $0x1e8] sm:$0xff] %vm194_vm0, %v4836_v39  ;;  %6783 = vmatmul.msk.f32.gmra.mxu3 %vm2340_vm6, %v11958_v29  ;;  %v11979_v15 = vsel %vm3030_vm7, %v3276_v58, %v3277_v61  ;;  %v2127_v39 = vsel %vm194_vm0, %v7130_v45, %v14675_v20  ;;  %v7131_v42 = vld [vmem:[#allocation2 + $0x340] sm:$0x3]  ;;  %v14677_v20 = vld [vmem:[#allocation277_spill] sm:$0xff] }
 0x591   : > { %v5868_v49 = vpop.f32.mrf.mxu3  ;;  %v2224_v27 = vsel %vm2139_vm4, %v2127_v39, %v14676_v51  ;;  %v3279_v45 = vrot.slane %v7131_v42, 2 }
 0x592   : > { %v5869_v41 = vadd.f32 %v11825_v16, %v5868_v49  ;;  %3696 = vrot.lane.b32.xlu1 %v14674_v37, %s7244_s25 }
 0x593   : > { %3410 = vrot.lane.b32.xlu0 %v3188_v31, %s7243_s24  ;;  %v12015_v42 = vsel %vm3030_vm7, %v3277_v61, %v3279_v45 }
 0x594   : > { %6864 = vst.msk [vmem:[%s9373_s21 + $0x3e8] sm:$0xff] %vm194_vm0, %v5869_v41  ;;  %v2850_v47 = vpop.f32.mrf.mxu0  ;;  %v3669_v54 = vpop.permute.xlu1 %3668  ;;  %3986 = vrot.lane.b32.xlu2 %v11979_v15, %s7245_s26  ;;  %v11993_v41 = vsel %vm2236_vm5, %v2224_v27, %v14677_v20  ;;  %v14681_v27 = vld [vmem:[#allocation209_spill] sm:$0xff] }
 0x595   : > { %v2851_v31 = vadd.f32 %v11825_v16, %v2850_v47  ;;  %v4293_v58 = vsel %vm2139_vm4, %v4197_v24, %v3669_v54  ;;  %v4838_v1 = vpop.f32.mrf.mxu1  ;;  %v3383_v49 = vpop.permute.xlu0 %3382  ;;  %14678 = vst [vmem:[#allocation45_spill] sm:$0xff] %v11993_v41 }
 0x596   : > { %v4839_v43 = vadd.f32 %v11825_v16, %v4838_v1  ;;  %6590 = vmatmul.msk.f32.gmra.mxu2 %vm2340_vm6, %v14679_v60  ;;  %v12000_v39 = vsel %vm2236_vm5, %v4293_v58, %v11840_v11  ;;  %v12002_v47 = vpop.permute.xlu2 %3964  ;;  %v4198_v24 = vsel %vm194_vm0, %v14590_v53, %v3383_v49  ;;  %v14682_v53 = vld [vmem:[#allocation262_spill] sm:$0xff] }
 0x597   : > { %3002 = vst.msk [vmem:[%s9373_s21 + $0x820] sm:$0xff] %vm194_vm0, %v2851_v31  ;;  %6331 = vmatmul.msk.f32.gmra.mxu0 %vm2340_vm6, %v11993_v41  ;;  %6392 = vmatmul.msk.f32.gmra.mxu1 %vm2340_vm6, %v11916_v57  ;;  %v14680_v57 = vld [vmem:[#allocation59_spill] sm:$0xff] }
 0x598   : > { %6473 = vst.msk [vmem:[%s9373_s21 + $0x1f0] sm:$0xff] %vm194_vm0, %v4839_v43  ;;  %6784 = vmatmul.msk.f32.gmra.mxu3 %vm2340_vm6, %v12000_v39  ;;  %v7132_v43 = vld [vmem:[#allocation2 + $0x458] sm:$0xff] }
 0x599   : > { %v5362_v60 = vpop.f32.mrf.mxu2  ;;  %v5871_v11 = vpop.f32.mrf.mxu3  ;;  %v2128_v31 = vsel %vm194_vm0, %v7132_v43, %v14681_v27  ;;  %v14685_v43 = vld [vmem:[#allocation131_spill] sm:$0xff] }
 0x59a   : > { %v5363_v54 = vadd.f32 %v11825_v16, %v5362_v60  ;;  %v5872_v51 = vadd.f32 %v11825_v16, %v5871_v11  ;;  %3698 = vrot.lane.b32.xlu1 %v14680_v57, %s7244_s25  ;;  %v2225_v1 = vsel %vm2139_vm4, %v2128_v31, %v14682_v53  ;;  %v14683_v60 = vld [vmem:[#allocation118_spill] sm:$0xff] }
 0x59b   : > { %3412 = vrot.lane.b32.xlu0 %v3190_v0, %s7243_s24  ;;  %v12038_v11 = vsel %vm2236_vm5, %v2225_v1, %v14683_v60  ;;  %v14688_v60 = vld [vmem:[#allocation250_spill] sm:$0xff] }
 0x59c   : > { %6670 = vst.msk [vmem:[%s9373_s21 + $0x2f8] sm:$0xff] %vm194_vm0, %v5363_v54  ;;  %v2853_v61 = vpop.f32.mrf.mxu0  ;;  %v3671_v58 = vpop.permute.xlu1 %3670  ;;  %3988 = vrot.lane.b32.xlu2 %v12015_v42, %s7245_s26 }
 0x59d   : > { %6865 = vst.msk [vmem:[%s9373_s21 + $0x3f0] sm:$0xff] %vm194_vm0, %v5872_v51  ;;  %v2854_v0 = vadd.f32 %v11825_v16, %v2853_v61  ;;  %v4294_v49 = vsel %vm2139_vm4, %v4198_v24, %v3671_v58  ;;  %v4841_v45 = vpop.f32.mrf.mxu1  ;;  %v3385_v20 = vpop.permute.xlu0 %3384  ;;  %v12059_v61 = vld [vmem:[#allocation2 + $0x350] sm:$0xff] }
 0x59e   : > { %14684 = vst [vmem:[#allocation32_spill] sm:$0xff] %v12038_v11  ;;  %v4842_v54 = vadd.f32 %v11825_v16, %v4841_v45  ;;  %6591 = vmatmul.msk.f32.gmra.mxu2 %vm2340_vm6, %v14685_v43  ;;  %v12045_v27 = vsel %vm2236_vm5, %v4294_v49, %v11879_v50  ;;  %v12047_v51 = vpop.permute.xlu2 %3966  ;;  %v610_v50 = vld [vmem:[#allocation2 + $0x348] sm:$0xff]  ;;  %v4199_v58 = vsel %vm194_vm0, %v14596_v3, %v3385_v20  ;;  %v14687_v49 = vld [vmem:[#allocation199_spill] sm:$0xff] }
 0x59f   : > { %3003 = vst.msk [vmem:[%s9373_s21 + $0x828] sm:$0xff] %vm194_vm0, %v2854_v0  ;;  %6332 = vmatmul.msk.f32.gmra.mxu0 %vm2340_vm6, %v12038_v11  ;;  %6393 = vmatmul.msk.f32.gmra.mxu1 %vm2340_vm6, %v11958_v29  ;;  %v14686_v29 = vld [vmem:[#allocation64_spill] sm:$0xff]  ;;  %v5147_v43 = vrot.slane %v610_v50, 1 }
 0x5a0   : > { %6474 = vst.msk [vmem:[%s9373_s21 + $0x1f8] sm:$0xff] %vm194_vm0, %v4842_v54  ;;  %6785 = vmatmul.msk.f32.gmra.mxu3 %vm2340_vm6, %v12045_v27  ;;  %v7133_v0 = vld [vmem:[#allocation2 + $0x468] sm:$0xff] }
 0x5a1   : > { %v5365_v24 = vpop.f32.mrf.mxu2  ;;  %v5874_v31 = vpop.f32.mrf.mxu3  ;;  %v2129_v45 = vsel %vm194_vm0, %v7133_v0, %v14687_v49 }
 0x5a2   : > { %v5366_v53 = vadd.f32 %v11825_v16, %v5365_v24  ;;  %v5875_v1 = vadd.f32 %v11825_v16, %v5874_v31  ;;  %3700 = vrot.lane.b32.xlu1 %v14686_v29, %s7244_s25  ;;  %v2226_v54 = vsel %vm2139_vm4, %v2129_v45, %v14688_v60  ;;  %v5659_v45 = vrot.slane %v610_v50, 2  ;;  %v14689_v60 = vld [vmem:[#allocation272_spill] sm:$0xff] }
 0x5a3   : > { %5161 = vrot.lane.b32.xlu0 %v14680_v57, %s7243_s24  ;;  %v12084_v41 = vsel %vm2236_vm5, %v2226_v54, %v14689_v60 }
 0x5a4   : > { %6671 = vst.msk [vmem:[%s9373_s21 + $0x600] sm:$0xff] %vm194_vm0, %v5366_v53  ;;  %v2856_v3 = vpop.f32.mrf.mxu0  ;;  %v3673_v20 = vpop.permute.xlu1 %3672  ;;  %5179 = vrot.lane.b32.xlu2 %v610_v50, %s7244_s25  ;;  %v5660_v53 = vrot.slane %v12059_v61, 2 }
 0x5a5   : > { %6866 = vst.msk [vmem:[%s9373_s21 + $0x3f8] sm:$0xff] %vm194_vm0, %v5875_v1  ;;  %v2857_v31 = vadd.f32 %v11825_v16, %v2856_v3  ;;  %v4295_v0 = vsel %vm2139_vm4, %v4199_v58, %v3673_v20  ;;  %v4844_v49 = vpop.f32.mrf.mxu1  ;;  %v3387_v11 = vpop.permute.xlu0 %3386 }
 0x5a6   : > { %v4845_v24 = vadd.f32 %v11825_v16, %v4844_v49  ;;  %6592 = vmatmul.msk.f32.gmra.mxu2 %vm2340_vm6, %v10624_v5  ;;  %v12091_v1 = vsel %vm2236_vm5, %v4295_v0, %v11918_v10  ;;  %v12093_v3 = vpop.permute.xlu2 %3968  ;;  %v14690_v5 = vrot.slane %v12059_v61, 1  ;;  %v5661_v54 = vsel %vm3030_vm7, %v5659_v45, %v5660_v53 }
 0x5a7   : > { %3004 = vst.msk [vmem:[%s9373_s21 + $0x830] sm:$0xff] %vm194_vm0, %v2857_v31  ;;  %6333 = vmatmul.msk.f32.gmra.mxu0 %vm2340_vm6, %v12084_v41  ;;  %6394 = vmatmul.msk.f32.gmra.mxu1 %vm2340_vm6, %v12000_v39  ;;  %v4200_v20 = vsel %vm194_vm0, %v14601_v19, %v3387_v11  ;;  %v14691_v31 = vld [vmem:[#allocation210_spill] sm:$0xff] }
 0x5a8   : > { %6475 = vst.msk [vmem:[%s9373_s21 + $0x500] sm:$0xff] %vm194_vm0, %v4845_v24  ;;  %6786 = vmatmul.msk.f32.gmra.mxu3 %vm2340_vm6, %v12091_v1  ;;  %v5149_v10 = vsel %vm812_vm1, %v5147_v43, %v14690_v5  ;;  %v7134_v43 = vld [vmem:[#allocation2 + $0x470] sm:$0xff] }
 0x5a9   : > { %v5368_v50 = vpop.f32.mrf.mxu2  ;;  %v5877_v58 = vpop.f32.mrf.mxu3  ;;  %v2130_v0 = vsel %vm194_vm0, %v7134_v43, %v14691_v31  ;;  %v14692_v19 = vld [vmem:[#allocation58_spill] sm:$0xff] }
 0x5aa   : > { %v5369_v39 = vadd.f32 %v11825_v16, %v5368_v50  ;;  %v5878_v24 = vadd.f32 %v11825_v16, %v5877_v58  ;;  %5673 = vrot.lane.b32.xlu1 %v11979_v15, %s7243_s24  ;;  %v2227_v11 = vsel %vm2139_vm4, %v2130_v0, %v14692_v19  ;;  %v14693_v50 = vld [vmem:[#allocation220_spill] sm:$0xff]  ;;  %v14694_v0 = vld [vmem:[#allocation211_spill] sm:$0xff] }
 0x5ab   : > { %5691 = vrot.lane.b32.xlu0 %v5149_v10, %s7244_s25  ;;  %v12131_v58 = vsel %vm2236_vm5, %v2227_v11, %v14693_v50 }
 0x5ac   : > { %6672 = vst.msk [vmem:[%s9373_s21 + $0x608] sm:$0xff] %vm194_vm0, %v5369_v39  ;;  %v2859_v49 = vpop.f32.mrf.mxu0  ;;  %v3675_v45 = vpop.permute.xlu1 %3674  ;;  %5709 = vrot.lane.b32.xlu2 %v5661_v54, %s7245_s26 }
 0x5ad   : > { %6867 = vst.msk [vmem:[%s9373_s21 + $0x700] sm:$0xff] %vm194_vm0, %v5878_v24  ;;  %v2860_v15 = vadd.f32 %v11825_v16, %v2859_v49  ;;  %v4296_v60 = vsel %vm2139_vm4, %v4200_v20, %v3675_v45  ;;  %v3389_v5 = vpop.permute.xlu0 %3388 }
 0x5ae   : > { %6593 = vmatmul.msk.f32.gmra.mxu2 %vm2340_vm6, %v10659_v6  ;;  %v12137_v54 = vsel %vm2236_vm5, %v4296_v60, %v11960_v44  ;;  %v12139_v39 = vpop.permute.xlu2 %3970  ;;  %v612_v6 = vld [vmem:[#allocation2 + $0x358] sm:$0x3]  ;;  %v4201_v44 = vsel %vm194_vm0, %v14607_v21, %v3389_v5 }
 0x5af   : > { %3005 = vst.msk [vmem:[%s9373_s21 + $0x838] sm:$0xff] %vm194_vm0, %v2860_v15  ;;  %6334 = vmatmul.msk.f32.gmra.mxu0 %vm2340_vm6, %v12131_v58  ;;  %6395 = vmatmul.msk.f32.gmra.mxu1 %vm2340_vm6, %v12045_v27  ;;  %v7135_v27 = vld [vmem:[#allocation2 + $0x480] sm:$0xff]  ;;  %v5150_v21 = vrot.slane %v612_v6, 1 }
 0x5b0   : > { %6787 = vmatmul.msk.f32.gmra.mxu3 %vm2340_vm6, %v12137_v54  ;;  %v2131_v49 = vsel %vm194_vm0, %v7135_v27, %v14694_v0  ;;  %v14697_v0 = vld [vmem:[#allocation10_spill] sm:$0xff] }
 0x5b1   : > { %v5371_v20 = vpop.f32.mrf.mxu2 }
 0x5b2   : > { %v5372_v24 = vadd.f32 %v11825_v16, %v5371_v20  ;;  %5197 = vrot.lane.b32.xlu1 %v5149_v10, %s7245_s26  ;;  %v5880_v43 = vpop.f32.mrf.mxu3  ;;  %v14695_v10 = vld [vmem:[#allocation263_spill] sm:$0xff]  ;;  %v5662_v20 = vrot.slane %v612_v6, 2  ;;  %v14698_v6 = vrot.slane %v12059_v61, 1 }
 0x5b3   : > { %v5881_v31 = vadd.f32 %v11825_v16, %v5880_v43  ;;  %5163 = vrot.lane.b32.xlu0 %v14686_v29, %s7243_s24  ;;  %v2228_v11 = vsel %vm2139_vm4, %v2131_v49, %v14695_v10 }
 0x5b4   : > { %6673 = vst.msk [vmem:[%s9373_s21 + $0x610] sm:$0xff] %vm194_vm0, %v5372_v24  ;;  %v2862_v45 = vpop.f32.mrf.mxu0  ;;  %v3677_v19 = vpop.permute.xlu1 %3676  ;;  %5181 = vrot.lane.b32.xlu2 %v12059_v61, %s7244_s25  ;;  %v14696_v24 = vld [vmem:[#allocation18_spill] sm:$0xff] }
 0x5b5   : > { %6868 = vst.msk [vmem:[%s9373_s21 + $0x708] sm:$0xff] %vm194_vm0, %v5881_v31  ;;  %v2863_v15 = vadd.f32 %v11825_v16, %v2862_v45  ;;  %v4297_v60 = vsel %vm2139_vm4, %v4201_v44, %v3677_v19  ;;  %v4847_v5 = vpop.f32.mrf.mxu1  ;;  %v3391_v50 = vpop.permute.xlu0 %3390  ;;  %v12170_v43 = vsel %vm2236_vm5, %v2228_v11, %v14696_v24  ;;  %v5663_v45 = vsel %vm3030_vm7, %v5660_v53, %v5662_v20  ;;  %v14699_v11 = vld [vmem:[#allocation202_spill] sm:$0xff] }
 0x5b6   : > { %v4848_v27 = vadd.f32 %v11825_v16, %v4847_v5  ;;  %6594 = vmatmul.msk.f32.gmra.mxu2 %vm2340_vm6, %v14697_v0  ;;  %v12177_v49 = vsel %vm2236_vm5, %v4297_v60, %v12002_v47  ;;  %v12179_v31 = vpop.permute.xlu2 %3972  ;;  %v5151_v47 = vsel %vm812_vm1, %v14698_v6, %v5150_v21  ;;  %v4202_v19 = vsel %vm194_vm0, %v14612_v30, %v3391_v50  ;;  %v14700_v21 = vld [vmem:[#allocation253_spill] sm:$0xff]  ;;  %v7137_v5 = vld [vmem:[#allocation2 + $0x378] sm:$0xff]  ;;  %v7138_v50 = vld [vmem:[#allocation2 + $0x380] sm:$0xff] }
 0x5b7   : > { %3006 = vst.msk [vmem:[%s9373_s21 + $0x840] sm:$0xff] %vm194_vm0, %v2863_v15  ;;  %6335 = vmatmul.msk.f32.gmra.mxu0 %vm2340_vm6, %v12170_v43  ;;  %6396 = vmatmul.msk.f32.gmra.mxu1 %vm2340_vm6, %v12091_v1  ;;  %v7136_v1 = vld [vmem:[#allocation2 + $0x488] sm:$0xff]  ;;  %v3196_v30 = vrot.slane %v7137_v5, 2  ;;  %v3197_v20 = vrot.slane %v7138_v50, 2  ;;  %v7139_v6 = vld [vmem:[#allocation2 + $0x390] sm:$0xff] }
 0x5b8   : > { %6476 = vst.msk [vmem:[%s9373_s21 + $0x508] sm:$0xff] %vm194_vm0, %v4848_v27  ;;  %6788 = vmatmul.msk.f32.gmra.mxu3 %vm2340_vm6, %v12177_v49  ;;  %v2132_v15 = vsel %vm194_vm0, %v7136_v1, %v14699_v11  ;;  %v12212_v1 = vld [vmem:[#allocation2 + $0x398] sm:$0xff] }
 0x5b9   : > { %v5374_v44 = vpop.f32.mrf.mxu2  ;;  %v2229_v60 = vsel %vm2139_vm4, %v2132_v15, %v14700_v21  ;;  %v14701_v11 = vld [vmem:[#allocation274_spill] sm:$0xff] }
 0x5ba   : > { %v5375_v10 = vadd.f32 %v11825_v16, %v5374_v44  ;;  %5675 = vrot.lane.b32.xlu1 %v12015_v42, %s7243_s24  ;;  %v3201_v44 = vrot.slane %v7139_v6, 2  ;;  %v12217_v15 = vsel %vm2236_vm5, %v2229_v60, %v14701_v11  ;;  %v12239_v60 = vsel %vm3030_vm7, %v3196_v30, %v3197_v20  ;;  %v14704_v30 = vld [vmem:[#allocation212_spill] sm:$0xff] }
 0x5bb   : > { %5693 = vrot.lane.b32.xlu0 %v5151_v47, %s7244_s25  ;;  %14702 = vst [vmem:[#allocation137_spill] sm:$0xff] %v12217_v15  ;;  %v12257_v11 = vld [vmem:[#allocation2 + $0x368] sm:$0xff] }
 0x5bc   : > { %6674 = vst.msk [vmem:[%s9373_s21 + $0x618] sm:$0xff] %vm194_vm0, %v5375_v10  ;;  %v2865_v61 = vpop.f32.mrf.mxu0  ;;  %v3679_v53 = vpop.permute.xlu1 %3678  ;;  %5711 = vrot.lane.b32.xlu2 %v5663_v45, %s7245_s26  ;;  %v13928_v10 = vrot.slane %v12212_v1, 2  ;;  %v14703_v45 = vld [vmem:[#allocation227_spill] sm:$0xff] }
 0x5bd   : > { %v2866_v42 = vadd.f32 %v11825_v16, %v2865_v61  ;;  %v4298_v24 = vsel %vm2139_vm4, %v4202_v19, %v3679_v53  ;;  %v4850_v27 = vpop.f32.mrf.mxu1  ;;  %v3393_v0 = vpop.permute.xlu0 %3392 }
 0x5be   : > { %v4851_v21 = vadd.f32 %v11825_v16, %v4850_v27  ;;  %6595 = vmatmul.msk.f32.gmra.mxu2 %vm2340_vm6, %v14703_v45  ;;  %v12224_v19 = vsel %vm2236_vm5, %v4298_v24, %v12047_v51  ;;  %v12226_v61 = vpop.permute.xlu2 %3974  ;;  %v12244_v53 = vsel %vm3030_vm7, %v3201_v44, %v13928_v10  ;;  %v4203_v5 = vsel %vm194_vm0, %v14617_v36, %v3393_v0  ;;  %v7142_v36 = vld [vmem:[#allocation2 + $0x360] sm:$0xff] }
 0x5bf   : > { %3007 = vst.msk [vmem:[%s9373_s21 + $0x848] sm:$0xff] %vm194_vm0, %v2866_v42  ;;  %6336 = vmatmul.msk.f32.gmra.mxu0 %vm2340_vm6, %v12217_v15  ;;  %6397 = vmatmul.msk.f32.gmra.mxu1 %vm2340_vm6, %v12137_v54  ;;  %v7141_v42 = vld [vmem:[#allocation2 + $0x498] sm:$0xff]  ;;  %v3191_v0 = vrot.slane %v7142_v36, 2 }
 0x5c0   : > { %6477 = vst.msk [vmem:[%s9373_s21 + $0x510] sm:$0xff] %vm194_vm0, %v4851_v21  ;;  %6789 = vmatmul.msk.f32.gmra.mxu3 %vm2340_vm6, %v12224_v19  ;;  %v2133_v24 = vsel %vm194_vm0, %v7141_v42, %v14704_v30  ;;  %v14705_v21 = vld [vmem:[#allocation264_spill] sm:$0xff]  ;;  %v14706_v10 = vld [vmem:[#allocation279_spill] sm:$0xff] }
 0x5c1   : > { %v5377_v51 = vpop.f32.mrf.mxu2  ;;  %v2230_v45 = vsel %vm2139_vm4, %v2133_v24, %v14705_v21  ;;  %v7144_v30 = vld [vmem:[#allocation2 + $0x388] sm:$0x3]  ;;  %v7145_v21 = vld [vmem:[#allocation2 + $0x4a0] sm:$0xff] }
 0x5c2   : > { %v5378_v50 = vadd.f32 %v11825_v16, %v5377_v51  ;;  %5199 = vrot.lane.b32.xlu1 %v5151_v47, %s7245_s26  ;;  %v3199_v36 = vrot.slane %v7144_v30, 2  ;;  %v12268_v15 = vsel %vm2236_vm5, %v2230_v45, %v14706_v10  ;;  %v14709_v45 = vld [vmem:[#allocation213_spill] sm:$0xff] }
 0x5c3   : > { %v5883_v54 = vpop.f32.mrf.mxu3  ;;  %3418 = vrot.lane.b32.xlu0 %v12239_v60, %s7243_s24 }
 0x5c4   : > { %6675 = vst.msk [vmem:[%s9373_s21 + $0x620] sm:$0xff] %vm194_vm0, %v5378_v50  ;;  %v5884_v27 = vadd.f32 %v11825_v16, %v5883_v54  ;;  %v2868_v6 = vpop.f32.mrf.mxu0  ;;  %v3681_v44 = vpop.permute.xlu1 %3680  ;;  %3994 = vrot.lane.b32.xlu2 %v12244_v53, %s7245_s26 }
 0x5c5   : > { %v2869_v51 = vadd.f32 %v11825_v16, %v2868_v6  ;;  %v4299_v50 = vsel %vm2139_vm4, %v4203_v5, %v3681_v44  ;;  %v4853_v54 = vpop.f32.mrf.mxu1  ;;  %v3395_v42 = vpop.permute.xlu0 %3394 }
 0x5c6   : > { %6869 = vst.msk [vmem:[%s9373_s21 + $0x710] sm:$0xff] %vm194_vm0, %v5884_v27  ;;  %v4854_v47 = vadd.f32 %v11825_v16, %v4853_v54  ;;  %6596 = vmatmul.msk.f32.gmra.mxu2 %vm2340_vm6, %v10802_v26  ;;  %v12277_v24 = vsel %vm2236_vm5, %v4299_v50, %v12093_v3  ;;  %v12279_v5 = vpop.permute.xlu2 %3976  ;;  %v14707_v26 = vrot.slane %v12257_v11, 2  ;;  %v12295_v27 = vsel %vm3030_vm7, %v3197_v20, %v3199_v36  ;;  %v14710_v50 = vld [vmem:[#allocation265_spill] sm:$0xff] }
 0x5c7   : > { %3008 = vst.msk [vmem:[%s9373_s21 + $0x850] sm:$0xff] %vm194_vm0, %v2869_v51  ;;  %6337 = vmatmul.msk.f32.gmra.mxu0 %vm2340_vm6, %v12268_v15  ;;  %6398 = vmatmul.msk.f32.gmra.mxu1 %vm2340_vm6, %v12177_v49  ;;  %v4204_v6 = vsel %vm194_vm0, %v14622_v2, %v3395_v42  ;;  %v14708_v49 = vld [vmem:[#allocation99_spill] sm:$0xff] }
 0x5c8   : > { %6478 = vst.msk [vmem:[%s9373_s21 + $0x518] sm:$0xff] %vm194_vm0, %v4854_v47  ;;  %6790 = vmatmul.msk.f32.gmra.mxu3 %vm2340_vm6, %v12277_v24  ;;  %v3193_v3 = vsel %vm3030_vm7, %v3191_v0, %v14707_v26  ;;  %v2134_v0 = vsel %vm194_vm0, %v7145_v21, %v14709_v45 }
 0x5c9   : > { %v5380_v10 = vpop.f32.mrf.mxu2  ;;  %v2231_v54 = vsel %vm2139_vm4, %v2134_v0, %v14710_v50  ;;  %v7147_v50 = vld [vmem:[#allocation2 + $0x4b0] sm:$0xff] }
 0x5ca   : > { %v5381_v44 = vadd.f32 %v11825_v16, %v5380_v10  ;;  %3706 = vrot.lane.b32.xlu1 %v14708_v49, %s7244_s25 }
 0x5cb   : > { %v5886_v47 = vpop.f32.mrf.mxu3  ;;  %3414 = vrot.lane.b32.xlu0 %v3193_v3, %s7243_s24  ;;  %v7146_v3 = vld [vmem:[#allocation2 + $0x3a0] sm:$0x3] }
 0x5cc   : > { %6676 = vst.msk [vmem:[%s9373_s21 + $0x628] sm:$0xff] %vm194_vm0, %v5381_v44  ;;  %v5887_v20 = vadd.f32 %v11825_v16, %v5886_v47  ;;  %v2871_v51 = vpop.f32.mrf.mxu0  ;;  %v3683_v2 = vpop.permute.xlu1 %3682  ;;  %3420 = vrot.lane.b32.xlu2 %v12295_v27, %s7243_s24  ;;  %v3204_v10 = vrot.slane %v7146_v3, 2  ;;  %v14711_v44 = vld [vmem:[#allocation20_spill] sm:$0xff] }
 0x5cd   : > { %v2872_v42 = vadd.f32 %v11825_v16, %v2871_v51  ;;  %v4300_v30 = vsel %vm2139_vm4, %v4204_v6, %v3683_v2  ;;  %v4856_v36 = vpop.f32.mrf.mxu1  ;;  %v3397_v26 = vpop.permute.xlu0 %3396  ;;  %v12316_v47 = vsel %vm2236_vm5, %v2231_v54, %v14711_v44  ;;  %v14713_v2 = vld [vmem:[#allocation98_spill] sm:$0xff]  ;;  %v14714_v54 = vld [vmem:[#allocation205_spill] sm:$0xff]  ;;  %v14715_v3 = vld [vmem:[#allocation256_spill] sm:$0xff] }
 0x5ce   : > { %6870 = vst.msk [vmem:[%s9373_s21 + $0x718] sm:$0xff] %vm194_vm0, %v5887_v20  ;;  %v4857_v21 = vadd.f32 %v11825_v16, %v4856_v36  ;;  %6597 = vmatmul.msk.f32.gmra.mxu2 %vm2340_vm6, %v10845_v13  ;;  %v12325_v45 = vsel %vm2236_vm5, %v4300_v30, %v12139_v39  ;;  %v12327_v6 = vpop.permute.xlu2 %3978  ;;  %v14712_v39 = vrot.slane %v12212_v1, 2  ;;  %v4205_v20 = vsel %vm194_vm0, %v14627_v17, %v3397_v26  ;;  %v7148_v36 = vld [vmem:[#allocation2 + $0x370] sm:$0x3] }
 0x5cf   : > { %3009 = vst.msk [vmem:[%s9373_s21 + $0x858] sm:$0xff] %vm194_vm0, %v2872_v42  ;;  %6338 = vmatmul.msk.f32.gmra.mxu0 %vm2340_vm6, %v12316_v47  ;;  %6399 = vmatmul.msk.f32.gmra.mxu1 %vm2340_vm6, %v12224_v19  ;;  %v2135_v1 = vsel %vm194_vm0, %v7147_v50, %v14714_v54  ;;  %v3194_v26 = vrot.slane %v7148_v36, 2  ;;  %v14719_v36 = vld [vmem:[#allocation214_spill] sm:$0xff] }
 0x5d0   : > { %6479 = vst.msk [vmem:[%s9373_s21 + $0x520] sm:$0xff] %vm194_vm0, %v4857_v21  ;;  %6791 = vmatmul.msk.f32.gmra.mxu3 %vm2340_vm6, %v12325_v45  ;;  %v12342_v0 = vsel %vm3030_vm7, %v14712_v39, %v3204_v10  ;;  %v14716_v39 = vld [vmem:[#allocation276_spill] sm:$0xff] }
 0x5d1   : > { %v5383_v13 = vpop.f32.mrf.mxu2 }
 0x5d2   : > { %v5384_v51 = vadd.f32 %v11825_v16, %v5383_v13  ;;  %3702 = vrot.lane.b32.xlu1 %v14713_v2, %s7244_s25 }
 0x5d3   : > { %v5889_v19 = vpop.f32.mrf.mxu3  ;;  %3990 = vrot.lane.b32.xlu0 %v12239_v60, %s7245_s26  ;;  %v2232_v60 = vsel %vm2139_vm4, %v2135_v1, %v14715_v3 }
 0x5d4   : > { %6677 = vst.msk [vmem:[%s9373_s21 + $0x630] sm:$0xff] %vm194_vm0, %v5384_v51  ;;  %v5890_v42 = vadd.f32 %v11825_v16, %v5889_v19  ;;  %v2874_v30 = vpop.f32.mrf.mxu0  ;;  %v3685_v17 = vpop.permute.xlu1 %3684  ;;  %3996 = vrot.lane.b32.xlu2 %v12342_v0, %s7245_s26  ;;  %v12364_v51 = vsel %vm2236_vm5, %v2232_v60, %v14716_v39  ;;  %v14720_v60 = vld [vmem:[#allocation266_spill] sm:$0xff] }
 0x5d5   : > { %v2875_v10 = vadd.f32 %v11825_v16, %v2874_v30  ;;  %v4301_v44 = vsel %vm2139_vm4, %v4205_v20, %v3685_v17  ;;  %v4859_v21 = vpop.f32.mrf.mxu1  ;;  %v3399_v13 = vpop.permute.xlu0 %3398  ;;  %v14718_v30 = vld [vmem:[#allocation104_spill] sm:$0xff]  ;;  %v7149_v17 = vld [vmem:[#allocation2 + $0x4b8] sm:$0xff] }
 0x5d6   : > { %6871 = vst.msk [vmem:[%s9373_s21 + $0x720] sm:$0xff] %vm194_vm0, %v5890_v42  ;;  %v4860_v19 = vadd.f32 %v11825_v16, %v4859_v21  ;;  %6598 = vmatmul.msk.f32.gmra.mxu2 %vm2340_vm6, %v10893_v8  ;;  %v12373_v50 = vsel %vm2236_vm5, %v4301_v44, %v12179_v31  ;;  %v12375_v54 = vpop.permute.xlu2 %3980  ;;  %v14717_v8 = vrot.slane %v12257_v11, 2  ;;  %v4206_v1 = vsel %vm194_vm0, %v14632_v46, %v3399_v13 }
 0x5d7   : > { %3010 = vst.msk [vmem:[%s9373_s21 + $0x860] sm:$0xff] %vm194_vm0, %v2875_v10  ;;  %6339 = vmatmul.msk.f32.gmra.mxu0 %vm2340_vm6, %v12364_v51  ;;  %6400 = vmatmul.msk.f32.gmra.mxu1 %vm2340_vm6, %v12277_v24  ;;  %v2136_v3 = vsel %vm194_vm0, %v7149_v17, %v14719_v36 }
 0x5d8   : > { %6480 = vst.msk [vmem:[%s9373_s21 + $0x528] sm:$0xff] %vm194_vm0, %v4860_v19  ;;  %6792 = vmatmul.msk.f32.gmra.mxu3 %vm2340_vm6, %v12373_v50  ;;  %v3195_v31 = vsel %vm3030_vm7, %v14717_v8, %v3194_v26  ;;  %v2233_v10 = vsel %vm2139_vm4, %v2136_v3, %v14720_v60  ;;  %v14721_v19 = vld [vmem:[#allocation19_spill] sm:$0xff] }
 0x5d9   : > { %v5386_v20 = vpop.f32.mrf.mxu2  ;;  %v12409_v8 = vsel %vm2236_vm5, %v2233_v10, %v14721_v19  ;;  %v14722_v3 = vld [vmem:[#allocation103_spill] sm:$0xff] }
 0x5da   : > { %v5387_v42 = vadd.f32 %v11825_v16, %v5386_v20  ;;  %3708 = vrot.lane.b32.xlu1 %v14718_v30, %s7244_s25 }
 0x5db   : > { %v5892_v24 = vpop.f32.mrf.mxu3  ;;  %3416 = vrot.lane.b32.xlu0 %v3195_v31, %s7243_s24 }
 0x5dc   : > { %6678 = vst.msk [vmem:[%s9373_s21 + $0x638] sm:$0xff] %vm194_vm0, %v5387_v42  ;;  %v5893_v11 = vadd.f32 %v11825_v16, %v5892_v24  ;;  %v2877_v26 = vpop.f32.mrf.mxu0  ;;  %v3687_v46 = vpop.permute.xlu1 %3686  ;;  %3422 = vrot.lane.b32.xlu2 %v12244_v53, %s7243_s24  ;;  %v7151_v24 = vld [vmem:[#allocation2 + $0x3b0] sm:$0xff] }
 0x5dd   : > { %v2878_v44 = vadd.f32 %v11825_v16, %v2877_v26  ;;  %v4302_v21 = vsel %vm2139_vm4, %v4206_v1, %v3687_v46  ;;  %v4862_v13 = vpop.f32.mrf.mxu1  ;;  %v3401_v39 = vpop.permute.xlu0 %3400  ;;  %v7150_v1 = vld [vmem:[#allocation2 + $0x3a8] sm:$0xff]  ;;  %v3207_v17 = vrot.slane %v7151_v24, 2  ;;  %v14723_v46 = vld [vmem:[#allocation215_spill] sm:$0xff] }
 0x5de   : > { %6872 = vst.msk [vmem:[%s9373_s21 + $0x728] sm:$0xff] %vm194_vm0, %v5893_v11  ;;  %v4863_v31 = vadd.f32 %v11825_v16, %v4862_v13  ;;  %6599 = vmatmul.msk.f32.gmra.mxu2 %vm2340_vm6, %v10938_v62  ;;  %v12418_v53 = vsel %vm2236_vm5, %v4302_v21, %v12226_v61  ;;  %v12420_v20 = vpop.permute.xlu2 %3982  ;;  %v3206_v42 = vrot.slane %v7150_v1, 2  ;;  %v4207_v61 = vsel %vm194_vm0, %v14638_v22, %v3401_v39  ;;  %v7152_v26 = vld [vmem:[#allocation2 + $0x4c8] sm:$0xff] }
 0x5df   : > { %3011 = vst.msk [vmem:[%s9373_s21 + $0x868] sm:$0xff] %vm194_vm0, %v2878_v44  ;;  %6340 = vmatmul.msk.f32.gmra.mxu0 %vm2340_vm6, %v12409_v8  ;;  %6401 = vmatmul.msk.f32.gmra.mxu1 %vm2340_vm6, %v12325_v45  ;;  %v2137_v60 = vsel %vm194_vm0, %v7152_v26, %v14723_v46  ;;  %v14724_v21 = vld [vmem:[#allocation53_spill] sm:$0xff]  ;;  %v14725_v1 = vld [vmem:[#allocation96_spill] sm:$0xff] }
 0x5e0   : > { %6481 = vst.msk [vmem:[%s9373_s21 + $0x530] sm:$0xff] %vm194_vm0, %v4863_v31  ;;  %6793 = vmatmul.msk.f32.gmra.mxu3 %vm2340_vm6, %v12418_v53  ;;  %v12440_v11 = vsel %vm3030_vm7, %v3206_v42, %v3207_v17  ;;  %v14726_v46 = vld [vmem:[#allocation109_spill] sm:$0xff] }
 0x5e1   : > { %v5389_v62 = vpop.f32.mrf.mxu2 }
 0x5e2   : > { %v5390_v36 = vadd.f32 %v11825_v16, %v5389_v62  ;;  %3704 = vrot.lane.b32.xlu1 %v14722_v3, %s7244_s25 }
 0x5e3   : > { %v5895_v45 = vpop.f32.mrf.mxu3  ;;  %3992 = vrot.lane.b32.xlu0 %v12295_v27, %s7245_s26  ;;  %v2234_v27 = vsel %vm2139_vm4, %v2137_v60, %v14724_v21 }
 0x5e4   : > { %6679 = vst.msk [vmem:[%s9373_s21 + $0x640] sm:$0xff] %vm194_vm0, %v5390_v36  ;;  %v5896_v22 = vadd.f32 %v11825_v16, %v5895_v45  ;;  %v2880_v10 = vpop.f32.mrf.mxu0  ;;  %v3689_v44 = vpop.permute.xlu1 %3688  ;;  %3998 = vrot.lane.b32.xlu2 %v12440_v11, %s7245_s26  ;;  %v12455_v42 = vsel %vm2236_vm5, %v2234_v27, %v14725_v1  ;;  %v14729_v1 = vld [vmem:[#allocation278_spill] sm:$0xff] }
 0x5e5   : > { %v2881_v13 = vadd.f32 %v11825_v16, %v2880_v10  ;;  %v4303_v39 = vsel %vm2139_vm4, %v4207_v61, %v3689_v44  ;;  %v4865_v19 = vpop.f32.mrf.mxu1  ;;  %v3403_v31 = vpop.permute.xlu0 %3402  ;;  %v7153_v61 = vld [vmem:[#allocation2 + $0x3b8] sm:$0x3]  ;;  %v14727_v10 = vld [vmem:[#allocation208_spill] sm:$0xff] }
 0x5e6   : > { %6873 = vst.msk [vmem:[%s9373_s21 + $0x730] sm:$0xff] %vm194_vm0, %v5896_v22  ;;  %v4866_v24 = vadd.f32 %v11825_v16, %v4865_v19  ;;  %6600 = vmatmul.msk.f32.gmra.mxu2 %vm2340_vm6, %v10981_v18  ;;  %v12464_v62 = vsel %vm2236_vm5, %v4303_v39, %v12279_v5  ;;  %v12466_v36 = vpop.permute.xlu2 %3984  ;;  %v3209_v45 = vrot.slane %v7153_v61, 2  ;;  %v4208_v5 = vsel %vm194_vm0, %v14644_v34, %v3403_v31  ;;  %v7154_v22 = vld [vmem:[#allocation2 + $0x4d0] sm:$0xff] }
 0x5e7   : > { %3012 = vst.msk [vmem:[%s9373_s21 + $0x870] sm:$0xff] %vm194_vm0, %v2881_v13  ;;  %6341 = vmatmul.msk.f32.gmra.mxu0 %vm2340_vm6, %v12455_v42  ;;  %6402 = vmatmul.msk.f32.gmra.mxu1 %vm2340_vm6, %v12373_v50  ;;  %v2138_v44 = vsel %vm194_vm0, %v7154_v22, %v14727_v10  ;;  %v14728_v13 = vld [vmem:[#allocation260_spill] sm:$0xff] }
 0x5e8   : > { %6482 = vst.msk [vmem:[%s9373_s21 + $0x538] sm:$0xff] %vm194_vm0, %v4866_v24  ;;  %6794 = vmatmul.msk.f32.gmra.mxu3 %vm2340_vm6, %v12464_v62  ;;  %v3210_v50 = vsel %vm3030_vm7, %v3207_v17, %v3209_v45  ;;  %v2235_v39 = vsel %vm2139_vm4, %v2138_v44, %v14728_v13  ;;  %v14730_v44 = vld [vmem:[#allocation105_spill] sm:$0xff] }
 0x5e9   : > { %v5392_v18 = vpop.f32.mrf.mxu2  ;;  %v12498_v24 = vsel %vm2236_vm5, %v2235_v39, %v14729_v1  ;;  %v7157_v1 = vld [vmem:[#allocation2 + $0x3d0] sm:$0x3] }
 0x5ea   : > { %v5393_v26 = vadd.f32 %v11825_v16, %v5392_v18  ;;  %3710 = vrot.lane.b32.xlu1 %v14726_v46, %s7244_s25 }
 0x5eb   : > { %v5898_v60 = vpop.f32.mrf.mxu3  ;;  %3424 = vrot.lane.b32.xlu0 %v12342_v0, %s7243_s24 }
 0x5ec   : > { %6680 = vst.msk [vmem:[%s9373_s21 + $0x648] sm:$0xff] %vm194_vm0, %v5393_v26  ;;  %v5899_v34 = vadd.f32 %v11825_v16, %v5898_v60  ;;  %v2883_v21 = vpop.f32.mrf.mxu0  ;;  %v3691_v27 = vpop.permute.xlu1 %3690  ;;  %4000 = vrot.lane.b32.xlu2 %v3210_v50, %s7245_s26  ;;  %v7156_v60 = vld [vmem:[#allocation2 + $0x3c8] sm:$0xff] }
 0x5ed   : > { %v2884_v0 = vadd.f32 %v11825_v16, %v2883_v21  ;;  %v4304_v17 = vsel %vm2139_vm4, %v4208_v5, %v3691_v27  ;;  %v4868_v19 = vpop.f32.mrf.mxu1  ;;  %v3405_v31 = vpop.permute.xlu0 %3404  ;;  %v7155_v5 = vld [vmem:[#allocation2 + $0x3c0] sm:$0xff]  ;;  %v3212_v22 = vrot.slane %v7156_v60, 2 }
 0x5ee   : > { %6874 = vst.msk [vmem:[%s9373_s21 + $0x738] sm:$0xff] %vm194_vm0, %v5899_v34  ;;  %v4869_v61 = vadd.f32 %v11825_v16, %v4868_v19  ;;  %6601 = vmatmul.msk.f32.gmra.mxu2 %vm2340_vm6, %v11026_v28  ;;  %v4400_v45 = vsel %vm2236_vm5, %v4304_v17, %v12327_v6  ;;  %v12507_v18 = vpop.permute.xlu2 %3986  ;;  %v3211_v26 = vrot.slane %v7155_v5, 2  ;;  %v4209_v6 = vsel %vm194_vm0, %v14650_v9, %v3405_v31 }
 0x5ef   : > { %3013 = vst.msk [vmem:[%s9373_s21 + $0x878] sm:$0xff] %vm194_vm0, %v2884_v0  ;;  %6342 = vmatmul.msk.f32.gmra.mxu0 %vm2340_vm6, %v12498_v24  ;;  %6403 = vmatmul.msk.f32.gmra.mxu1 %vm2340_vm6, %v12418_v53 }
 0x5f0   : > { %6483 = vst.msk [vmem:[%s9373_s21 + $0x540] sm:$0xff] %vm194_vm0, %v4869_v61  ;;  %6795 = vmatmul.msk.f32.gmra.mxu3 %vm2340_vm6, %v4400_v45  ;;  %v3213_v53 = vsel %vm3030_vm7, %v3211_v26, %v3212_v22  ;;  %v3214_v61 = vrot.slane %v7157_v1, 2  ;;  %v14731_v26 = vld [vmem:[#allocation110_spill] sm:$0xff]  ;;  %v14732_v1 = vld [vmem:[#allocation115_spill] sm:$0xff] }
 0x5f1   : > { %v5395_v28 = vpop.f32.mrf.mxu2 }
 0x5f2   : > { %v5396_v10 = vadd.f32 %v11825_v16, %v5395_v28  ;;  %3712 = vrot.lane.b32.xlu1 %v14730_v44, %s7244_s25 }
 0x5f3   : > { %v5901_v34 = vpop.f32.mrf.mxu3  ;;  %3426 = vrot.lane.b32.xlu0 %v12440_v11, %s7243_s24 }
 0x5f4   : > { %6681 = vst.msk [vmem:[%s9373_s21 + $0x650] sm:$0xff] %vm194_vm0, %v5396_v10  ;;  %v5902_v21 = vadd.f32 %v11825_v16, %v5901_v34  ;;  %v2886_v27 = vpop.f32.mrf.mxu0  ;;  %v3693_v13 = vpop.permute.xlu1 %3692  ;;  %4002 = vrot.lane.b32.xlu2 %v3213_v53, %s7245_s26 }
 0x5f5   : > { %v2887_v9 = vadd.f32 %v11825_v16, %v2886_v27  ;;  %v4305_v39 = vsel %vm2139_vm4, %v4209_v6, %v3693_v13  ;;  %v4871_v0 = vpop.f32.mrf.mxu1  ;;  %v3407_v17 = vpop.permute.xlu0 %3406 }
 0x5f6   : > { %6875 = vst.msk [vmem:[%s9373_s21 + $0x740] sm:$0xff] %vm194_vm0, %v5902_v21  ;;  %v4872_v11 = vadd.f32 %v11825_v16, %v4871_v0  ;;  %6602 = vmatmul.msk.f32.gmra.mxu2 %vm2340_vm6, %v11069_v33  ;;  %v4401_v19 = vsel %vm2236_vm5, %v4305_v39, %v12375_v54  ;;  %v12539_v31 = vpop.permute.xlu2 %3988  ;;  %v4210_v33 = vsel %vm194_vm0, %v14656_v63, %v3407_v17  ;;  %v7159_v0 = vld [vmem:[#allocation2 + $0x3e0] sm:$0xff] }
 0x5f7   : > { %3014 = vst.msk [vmem:[%s9373_s21 + $0x880] sm:$0xff] %vm194_vm0, %v2887_v9  ;;  %6404 = vmatmul.msk.f32.gmra.mxu1 %vm2340_vm6, %v12464_v62  ;;  %v3215_v62 = vsel %vm3030_vm7, %v3212_v22, %v3214_v61  ;;  %v7158_v9 = vld [vmem:[#allocation2 + $0x3d8] sm:$0xff]  ;;  %v3217_v17 = vrot.slane %v7159_v0, 2 }
 0x5f8   : > { %6484 = vst.msk [vmem:[%s9373_s21 + $0x548] sm:$0xff] %vm194_vm0, %v4872_v11  ;;  %6796 = vmatmul.msk.f32.gmra.mxu3 %vm2340_vm6, %v4401_v19  ;;  %v3216_v39 = vrot.slane %v7158_v9, 2 }
 0x5f9   : > { %v5398_v5 = vpop.f32.mrf.mxu2 }
 0x5fa   : > { %v5399_v54 = vadd.f32 %v11825_v16, %v5398_v5  ;;  %3714 = vrot.lane.b32.xlu1 %v14731_v26, %s7244_s25  ;;  %v3218_v61 = vsel %vm3030_vm7, %v3216_v39, %v3217_v17 }
 0x5fb   : > { %v5904_v60 = vpop.f32.mrf.mxu3  ;;  %3428 = vrot.lane.b32.xlu0 %v3210_v50, %s7243_s24 }
 0x5fc   : > { %6682 = vst.msk [vmem:[%s9373_s21 + $0x658] sm:$0xff] %vm194_vm0, %v5399_v54  ;;  %v5905_v28 = vadd.f32 %v11825_v16, %v5904_v60  ;;  %v2889_v6 = vpop.f32.mrf.mxu0  ;;  %v3695_v10 = vpop.permute.xlu1 %3694  ;;  %4004 = vrot.lane.b32.xlu2 %v3215_v62, %s7245_s26 }
 0x5fd   : > { %v2890_v63 = vadd.f32 %v11825_v16, %v2889_v6  ;;  %v4306_v34 = vsel %vm2139_vm4, %v4210_v33, %v3695_v10  ;;  %v4874_v21 = vpop.f32.mrf.mxu1  ;;  %v3409_v27 = vpop.permute.xlu0 %3408 }
 0x5fe   : > { %6876 = vst.msk [vmem:[%s9373_s21 + $0x748] sm:$0xff] %vm194_vm0, %v5905_v28  ;;  %v4875_v50 = vadd.f32 %v11825_v16, %v4874_v21  ;;  %6603 = vmatmul.msk.f32.gmra.mxu2 %vm2340_vm6, %v11116_v56  ;;  %v4402_v22 = vsel %vm2236_vm5, %v4306_v34, %v12420_v20  ;;  %v12568_v13 = vpop.permute.xlu2 %5179  ;;  %v4211_v56 = vsel %vm194_vm0, %v14662_v52, %v3409_v27  ;;  %v12578_v20 = vld [vmem:[#allocation3] ss:$0 sm:$0xff]  ;;  %v7161_v34 = vld [vmem:[#allocation2 + $0x3e8] sm:$0x3] }
 0x5ff   : > { %3015 = vst.msk [vmem:[%s9373_s21 + $0x888] sm:$0xff] %vm194_vm0, %v2890_v63  ;;  %6405 = vmatmul.msk.f32.gmra.mxu1 %vm2340_vm6, %v4400_v45  ;;  %v3219_v21 = vrot.slane %v7161_v34, 2 }
 0x600   : > { %6485 = vst.msk [vmem:[%s9373_s21 + $0x550] sm:$0xff] %vm194_vm0, %v4875_v50  ;;  %6797 = vmatmul.msk.f32.gmra.mxu3 %vm2340_vm6, %v4402_v22 }
 0x601   : > { %v5401_v16 = vpop.f32.mrf.mxu2 }
 0x602   : > { %v5402_v11 = vadd.f32 %v12578_v20, %v5401_v16  ;;  %3716 = vrot.lane.b32.xlu1 %v14732_v1, %s7244_s25 }
 0x603   : > { %v5907_v45 = vpop.f32.mrf.mxu3  ;;  %3430 = vrot.lane.b32.xlu0 %v3213_v53, %s7243_s24 }
 0x604   : > { %6683 = vst.msk [vmem:[%s9373_s21 + $0x660] sm:$0xff] %vm194_vm0, %v5402_v11  ;;  %v5908_v5 = vadd.f32 %v12578_v20, %v5907_v45  ;;  %v2892_v33 = vpop.f32.mrf.mxu0  ;;  %v3697_v52 = vpop.permute.xlu1 %3696  ;;  %4006 = vrot.lane.b32.xlu2 %v3218_v61, %s7245_s26 }
 0x605   : > { %v2893_v54 = vadd.f32 %v12578_v20, %v2892_v33  ;;  %v4307_v60 = vsel %vm2139_vm4, %v4211_v56, %v3697_v52  ;;  %v4877_v28 = vpop.f32.mrf.mxu1  ;;  %v3411_v6 = vpop.permute.xlu0 %3410  ;;  %v7162_v33 = vld [vmem:[#allocation2 + $0x3f0] sm:$0xff] }
 0x606   : > { %6877 = vst.msk [vmem:[%s9373_s21 + $0x750] sm:$0xff] %vm194_vm0, %v5908_v5  ;;  %v4878_v53 = vadd.f32 %v12578_v20, %v4877_v28  ;;  %6604 = vmatmul.msk.f32.gmra.mxu2 %vm2340_vm6, %v11159_v55  ;;  %v4403_v10 = vsel %vm2236_vm5, %v4307_v60, %v12466_v36  ;;  %v12598_v63 = vpop.permute.xlu2 %5709  ;;  %v4212_v55 = vsel %vm194_vm0, %v14668_v59, %v3411_v6  ;;  %v14733_v36 = vld [vmem:[#allocation111_spill] sm:$0xff]  ;;  %v3221_v52 = vrot.slane %v7162_v33, 2 }
 0x607   : > { %3016 = vst.msk [vmem:[%s9373_s21 + $0x890] sm:$0xff] %vm194_vm0, %v2893_v54  ;;  %6406 = vmatmul.msk.f32.gmra.mxu1 %vm2340_vm6, %v4401_v19  ;;  %v3220_v19 = vsel %vm3030_vm7, %v3217_v17, %v3219_v21  ;;  %v7163_v54 = vld [vmem:[#allocation2 + $0x3f8] sm:$0xff] }
 0x608   : > { %6486 = vst.msk [vmem:[%s9373_s21 + $0x558] sm:$0xff] %vm194_vm0, %v4878_v53  ;;  %6798 = vmatmul.msk.f32.gmra.mxu3 %vm2340_vm6, %v4403_v10  ;;  %v3222_v60 = vrot.slane %v7163_v54, 2  ;;  %v14734_v53 = vld [vmem:[#allocation116_spill] sm:$0xff] }
 0x609   : > { %v5404_v27 = vpop.f32.mrf.mxu2 }
 0x60a   : > { %v5405_v50 = vadd.f32 %v12578_v20, %v5404_v27  ;;  %3718 = vrot.lane.b32.xlu1 %v14733_v36, %s7244_s25 }
 0x60b   : > { %v5910_v9 = vpop.f32.mrf.mxu3  ;;  %3432 = vrot.lane.b32.xlu0 %v3215_v62, %s7243_s24 }
 0x60c   : > { %6684 = vst.msk [vmem:[%s9373_s21 + $0x668] sm:$0xff] %vm194_vm0, %v5405_v50  ;;  %v5911_v39 = vadd.f32 %v12578_v20, %v5910_v9  ;;  %v2895_v0 = vpop.f32.mrf.mxu0  ;;  %v3699_v16 = vpop.permute.xlu1 %3698  ;;  %4008 = vrot.lane.b32.xlu2 %v3220_v19, %s7245_s26 }
 0x60d   : > { %v2896_v59 = vadd.f32 %v12578_v20, %v2895_v0  ;;  %v4308_v56 = vsel %vm2139_vm4, %v4212_v55, %v3699_v16  ;;  %v4880_v11 = vpop.f32.mrf.mxu1  ;;  %v3413_v45 = vpop.permute.xlu0 %3412 }
 0x60e   : > { %6878 = vst.msk [vmem:[%s9373_s21 + $0x758] sm:$0xff] %vm194_vm0, %v5911_v39  ;;  %v4881_v62 = vadd.f32 %v12578_v20, %v4880_v11  ;;  %v4404_v17 = vsel %vm2236_vm5, %v4308_v56, %v12507_v18  ;;  %v12624_v5 = vpop.permute.xlu2 %5181  ;;  %v4213_v18 = vsel %vm194_vm0, %v14674_v37, %v3413_v45 }
 0x60f   : > { %3017 = vst.msk [vmem:[%s9373_s21 + $0x898] sm:$0xff] %vm194_vm0, %v2896_v59  ;;  %6407 = vmatmul.msk.f32.gmra.mxu1 %vm2340_vm6, %v4402_v22  ;;  %v3223_v22 = vsel %vm3030_vm7, %v3221_v52, %v3222_v60  ;;  %v7164_v59 = vld [vmem:[#allocation2 + $0x400] sm:$0x3] }
 0x610   : > { %6487 = vst.msk [vmem:[%s9373_s21 + $0x560] sm:$0xff] %vm194_vm0, %v4881_v62  ;;  %6799 = vmatmul.msk.f32.gmra.mxu3 %vm2340_vm6, %v4404_v17  ;;  %v3224_v56 = vrot.slane %v7164_v59, 2  ;;  %v14735_v62 = vld [vmem:[#allocation121_spill] sm:$0xff] }
 0x611   : > { %v5407_v28 = vpop.f32.mrf.mxu2 }
 0x612   : > { %v5408_v6 = vadd.f32 %v12578_v20, %v5407_v28  ;;  %3720 = vrot.lane.b32.xlu1 %v14734_v53, %s7244_s25  ;;  %v3225_v33 = vsel %vm3030_vm7, %v3222_v60, %v3224_v56 }
 0x613   : > { %v5913_v34 = vpop.f32.mrf.mxu3  ;;  %3434 = vrot.lane.b32.xlu0 %v3218_v61, %s7243_s24 }
 0x614   : > { %6685 = vst.msk [vmem:[%s9373_s21 + $0x670] sm:$0xff] %vm194_vm0, %v5408_v6  ;;  %v5914_v21 = vadd.f32 %v12578_v20, %v5913_v34  ;;  %v2898_v27 = vpop.f32.mrf.mxu0  ;;  %v3701_v55 = vpop.permute.xlu1 %3700  ;;  %4010 = vrot.lane.b32.xlu2 %v3223_v22, %s7245_s26 }
 0x615   : > { %v2899_v37 = vadd.f32 %v12578_v20, %v2898_v27  ;;  %v4309_v50 = vsel %vm2139_vm4, %v4213_v18, %v3701_v55  ;;  %v4883_v9 = vpop.f32.mrf.mxu1  ;;  %v5162_v39 = vpop.permute.xlu0 %5161  ;;  %v7165_v55 = vld [vmem:[#allocation2 + $0x408] sm:$0xff] }
 0x616   : > { %6879 = vst.msk [vmem:[%s9373_s21 + $0x760] sm:$0xff] %vm194_vm0, %v5914_v21  ;;  %v4884_v61 = vadd.f32 %v12578_v20, %v4883_v9  ;;  %v4405_v0 = vsel %vm2236_vm5, %v4309_v50, %v12539_v31  ;;  %v12650_v16 = vpop.permute.xlu2 %5711  ;;  %v7167_v9 = vld [vmem:[#allocation2 + $0x330] sm:$0xff] }
 0x617   : > { %3018 = vst.msk [vmem:[%s9373_s21 + $0x8a0] sm:$0xff] %vm194_vm0, %v2899_v37  ;;  %6408 = vmatmul.msk.f32.gmra.mxu1 %vm2340_vm6, %v4403_v10  ;;  %v7166_v37 = vld [vmem:[#allocation2 + $0x410] sm:$0xff] }
 0x618   : > { %6488 = vst.msk [vmem:[%s9373_s21 + $0x568] sm:$0xff] %vm194_vm0, %v4884_v61  ;;  %6800 = vmatmul.msk.f32.gmra.mxu3 %vm2340_vm6, %v4405_v0  ;;  %v3227_v50 = vrot.slane %v7166_v37, 2  ;;  %v5213_v61 = vsel %vm194_vm0, %v7167_v9, %v5162_v39 }
 0x619   : > { %v5410_v11 = vpop.f32.mrf.mxu2 }
 0x61a   : > { %v5411_v45 = vadd.f32 %v12578_v20, %v5410_v11  ;;  %3722 = vrot.lane.b32.xlu1 %v14735_v62, %s7244_s25 }
 0x61b   : > { %v5916_v31 = vpop.f32.mrf.mxu3  ;;  %3436 = vrot.lane.b32.xlu0 %v3220_v19, %s7243_s24 }
 0x61c   : > { %6686 = vst.msk [vmem:[%s9373_s21 + $0x678] sm:$0xff] %vm194_vm0, %v5411_v45  ;;  %v5917_v10 = vadd.f32 %v12578_v20, %v5916_v31  ;;  %v2901_v52 = vpop.f32.mrf.mxu0  ;;  %v5674_v54 = vpop.permute.xlu1 %5673  ;;  %4012 = vrot.lane.b32.xlu2 %v3225_v33, %s7245_s26  ;;  %v5219_v45 = vsel %vm2139_vm4, %v5213_v61, %v12568_v13 }
 0x61d   : > { %v2902_v28 = vadd.f32 %v12578_v20, %v2901_v52  ;;  %v5725_v18 = vsel %vm194_vm0, %v14680_v57, %v5674_v54  ;;  %v4886_v6 = vpop.f32.mrf.mxu1  ;;  %v5692_v34 = vpop.permute.xlu0 %5691  ;;  %v3226_v57 = vrot.slane %v7165_v55, 2 }
 0x61e   : > { %6880 = vst.msk [vmem:[%s9373_s21 + $0x768] sm:$0xff] %vm194_vm0, %v5917_v10  ;;  %v4887_v19 = vadd.f32 %v12578_v20, %v4886_v6  ;;  %v5731_v60 = vsel %vm2139_vm4, %v5725_v18, %v5692_v34  ;;  %v12674_v21 = vpop.permute.xlu2 %3994  ;;  %v7168_v6 = vld [vmem:[#allocation2 + $0x418] sm:$0x3] }
 0x61f   : > { %3019 = vst.msk [vmem:[%s9373_s21 + $0x8a8] sm:$0xff] %vm194_vm0, %v2902_v28  ;;  %v5737_v27 = vsel %vm2236_vm5, %v5731_v60, %v12598_v63  ;;  %6409 = vmatmul.msk.f32.gmra.mxu1 %vm2340_vm6, %v4404_v17  ;;  %v14736_v63 = vld [vmem:[#allocation117_spill] sm:$0xff]  ;;  %v3228_v11 = vsel %vm3030_vm7, %v3226_v57, %v3227_v50  ;;  %v3229_v34 = vrot.slane %v7168_v6, 2 }
 0x620   : > { %6489 = vst.msk [vmem:[%s9373_s21 + $0x570] sm:$0xff] %vm194_vm0, %v4887_v19  ;;  %6801 = vmatmul.msk.f32.gmra.mxu3 %vm2340_vm6, %v5737_v27  ;;  %v14737_v27 = vld [vmem:[#allocation122_spill] sm:$0xff] }
 0x621   : > { %v5413_v59 = vpop.f32.mrf.mxu2  ;;  %v3230_v57 = vsel %vm3030_vm7, %v3227_v50, %v3229_v34  ;;  %v14738_v34 = vld [vmem:[#allocation127_spill] sm:$0xff] }
 0x622   : > { %v5414_v56 = vadd.f32 %v12578_v20, %v5413_v59  ;;  %3724 = vrot.lane.b32.xlu1 %v14736_v63, %s7244_s25 }
 0x623   : > { %v5919_v17 = vpop.f32.mrf.mxu3  ;;  %3438 = vrot.lane.b32.xlu0 %v3223_v22, %s7243_s24 }
 0x624   : > { %6687 = vst.msk [vmem:[%s9373_s21 + $0x680] sm:$0xff] %vm194_vm0, %v5414_v56  ;;  %v5920_v39 = vadd.f32 %v12578_v20, %v5919_v17  ;;  %v2904_v31 = vpop.f32.mrf.mxu0  ;;  %v5198_v10 = vpop.permute.xlu1 %5197  ;;  %4014 = vrot.lane.b32.xlu2 %v3228_v11, %s7245_s26 }
 0x625   : > { %v2905_v52 = vadd.f32 %v12578_v20, %v2904_v31  ;;  %v5225_v54 = vsel %vm2236_vm5, %v5219_v45, %v5198_v10  ;;  %v4889_v22 = vpop.f32.mrf.mxu1  ;;  %v5164_v28 = vpop.permute.xlu0 %5163  ;;  %v7169_v31 = vld [vmem:[#allocation2 + $0x420] sm:$0xff] }
 0x626   : > { %6881 = vst.msk [vmem:[%s9373_s21 + $0x770] sm:$0xff] %vm194_vm0, %v5920_v39  ;;  %v4890_v13 = vadd.f32 %v12578_v20, %v4889_v22  ;;  %6605 = vmatmul.msk.f32.gmra.mxu2 %vm2340_vm6, %v5225_v54  ;;  %v12702_v18 = vpop.permute.xlu2 %3420  ;;  %v3231_v10 = vrot.slane %v7169_v31, 2  ;;  %v7171_v54 = vld [vmem:[#allocation2 + $0x338] sm:$0xff] }
 0x627   : > { %3020 = vst.msk [vmem:[%s9373_s21 + $0x8b0] sm:$0xff] %vm194_vm0, %v2905_v52  ;;  %6410 = vmatmul.msk.f32.gmra.mxu1 %vm2340_vm6, %v4405_v0  ;;  %v7170_v52 = vld [vmem:[#allocation2 + $0x428] sm:$0xff]  ;;  %v5214_v22 = vsel %vm194_vm0, %v7171_v54, %v5164_v28  ;;  %v14739_v31 = vld [vmem:[#allocation123_spill] sm:$0xff] }
 0x628   : > { %6490 = vst.msk [vmem:[%s9373_s21 + $0x578] sm:$0xff] %vm194_vm0, %v4890_v13 }
 0x629   : > { %v5416_v19 = vpop.f32.mrf.mxu2 }
 0x62a   : > { %v5417_v60 = vadd.f32 %v12578_v20, %v5416_v19  ;;  %3726 = vrot.lane.b32.xlu1 %v14737_v27, %s7244_s25 }
 0x62b   : > { %v5922_v55 = vpop.f32.mrf.mxu3  ;;  %3440 = vrot.lane.b32.xlu0 %v3225_v33, %s7243_s24 }
 0x62c   : > { %6688 = vst.msk [vmem:[%s9373_s21 + $0x688] sm:$0xff] %vm194_vm0, %v5417_v60  ;;  %v5923_v0 = vadd.f32 %v12578_v20, %v5922_v55  ;;  %v2907_v37 = vpop.f32.mrf.mxu0  ;;  %v5676_v9 = vpop.permute.xlu1 %5675  ;;  %4016 = vrot.lane.b32.xlu2 %v3230_v57, %s7245_s26  ;;  %v5220_v60 = vsel %vm2139_vm4, %v5214_v22, %v12624_v5 }
 0x62d   : > { %v2908_v61 = vadd.f32 %v12578_v20, %v2907_v37  ;;  %v5726_v59 = vsel %vm194_vm0, %v14686_v29, %v5676_v9  ;;  %v4892_v56 = vpop.f32.mrf.mxu1  ;;  %v5694_v17 = vpop.permute.xlu0 %5693  ;;  %v3232_v29 = vrot.slane %v7170_v52, 2 }
 0x62e   : > { %6882 = vst.msk [vmem:[%s9373_s21 + $0x778] sm:$0xff] %vm194_vm0, %v5923_v0  ;;  %v4893_v33 = vadd.f32 %v12578_v20, %v4892_v56  ;;  %v5732_v50 = vsel %vm2139_vm4, %v5726_v59, %v5694_v17  ;;  %v12725_v45 = vpop.permute.xlu2 %3996  ;;  %v7172_v56 = vld [vmem:[#allocation2 + $0x430] sm:$0x3] }
 0x62f   : > { %3021 = vst.msk [vmem:[%s9373_s21 + $0x8b8] sm:$0xff] %vm194_vm0, %v2908_v61  ;;  %v5738_v39 = vsel %vm2236_vm5, %v5732_v50, %v12650_v16  ;;  %v3233_v19 = vsel %vm3030_vm7, %v3231_v10, %v3232_v29  ;;  %v3234_v17 = vrot.slane %v7172_v56, 2 }
 0x630   : > { %6491 = vst.msk [vmem:[%s9373_s21 + $0x580] sm:$0xff] %vm194_vm0, %v4893_v33  ;;  %6802 = vmatmul.msk.f32.gmra.mxu3 %vm2340_vm6, %v5738_v39 }
 0x631   : > { %v5419_v13 = vpop.f32.mrf.mxu2  ;;  %v3235_v52 = vsel %vm3030_vm7, %v3232_v29, %v3234_v17 }
 0x632   : > { %v5420_v6 = vadd.f32 %v12578_v20, %v5419_v13  ;;  %3728 = vrot.lane.b32.xlu1 %v14738_v34, %s7244_s25 }
 0x633   : > { %v5925_v16 = vpop.f32.mrf.mxu3  ;;  %3442 = vrot.lane.b32.xlu0 %v3228_v11, %s7243_s24 }
 0x634   : > { %6689 = vst.msk [vmem:[%s9373_s21 + $0x690] sm:$0xff] %vm194_vm0, %v5420_v6  ;;  %v5926_v28 = vadd.f32 %v12578_v20, %v5925_v16  ;;  %v2910_v55 = vpop.f32.mrf.mxu0  ;;  %v5200_v0 = vpop.permute.xlu1 %5199  ;;  %4018 = vrot.lane.b32.xlu2 %v3233_v19, %s7245_s26 }
 0x635   : > { %v2911_v37 = vadd.f32 %v12578_v20, %v2910_v55  ;;  %v5226_v9 = vsel %vm2236_vm5, %v5220_v60, %v5200_v0  ;;  %v4895_v11 = vpop.f32.mrf.mxu1  ;;  %v3419_v61 = vpop.permute.xlu0 %3418  ;;  %v7173_v55 = vld [vmem:[#allocation2 + $0x438] sm:$0xff] }
 0x636   : > { %6883 = vst.msk [vmem:[%s9373_s21 + $0x780] sm:$0xff] %vm194_vm0, %v5926_v28  ;;  %v4896_v5 = vadd.f32 %v12578_v20, %v4895_v11  ;;  %6606 = vmatmul.msk.f32.gmra.mxu2 %vm2340_vm6, %v5226_v9  ;;  %v12752_v59 = vpop.permute.xlu2 %3422  ;;  %v4216_v50 = vsel %vm194_vm0, %v14713_v2, %v3419_v61  ;;  %v3236_v0 = vrot.slane %v7173_v55, 2 }
 0x637   : > { %3022 = vst.msk [vmem:[%s9373_s21 + $0x8c0] sm:$0xff] %vm194_vm0, %v2911_v37  ;;  %v7174_v37 = vld [vmem:[#allocation2 + $0x440] sm:$0xff] }
 0x638   : > { %6492 = vst.msk [vmem:[%s9373_s21 + $0x588] sm:$0xff] %vm194_vm0, %v4896_v5  ;;  %v3237_v9 = vrot.slane %v7174_v37, 2  ;;  %v14741_v5 = vld [vmem:[#allocation128_spill] sm:$0xff] }
 0x639   : > { %v5422_v33 = vpop.f32.mrf.mxu2 }
 0x63a   : > { %v5423_v39 = vadd.f32 %v12578_v20, %v5422_v33  ;;  %3730 = vrot.lane.b32.xlu1 %v14739_v31, %s7244_s25  ;;  %v3238_v17 = vsel %vm3030_vm7, %v3236_v0, %v3237_v9  ;;  %v14742_v0 = vld [vmem:[#allocation133_spill] sm:$0xff] }
 0x63b   : > { %v5928_v10 = vpop.f32.mrf.mxu3  ;;  %3444 = vrot.lane.b32.xlu0 %v3230_v57, %s7243_s24 }
 0x63c   : > { %6690 = vst.msk [vmem:[%s9373_s21 + $0x698] sm:$0xff] %vm194_vm0, %v5423_v39  ;;  %v5929_v54 = vadd.f32 %v12578_v20, %v5928_v10  ;;  %v2913_v22 = vpop.f32.mrf.mxu0  ;;  %v3707_v13 = vpop.permute.xlu1 %3706  ;;  %4020 = vrot.lane.b32.xlu2 %v3235_v52, %s7245_s26 }
 0x63d   : > { %v2914_v2 = vadd.f32 %v12578_v20, %v2913_v22  ;;  %v4312_v6 = vsel %vm2139_vm4, %v4216_v50, %v3707_v13  ;;  %v4898_v16 = vpop.f32.mrf.mxu1  ;;  %v3415_v60 = vpop.permute.xlu0 %3414 }
 0x63e   : > { %6884 = vst.msk [vmem:[%s9373_s21 + $0x788] sm:$0xff] %vm194_vm0, %v5929_v54  ;;  %v4899_v57 = vadd.f32 %v12578_v20, %v4898_v16  ;;  %6607 = vmatmul.msk.f32.gmra.mxu2 %vm2340_vm6, %v11285_v14  ;;  %v12778_v29 = vsel %vm2236_vm5, %v4312_v6, %v12674_v21  ;;  %v12780_v28 = vpop.permute.xlu2 %3998  ;;  %v14740_v14 = vld [vmem:[#allocation97_spill] sm:$0xff]  ;;  %v7175_v16 = vld [vmem:[#allocation2 + $0x448] sm:$0x3] }
 0x63f   : > { %3023 = vst.msk [vmem:[%s9373_s21 + $0x8c8] sm:$0xff] %vm194_vm0, %v2914_v2  ;;  %6803 = vmatmul.msk.f32.gmra.mxu3 %vm2340_vm6, %v12778_v29  ;;  %v4214_v21 = vsel %vm194_vm0, %v14740_v14, %v3415_v60  ;;  %v3239_v60 = vrot.slane %v7175_v16, 2 }
 0x640   : > { %6493 = vst.msk [vmem:[%s9373_s21 + $0x590] sm:$0xff] %vm194_vm0, %v4899_v57 }
 0x641   : > { %v5425_v11 = vpop.f32.mrf.mxu2 }
 0x642   : > { %v5426_v61 = vadd.f32 %v12578_v20, %v5425_v11  ;;  %3732 = vrot.lane.b32.xlu1 %v14741_v5, %s7244_s25  ;;  %v4217_v11 = vsel %vm194_vm0, %v14722_v3, %v12702_v18 }
 0x643   : > { %v5931_v56 = vpop.f32.mrf.mxu3  ;;  %3446 = vrot.lane.b32.xlu0 %v3233_v19, %s7243_s24 }
 0x644   : > { %6691 = vst.msk [vmem:[%s9373_s21 + $0x6a0] sm:$0xff] %vm194_vm0, %v5426_v61  ;;  %v5932_v33 = vadd.f32 %v12578_v20, %v5931_v56  ;;  %v2916_v50 = vpop.f32.mrf.mxu0  ;;  %v3703_v39 = vpop.permute.xlu1 %3702  ;;  %4022 = vrot.lane.b32.xlu2 %v3238_v17, %s7245_s26 }
 0x645   : > { %v2917_v10 = vadd.f32 %v12578_v20, %v2916_v50  ;;  %v4310_v54 = vsel %vm2139_vm4, %v4214_v21, %v3703_v39  ;;  %v4901_v22 = vpop.f32.mrf.mxu1  ;;  %v3991_v13 = vpop.permute.xlu0 %3990  ;;  %v7176_v39 = vld [vmem:[#allocation2 + $0x450] sm:$0xff] }
 0x646   : > { %6885 = vst.msk [vmem:[%s9373_s21 + $0x790] sm:$0xff] %vm194_vm0, %v5932_v33  ;;  %v4902_v19 = vadd.f32 %v12578_v20, %v4901_v22  ;;  %v4406_v2 = vsel %vm2236_vm5, %v4310_v54, %v3991_v13  ;;  %6608 = vmatmul.msk.f32.gmra.mxu2 %vm2340_vm6, %v11325_v12  ;;  %v12807_v6 = vpop.permute.xlu2 %4000  ;;  %v3240_v12 = vsel %vm3030_vm7, %v3237_v9, %v3239_v60  ;;  %v7177_v54 = vld [vmem:[#allocation2 + $0x458] sm:$0xff] }
 0x647   : > { %3024 = vst.msk [vmem:[%s9373_s21 + $0x8d0] sm:$0xff] %vm194_vm0, %v2917_v10  ;;  %6411 = vmatmul.msk.f32.gmra.mxu1 %vm2340_vm6, %v4406_v2  ;;  %v3241_v10 = vrot.slane %v7176_v39, 2  ;;  %v3242_v22 = vrot.slane %v7177_v54, 2  ;;  %v14744_v2 = vld [vmem:[#allocation129_spill] sm:$0xff] }
 0x648   : > { %6494 = vst.msk [vmem:[%s9373_s21 + $0x598] sm:$0xff] %vm194_vm0, %v4902_v19 }
 0x649   : > { %v5428_v57 = vpop.f32.mrf.mxu2  ;;  %v3243_v60 = vsel %vm3030_vm7, %v3241_v10, %v3242_v22  ;;  %v14745_v10 = vld [vmem:[#allocation134_spill] sm:$0xff] }
 0x64a   : > { %v5429_v55 = vadd.f32 %v12578_v20, %v5428_v57  ;;  %3734 = vrot.lane.b32.xlu1 %v14742_v0, %s7244_s25 }
 0x64b   : > { %v5934_v37 = vpop.f32.mrf.mxu3  ;;  %3448 = vrot.lane.b32.xlu0 %v3235_v52, %s7243_s24 }
 0x64c   : > { %6692 = vst.msk [vmem:[%s9373_s21 + $0x6a8] sm:$0xff] %vm194_vm0, %v5429_v55  ;;  %v5935_v14 = vadd.f32 %v12578_v20, %v5934_v37  ;;  %v2919_v21 = vpop.f32.mrf.mxu0  ;;  %v3709_v61 = vpop.permute.xlu1 %3708  ;;  %4024 = vrot.lane.b32.xlu2 %v3240_v12, %s7245_s26 }
 0x64d   : > { %v2920_v56 = vadd.f32 %v12578_v20, %v2919_v21  ;;  %v4313_v52 = vsel %vm2139_vm4, %v4217_v11, %v3709_v61  ;;  %v4904_v33 = vpop.f32.mrf.mxu1  ;;  %v3417_v9 = vpop.permute.xlu0 %3416 }
 0x64e   : > { %6886 = vst.msk [vmem:[%s9373_s21 + $0x798] sm:$0xff] %vm194_vm0, %v5935_v14  ;;  %v4905_v50 = vadd.f32 %v12578_v20, %v4904_v33  ;;  %6609 = vmatmul.msk.f32.gmra.mxu2 %vm2340_vm6, %v11369_v4  ;;  %v12835_v3 = vsel %vm2236_vm5, %v4313_v52, %v12725_v45  ;;  %v12837_v18 = vpop.permute.xlu2 %4002  ;;  %v14743_v4 = vld [vmem:[#allocation93_spill] sm:$0xff]  ;;  %v7178_v33 = vld [vmem:[#allocation2 + $0x460] sm:$0x3] }
 0x64f   : > { %3025 = vst.msk [vmem:[%s9373_s21 + $0x8d8] sm:$0xff] %vm194_vm0, %v2920_v56  ;;  %6804 = vmatmul.msk.f32.gmra.mxu3 %vm2340_vm6, %v12835_v3  ;;  %v4215_v45 = vsel %vm194_vm0, %v14743_v4, %v3417_v9  ;;  %v3244_v9 = vrot.slane %v7178_v33, 2 }
 0x650   : > { %6495 = vst.msk [vmem:[%s9373_s21 + $0x5a0] sm:$0xff] %vm194_vm0, %v4905_v50 }
 0x651   : > { %v5431_v13 = vpop.f32.mrf.mxu2 }
 0x652   : > { %v5432_v19 = vadd.f32 %v12578_v20, %v5431_v13  ;;  %3736 = vrot.lane.b32.xlu1 %v14744_v2, %s7244_s25  ;;  %v4218_v13 = vsel %vm194_vm0, %v14708_v49, %v12752_v59 }
 0x653   : > { %v5937_v16 = vpop.f32.mrf.mxu3  ;;  %3450 = vrot.lane.b32.xlu0 %v3238_v17, %s7243_s24 }
 0x654   : > { %6693 = vst.msk [vmem:[%s9373_s21 + $0x6b0] sm:$0xff] %vm194_vm0, %v5432_v19  ;;  %v5938_v57 = vadd.f32 %v12578_v20, %v5937_v16  ;;  %v2922_v55 = vpop.f32.mrf.mxu0  ;;  %v3705_v37 = vpop.permute.xlu1 %3704  ;;  %4026 = vrot.lane.b32.xlu2 %v3243_v60, %s7245_s26 }
 0x655   : > { %v2923_v11 = vadd.f32 %v12578_v20, %v2922_v55  ;;  %v4311_v14 = vsel %vm2139_vm4, %v4215_v45, %v3705_v37  ;;  %v4907_v21 = vpop.f32.mrf.mxu1  ;;  %v3993_v61 = vpop.permute.xlu0 %3992  ;;  %v7179_v37 = vld [vmem:[#allocation2 + $0x468] sm:$0xff] }
 0x656   : > { %6887 = vst.msk [vmem:[%s9373_s21 + $0x7a0] sm:$0xff] %vm194_vm0, %v5938_v57  ;;  %v4908_v17 = vadd.f32 %v12578_v20, %v4907_v21  ;;  %v4407_v56 = vsel %vm2236_vm5, %v4311_v14, %v3993_v61  ;;  %6610 = vmatmul.msk.f32.gmra.mxu2 %vm2340_vm6, %v11404_v7  ;;  %v12864_v52 = vpop.permute.xlu2 %4004  ;;  %v3245_v7 = vsel %vm3030_vm7, %v3242_v22, %v3244_v9  ;;  %v7180_v14 = vld [vmem:[#allocation2 + $0x470] sm:$0xff] }
 0x657   : > { %3026 = vst.msk [vmem:[%s9373_s21 + $0x8e0] sm:$0xff] %vm194_vm0, %v2923_v11  ;;  %6412 = vmatmul.msk.f32.gmra.mxu1 %vm2340_vm6, %v4407_v56  ;;  %v3246_v11 = vrot.slane %v7179_v37, 2  ;;  %v3247_v21 = vrot.slane %v7180_v14, 2 }
 0x658   : > { %6496 = vst.msk [vmem:[%s9373_s21 + $0x5a8] sm:$0xff] %vm194_vm0, %v4908_v17  ;;  %v14746_v17 = vld [vmem:[#allocation139_spill] sm:$0xff] }
 0x659   : > { %v5434_v50 = vpop.f32.mrf.mxu2 }
 0x65a   : > { %v5435_v39 = vadd.f32 %v12578_v20, %v5434_v50  ;;  %3738 = vrot.lane.b32.xlu1 %v14745_v10, %s7244_s25 }
 0x65b   : > { %v5940_v54 = vpop.f32.mrf.mxu3  ;;  %3452 = vrot.lane.b32.xlu0 %v3240_v12, %s7243_s24 }
 0x65c   : > { %6694 = vst.msk [vmem:[%s9373_s21 + $0x6b8] sm:$0xff] %vm194_vm0, %v5435_v39  ;;  %v5941_v4 = vadd.f32 %v12578_v20, %v5940_v54  ;;  %v2925_v45 = vpop.f32.mrf.mxu0  ;;  %v3711_v19 = vpop.permute.xlu1 %3710  ;;  %4028 = vrot.lane.b32.xlu2 %v3245_v7, %s7245_s26 }
 0x65d   : > { %v2926_v16 = vadd.f32 %v12578_v20, %v2925_v45  ;;  %v4314_v12 = vsel %vm2139_vm4, %v4218_v13, %v3711_v19  ;;  %v4910_v57 = vpop.f32.mrf.mxu1  ;;  %v3425_v22 = vpop.permute.xlu0 %3424  ;;  %v7181_v19 = vld [vmem:[#allocation2 + $0x478] sm:$0x3] }
 0x65e   : > { %6888 = vst.msk [vmem:[%s9373_s21 + $0x7a8] sm:$0xff] %vm194_vm0, %v5941_v4  ;;  %v4911_v55 = vadd.f32 %v12578_v20, %v4910_v57  ;;  %6611 = vmatmul.msk.f32.gmra.mxu2 %vm2340_vm6, %v11446_v23  ;;  %v4410_v49 = vsel %vm2236_vm5, %v4314_v12, %v12780_v28  ;;  %v12892_v59 = vpop.permute.xlu2 %4006  ;;  %v4219_v28 = vsel %vm194_vm0, %v14718_v30, %v3425_v22  ;;  %v14747_v57 = vld [vmem:[#allocation135_spill] sm:$0xff] }
 0x65f   : > { %3027 = vst.msk [vmem:[%s9373_s21 + $0x8e8] sm:$0xff] %vm194_vm0, %v2926_v16  ;;  %6413 = vmatmul.msk.f32.gmra.mxu1 %vm2340_vm6, %v12778_v29  ;;  %6805 = vmatmul.msk.f32.gmra.mxu3 %vm2340_vm6, %v4410_v49  ;;  %v3248_v29 = vsel %vm3030_vm7, %v3246_v11, %v3247_v21  ;;  %v3249_v16 = vrot.slane %v7181_v19, 2 }
 0x660   : > { %6497 = vst.msk [vmem:[%s9373_s21 + $0x5b0] sm:$0xff] %vm194_vm0, %v4911_v55 }
 0x661   : > { %v5437_v23 = vpop.f32.mrf.mxu2 }
 0x662   : > { %v5438_v61 = vadd.f32 %v12578_v20, %v5437_v23  ;;  %3740 = vrot.lane.b32.xlu1 %v14746_v17, %s7244_s25 }
 0x663   : > { %v5943_v56 = vpop.f32.mrf.mxu3  ;;  %3454 = vrot.lane.b32.xlu0 %v3243_v60, %s7243_s24 }
 0x664   : > { %6695 = vst.msk [vmem:[%s9373_s21 + $0x6c0] sm:$0xff] %vm194_vm0, %v5438_v61  ;;  %v5944_v33 = vadd.f32 %v12578_v20, %v5943_v56  ;;  %v2928_v9 = vpop.f32.mrf.mxu0  ;;  %v3713_v50 = vpop.permute.xlu1 %3712  ;;  %4030 = vrot.lane.b32.xlu2 %v3248_v29, %s7245_s26  ;;  %v7182_v56 = vld [vmem:[#allocation2 + $0x480] sm:$0xff] }
 0x665   : > { %v2929_v30 = vadd.f32 %v12578_v20, %v2928_v9  ;;  %v4315_v39 = vsel %vm2139_vm4, %v4219_v28, %v3713_v50  ;;  %v4913_v54 = vpop.f32.mrf.mxu1  ;;  %v3427_v13 = vpop.permute.xlu0 %3426  ;;  %v7183_v9 = vld [vmem:[#allocation2 + $0x488] sm:$0xff] }
 0x666   : > { %6889 = vst.msk [vmem:[%s9373_s21 + $0x7b0] sm:$0xff] %vm194_vm0, %v5944_v33  ;;  %v4914_v60 = vadd.f32 %v12578_v20, %v4913_v54  ;;  %6612 = vmatmul.msk.f32.gmra.mxu2 %vm2340_vm6, %v11482_v35  ;;  %v4411_v4 = vsel %vm2236_vm5, %v4315_v39, %v12807_v6  ;;  %v12921_v45 = vpop.permute.xlu2 %4008  ;;  %v4220_v35 = vsel %vm194_vm0, %v14726_v46, %v3427_v13  ;;  %v3251_v33 = vrot.slane %v7182_v56, 2  ;;  %v14748_v39 = vld [vmem:[#allocation140_spill] sm:$0xff] }
 0x667   : > { %3028 = vst.msk [vmem:[%s9373_s21 + $0x8f0] sm:$0xff] %vm194_vm0, %v2929_v30  ;;  %6414 = vmatmul.msk.f32.gmra.mxu1 %vm2340_vm6, %v12835_v3  ;;  %6806 = vmatmul.msk.f32.gmra.mxu3 %vm2340_vm6, %v4411_v4  ;;  %v3250_v3 = vsel %vm3030_vm7, %v3247_v21, %v3249_v16  ;;  %v3252_v50 = vrot.slane %v7183_v9, 2 }
 0x668   : > { %6498 = vst.msk [vmem:[%s9373_s21 + $0x5b8] sm:$0xff] %vm194_vm0, %v4914_v60 }
 0x669   : > { %v5440_v12 = vpop.f32.mrf.mxu2 }
 0x66a   : > { %v5441_v6 = vadd.f32 %v12578_v20, %v5440_v12  ;;  %3742 = vrot.lane.b32.xlu1 %v14747_v57, %s7244_s25 }
 0x66b   : > { %v5946_v22 = vpop.f32.mrf.mxu3  ;;  %3456 = vrot.lane.b32.xlu0 %v3245_v7, %s7243_s24 }
 0x66c   : > { %6696 = vst.msk [vmem:[%s9373_s21 + $0x6c8] sm:$0xff] %vm194_vm0, %v5441_v6  ;;  %v5947_v55 = vadd.f32 %v12578_v20, %v5946_v22  ;;  %v2931_v37 = vpop.f32.mrf.mxu0  ;;  %v3715_v11 = vpop.permute.xlu1 %3714  ;;  %4032 = vrot.lane.b32.xlu2 %v3250_v3, %s7245_s26  ;;  %v7184_v6 = vld [vmem:[#allocation2 + $0x490] sm:$0x3] }
 0x66d   : > { %v2932_v46 = vadd.f32 %v12578_v20, %v2931_v37  ;;  %v4316_v14 = vsel %vm2139_vm4, %v4220_v35, %v3715_v11  ;;  %v4916_v23 = vpop.f32.mrf.mxu1  ;;  %v3429_v28 = vpop.permute.xlu0 %3428  ;;  %v3254_v22 = vrot.slane %v7184_v6, 2  ;;  %v14749_v11 = vld [vmem:[#allocation149_spill] sm:$0xff]  ;;  %v7187_v6 = vld [vmem:[#allocation2 + $0x4a8] sm:$0x3] }
 0x66e   : > { %6890 = vst.msk [vmem:[%s9373_s21 + $0x7b8] sm:$0xff] %vm194_vm0, %v5947_v55  ;;  %v4917_v7 = vadd.f32 %v12578_v20, %v4916_v23  ;;  %6613 = vmatmul.msk.f32.gmra.mxu2 %vm2340_vm6, %v11520_v25  ;;  %v4412_v21 = vsel %vm2236_vm5, %v4316_v14, %v12837_v18  ;;  %v12950_v61 = vpop.permute.xlu2 %4010  ;;  %v4221_v18 = vsel %vm194_vm0, %v14730_v44, %v3429_v28 }
 0x66f   : > { %3029 = vst.msk [vmem:[%s9373_s21 + $0x8f8] sm:$0xff] %vm194_vm0, %v2932_v46  ;;  %6415 = vmatmul.msk.f32.gmra.mxu1 %vm2340_vm6, %v4410_v49  ;;  %6807 = vmatmul.msk.f32.gmra.mxu3 %vm2340_vm6, %v4412_v21  ;;  %v3253_v49 = vsel %vm3030_vm7, %v3251_v33, %v3252_v50  ;;  %v7185_v33 = vld [vmem:[#allocation2 + $0x498] sm:$0xff] }
 0x670   : > { %6499 = vst.msk [vmem:[%s9373_s21 + $0x5c0] sm:$0xff] %vm194_vm0, %v4917_v7  ;;  %v3256_v9 = vrot.slane %v7185_v33, 2 }
 0x671   : > { %v5443_v25 = vpop.f32.mrf.mxu2 }
 0x672   : > { %v5444_v30 = vadd.f32 %v12578_v20, %v5443_v25  ;;  %3744 = vrot.lane.b32.xlu1 %v14748_v39, %s7244_s25 }
 0x673   : > { %v5949_v54 = vpop.f32.mrf.mxu3  ;;  %3458 = vrot.lane.b32.xlu0 %v3248_v29, %s7243_s24 }
 0x674   : > { %6697 = vst.msk [vmem:[%s9373_s21 + $0x6d0] sm:$0xff] %vm194_vm0, %v5444_v30  ;;  %v5950_v13 = vadd.f32 %v12578_v20, %v5949_v54  ;;  %v3717_v60 = vpop.permute.xlu1 %3716  ;;  %4034 = vrot.lane.b32.xlu2 %v3253_v49, %s7245_s26  ;;  %v14750_v30 = vld [vmem:[#allocation141_spill] sm:$0xff] }
 0x675   : > { %v4317_v44 = vsel %vm2139_vm4, %v4221_v18, %v3717_v60  ;;  %v4919_v19 = vpop.f32.mrf.mxu1  ;;  %v3431_v16 = vpop.permute.xlu0 %3430 }
 0x676   : > { %6891 = vst.msk [vmem:[%s9373_s21 + $0x7c0] sm:$0xff] %vm194_vm0, %v5950_v13  ;;  %v4920_v12 = vadd.f32 %v12578_v20, %v4919_v19  ;;  %6614 = vmatmul.msk.f32.gmra.mxu2 %vm2340_vm6, %v11554_v40  ;;  %v4413_v29 = vsel %vm2236_vm5, %v4317_v44, %v12864_v52  ;;  %v12977_v35 = vpop.permute.xlu2 %4012  ;;  %v4222_v37 = vsel %vm194_vm0, %v14731_v26, %v3431_v16 }
 0x677   : > { %6416 = vmatmul.msk.f32.gmra.mxu1 %vm2340_vm6, %v4411_v4  ;;  %6808 = vmatmul.msk.f32.gmra.mxu3 %vm2340_vm6, %v4413_v29  ;;  %v3255_v4 = vsel %vm3030_vm7, %v3252_v50, %v3254_v22  ;;  %v7186_v50 = vld [vmem:[#allocation2 + $0x4a0] sm:$0xff]  ;;  %v3259_v22 = vrot.slane %v7187_v6, 2 }
 0x678   : > { %6500 = vst.msk [vmem:[%s9373_s21 + $0x5c8] sm:$0xff] %vm194_vm0, %v4920_v12  ;;  %v3257_v25 = vrot.slane %v7186_v50, 2  ;;  %v14754_v6 = vld [vmem:[#allocation151_spill] sm:$0xff] }
 0x679   : > { %v5446_v55 = vpop.f32.mrf.mxu2 }
 0x67a   : > { %v5447_v40 = vadd.f32 %v12578_v20, %v5446_v55  ;;  %3746 = vrot.lane.b32.xlu1 %v14749_v11, %s7244_s25 }
 0x67b   : > { %v5952_v52 = vpop.f32.mrf.mxu3  ;;  %3460 = vrot.lane.b32.xlu0 %v3250_v3, %s7243_s24 }
 0x67c   : > { %6698 = vst.msk [vmem:[%s9373_s21 + $0x6d8] sm:$0xff] %vm194_vm0, %v5447_v40  ;;  %v5953_v46 = vadd.f32 %v12578_v20, %v5952_v52  ;;  %v3719_v14 = vpop.permute.xlu1 %3718  ;;  %4036 = vrot.lane.b32.xlu2 %v3255_v4, %s7245_s26  ;;  %v14751_v40 = vld [vmem:[#allocation150_spill] sm:$0xff] }
 0x67d   : > { %v4318_v26 = vsel %vm2139_vm4, %v4222_v37, %v3719_v14  ;;  %v4922_v23 = vpop.f32.mrf.mxu1  ;;  %v3433_v28 = vpop.permute.xlu0 %3432 }
 0x67e   : > { %6892 = vst.msk [vmem:[%s9373_s21 + $0x7c8] sm:$0xff] %vm194_vm0, %v5953_v46  ;;  %v4923_v7 = vadd.f32 %v12578_v20, %v4922_v23  ;;  %6615 = vmatmul.msk.f32.gmra.mxu2 %vm2340_vm6, %v11594_v38  ;;  %v4414_v3 = vsel %vm2236_vm5, %v4318_v26, %v12892_v59  ;;  %v13002_v56 = vpop.permute.xlu2 %4014  ;;  %v4223_v38 = vsel %vm194_vm0, %v14732_v1, %v3433_v28 }
 0x67f   : > { %6417 = vmatmul.msk.f32.gmra.mxu1 %vm2340_vm6, %v4412_v21  ;;  %6809 = vmatmul.msk.f32.gmra.mxu3 %vm2340_vm6, %v4414_v3  ;;  %v3258_v21 = vsel %vm3030_vm7, %v3256_v9, %v3257_v25  ;;  %v7189_v9 = vld [vmem:[#allocation2 + $0x4b8] sm:$0xff] }
 0x680   : > { %6501 = vst.msk [vmem:[%s9373_s21 + $0x5d0] sm:$0xff] %vm194_vm0, %v4923_v7  ;;  %v7188_v7 = vld [vmem:[#allocation2 + $0x4b0] sm:$0xff]  ;;  %v3262_v50 = vrot.slane %v7189_v9, 2 }
 0x681   : > { %v5449_v18 = vpop.f32.mrf.mxu2  ;;  %v3261_v33 = vrot.slane %v7188_v7, 2 }
 0x682   : > { %v5450_v59 = vadd.f32 %v12578_v20, %v5449_v18  ;;  %3748 = vrot.lane.b32.xlu1 %v14750_v30, %s7244_s25 }
 0x683   : > { %v5955_v54 = vpop.f32.mrf.mxu3  ;;  %3462 = vrot.lane.b32.xlu0 %v3253_v49, %s7243_s24 }
 0x684   : > { %6699 = vst.msk [vmem:[%s9373_s21 + $0x6e0] sm:$0xff] %vm194_vm0, %v5450_v59  ;;  %v5956_v13 = vadd.f32 %v12578_v20, %v5955_v54  ;;  %v3721_v60 = vpop.permute.xlu1 %3720  ;;  %4038 = vrot.lane.b32.xlu2 %v3258_v21, %s7245_s26 }
 0x685   : > { %v4319_v1 = vsel %vm2139_vm4, %v4223_v38, %v3721_v60  ;;  %v4925_v44 = vpop.f32.mrf.mxu1  ;;  %v3435_v19 = vpop.permute.xlu0 %3434  ;;  %v14753_v60 = vld [vmem:[#allocation166_spill] sm:$0xff] }
 0x686   : > { %6893 = vst.msk [vmem:[%s9373_s21 + $0x7d0] sm:$0xff] %vm194_vm0, %v5956_v13  ;;  %v4926_v16 = vadd.f32 %v12578_v20, %v4925_v44  ;;  %6616 = vmatmul.msk.f32.gmra.mxu2 %vm2340_vm6, %v11633_v48  ;;  %v4415_v49 = vsel %vm2236_vm5, %v4319_v1, %v12921_v45  ;;  %v13027_v12 = vpop.permute.xlu2 %4016  ;;  %v4224_v37 = vsel %vm194_vm0, %v14733_v36, %v3435_v19  ;;  %v7190_v44 = vld [vmem:[#allocation2 + $0x4c0] sm:$0x3] }
 0x687   : > { %6418 = vmatmul.msk.f32.gmra.mxu1 %vm2340_vm6, %v4413_v29  ;;  %6810 = vmatmul.msk.f32.gmra.mxu3 %vm2340_vm6, %v4415_v49  ;;  %v3260_v29 = vsel %vm3030_vm7, %v3257_v25, %v3259_v22  ;;  %v3264_v19 = vrot.slane %v7190_v44, 2 }
 0x688   : > { %6502 = vst.msk [vmem:[%s9373_s21 + $0x5d8] sm:$0xff] %vm194_vm0, %v4926_v16 }
 0x689   : > { %v5452_v55 = vpop.f32.mrf.mxu2 }
 0x68a   : > { %v5453_v48 = vadd.f32 %v12578_v20, %v5452_v55  ;;  %3750 = vrot.lane.b32.xlu1 %v14751_v40, %s7244_s25 }
 0x68b   : > { %v5958_v45 = vpop.f32.mrf.mxu3  ;;  %3464 = vrot.lane.b32.xlu0 %v3255_v4, %s7243_s24 }
 0x68c   : > { %6700 = vst.msk [vmem:[%s9373_s21 + $0x6e8] sm:$0xff] %vm194_vm0, %v5453_v48  ;;  %v5959_v52 = vadd.f32 %v12578_v20, %v5958_v45  ;;  %v3723_v46 = vpop.permute.xlu1 %3722  ;;  %4040 = vrot.lane.b32.xlu2 %v3260_v29, %s7245_s26 }
 0x68d   : > { %v4320_v36 = vsel %vm2139_vm4, %v4224_v37, %v3723_v46  ;;  %v4928_v14 = vpop.f32.mrf.mxu1  ;;  %v3437_v26 = vpop.permute.xlu0 %3436 }
 0x68e   : > { %6894 = vst.msk [vmem:[%s9373_s21 + $0x7d8] sm:$0xff] %vm194_vm0, %v5959_v52  ;;  %v4929_v23 = vadd.f32 %v12578_v20, %v4928_v14  ;;  %6617 = vmatmul.msk.f32.gmra.mxu2 %vm2340_vm6, %v11673_v32  ;;  %v4416_v4 = vsel %vm2236_vm5, %v4320_v36, %v12950_v61  ;;  %v13052_v28 = vpop.permute.xlu2 %4018  ;;  %v4225_v25 = vsel %vm194_vm0, %v14734_v53, %v3437_v26  ;;  %v14752_v32 = vld [vmem:[#allocation155_spill] sm:$0xff]  ;;  %v14755_v52 = vld [vmem:[#allocation28_spill] sm:$0xff]  ;;  %v7192_v26 = vld [vmem:[#allocation2 + $0x4d0] sm:$0xff] }
 0x68f   : > { %6419 = vmatmul.msk.f32.gmra.mxu1 %vm2340_vm6, %v4414_v3  ;;  %6811 = vmatmul.msk.f32.gmra.mxu3 %vm2340_vm6, %v4416_v4  ;;  %v3263_v3 = vsel %vm3030_vm7, %v3261_v33, %v3262_v50  ;;  %v7191_v36 = vld [vmem:[#allocation2 + $0x4c8] sm:$0xff] }
 0x690   : > { %6503 = vst.msk [vmem:[%s9373_s21 + $0x5e0] sm:$0xff] %vm194_vm0, %v4929_v23  ;;  %v3266_v14 = vrot.slane %v7191_v36, 2  ;;  %v3267_v23 = vrot.slane %v7192_v26, 2  ;;  %v14756_v33 = vld [vmem:[#allocation156_spill] sm:$0xff] }
 0x692   : > { %3752 = vrot.lane.b32.xlu1 %v14752_v32, %s7244_s25 }
 0x693   : > { %v5961_v61 = vpop.f32.mrf.mxu3  ;;  %3466 = vrot.lane.b32.xlu0 %v3258_v21, %s7243_s24 }
 0x694   : > { %v5962_v18 = vadd.f32 %v12578_v20, %v5961_v61  ;;  %v3725_v38 = vpop.permute.xlu1 %3724  ;;  %4042 = vrot.lane.b32.xlu2 %v3263_v3, %s7245_s26 }
 0x695   : > { %v4321_v59 = vsel %vm2139_vm4, %v4225_v25, %v3725_v38  ;;  %v4931_v54 = vpop.f32.mrf.mxu1  ;;  %v3439_v13 = vpop.permute.xlu0 %3438  ;;  %v14757_v38 = vld [vmem:[#allocation136_spill] sm:$0xff] }
 0x696   : > { %6895 = vst.msk [vmem:[%s9373_s21 + $0x7e0] sm:$0xff] %vm194_vm0, %v5962_v18  ;;  %v4932_v53 = vadd.f32 %v12578_v20, %v4931_v54  ;;  %6618 = vmatmul.msk.f32.gmra.mxu2 %vm2340_vm6, %v14753_v60  ;;  %v4417_v21 = vsel %vm2236_vm5, %v4321_v59, %v12977_v35  ;;  %v13074_v1 = vpop.permute.xlu2 %4020  ;;  %v4226_v16 = vsel %vm194_vm0, %v14735_v62, %v3439_v13  ;;  %v7193_v54 = vld [vmem:[#allocation2 + $0x4d8] sm:$0x3]  ;;  %v13126_v60 = vld [vmem:[#allocation3] ss:$0 sm:$0xff] }
 0x697   : > { %6420 = vmatmul.msk.f32.gmra.mxu1 %vm2340_vm6, %v4415_v49  ;;  %6812 = vmatmul.msk.f32.gmra.mxu3 %vm2340_vm6, %v4417_v21  ;;  %v3265_v35 = vsel %vm3030_vm7, %v3262_v50, %v3264_v19  ;;  %v3269_v13 = vrot.slane %v7193_v54, 2  ;;  %v14763_v54 = vld [vmem:[#allocation114_spill] sm:$0xff] }
 0x698   : > { %6504 = vst.msk [vmem:[%s9373_s21 + $0x5e8] sm:$0xff] %vm194_vm0, %v4932_v53 }
 0x69a   : > { %3754 = vrot.lane.b32.xlu1 %v14754_v6, %s7244_s25 }
 0x69b   : > { %v5964_v22 = vpop.f32.mrf.mxu3  ;;  %3468 = vrot.lane.b32.xlu0 %v3260_v29, %s7243_s24 }
 0x69c   : > { %v5965_v49 = vadd.f32 %v12578_v20, %v5964_v22  ;;  %v3727_v55 = vpop.permute.xlu1 %3726  ;;  %4044 = vrot.lane.b32.xlu2 %v3265_v35, %s7245_s26 }
 0x69d   : > { %v4322_v37 = vsel %vm2139_vm4, %v4226_v16, %v3727_v55  ;;  %v4934_v48 = vpop.f32.mrf.mxu1  ;;  %v3441_v45 = vpop.permute.xlu0 %3440 }
 0x69e   : > { %6896 = vst.msk [vmem:[%s9373_s21 + $0x7e8] sm:$0xff] %vm194_vm0, %v5965_v49  ;;  %v4935_v62 = vadd.f32 %v12578_v20, %v4934_v48  ;;  %6619 = vmatmul.msk.f32.gmra.mxu2 %vm2340_vm6, %v14755_v52  ;;  %v4418_v29 = vsel %vm2236_vm5, %v4322_v37, %v13002_v56  ;;  %v13096_v46 = vpop.permute.xlu2 %4022  ;;  %v4227_v7 = vsel %vm194_vm0, %v14736_v63, %v3441_v45  ;;  %v13143_v37 = vld [vmem:[#allocation2 + $0x4e0] sm:$0xff]  ;;  %v13146_v48 = vld [vmem:[#allocation2 + $0x4e8] sm:$0xff] }
 0x69f   : > { %6421 = vmatmul.msk.f32.gmra.mxu1 %vm2340_vm6, %v4416_v4  ;;  %6813 = vmatmul.msk.f32.gmra.mxu3 %vm2340_vm6, %v4418_v29  ;;  %v3268_v4 = vsel %vm3030_vm7, %v3266_v14, %v3267_v23  ;;  %v3282_v45 = vrot.slane %v13146_v48, 2 }
 0x6a0   : > { %6505 = vst.msk [vmem:[%s9373_s21 + $0x5f0] sm:$0xff] %vm194_vm0, %v4935_v62 }
 0x6a2   : > { %3756 = vrot.lane.b32.xlu1 %v14756_v33, %s7244_s25 }
 0x6a3   : > { %3470 = vrot.lane.b32.xlu0 %v3263_v3, %s7243_s24  ;;  %v5967_v56 = vpop.f32.mrf.mxu3 }
 0x6a4   : > { %v5968_v9 = vadd.f32 %v12578_v20, %v5967_v56  ;;  %v3729_v50 = vpop.permute.xlu1 %3728  ;;  %4046 = vrot.lane.b32.xlu2 %v3268_v4, %s7245_s26 }
 0x6a5   : > { %v4323_v25 = vsel %vm2139_vm4, %v4227_v7, %v3729_v50  ;;  %v4937_v61 = vpop.f32.mrf.mxu1  ;;  %v3443_v18 = vpop.permute.xlu0 %3442  ;;  %v7197_v7 = vld [vmem:[#allocation2 + $0x4f0] sm:$0x3] }
 0x6a6   : > { %6897 = vst.msk [vmem:[%s9373_s21 + $0x7f0] sm:$0xff] %vm194_vm0, %v5968_v9  ;;  %v4938_v63 = vadd.f32 %v12578_v20, %v4937_v61  ;;  %6620 = vmatmul.msk.f32.gmra.mxu2 %vm2340_vm6, %v14757_v38  ;;  %v4419_v3 = vsel %vm2236_vm5, %v4323_v25, %v13027_v12  ;;  %v13118_v59 = vpop.permute.xlu2 %4024  ;;  %v4228_v20 = vsel %vm194_vm0, %v14737_v27, %v3443_v18  ;;  %v14758_v12 = vld [vmem:[#allocation161_spill] sm:$0xff]  ;;  %v3284_v56 = vrot.slane %v7197_v7, 2 }
 0x6a7   : > { %6422 = vmatmul.msk.f32.gmra.mxu1 %vm2340_vm6, %v4417_v21  ;;  %6814 = vmatmul.msk.f32.gmra.mxu3 %vm2340_vm6, %v4419_v3  ;;  %v3270_v21 = vsel %vm3030_vm7, %v3267_v23, %v3269_v13  ;;  %v14759_v27 = vld [vmem:[#allocation229_spill] sm:$0xff] }
 0x6a8   : > { %6506 = vst.msk [vmem:[%s9373_s21 + $0x5f8] sm:$0xff] %vm194_vm0, %v4938_v63  ;;  %v13171_v25 = vsel %vm3030_vm7, %v3282_v45, %v3284_v56  ;;  %v14762_v63 = vld [vmem:[#allocation182_spill] sm:$0xff] }
 0x6a9   : > { %v5455_v53 = vpop.f32.mrf.mxu2 }
 0x6aa   : > { %v5456_v44 = vadd.f32 %v13126_v60, %v5455_v53  ;;  %3758 = vrot.lane.b32.xlu1 %v14758_v12, %s7244_s25 }
 0x6ab   : > { %3472 = vrot.lane.b32.xlu0 %v3265_v35, %s7243_s24  ;;  %v3281_v35 = vrot.slane %v13143_v37, 2 }
 0x6ac   : > { %6701 = vst.msk [vmem:[%s9373_s21 + $0x6f0] sm:$0xff] %vm194_vm0, %v5456_v44  ;;  %v3731_v19 = vpop.permute.xlu1 %3730  ;;  %4048 = vrot.lane.b32.xlu2 %v3270_v21, %s7245_s26  ;;  %v13192_v44 = vld [vmem:[#allocation2 + $0x500] sm:$0xff] }
 0x6ad   : > { %v4324_v16 = vsel %vm2139_vm4, %v4228_v20, %v3731_v19  ;;  %v3445_v22 = vpop.permute.xlu0 %3444  ;;  %v3283_v36 = vsel %vm3030_vm7, %v3281_v35, %v3282_v45  ;;  %v664_v20 = vld [vmem:[#allocation2 + $0x4f8] sm:$0xff]  ;;  %v5153_v45 = vrot.slane %v13192_v44, 1 }
 0x6ae   : > { %6621 = vmatmul.msk.f32.gmra.mxu2 %vm2340_vm6, %v14759_v27  ;;  %v4420_v49 = vsel %vm2236_vm5, %v4324_v16, %v13052_v28  ;;  %v13141_v55 = vpop.permute.xlu2 %4026  ;;  %v4229_v62 = vsel %vm194_vm0, %v14738_v34, %v3445_v22  ;;  %v14760_v28 = vld [vmem:[#allocation157_spill] sm:$0xff]  ;;  %v14761_v34 = vld [vmem:[#allocation30_spill] sm:$0xff]  ;;  %v5152_v35 = vrot.slane %v664_v20, 1 }
 0x6af   : > { %6423 = vmatmul.msk.f32.gmra.mxu1 %vm2340_vm6, %v4418_v29  ;;  %6815 = vmatmul.msk.f32.gmra.mxu3 %vm2340_vm6, %v4420_v49  ;;  %v14764_v16 = vld [vmem:[#allocation181_spill] sm:$0xff] }
 0x6b0   : > { %v5154_v56 = vsel %vm812_vm1, %v5152_v35, %v5153_v45  ;;  %v14767_v35 = vld [vmem:[#allocation32_spill] sm:$0xff] }
 0x6b2   : > { %3760 = vrot.lane.b32.xlu1 %v14760_v28, %s7244_s25 }
 0x6b3   : > { %3474 = vrot.lane.b32.xlu0 %v3268_v4, %s7243_s24  ;;  %v5970_v52 = vpop.f32.mrf.mxu3 }
 0x6b4   : > { %v5971_v14 = vadd.f32 %v13126_v60, %v5970_v52  ;;  %v3733_v26 = vpop.permute.xlu1 %3732  ;;  %4050 = vrot.lane.b32.xlu2 %v3283_v36, %s7245_s26 }
 0x6b5   : > { %v4325_v29 = vsel %vm2139_vm4, %v4229_v62, %v3733_v26  ;;  %v3447_v23 = vpop.permute.xlu0 %3446  ;;  %v5665_v26 = vrot.slane %v13192_v44, 2 }
 0x6b6   : > { %6898 = vst.msk [vmem:[%s9373_s21 + $0x7f8] sm:$0xff] %vm194_vm0, %v5971_v14  ;;  %6622 = vmatmul.msk.f32.gmra.mxu2 %vm2340_vm6, %v14761_v34  ;;  %v4421_v4 = vsel %vm2236_vm5, %v4325_v29, %v13074_v1  ;;  %v13166_v9 = vpop.permute.xlu2 %4028  ;;  %v4230_v61 = vsel %vm194_vm0, %v14739_v31, %v3447_v23  ;;  %v5664_v14 = vrot.slane %v664_v20, 2  ;;  %v14765_v29 = vld [vmem:[#allocation219_spill] sm:$0xff] }
 0x6b7   : > { %6424 = vmatmul.msk.f32.gmra.mxu1 %vm2340_vm6, %v4419_v3  ;;  %6816 = vmatmul.msk.f32.gmra.mxu3 %vm2340_vm6, %v4421_v4 }
 0x6b9   : > { %v5458_v50 = vpop.f32.mrf.mxu2 }
 0x6ba   : > { %v5459_v18 = vadd.f32 %v13126_v60, %v5458_v50  ;;  %3762 = vrot.lane.b32.xlu1 %v14762_v63, %s7244_s25  ;;  %v5666_v50 = vsel %vm3030_vm7, %v5664_v14, %v5665_v26 }
 0x6bb   : > { %3476 = vrot.lane.b32.xlu0 %v3270_v21, %s7243_s24 }
 0x6bc   : > { %6702 = vst.msk [vmem:[%s9373_s21 + $0x6f8] sm:$0xff] %vm194_vm0, %v5459_v18  ;;  %v3735_v1 = vpop.permute.xlu1 %3734  ;;  %4052 = vrot.lane.b32.xlu2 %v13171_v25, %s7245_s26 }
 0x6bd   : > { %v4326_v38 = vsel %vm2139_vm4, %v4230_v61, %v3735_v1  ;;  %v3449_v3 = vpop.permute.xlu0 %3448 }
 0x6be   : > { %6623 = vmatmul.msk.f32.gmra.mxu2 %vm2340_vm6, %v14763_v54  ;;  %v4422_v31 = vsel %vm2236_vm5, %v4326_v38, %v13096_v46  ;;  %v13188_v13 = vpop.permute.xlu2 %4030  ;;  %v4231_v21 = vsel %vm194_vm0, %v14741_v5, %v3449_v3  ;;  %v14766_v38 = vld [vmem:[#allocation45_spill] sm:$0xff]  ;;  %v666_v54 = vld [vmem:[#allocation2 + $0x508] sm:$0x3] }
 0x6bf   : > { %6425 = vmatmul.msk.f32.gmra.mxu1 %vm2340_vm6, %v4420_v49  ;;  %6817 = vmatmul.msk.f32.gmra.mxu3 %vm2340_vm6, %v4422_v31 }
 0x6c1   : > { %v5461_v53 = vpop.f32.mrf.mxu2 }
 0x6c2   : > { %v5462_v19 = vadd.f32 %v13126_v60, %v5461_v53  ;;  %3764 = vrot.lane.b32.xlu1 %v14764_v16, %s7244_s25  ;;  %v5973_v46 = vpop.f32.mrf.mxu3 }
 0x6c3   : > { %v5974_v22 = vadd.f32 %v13126_v60, %v5973_v46  ;;  %5165 = vrot.lane.b32.xlu0 %v14762_v63, %s7243_s24  ;;  %v5155_v46 = vrot.slane %v666_v54, 1 }
 0x6c4   : > { %6703 = vst.msk [vmem:[%s9373_s21 + $0xa00] sm:$0xff] %vm194_vm0, %v5462_v19  ;;  %v3737_v27 = vpop.permute.xlu1 %3736  ;;  %v4940_v49 = vpop.f32.mrf.mxu1  ;;  %5183 = vrot.lane.b32.xlu2 %v664_v20, %s7244_s25 }
 0x6c5   : > { %6899 = vst.msk [vmem:[%s9373_s21 + $0xb00] sm:$0xff] %vm194_vm0, %v5974_v22  ;;  %v4327_v5 = vsel %vm2139_vm4, %v4231_v21, %v3737_v27  ;;  %v4941_v62 = vadd.f32 %v13126_v60, %v4940_v49  ;;  %v3451_v52 = vpop.permute.xlu0 %3450  ;;  %v5667_v49 = vrot.slane %v666_v54, 2 }
 0x6c6   : > { %6624 = vmatmul.msk.f32.gmra.mxu2 %vm2340_vm6, %v14765_v29  ;;  %v4423_v23 = vsel %vm2236_vm5, %v4327_v5, %v13118_v59  ;;  %v13215_v7 = vpop.permute.xlu2 %4032  ;;  %v4232_v61 = vsel %vm194_vm0, %v14742_v0, %v3451_v52 }
 0x6c7   : > { %6507 = vst.msk [vmem:[%s9373_s21 + $0x900] sm:$0xff] %vm194_vm0, %v4941_v62  ;;  %6426 = vmatmul.msk.f32.gmra.mxu1 %vm2340_vm6, %v4421_v4  ;;  %6818 = vmatmul.msk.f32.gmra.mxu3 %vm2340_vm6, %v4423_v23  ;;  %v5668_v14 = vsel %vm3030_vm7, %v5665_v26, %v5667_v49 }
 0x6c9   : > { %v5464_v34 = vpop.f32.mrf.mxu2 }
 0x6ca   : > { %v5465_v18 = vadd.f32 %v13126_v60, %v5464_v34  ;;  %5677 = vrot.lane.b32.xlu1 %v3283_v36, %s7243_s24 }
 0x6cb   : > { %5695 = vrot.lane.b32.xlu0 %v5154_v56, %s7244_s25 }
 0x6cc   : > { %6704 = vst.msk [vmem:[%s9373_s21 + $0xa08] sm:$0xff] %vm194_vm0, %v5465_v18  ;;  %v3739_v59 = vpop.permute.xlu1 %3738  ;;  %5713 = vrot.lane.b32.xlu2 %v5666_v50, %s7245_s26 }
 0x6cd   : > { %v4328_v4 = vsel %vm2139_vm4, %v4232_v61, %v3739_v59  ;;  %v3453_v1 = vpop.permute.xlu0 %3452 }
 0x6ce   : > { %6625 = vmatmul.msk.f32.gmra.mxu2 %vm2340_vm6, %v14766_v38  ;;  %v4424_v0 = vsel %vm2236_vm5, %v4328_v4, %v13141_v55  ;;  %v13236_v3 = vpop.permute.xlu2 %4034  ;;  %v4233_v53 = vsel %vm194_vm0, %v14744_v2, %v3453_v1 }
 0x6cf   : > { %6427 = vmatmul.msk.f32.gmra.mxu1 %vm2340_vm6, %v4422_v31  ;;  %6819 = vmatmul.msk.f32.gmra.mxu3 %vm2340_vm6, %v4424_v0 }
 0x6d1   : > { %v5467_v36 = vpop.f32.mrf.mxu2 }
 0x6d2   : > { %v5468_v20 = vadd.f32 %v13126_v60, %v5467_v36  ;;  %5201 = vrot.lane.b32.xlu1 %v5154_v56, %s7245_s26  ;;  %v5976_v21 = vpop.f32.mrf.mxu3 }
 0x6d3   : > { %v5977_v55 = vadd.f32 %v13126_v60, %v5976_v21  ;;  %5167 = vrot.lane.b32.xlu0 %v14764_v16, %s7243_s24 }
 0x6d4   : > { %6705 = vst.msk [vmem:[%s9373_s21 + $0xa10] sm:$0xff] %vm194_vm0, %v5468_v20  ;;  %v3741_v31 = vpop.permute.xlu1 %3740  ;;  %v4943_v19 = vpop.f32.mrf.mxu1  ;;  %5185 = vrot.lane.b32.xlu2 %v13192_v44, %s7244_s25  ;;  %v5156_v44 = vsel %vm812_vm1, %v5153_v45, %v5155_v46 }
 0x6d5   : > { %6900 = vst.msk [vmem:[%s9373_s21 + $0xb08] sm:$0xff] %vm194_vm0, %v5977_v55  ;;  %v4329_v2 = vsel %vm2139_vm4, %v4233_v53, %v3741_v31  ;;  %v4944_v22 = vadd.f32 %v13126_v60, %v4943_v19  ;;  %v3455_v27 = vpop.permute.xlu0 %3454 }
 0x6d6   : > { %6626 = vmatmul.msk.f32.gmra.mxu2 %vm2340_vm6, %v14767_v35  ;;  %v4425_v5 = vsel %vm2236_vm5, %v4329_v2, %v13166_v9  ;;  %v13259_v62 = vpop.permute.xlu2 %4036  ;;  %v4234_v29 = vsel %vm194_vm0, %v14745_v10, %v3455_v27 }
 0x6d7   : > { %6508 = vst.msk [vmem:[%s9373_s21 + $0x908] sm:$0xff] %vm194_vm0, %v4944_v22  ;;  %6428 = vmatmul.msk.f32.gmra.mxu1 %vm2340_vm6, %v4423_v23  ;;  %6820 = vmatmul.msk.f32.gmra.mxu3 %vm2340_vm6, %v4425_v5 }
 0x6d9   : > { %v5470_v52 = vpop.f32.mrf.mxu2 }
 0x6da   : > { %v5471_v56 = vadd.f32 %v13126_v60, %v5470_v52  ;;  %5679 = vrot.lane.b32.xlu1 %v13171_v25, %s7243_s24 }
 0x6db   : > { %5697 = vrot.lane.b32.xlu0 %v5156_v44, %s7244_s25 }
 0x6dc   : > { %6706 = vst.msk [vmem:[%s9373_s21 + $0xa18] sm:$0xff] %vm194_vm0, %v5471_v56  ;;  %v3743_v9 = vpop.permute.xlu1 %3742  ;;  %v4946_v23 = vpop.f32.mrf.mxu1  ;;  %5715 = vrot.lane.b32.xlu2 %v5668_v14, %s7245_s26 }
 0x6dd   : > { %v4330_v45 = vsel %vm2139_vm4, %v4234_v29, %v3743_v9  ;;  %v4947_v26 = vadd.f32 %v13126_v60, %v4946_v23  ;;  %v3457_v34 = vpop.permute.xlu0 %3456  ;;  %v14768_v29 = vld [vmem:[#allocation137_spill] sm:$0xff] }
 0x6de   : > { %6627 = vmatmul.msk.f32.gmra.mxu2 %vm2340_vm6, %v12084_v41  ;;  %v4426_v10 = vsel %vm2236_vm5, %v4330_v45, %v13188_v13  ;;  %v13282_v25 = vpop.permute.xlu2 %4038  ;;  %v4235_v61 = vsel %vm194_vm0, %v14746_v17, %v3457_v34 }
 0x6df   : > { %6509 = vst.msk [vmem:[%s9373_s21 + $0x910] sm:$0xff] %vm194_vm0, %v4947_v26  ;;  %6429 = vmatmul.msk.f32.gmra.mxu1 %vm2340_vm6, %v4424_v0  ;;  %6821 = vmatmul.msk.f32.gmra.mxu3 %vm2340_vm6, %v4426_v10 }
 0x6e1   : > { %v5473_v50 = vpop.f32.mrf.mxu2 }
 0x6e2   : > { %v5474_v18 = vadd.f32 %v13126_v60, %v5473_v50  ;;  %5203 = vrot.lane.b32.xlu1 %v5156_v44, %s7245_s26  ;;  %v5979_v41 = vpop.f32.mrf.mxu3 }
 0x6e3   : > { %v5980_v13 = vadd.f32 %v13126_v60, %v5979_v41 }
 0x6e4   : > { %6707 = vst.msk [vmem:[%s9373_s21 + $0xa20] sm:$0xff] %vm194_vm0, %v5474_v18  ;;  %v3745_v59 = vpop.permute.xlu1 %3744  ;;  %v4949_v4 = vpop.f32.mrf.mxu1 }
 0x6e5   : > { %6901 = vst.msk [vmem:[%s9373_s21 + $0xb10] sm:$0xff] %vm194_vm0, %v5980_v13  ;;  %v4331_v1 = vsel %vm2139_vm4, %v4235_v61, %v3745_v59  ;;  %v4950_v38 = vadd.f32 %v13126_v60, %v4949_v4  ;;  %v3459_v17 = vpop.permute.xlu0 %3458 }
 0x6e6   : > { %6628 = vmatmul.msk.f32.gmra.mxu2 %vm2340_vm6, %v12131_v58  ;;  %v4427_v0 = vsel %vm2236_vm5, %v4331_v1, %v13215_v7  ;;  %v13307_v36 = vpop.permute.xlu2 %4040  ;;  %v4236_v53 = vsel %vm194_vm0, %v14747_v57, %v3459_v17 }
 0x6e7   : > { %6510 = vst.msk [vmem:[%s9373_s21 + $0x918] sm:$0xff] %vm194_vm0, %v4950_v38  ;;  %6430 = vmatmul.msk.f32.gmra.mxu1 %vm2340_vm6, %v4425_v5  ;;  %6822 = vmatmul.msk.f32.gmra.mxu3 %vm2340_vm6, %v4427_v0 }
 0x6e9   : > { %v5476_v54 = vpop.f32.mrf.mxu2 }
 0x6ea   : > { %v5477_v20 = vadd.f32 %v13126_v60, %v5476_v54  ;;  %v5982_v21 = vpop.f32.mrf.mxu3 }
 0x6eb   : > { %v5983_v58 = vadd.f32 %v13126_v60, %v5982_v21 }
 0x6ec   : > { %6708 = vst.msk [vmem:[%s9373_s21 + $0xa28] sm:$0xff] %vm194_vm0, %v5477_v20  ;;  %v3747_v7 = vpop.permute.xlu1 %3746  ;;  %v4952_v55 = vpop.f32.mrf.mxu1 }
 0x6ed   : > { %6902 = vst.msk [vmem:[%s9373_s21 + $0xb18] sm:$0xff] %vm194_vm0, %v5983_v58  ;;  %v4332_v31 = vsel %vm2139_vm4, %v4236_v53, %v3747_v7  ;;  %v4953_v19 = vadd.f32 %v13126_v60, %v4952_v55  ;;  %v3461_v46 = vpop.permute.xlu0 %3460 }
 0x6ee   : > { %6629 = vmatmul.msk.f32.gmra.mxu2 %vm2340_vm6, %v12170_v43  ;;  %v4428_v57 = vsel %vm2236_vm5, %v4332_v31, %v13236_v3  ;;  %v13327_v22 = vpop.permute.xlu2 %4042  ;;  %v4237_v27 = vsel %vm194_vm0, %v14748_v39, %v3461_v46 }
 0x6ef   : > { %6511 = vst.msk [vmem:[%s9373_s21 + $0x920] sm:$0xff] %vm194_vm0, %v4953_v19  ;;  %6431 = vmatmul.msk.f32.gmra.mxu1 %vm2340_vm6, %v4426_v10  ;;  %6823 = vmatmul.msk.f32.gmra.mxu3 %vm2340_vm6, %v4428_v57 }
 0x6f1   : > { %v5479_v2 = vpop.f32.mrf.mxu2 }
 0x6f2   : > { %v5480_v49 = vadd.f32 %v13126_v60, %v5479_v2  ;;  %v5985_v35 = vpop.f32.mrf.mxu3 }
 0x6f3   : > { %v5986_v43 = vadd.f32 %v13126_v60, %v5985_v35 }
 0x6f4   : > { %6709 = vst.msk [vmem:[%s9373_s21 + $0xa30] sm:$0xff] %vm194_vm0, %v5480_v49  ;;  %v3749_v3 = vpop.permute.xlu1 %3748  ;;  %v4955_v5 = vpop.f32.mrf.mxu1 }
 0x6f5   : > { %6903 = vst.msk [vmem:[%s9373_s21 + $0xb20] sm:$0xff] %vm194_vm0, %v5986_v43  ;;  %v4333_v44 = vsel %vm2139_vm4, %v4237_v27, %v3749_v3  ;;  %v4956_v52 = vadd.f32 %v13126_v60, %v4955_v5  ;;  %v3463_v14 = vpop.permute.xlu0 %3462 }
 0x6f6   : > { %6630 = vmatmul.msk.f32.gmra.mxu2 %vm2340_vm6, %v14768_v29  ;;  %v4429_v39 = vsel %vm2236_vm5, %v4333_v44, %v13259_v62  ;;  %v4238_v9 = vsel %vm194_vm0, %v14749_v11, %v3463_v14  ;;  %v13351_v34 = vpop.permute.xlu2 %4044 }
 0x6f7   : > { %6512 = vst.msk [vmem:[%s9373_s21 + $0x928] sm:$0xff] %vm194_vm0, %v4956_v52  ;;  %6432 = vmatmul.msk.f32.gmra.mxu1 %vm2340_vm6, %v4427_v0  ;;  %6824 = vmatmul.msk.f32.gmra.mxu3 %vm2340_vm6, %v4429_v39 }
 0x6f9   : > { %v5482_v56 = vpop.f32.mrf.mxu2 }
 0x6fa   : > { %v5483_v23 = vadd.f32 %v13126_v60, %v5482_v56  ;;  %v5988_v45 = vpop.f32.mrf.mxu3 }
 0x6fb   : > { %v5989_v26 = vadd.f32 %v13126_v60, %v5988_v45 }
 0x6fc   : > { %6710 = vst.msk [vmem:[%s9373_s21 + $0xa38] sm:$0xff] %vm194_vm0, %v5483_v23  ;;  %v3751_v62 = vpop.permute.xlu1 %3750  ;;  %v4958_v10 = vpop.f32.mrf.mxu1 }
 0x6fd   : > { %6904 = vst.msk [vmem:[%s9373_s21 + $0xb28] sm:$0xff] %vm194_vm0, %v5989_v26  ;;  %v4334_v50 = vsel %vm2139_vm4, %v4238_v9, %v3751_v62  ;;  %v4959_v61 = vadd.f32 %v13126_v60, %v4958_v10  ;;  %v3465_v11 = vpop.permute.xlu0 %3464 }
 0x6fe   : > { %6631 = vmatmul.msk.f32.gmra.mxu2 %vm2340_vm6, %v12268_v15  ;;  %v4430_v18 = vsel %vm2236_vm5, %v4334_v50, %v13282_v25  ;;  %v4239_v13 = vsel %vm194_vm0, %v14750_v30, %v3465_v11  ;;  %v4047_v54 = vpop.permute.xlu2 %4046 }
 0x6ff   : > { %6513 = vst.msk [vmem:[%s9373_s21 + $0x930] sm:$0xff] %vm194_vm0, %v4959_v61  ;;  %6433 = vmatmul.msk.f32.gmra.mxu1 %vm2340_vm6, %v4428_v57  ;;  %6825 = vmatmul.msk.f32.gmra.mxu3 %vm2340_vm6, %v4430_v18 }
 0x701   : > { %v5485_v41 = vpop.f32.mrf.mxu2 }
 0x702   : > { %v5486_v59 = vadd.f32 %v13126_v60, %v5485_v41  ;;  %v5991_v4 = vpop.f32.mrf.mxu3 }
 0x703   : > { %v5992_v1 = vadd.f32 %v13126_v60, %v5991_v4 }
 0x704   : > { %6711 = vst.msk [vmem:[%s9373_s21 + $0xa40] sm:$0xff] %vm194_vm0, %v5486_v59  ;;  %v3753_v15 = vpop.permute.xlu1 %3752  ;;  %v4961_v25 = vpop.f32.mrf.mxu1 }
 0x705   : > { %6905 = vst.msk [vmem:[%s9373_s21 + $0xb30] sm:$0xff] %vm194_vm0, %v5992_v1  ;;  %v4335_v38 = vsel %vm2139_vm4, %v4239_v13, %v3753_v15  ;;  %v4962_v17 = vadd.f32 %v13126_v60, %v4961_v25  ;;  %v3467_v0 = vpop.permute.xlu0 %3466 }
 0x706   : > { %6632 = vmatmul.msk.f32.gmra.mxu2 %vm2340_vm6, %v12316_v47  ;;  %v4431_v30 = vsel %vm2236_vm5, %v4335_v38, %v13307_v36  ;;  %v4240_v20 = vsel %vm194_vm0, %v14751_v40, %v3467_v0  ;;  %v4049_v46 = vpop.permute.xlu2 %4048 }
 0x707   : > { %6514 = vst.msk [vmem:[%s9373_s21 + $0x938] sm:$0xff] %vm194_vm0, %v4962_v17  ;;  %6434 = vmatmul.msk.f32.gmra.mxu1 %vm2340_vm6, %v4429_v39  ;;  %6826 = vmatmul.msk.f32.gmra.mxu3 %vm2340_vm6, %v4431_v30 }
 0x709   : > { %v5488_v53 = vpop.f32.mrf.mxu2 }
 0x70a   : > { %v5489_v21 = vadd.f32 %v13126_v60, %v5488_v53  ;;  %v5994_v58 = vpop.f32.mrf.mxu3 }
 0x70b   : > { %v5995_v7 = vadd.f32 %v13126_v60, %v5994_v58 }
 0x70c   : > { %6712 = vst.msk [vmem:[%s9373_s21 + $0xa48] sm:$0xff] %vm194_vm0, %v5489_v21  ;;  %v3755_v47 = vpop.permute.xlu1 %3754  ;;  %v4964_v36 = vpop.f32.mrf.mxu1 }
 0x70d   : > { %6906 = vst.msk [vmem:[%s9373_s21 + $0xb38] sm:$0xff] %vm194_vm0, %v5995_v7  ;;  %v4336_v55 = vsel %vm2139_vm4, %v4240_v20, %v3755_v47  ;;  %v4965_v31 = vadd.f32 %v13126_v60, %v4964_v36  ;;  %v3469_v19 = vpop.permute.xlu0 %3468 }
 0x70e   : > { %6633 = vmatmul.msk.f32.gmra.mxu2 %vm2340_vm6, %v12364_v51  ;;  %v4432_v40 = vsel %vm2236_vm5, %v4336_v55, %v13327_v22  ;;  %v4241_v2 = vsel %vm194_vm0, %v14752_v32, %v3469_v19  ;;  %v4051_v52 = vpop.permute.xlu2 %4050 }
 0x70f   : > { %6515 = vst.msk [vmem:[%s9373_s21 + $0x940] sm:$0xff] %vm194_vm0, %v4965_v31  ;;  %6435 = vmatmul.msk.f32.gmra.mxu1 %vm2340_vm6, %v4430_v18  ;;  %6827 = vmatmul.msk.f32.gmra.mxu3 %vm2340_vm6, %v4432_v40 }
 0x711   : > { %v5491_v57 = vpop.f32.mrf.mxu2 }
 0x712   : > { %v5492_v27 = vadd.f32 %v13126_v60, %v5491_v57  ;;  %v5997_v49 = vpop.f32.mrf.mxu3 }
 0x713   : > { %v5998_v51 = vadd.f32 %v13126_v60, %v5997_v49 }
 0x714   : > { %6713 = vst.msk [vmem:[%s9373_s21 + $0xa50] sm:$0xff] %vm194_vm0, %v5492_v27  ;;  %v3757_v22 = vpop.permute.xlu1 %3756  ;;  %v4967_v35 = vpop.f32.mrf.mxu1 }
 0x715   : > { %6907 = vst.msk [vmem:[%s9373_s21 + $0xb40] sm:$0xff] %vm194_vm0, %v5998_v51  ;;  %v4337_v43 = vsel %vm2139_vm4, %v4241_v2, %v3757_v22  ;;  %v4968_v3 = vadd.f32 %v13126_v60, %v4967_v35  ;;  %v3471_v5 = vpop.permute.xlu0 %3470 }
 0x716   : > { %6634 = vmatmul.msk.f32.gmra.mxu2 %vm2340_vm6, %v12409_v8  ;;  %v4433_v32 = vsel %vm2236_vm5, %v4337_v43, %v13351_v34  ;;  %v4242_v14 = vsel %vm194_vm0, %v14754_v6, %v3471_v5  ;;  %v4053_v11 = vpop.permute.xlu2 %4052 }
 0x717   : > { %6516 = vst.msk [vmem:[%s9373_s21 + $0x948] sm:$0xff] %vm194_vm0, %v4968_v3  ;;  %6436 = vmatmul.msk.f32.gmra.mxu1 %vm2340_vm6, %v4431_v30  ;;  %6828 = vmatmul.msk.f32.gmra.mxu3 %vm2340_vm6, %v4433_v32 }
 0x719   : > { %v5494_v44 = vpop.f32.mrf.mxu2 }
 0x71a   : > { %v5495_v29 = vadd.f32 %v13126_v60, %v5494_v44  ;;  %v6000_v39 = vpop.f32.mrf.mxu3 }
 0x71b   : > { %v6001_v8 = vadd.f32 %v13126_v60, %v6000_v39 }
 0x71c   : > { %6714 = vst.msk [vmem:[%s9373_s21 + $0xa58] sm:$0xff] %vm194_vm0, %v5495_v29  ;;  %v3759_v56 = vpop.permute.xlu1 %3758  ;;  %v4970_v9 = vpop.f32.mrf.mxu1 }
 0x71d   : > { %6908 = vst.msk [vmem:[%s9373_s21 + $0xb48] sm:$0xff] %vm194_vm0, %v6001_v8  ;;  %v4338_v23 = vsel %vm2139_vm4, %v4242_v14, %v3759_v56  ;;  %v4971_v45 = vadd.f32 %v13126_v60, %v4970_v9  ;;  %v3473_v26 = vpop.permute.xlu0 %3472 }
 0x71e   : > { %6635 = vmatmul.msk.f32.gmra.mxu2 %vm2340_vm6, %v12455_v42  ;;  %v4434_v6 = vsel %vm2236_vm5, %v4338_v23, %v4047_v54  ;;  %v4243_v62 = vsel %vm194_vm0, %v14756_v33, %v3473_v26  ;;  %v5184_v53 = vpop.permute.xlu2 %5183 }
 0x71f   : > { %6517 = vst.msk [vmem:[%s9373_s21 + $0x950] sm:$0xff] %vm194_vm0, %v4971_v45  ;;  %6437 = vmatmul.msk.f32.gmra.mxu1 %vm2340_vm6, %v4432_v40  ;;  %6829 = vmatmul.msk.f32.gmra.mxu3 %vm2340_vm6, %v4434_v6 }
 0x721   : > { %v5497_v34 = vpop.f32.mrf.mxu2 }
 0x722   : > { %v5498_v10 = vadd.f32 %v13126_v60, %v5497_v34  ;;  %v6003_v50 = vpop.f32.mrf.mxu3 }
 0x723   : > { %v6004_v61 = vadd.f32 %v13126_v60, %v6003_v50 }
 0x724   : > { %6715 = vst.msk [vmem:[%s9373_s21 + $0xa60] sm:$0xff] %vm194_vm0, %v5498_v10  ;;  %v3761_v42 = vpop.permute.xlu1 %3760  ;;  %v4973_v18 = vpop.f32.mrf.mxu1 }
 0x725   : > { %6909 = vst.msk [vmem:[%s9373_s21 + $0xb50] sm:$0xff] %vm194_vm0, %v6004_v61  ;;  %v4339_v41 = vsel %vm2139_vm4, %v4243_v62, %v3761_v42  ;;  %v4974_v13 = vadd.f32 %v13126_v60, %v4973_v18  ;;  %v3475_v59 = vpop.permute.xlu0 %3474 }
 0x726   : > { %6636 = vmatmul.msk.f32.gmra.mxu2 %vm2340_vm6, %v12498_v24  ;;  %v4435_v33 = vsel %vm2236_vm5, %v4339_v41, %v4049_v46  ;;  %v4244_v1 = vsel %vm194_vm0, %v14758_v12, %v3475_v59  ;;  %v5714_v46 = vpop.permute.xlu2 %5713 }
 0x727   : > { %6518 = vst.msk [vmem:[%s9373_s21 + $0x958] sm:$0xff] %vm194_vm0, %v4974_v13  ;;  %6438 = vmatmul.msk.f32.gmra.mxu1 %vm2340_vm6, %v4433_v32  ;;  %6830 = vmatmul.msk.f32.gmra.mxu3 %vm2340_vm6, %v4435_v33 }
 0x729   : > { %v5500_v4 = vpop.f32.mrf.mxu2 }
 0x72a   : > { %v5501_v15 = vadd.f32 %v13126_v60, %v5500_v4  ;;  %v6006_v25 = vpop.f32.mrf.mxu3 }
 0x72b   : > { %v6007_v38 = vadd.f32 %v13126_v60, %v6006_v25 }
 0x72c   : > { %6716 = vst.msk [vmem:[%s9373_s21 + $0xa68] sm:$0xff] %vm194_vm0, %v5501_v15  ;;  %v3763_v24 = vpop.permute.xlu1 %3762  ;;  %v4976_v17 = vpop.f32.mrf.mxu1 }
 0x72d   : > { %6910 = vst.msk [vmem:[%s9373_s21 + $0xb58] sm:$0xff] %vm194_vm0, %v6007_v38  ;;  %v4340_v0 = vsel %vm2139_vm4, %v4244_v1, %v3763_v24  ;;  %v4977_v54 = vadd.f32 %v13126_v60, %v4976_v17  ;;  %v3477_v30 = vpop.permute.xlu0 %3476 }
 0x72e   : > { %v4436_v12 = vsel %vm2236_vm5, %v4340_v0, %v4051_v52  ;;  %v4245_v21 = vsel %vm194_vm0, %v14760_v28, %v3477_v30 }
 0x72f   : > { %6519 = vst.msk [vmem:[%s9373_s21 + $0x960] sm:$0xff] %vm194_vm0, %v4977_v54  ;;  %6439 = vmatmul.msk.f32.gmra.mxu1 %vm2340_vm6, %v4434_v6  ;;  %6831 = vmatmul.msk.f32.gmra.mxu3 %vm2340_vm6, %v4436_v12 }
 0x731   : > { %v5503_v20 = vpop.f32.mrf.mxu2 }
 0x732   : > { %v5504_v58 = vadd.f32 %v13126_v60, %v5503_v20  ;;  %v6009_v7 = vpop.f32.mrf.mxu3 }
 0x733   : > { %v6010_v47 = vadd.f32 %v13126_v60, %v6009_v7 }
 0x734   : > { %6717 = vst.msk [vmem:[%s9373_s21 + $0xa70] sm:$0xff] %vm194_vm0, %v5504_v58  ;;  %v3765_v36 = vpop.permute.xlu1 %3764  ;;  %v4979_v55 = vpop.f32.mrf.mxu1 }
 0x735   : > { %6911 = vst.msk [vmem:[%s9373_s21 + $0xb60] sm:$0xff] %vm194_vm0, %v6010_v47  ;;  %v4341_v31 = vsel %vm2139_vm4, %v4245_v21, %v3765_v36  ;;  %v4980_v19 = vadd.f32 %v13126_v60, %v4979_v55  ;;  %v5166_v40 = vpop.permute.xlu0 %5165 }
 0x736   : > { %v4437_v28 = vsel %vm2236_vm5, %v4341_v31, %v4053_v11  ;;  %v5215_v44 = vsel %vm194_vm0, %v13143_v37, %v5166_v40 }
 0x737   : > { %6520 = vst.msk [vmem:[%s9373_s21 + $0x968] sm:$0xff] %vm194_vm0, %v4980_v19  ;;  %6440 = vmatmul.msk.f32.gmra.mxu1 %vm2340_vm6, %v4435_v33  ;;  %6832 = vmatmul.msk.f32.gmra.mxu3 %vm2340_vm6, %v4437_v28  ;;  %v5221_v8 = vsel %vm2139_vm4, %v5215_v44, %v5184_v53 }
 0x739   : > { %v5506_v57 = vpop.f32.mrf.mxu2 }
 0x73a   : > { %v5507_v2 = vadd.f32 %v13126_v60, %v5506_v57  ;;  %v6012_v27 = vpop.f32.mrf.mxu3 }
 0x73b   : > { %v6013_v49 = vadd.f32 %v13126_v60, %v6012_v27 }
 0x73c   : > { %6718 = vst.msk [vmem:[%s9373_s21 + $0xa78] sm:$0xff] %vm194_vm0, %v5507_v2  ;;  %v5678_v51 = vpop.permute.xlu1 %5677  ;;  %v4982_v22 = vpop.f32.mrf.mxu1 }
 0x73d   : > { %6912 = vst.msk [vmem:[%s9373_s21 + $0xb68] sm:$0xff] %vm194_vm0, %v6013_v49  ;;  %v5727_v35 = vsel %vm194_vm0, %v14762_v63, %v5678_v51  ;;  %v4983_v43 = vadd.f32 %v13126_v60, %v4982_v22  ;;  %v5696_v3 = vpop.permute.xlu0 %5695  ;;  %v5186_v63 = vpop.permute.xlu2 %5185 }
 0x73e   : > { %v5733_v5 = vsel %vm2139_vm4, %v5727_v35, %v5696_v3 }
 0x73f   : > { %6521 = vst.msk [vmem:[%s9373_s21 + $0x970] sm:$0xff] %vm194_vm0, %v4983_v43  ;;  %v5739_v32 = vsel %vm2236_vm5, %v5733_v5, %v5714_v46  ;;  %6441 = vmatmul.msk.f32.gmra.mxu1 %vm2340_vm6, %v4436_v12 }
 0x740   : > { %6833 = vmatmul.msk.f32.gmra.mxu3 %vm2340_vm6, %v5739_v32 }
 0x741   : > { %v5509_v52 = vpop.f32.mrf.mxu2 }
 0x742   : > { %v5510_v14 = vadd.f32 %v13126_v60, %v5509_v52  ;;  %v6015_v29 = vpop.f32.mrf.mxu3 }
 0x743   : > { %v6016_v39 = vadd.f32 %v13126_v60, %v6015_v29 }
 0x744   : > { %6719 = vst.msk [vmem:[%s9373_s21 + $0xa80] sm:$0xff] %vm194_vm0, %v5510_v14  ;;  %v5202_v56 = vpop.permute.xlu1 %5201  ;;  %v4985_v9 = vpop.f32.mrf.mxu1 }
 0x745   : > { %6913 = vst.msk [vmem:[%s9373_s21 + $0xb70] sm:$0xff] %vm194_vm0, %v6016_v39  ;;  %v5227_v23 = vsel %vm2236_vm5, %v5221_v8, %v5202_v56  ;;  %v4986_v37 = vadd.f32 %v13126_v60, %v4985_v9  ;;  %v5168_v45 = vpop.permute.xlu0 %5167  ;;  %v5716_v10 = vpop.permute.xlu2 %5715 }
 0x746   : > { %6637 = vmatmul.msk.f32.gmra.mxu2 %vm2340_vm6, %v5227_v23  ;;  %v5216_v59 = vsel %vm194_vm0, %v13146_v48, %v5168_v45 }
 0x747   : > { %6522 = vst.msk [vmem:[%s9373_s21 + $0x978] sm:$0xff] %vm194_vm0, %v4986_v37  ;;  %6442 = vmatmul.msk.f32.gmra.mxu1 %vm2340_vm6, %v4437_v28  ;;  %v5222_v15 = vsel %vm2139_vm4, %v5216_v59, %v5186_v63 }
 0x749   : > { %v5512_v26 = vpop.f32.mrf.mxu2 }
 0x74a   : > { %v5513_v6 = vadd.f32 %v13126_v60, %v5512_v26  ;;  %v6018_v34 = vpop.f32.mrf.mxu3 }
 0x74b   : > { %v6019_v62 = vadd.f32 %v13126_v60, %v6018_v34 }
 0x74c   : > { %6720 = vst.msk [vmem:[%s9373_s21 + $0xa88] sm:$0xff] %vm194_vm0, %v5513_v6  ;;  %v5680_v50 = vpop.permute.xlu1 %5679  ;;  %v4988_v61 = vpop.f32.mrf.mxu1 }
 0x74d   : > { %6914 = vst.msk [vmem:[%s9373_s21 + $0xb78] sm:$0xff] %vm194_vm0, %v6019_v62  ;;  %v5728_v11 = vsel %vm194_vm0, %v14764_v16, %v5680_v50  ;;  %v4989_v42 = vadd.f32 %v13126_v60, %v4988_v61  ;;  %v5698_v18 = vpop.permute.xlu0 %5697 }
 0x74e   : > { %v5734_v41 = vsel %vm2139_vm4, %v5728_v11, %v5698_v18 }
 0x74f   : > { %6523 = vst.msk [vmem:[%s9373_s21 + $0x980] sm:$0xff] %vm194_vm0, %v4989_v42  ;;  %v5740_v13 = vsel %vm2236_vm5, %v5734_v41, %v5716_v10 }
 0x750   : > { %6834 = vmatmul.msk.f32.gmra.mxu3 %vm2340_vm6, %v5740_v13 }
 0x751   : > { %v5515_v33 = vpop.f32.mrf.mxu2 }
 0x752   : > { %v5516_v4 = vadd.f32 %v13126_v60, %v5515_v33  ;;  %v6021_v16 = vpop.f32.mrf.mxu3 }
 0x753   : > { %v6022_v1 = vadd.f32 %v13126_v60, %v6021_v16 }
 0x754   : > { %6721 = vst.msk [vmem:[%s9373_s21 + $0xa90] sm:$0xff] %vm194_vm0, %v5516_v4  ;;  %v5204_v25 = vpop.permute.xlu1 %5203  ;;  %v4991_v38 = vpop.f32.mrf.mxu1 }
 0x755   : > { %6915 = vst.msk [vmem:[%s9373_s21 + $0xb80] sm:$0xff] %vm194_vm0, %v6022_v1  ;;  %v5228_v24 = vsel %vm2236_vm5, %v5222_v15, %v5204_v25  ;;  %v4992_v48 = vadd.f32 %v13126_v60, %v4991_v38 }
 0x756   : > { %6638 = vmatmul.msk.f32.gmra.mxu2 %vm2340_vm6, %v5228_v24 }
 0x757   : > { %6524 = vst.msk [vmem:[%s9373_s21 + $0x988] sm:$0xff] %vm194_vm0, %v4992_v48 }
 0x759   : > { %v5518_v17 = vpop.f32.mrf.mxu2 }
 0x75a   : > { %v5519_v0 = vadd.f32 %v13126_v60, %v5518_v17  ;;  %v6024_v54 = vpop.f32.mrf.mxu3 }
 0x75b   : > { %v6025_v30 = vadd.f32 %v13126_v60, %v6024_v54 }
 0x75c   : > { %6722 = vst.msk [vmem:[%s9373_s21 + $0xa98] sm:$0xff] %vm194_vm0, %v5519_v0  ;;  %v4994_v53 = vpop.f32.mrf.mxu1 }
 0x75d   : > { %6916 = vst.msk [vmem:[%s9373_s21 + $0xb88] sm:$0xff] %vm194_vm0, %v6025_v30  ;;  %v4995_v12 = vadd.f32 %v13126_v60, %v4994_v53 }
 0x75f   : > { %6525 = vst.msk [vmem:[%s9373_s21 + $0x990] sm:$0xff] %vm194_vm0, %v4995_v12 }
 0x761   : > { %v5521_v20 = vpop.f32.mrf.mxu2 }
 0x762   : > { %v5522_v21 = vadd.f32 %v13126_v60, %v5521_v20  ;;  %v6027_v58 = vpop.f32.mrf.mxu3 }
 0x763   : > { %v6028_v7 = vadd.f32 %v13126_v60, %v6027_v58 }
 0x764   : > { %6723 = vst.msk [vmem:[%s9373_s21 + $0xaa0] sm:$0xff] %vm194_vm0, %v5522_v21  ;;  %v4997_v47 = vpop.f32.mrf.mxu1 }
 0x765   : > { %6917 = vst.msk [vmem:[%s9373_s21 + $0xb90] sm:$0xff] %vm194_vm0, %v6028_v7  ;;  %v4998_v36 = vadd.f32 %v13126_v60, %v4997_v47 }
 0x767   : > { %6526 = vst.msk [vmem:[%s9373_s21 + $0x998] sm:$0xff] %vm194_vm0, %v4998_v36 }
 0x769   : > { %v5524_v55 = vpop.f32.mrf.mxu2 }
 0x76a   : > { %v5525_v31 = vadd.f32 %v13126_v60, %v5524_v55  ;;  %v6030_v19 = vpop.f32.mrf.mxu3 }
 0x76b   : > { %v6031_v40 = vadd.f32 %v13126_v60, %v6030_v19 }
 0x76c   : > { %6724 = vst.msk [vmem:[%s9373_s21 + $0xaa8] sm:$0xff] %vm194_vm0, %v5525_v31  ;;  %v5000_v28 = vpop.f32.mrf.mxu1 }
 0x76d   : > { %6918 = vst.msk [vmem:[%s9373_s21 + $0xb98] sm:$0xff] %vm194_vm0, %v6031_v40  ;;  %v5001_v46 = vadd.f32 %v13126_v60, %v5000_v28  ;;  %v7198_v28 = vld [vmem:[#allocation3] ss:$0 sm:$0xff] }
 0x76f   : > { %6527 = vst.msk [vmem:[%s9373_s21 + $0x9a0] sm:$0xff] %vm194_vm0, %v5001_v46 }
 0x771   : > { %v5527_v57 = vpop.f32.mrf.mxu2 }
 0x772   : > { %v5528_v2 = vadd.f32 %v13126_v60, %v5527_v57  ;;  %v6033_v27 = vpop.f32.mrf.mxu3 }
 0x773   : > { %v6034_v49 = vadd.f32 %v13126_v60, %v6033_v27 }
 0x774   : > { %6725 = vst.msk [vmem:[%s9373_s21 + $0xab0] sm:$0xff] %vm194_vm0, %v5528_v2  ;;  %v5003_v51 = vpop.f32.mrf.mxu1 }
 0x775   : > { %6919 = vst.msk [vmem:[%s9373_s21 + $0xba0] sm:$0xff] %vm194_vm0, %v6034_v49  ;;  %v5004_v22 = vadd.f32 %v13126_v60, %v5003_v51 }
 0x777   : > { %6528 = vst.msk [vmem:[%s9373_s21 + $0x9a8] sm:$0xff] %vm194_vm0, %v5004_v22 }
 0x779   : > { %v5530_v35 = vpop.f32.mrf.mxu2 }
 0x77a   : > { %v5531_v43 = vadd.f32 %v13126_v60, %v5530_v35  ;;  %v6036_v3 = vpop.f32.mrf.mxu3 }
 0x77b   : > { %v6037_v5 = vadd.f32 %v13126_v60, %v6036_v3 }
 0x77c   : > { %6726 = vst.msk [vmem:[%s9373_s21 + $0xab8] sm:$0xff] %vm194_vm0, %v5531_v43  ;;  %v5006_v32 = vpop.f32.mrf.mxu1 }
 0x77d   : > { %6920 = vst.msk [vmem:[%s9373_s21 + $0xba8] sm:$0xff] %vm194_vm0, %v6037_v5  ;;  %v5007_v44 = vadd.f32 %v13126_v60, %v5006_v32 }
 0x77f   : > { %6529 = vst.msk [vmem:[%s9373_s21 + $0x9b0] sm:$0xff] %vm194_vm0, %v5007_v44 }
 0x781   : > { %v5533_v52 = vpop.f32.mrf.mxu2 }
 0x782   : > { %v5534_v63 = vadd.f32 %v13126_v60, %v5533_v52  ;;  %v6039_v14 = vpop.f32.mrf.mxu3 }
 0x783   : > { %v6040_v29 = vadd.f32 %v13126_v60, %v6039_v14 }
 0x784   : > { %6727 = vst.msk [vmem:[%s9373_s21 + $0xac0] sm:$0xff] %vm194_vm0, %v5534_v63  ;;  %v5009_v39 = vpop.f32.mrf.mxu1 }
 0x785   : > { %6921 = vst.msk [vmem:[%s9373_s21 + $0xbb0] sm:$0xff] %vm194_vm0, %v6040_v29  ;;  %v5010_v8 = vadd.f32 %v13126_v60, %v5009_v39 }
 0x787   : > { %6530 = vst.msk [vmem:[%s9373_s21 + $0x9b8] sm:$0xff] %vm194_vm0, %v5010_v8 }
 0x789   : > { %v5536_v56 = vpop.f32.mrf.mxu2 }
 0x78a   : > { %v5537_v9 = vadd.f32 %v13126_v60, %v5536_v56  ;;  %v6042_v23 = vpop.f32.mrf.mxu3 }
 0x78b   : > { %v6043_v37 = vadd.f32 %v13126_v60, %v6042_v23 }
 0x78c   : > { %6728 = vst.msk [vmem:[%s9373_s21 + $0xac8] sm:$0xff] %vm194_vm0, %v5537_v9  ;;  %v5012_v45 = vpop.f32.mrf.mxu1 }
 0x78d   : > { %6922 = vst.msk [vmem:[%s9373_s21 + $0xbb8] sm:$0xff] %vm194_vm0, %v6043_v37  ;;  %v5013_v26 = vadd.f32 %v13126_v60, %v5012_v45 }
 0x78f   : > { %6531 = vst.msk [vmem:[%s9373_s21 + $0x9c0] sm:$0xff] %vm194_vm0, %v5013_v26 }
 0x791   : > { %v5539_v6 = vpop.f32.mrf.mxu2 }
 0x792   : > { %v5540_v34 = vadd.f32 %v13126_v60, %v5539_v6  ;;  %v6045_v62 = vpop.f32.mrf.mxu3 }
 0x793   : > { %v6046_v10 = vadd.f32 %v13126_v60, %v6045_v62 }
 0x794   : > { %6729 = vst.msk [vmem:[%s9373_s21 + $0xad0] sm:$0xff] %vm194_vm0, %v5540_v34  ;;  %v5015_v50 = vpop.f32.mrf.mxu1 }
 0x795   : > { %6923 = vst.msk [vmem:[%s9373_s21 + $0xbc0] sm:$0xff] %vm194_vm0, %v6046_v10  ;;  %v5016_v61 = vadd.f32 %v13126_v60, %v5015_v50 }
 0x797   : > { %6532 = vst.msk [vmem:[%s9373_s21 + $0x9c8] sm:$0xff] %vm194_vm0, %v5016_v61 }
 0x799   : > { %v5542_v11 = vpop.f32.mrf.mxu2 }
 0x79a   : > { %v5543_v42 = vadd.f32 %v13126_v60, %v5542_v11  ;;  %v6048_v18 = vpop.f32.mrf.mxu3 }
 0x79b   : > { %v6049_v41 = vadd.f32 %v13126_v60, %v6048_v18 }
 0x79c   : > { %6730 = vst.msk [vmem:[%s9373_s21 + $0xad8] sm:$0xff] %vm194_vm0, %v5543_v42  ;;  %v5018_v13 = vpop.f32.mrf.mxu1 }
 0x79d   : > { %6924 = vst.msk [vmem:[%s9373_s21 + $0xbc8] sm:$0xff] %vm194_vm0, %v6049_v41  ;;  %v5019_v59 = vadd.f32 %v13126_v60, %v5018_v13 }
 0x79f   : > { %6533 = vst.msk [vmem:[%s9373_s21 + $0x9d0] sm:$0xff] %vm194_vm0, %v5019_v59 }
 0x7a1   : > { %v5545_v33 = vpop.f32.mrf.mxu2 }
 0x7a2   : > { %v5546_v4 = vadd.f32 %v13126_v60, %v5545_v33  ;;  %v6051_v16 = vpop.f32.mrf.mxu3 }
 0x7a3   : > { %v6052_v1 = vadd.f32 %v13126_v60, %v6051_v16 }
 0x7a4   : > { %6731 = vst.msk [vmem:[%s9373_s21 + $0xae0] sm:$0xff] %vm194_vm0, %v5546_v4  ;;  %v5021_v15 = vpop.f32.mrf.mxu1 }
 0x7a5   : > { %6925 = vst.msk [vmem:[%s9373_s21 + $0xbd0] sm:$0xff] %vm194_vm0, %v6052_v1  ;;  %v5022_v25 = vadd.f32 %v13126_v60, %v5021_v15 }
 0x7a7   : > { %6534 = vst.msk [vmem:[%s9373_s21 + $0x9d8] sm:$0xff] %vm194_vm0, %v5022_v25 }
 0x7a9   : > { %v5548_v38 = vpop.f32.mrf.mxu2 }
 0x7aa   : > { %v5549_v24 = vadd.f32 %v13126_v60, %v5548_v38  ;;  %v6054_v48 = vpop.f32.mrf.mxu3 }
 0x7ab   : > { %v6055_v17 = vadd.f32 %v13126_v60, %v6054_v48 }
 0x7ac   : > { %6732 = vst.msk [vmem:[%s9373_s21 + $0xae8] sm:$0xff] %vm194_vm0, %v5549_v24  ;;  %v5024_v0 = vpop.f32.mrf.mxu1 }
 0x7ad   : > { %6926 = vst.msk [vmem:[%s9373_s21 + $0xbd8] sm:$0xff] %vm194_vm0, %v6055_v17  ;;  %v5025_v54 = vadd.f32 %v13126_v60, %v5024_v0 }
 0x7af   : > { %6535 = vst.msk [vmem:[%s9373_s21 + $0x9e0] sm:$0xff] %vm194_vm0, %v5025_v54 }
 0x7b2   : > { %v6057_v30 = vpop.f32.mrf.mxu3 }
 0x7b3   : > { %v6058_v53 = vadd.f32 %v13126_v60, %v6057_v30 }
 0x7b4   : > { %v5027_v12 = vpop.f32.mrf.mxu1 }
 0x7b5   : > { %6927 = vst.msk [vmem:[%s9373_s21 + $0xbe0] sm:$0xff] %vm194_vm0, %v6058_v53  ;;  %v5028_v20 = vadd.f32 %v13126_v60, %v5027_v12 }
 0x7b7   : > { %6536 = vst.msk [vmem:[%s9373_s21 + $0x9e8] sm:$0xff] %vm194_vm0, %v5028_v20 }
 0x7ba   : > { %v6060_v21 = vpop.f32.mrf.mxu3 }
 0x7bb   : > { %v6061_v58 = vadd.f32 %v13126_v60, %v6060_v21 }
 0x7bc   : > { %v5030_v7 = vpop.f32.mrf.mxu1 }
 0x7bd   : > { %6928 = vst.msk [vmem:[%s9373_s21 + $0xbe8] sm:$0xff] %vm194_vm0, %v6061_v58  ;;  %v5031_v47 = vadd.f32 %v13126_v60, %v5030_v7 }
 0x7bf   : > { %6537 = vst.msk [vmem:[%s9373_s21 + $0x9f0] sm:$0xff] %vm194_vm0, %v5031_v47 }
 0x7c3   : > { %v6063_v36 = vpop.f32.mrf.mxu3 }
 0x7c4   : > { %v6064_v55 = vadd.f32 %v13126_v60, %v6063_v36  ;;  %v5033_v31 = vpop.f32.mrf.mxu1 }
 0x7c5   : > { %v5034_v19 = vadd.f32 %v13126_v60, %v5033_v31 }
 0x7c6   : > { %6929 = vst.msk [vmem:[%s9373_s21 + $0xbf0] sm:$0xff] %vm194_vm0, %v6064_v55 }
 0x7c7   : > { %6538 = vst.msk [vmem:[%s9373_s21 + $0x9f8] sm:$0xff] %vm194_vm0, %v5034_v19 }
 0x7c9   : > { %v5551_v40 = vpop.f32.mrf.mxu2 }
 0x7ca   : > { %v5552_v46 = vadd.f32 %v7198_v28, %v5551_v40 }
 0x7cc   : > { %6733 = vst.msk [vmem:[%s9373_s21 + $0xaf0] sm:$0xff] %vm194_vm0, %v5552_v46 }
 0x7d3   : > { %v6066_v57 = vpop.f32.mrf.mxu3 }
 0x7d4   : > { %v6067_v2 = vadd.f32 %v7198_v28, %v6066_v57 }
 0x7d6   : > { %6930 = vst.msk [vmem:[%s9373_s21 + $0xbf8] sm:$0xff] %vm194_vm0, %v6067_v2 }
 0x7d9   : > { %v5554_v27 = vpop.f32.mrf.mxu2 }
 0x7da   : > { %v5555_v49 = vadd.f32 %v7198_v28, %v5554_v27 }
 0x7dc   : > { %6734 = vst.msk [vmem:[%s9373_s21 + $0xaf8] sm:$0xff] %vm194_vm0, %v5555_v49 }
 0x7dd PF: > { %s14_s12 = sadd.s32 1, %s7239_s12  }
 0x7de   : > { %p11_p7 = scmp.ge.s32.totalorder %s14_s12, 4  }
 0x7e0   :  { %13 = sbr.rel (!%p11_p7) target bundleno = 1 (0x1), region = 75 }
 0x7e5   :  { %6190 = vsyncpa [#allocation4], 1 }
 0x7e6   :  { %6192 = vsyncpa [#allocation4 + $0x1], 1 }

</bundles_post_ra>
